<compile_context>
chip_gen: v6e
topology: v6e:2x2x1
jax: 0.10.0
libtpu: 0.0.40
codegen_flags: <defaults>
</compile_context>

<pallas_src>
import jax
import jax.numpy as jnp
from jax.experimental import pallas as pl
from jax.experimental.pallas import tpu as pltpu


def _round_up(x, m):
    return ((x + m - 1) // m) * m


# --------------------------------------------------------------------------- kernel
def mlp_kernel(x_ref, w1_ref, b1_ref, w2_ref, b2_ref, w3_ref, b3_ref, o_ref):
    # x arrives in its native (f32) dtype; cast to bf16 in-kernel so there is no
    # separate XLA cast pass over the whole batch (the VPU cast hides under fc1).
    x = x_ref[...].astype(jnp.bfloat16)                               # (TB, 3072)

    # fc1 + ReLU (bf16 MXU operands, f32 accumulate / elementwise)
    h1 = jnp.dot(x, w1_ref[...], preferred_element_type=jnp.float32) + b1_ref[...]
    h1 = jnp.maximum(h1, 0.0)                                         # (TB, 512) f32

    # fc2 + ReLU
    h2 = jnp.dot(h1.astype(jnp.bfloat16), w2_ref[...],
                 preferred_element_type=jnp.float32) + b2_ref[...]
    h2 = jnp.maximum(h2, 0.0)                                         # (TB, 128) f32

    # fc3 (class dim padded to a lane-dense multiple of 128) + softmax over classes
    logits = jnp.dot(h2.astype(jnp.bfloat16), w3_ref[...],
                     preferred_element_type=jnp.float32) + b3_ref[...]
    m = jnp.max(logits, axis=-1, keepdims=True)
    e = jnp.exp(logits - m)                                           # padded cols -> 0
    probs = e * pl.reciprocal(jnp.sum(e, axis=-1, keepdims=True), approx=True)
    o_ref[...] = probs.astype(o_ref.dtype)                            # (TB, NP)


# ------------------------------------------------------------------- one-time packing
def pack_params(params):
    """One-time parameter packing: bf16 casts + lane-dense class padding.

    Hoisted out of the per-call path so every forward call passes pre-cast,
    pre-padded arrays (no repeated XLA cast/pad ops before the kernel).
    """
    w1, b1, w2, b2, w3, b3 = params
    num_class = w3.shape[1]
    NP = max(128, _round_up(num_class, 128))
    w3p = jnp.pad(w3, ((0, 0), (0, NP - num_class)))
    # Padded classes get bias -1e30; kept in f32 so exp() underflows to exactly 0.
    b3p = jnp.pad(b3, ((0, 0), (0, NP - num_class)), constant_values=-1e30)
    return dict(
        w1=w1.astype(jnp.bfloat16), b1=b1.astype(jnp.float32),
        w2=w2.astype(jnp.bfloat16), b2=b2.astype(jnp.float32),
        w3=w3p.astype(jnp.bfloat16), b3=b3p.astype(jnp.float32),
        num_class=num_class, padded_class=NP,
    )


# ----------------------------------------------------------------- tiling / VMEM picks
def _vmem_limit_bytes():
    """Generation-aware VMEM budget (~3/4 of physical, capped at 100 MiB)."""
    try:
        cap = pltpu.get_tpu_info().vmem_capacity_bytes   # 128 MiB v5e/v6e, 64 MiB v7x
    except Exception:
        cap = 64 << 20                                   # assume the smallest (v7x)
    return int(min((cap * 3) // 4, 100 << 20))


def _choose_tb(B, tb, vmem_limit):
    """Pick the batch tile: multiple of 8 (f32 sublane), prefer multiples of 128,
    fit the VMEM budget, and keep >= 2 grid steps when the batch allows it."""
    TB = min(_round_up(tb, 128), _round_up(B, 8))

    def vmem_use(t):
        x_bufs = 2 * t * 3072 * 4          # double-buffered f32 x tiles
        o_bufs = 2 * t * 128 * 4           # double-buffered f32 out tiles
        interm = t * (512 + 2 * 128) * 4   # h1 / h2 / logits f32 live values
        weights = 4 << 20                  # resident bf16 weights + f32 biases
        return x_bufs + o_bufs + interm + weights

    while TB > 128 and vmem_use(TB) > vmem_limit - (8 << 20):
        TB //= 2
    Bp = _round_up(B, TB)
    # >= 2 grid steps so the "parallel" batch axis can feed both v7x TensorCores.
    while Bp // TB < 2 and TB > 256:
        TB //= 2
        Bp = _round_up(B, TB)
    return TB, Bp


def _mlp_call(TB, Bp, NP, vmem_limit, out_dtype, weight_buffers):
    if weight_buffers == 1:
        # Grid-invariant operands (constant block index): single-buffer to save VMEM.
        resident = lambda shape: pl.BlockSpec(shape, lambda i: (0, 0),
                                              pipeline_mode=pl.Buffered(1))
    else:
        resident = lambda shape: pl.BlockSpec(shape, lambda i: (0, 0))

    return pl.pallas_call(
        mlp_kernel,
        out_shape=jax.ShapeDtypeStruct((Bp, NP), out_dtype),
        grid_spec=pltpu.PrefetchScalarGridSpec(
            num_scalar_prefetch=0,
            grid=(Bp // TB,),
            in_specs=[
                pl.BlockSpec((TB, 3072), lambda i: (i, 0)),   # x: tiled over batch
                resident((3072, 512)),                        # w1 (bf16)
                resident((1, 512)),                           # b1 (f32)
                resident((512, 128)),                         # w2 (bf16)
                resident((1, 128)),                           # b2 (f32)
                resident((128, NP)),                          # w3 (bf16, class-padded)
                resident((1, NP)),                            # b3 (f32, class-padded)
            ],
            out_specs=pl.BlockSpec((TB, NP), lambda i: (i, 0)),
        ),
        compiler_params=pltpu.CompilerParams(
            dimension_semantics=("parallel",),   # shard batch tiles across TCs (v7x)
            vmem_limit_bytes=vmem_limit,         # generation-dependent budget
        ),
    )


# ----------------------------------------------------------------------------- forward
def mlp_forward(x_nchw, packed, tb=512, out_dtype=jnp.float32):
    w1, b1 = packed["w1"], packed["b1"]
    w2, b2 = packed["w2"], packed["b2"]
    w3, b3 = packed["w3"], packed["b3"]
    num_class, NP = packed["num_class"], packed["padded_class"]

    B = x_nchw.shape[0]
    x = x_nchw.reshape(B, 32 * 32 * 3)        # same flatten order as torch .view(-1, 3072)

    vmem_limit = _vmem_limit_bytes()
    TB, Bp = _choose_tb(B, tb, vmem_limit)
    if Bp != B:
        x = jnp.pad(x, ((0, Bp - B), (0, 0)))

    args = (x, w1, b1, w2, b2, w3, b3)
    try:
        out = _mlp_call(TB, Bp, NP, vmem_limit, out_dtype, weight_buffers=1)(*args)
    except Exception:
        # Fallback if this JAX build rejects pipeline_mode=pl.Buffered(1).
        out = _mlp_call(TB, Bp, NP, vmem_limit, out_dtype, weight_buffers=2)(*args)

    # Padded classes have probability exactly 0, so real classes still sum to 1.
    return out[:B, :num_class]


# ------------------------------------------------------------------------------- init
def init_params(key, num_class):
    # Deterministic init mimicking torch.nn.Linear default (uniform +- 1/sqrt(fan_in)).
    def linear(k, fan_in, fan_out):
        kw, kb = jax.random.split(k)
        bound = 1.0 / jnp.sqrt(fan_in)
        w = jax.random.uniform(kw, (fan_in, fan_out), jnp.float32, -bound, bound)
        b = jax.random.uniform(kb, (1, fan_out), jnp.float32, -bound, bound)
        return w, b

    k1, k2, k3 = jax.random.split(key, 3)
    w1, b1 = linear(k1, 3072, 512)
    w2, b2 = linear(k2, 512, 128)
    w3, b3 = linear(k3, 128, num_class)
    return (w1, b1, w2, b2, w3, b3)


if __name__ == "__main__":
    num_class = 10
    key = jax.random.PRNGKey(0)
    k_x, k_p = jax.random.split(key)

    # Small CIFAR-like input: (batch=2, channels=3, H=32, W=32), NCHW like PyTorch.
    x = jax.random.normal(k_x, (2, 3, 32, 32), jnp.float32)
    params = init_params(k_p, num_class)
    packed = pack_params(params)            # one-time weight packing (bf16 + padding)

    out = mlp_forward(x, packed)
    out = jax.block_until_ready(out)

    # sanity: reference in plain JAX (f32); kernel uses bf16 MXU operands + approx
    # reciprocal, so compare with a correspondingly relaxed tolerance.
    w1, b1, w2, b2, w3, b3 = params
    xr = x.reshape(2, 3072)
    h = jnp.maximum(xr @ w1 + b1, 0.0)
    h = jnp.maximum(h @ w2 + b2, 0.0)
    ref = jax.nn.softmax(h @ w3 + b3, axis=1)

    assert out.shape == (2, num_class)
    assert bool(jnp.all(jnp.isfinite(out))), "non-finite output"
    assert jnp.allclose(jnp.sum(out, axis=1), 1.0, atol=1e-2), "rows do not sum to 1"
    assert jnp.allclose(out, ref, atol=3e-2), "mismatch vs reference"

    print("KERNEL_OK")
</pallas_src>

<mosaic_0001>
module attributes {stable_mosaic.version = 11 : i64} {
  func.func @mlp_kernel(%arg0: i32, %arg1: memref<8x3072xf32, #tpu.memory_space<vmem>>, %arg2: memref<3072x512xbf16, #tpu.memory_space<vmem>>, %arg3: memref<1x512xf32, #tpu.memory_space<vmem>>, %arg4: memref<512x128xbf16, #tpu.memory_space<vmem>>, %arg5: memref<1x128xf32, #tpu.memory_space<vmem>>, %arg6: memref<128x128xbf16, #tpu.memory_space<vmem>>, %arg7: memref<1x128xf32, #tpu.memory_space<vmem>>, %arg8: memref<8x128xf32, #tpu.memory_space<vmem>>) attributes {dimension_semantics = [#tpu.dimension_semantics<parallel>], iteration_bounds = array<i64: 1>, scalar_prefetch = 0 : i64, scratch_operands = 0 : i64, tpu.core_type = #tpu.core_type<tc>, window_params = [{transform_indices = @transform_0, window_bounds = array<i64: 8, 3072>}, {pipeline_mode = #tpu.pipeline_mode<synchronous>, transform_indices = @transform_1, window_bounds = array<i64: 3072, 512>}, {pipeline_mode = #tpu.pipeline_mode<synchronous>, transform_indices = @transform_2, window_bounds = array<i64: 1, 512>}, {pipeline_mode = #tpu.pipeline_mode<synchronous>, transform_indices = @transform_3, window_bounds = array<i64: 512, 128>}, {pipeline_mode = #tpu.pipeline_mode<synchronous>, transform_indices = @transform_4, window_bounds = array<i64: 1, 128>}, {pipeline_mode = #tpu.pipeline_mode<synchronous>, transform_indices = @transform_5, window_bounds = array<i64: 128, 128>}, {pipeline_mode = #tpu.pipeline_mode<synchronous>, transform_indices = @transform_6, window_bounds = array<i64: 1, 128>}, {transform_indices = @transform_7, window_bounds = array<i64: 8, 128>}]} {
    %c0 = arith.constant 0 : index
    %c0_0 = arith.constant 0 : index
    %0 = vector.load %arg1[%c0, %c0_0] : memref<8x3072xf32, #tpu.memory_space<vmem>>, vector<8x3072xf32>
    %1 = arith.truncf %0 : vector<8x3072xf32> to vector<8x3072xbf16>
    %c0_1 = arith.constant 0 : index
    %c0_2 = arith.constant 0 : index
    %2 = vector.load %arg2[%c0_1, %c0_2] : memref<3072x512xbf16, #tpu.memory_space<vmem>>, vector<3072x512xbf16>
    %cst = arith.constant dense<0.000000e+00> : vector<8x512xf32>
    %3 = tpu.matmul %1, %2, %cst {dimension_numbers = #tpu.dot_dimension_numbers<[1], [0], [0], [1], [0, 0, 1, 1], [], []>} : vector<8x3072xbf16>, vector<3072x512xbf16>, vector<8x512xf32> -> vector<8x512xf32>
    %c0_3 = arith.constant 0 : index
    %c0_4 = arith.constant 0 : index
    %4 = vector.load %arg3[%c0_3, %c0_4] : memref<1x512xf32, #tpu.memory_space<vmem>>, vector<1x512xf32>
    %5 = vector.broadcast %4 : vector<1x512xf32> to vector<8x512xf32>
    %6 = arith.addf %3, %5 : vector<8x512xf32>
    %cst_5 = arith.constant 0.000000e+00 : f32
    %7 = vector.broadcast %cst_5 : f32 to vector<8x512xf32>
    %8 = arith.maximumf %6, %7 : vector<8x512xf32>
    %9 = arith.truncf %8 : vector<8x512xf32> to vector<8x512xbf16>
    %c0_6 = arith.constant 0 : index
    %c0_7 = arith.constant 0 : index
    %10 = vector.load %arg4[%c0_6, %c0_7] : memref<512x128xbf16, #tpu.memory_space<vmem>>, vector<512x128xbf16>
    %cst_8 = arith.constant dense<0.000000e+00> : vector<8x128xf32>
    %11 = tpu.matmul %9, %10, %cst_8 {dimension_numbers = #tpu.dot_dimension_numbers<[1], [0], [0], [1], [0, 0, 1, 1], [], []>} : vector<8x512xbf16>, vector<512x128xbf16>, vector<8x128xf32> -> vector<8x128xf32>
    %c0_9 = arith.constant 0 : index
    %c0_10 = arith.constant 0 : index
    %12 = vector.load %arg5[%c0_9, %c0_10] : memref<1x128xf32, #tpu.memory_space<vmem>>, vector<1x128xf32>
    %13 = vector.broadcast %12 : vector<1x128xf32> to vector<8x128xf32>
    %14 = arith.addf %11, %13 : vector<8x128xf32>
    %cst_11 = arith.constant 0.000000e+00 : f32
    %15 = vector.broadcast %cst_11 : f32 to vector<8x128xf32>
    %16 = arith.maximumf %14, %15 : vector<8x128xf32>
    %17 = arith.truncf %16 : vector<8x128xf32> to vector<8x128xbf16>
    %c0_12 = arith.constant 0 : index
    %c0_13 = arith.constant 0 : index
    %18 = vector.load %arg6[%c0_12, %c0_13] : memref<128x128xbf16, #tpu.memory_space<vmem>>, vector<128x128xbf16>
    %cst_14 = arith.constant dense<0.000000e+00> : vector<8x128xf32>
    %19 = tpu.matmul %17, %18, %cst_14 {dimension_numbers = #tpu.dot_dimension_numbers<[1], [0], [0], [1], [0, 0, 1, 1], [], []>} : vector<8x128xbf16>, vector<128x128xbf16>, vector<8x128xf32> -> vector<8x128xf32>
    %c0_15 = arith.constant 0 : index
    %c0_16 = arith.constant 0 : index
    %20 = vector.load %arg7[%c0_15, %c0_16] : memref<1x128xf32, #tpu.memory_space<vmem>>, vector<1x128xf32>
    %21 = vector.broadcast %20 : vector<1x128xf32> to vector<8x128xf32>
    %22 = arith.addf %19, %21 : vector<8x128xf32>
    %cst_17 = arith.constant dense<0xFF800000> : vector<8xf32>
    %23 = vector.multi_reduction <maximumf>, %22, %cst_17 [1] : vector<8x128xf32> to vector<8xf32>
    %24 = vector.shape_cast %23 : vector<8xf32> to vector<8x1xf32>
    %25 = vector.broadcast %24 : vector<8x1xf32> to vector<8x128xf32>
    %26 = arith.subf %22, %25 : vector<8x128xf32>
    %27 = math.exp %26 : vector<8x128xf32>
    %cst_18 = arith.constant dense<0.000000e+00> : vector<8xf32>
    %28 = vector.multi_reduction <add>, %27, %cst_18 [1] : vector<8x128xf32> to vector<8xf32>
    %29 = vector.shape_cast %28 : vector<8xf32> to vector<8x1xf32>
    %30 = tpu.reciprocal %29 {approx = true} : vector<8x1xf32> -> vector<8x1xf32>
    %31 = vector.broadcast %30 : vector<8x1xf32> to vector<8x128xf32>
    %32 = arith.mulf %27, %31 : vector<8x128xf32>
    %c0_19 = arith.constant 0 : index
    %c0_20 = arith.constant 0 : index
    %33 = vector.load %arg8[%c0_19, %c0_20] : memref<8x128xf32, #tpu.memory_space<vmem>>, vector<8x128xf32>
    tpu.vector_store %arg8[%c0_19, %c0_20], %32 {strides = array<i32>} : memref<8x128xf32, #tpu.memory_space<vmem>>, vector<8x128xf32>,
    return
  }
  func.func @transform_0(%arg0: i32) -> (i32, i32) {
    %c0_i32 = arith.constant 0 : i32
    %c0_i32_0 = arith.constant 0 : i32
    return %arg0, %c0_i32 : i32, i32
  }
  func.func @transform_1(%arg0: i32) -> (i32, i32) {
    %c0_i32 = arith.constant 0 : i32
    %c0_i32_0 = arith.constant 0 : i32
    %c0_i32_1 = arith.constant 0 : i32
    return %c0_i32, %c0_i32_0 : i32, i32
  }
  func.func @transform_2(%arg0: i32) -> (i32, i32) {
    %c0_i32 = arith.constant 0 : i32
    %c0_i32_0 = arith.constant 0 : i32
    %c0_i32_1 = arith.constant 0 : i32
    return %c0_i32, %c0_i32_0 : i32, i32
  }
  func.func @transform_3(%arg0: i32) -> (i32, i32) {
    %c0_i32 = arith.constant 0 : i32
    %c0_i32_0 = arith.constant 0 : i32
    %c0_i32_1 = arith.constant 0 : i32
    return %c0_i32, %c0_i32_0 : i32, i32
  }
  func.func @transform_4(%arg0: i32) -> (i32, i32) {
    %c0_i32 = arith.constant 0 : i32
    %c0_i32_0 = arith.constant 0 : i32
    %c0_i32_1 = arith.constant 0 : i32
    return %c0_i32, %c0_i32_0 : i32, i32
  }
  func.func @transform_5(%arg0: i32) -> (i32, i32) {
    %c0_i32 = arith.constant 0 : i32
    %c0_i32_0 = arith.constant 0 : i32
    %c0_i32_1 = arith.constant 0 : i32
    return %c0_i32, %c0_i32_0 : i32, i32
  }
  func.func @transform_6(%arg0: i32) -> (i32, i32) {
    %c0_i32 = arith.constant 0 : i32
    %c0_i32_0 = arith.constant 0 : i32
    %c0_i32_1 = arith.constant 0 : i32
    return %c0_i32, %c0_i32_0 : i32, i32
  }
  func.func @transform_7(%arg0: i32) -> (i32, i32) {
    %c0_i32 = arith.constant 0 : i32
    %c0_i32_0 = arith.constant 0 : i32
    return %arg0, %c0_i32 : i32, i32
  }
}

module attributes {stable_mosaic.version = 11 : i64} {
  func.func @mlp_kernel(%arg0: i32, %arg1: memref<8x3072xf32, #tpu.memory_space<vmem>>, %arg2: memref<3072x512xbf16, #tpu.memory_space<vmem>>, %arg3: memref<1x512xf32, #tpu.memory_space<vmem>>, %arg4: memref<512x128xbf16, #tpu.memory_space<vmem>>, %arg5: memref<1x128xf32, #tpu.memory_space<vmem>>, %arg6: memref<128x128xbf16, #tpu.memory_space<vmem>>, %arg7: memref<1x128xf32, #tpu.memory_space<vmem>>, %arg8: memref<8x128xf32, #tpu.memory_space<vmem>>) attributes {dimension_semantics = [#tpu.dimension_semantics<parallel>], iteration_bounds = array<i64: 1>, scalar_prefetch = 0 : i64, scratch_operands = 0 : i64, tpu.core_type = #tpu.core_type<tc>, window_params = [{transform_indices = @transform_0, window_bounds = array<i64: 8, 3072>}, {pipeline_mode = #tpu.pipeline_mode<synchronous>, transform_indices = @transform_1, window_bounds = array<i64: 3072, 512>}, {pipeline_mode = #tpu.pipeline_mode<synchronous>, transform_indices = @transform_2, window_bounds = array<i64: 1, 512>}, {pipeline_mode = #tpu.pipeline_mode<synchronous>, transform_indices = @transform_3, window_bounds = array<i64: 512, 128>}, {pipeline_mode = #tpu.pipeline_mode<synchronous>, transform_indices = @transform_4, window_bounds = array<i64: 1, 128>}, {pipeline_mode = #tpu.pipeline_mode<synchronous>, transform_indices = @transform_5, window_bounds = array<i64: 128, 128>}, {pipeline_mode = #tpu.pipeline_mode<synchronous>, transform_indices = @transform_6, window_bounds = array<i64: 1, 128>}, {transform_indices = @transform_7, window_bounds = array<i64: 8, 128>}]} {
    %c0 = arith.constant 0 : index
    %c0_0 = arith.constant 0 : index
    %0 = vector.load %arg1[%c0, %c0_0] : memref<8x3072xf32, #tpu.memory_space<vmem>>, vector<8x3072xf32>
    %1 = arith.truncf %0 : vector<8x3072xf32> to vector<8x3072xbf16>
    %c0_1 = arith.constant 0 : index
    %c0_2 = arith.constant 0 : index
    %2 = vector.load %arg2[%c0_1, %c0_2] : memref<3072x512xbf16, #tpu.memory_space<vmem>>, vector<3072x512xbf16>
    %cst = arith.constant dense<0.000000e+00> : vector<8x512xf32>
    %3 = tpu.matmul %1, %2, %cst {dimension_numbers = #tpu.dot_dimension_numbers<[1], [0], [0], [1], [0, 0, 1, 1], [], []>} : vector<8x3072xbf16>, vector<3072x512xbf16>, vector<8x512xf32> -> vector<8x512xf32>
    %c0_3 = arith.constant 0 : index
    %c0_4 = arith.constant 0 : index
    %4 = vector.load %arg3[%c0_3, %c0_4] : memref<1x512xf32, #tpu.memory_space<vmem>>, vector<1x512xf32>
    %5 = vector.broadcast %4 : vector<1x512xf32> to vector<8x512xf32>
    %6 = arith.addf %3, %5 : vector<8x512xf32>
    %cst_5 = arith.constant 0.000000e+00 : f32
    %7 = vector.broadcast %cst_5 : f32 to vector<8x512xf32>
    %8 = arith.maximumf %6, %7 : vector<8x512xf32>
    %9 = arith.truncf %8 : vector<8x512xf32> to vector<8x512xbf16>
    %c0_6 = arith.constant 0 : index
    %c0_7 = arith.constant 0 : index
    %10 = vector.load %arg4[%c0_6, %c0_7] : memref<512x128xbf16, #tpu.memory_space<vmem>>, vector<512x128xbf16>
    %cst_8 = arith.constant dense<0.000000e+00> : vector<8x128xf32>
    %11 = tpu.matmul %9, %10, %cst_8 {dimension_numbers = #tpu.dot_dimension_numbers<[1], [0], [0], [1], [0, 0, 1, 1], [], []>} : vector<8x512xbf16>, vector<512x128xbf16>, vector<8x128xf32> -> vector<8x128xf32>
    %c0_9 = arith.constant 0 : index
    %c0_10 = arith.constant 0 : index
    %12 = vector.load %arg5[%c0_9, %c0_10] : memref<1x128xf32, #tpu.memory_space<vmem>>, vector<1x128xf32>
    %13 = vector.broadcast %12 : vector<1x128xf32> to vector<8x128xf32>
    %14 = arith.addf %11, %13 : vector<8x128xf32>
    %cst_11 = arith.constant 0.000000e+00 : f32
    %15 = vector.broadcast %cst_11 : f32 to vector<8x128xf32>
    %16 = arith.maximumf %14, %15 : vector<8x128xf32>
    %17 = arith.truncf %16 : vector<8x128xf32> to vector<8x128xbf16>
    %c0_12 = arith.constant 0 : index
    %c0_13 = arith.constant 0 : index
    %18 = vector.load %arg6[%c0_12, %c0_13] : memref<128x128xbf16, #tpu.memory_space<vmem>>, vector<128x128xbf16>
    %cst_14 = arith.constant dense<0.000000e+00> : vector<8x128xf32>
    %19 = tpu.matmul %17, %18, %cst_14 {dimension_numbers = #tpu.dot_dimension_numbers<[1], [0], [0], [1], [0, 0, 1, 1], [], []>} : vector<8x128xbf16>, vector<128x128xbf16>, vector<8x128xf32> -> vector<8x128xf32>
    %c0_15 = arith.constant 0 : index
    %c0_16 = arith.constant 0 : index
    %20 = vector.load %arg7[%c0_15, %c0_16] : memref<1x128xf32, #tpu.memory_space<vmem>>, vector<1x128xf32>
    %21 = vector.broadcast %20 : vector<1x128xf32> to vector<8x128xf32>
    %22 = arith.addf %19, %21 : vector<8x128xf32>
    %cst_17 = arith.constant dense<0xFF800000> : vector<8xf32>
    %23 = vector.multi_reduction <maximumf>, %22, %cst_17 [1] : vector<8x128xf32> to vector<8xf32>
    %24 = vector.shape_cast %23 : vector<8xf32> to vector<8x1xf32>
    %25 = vector.broadcast %24 : vector<8x1xf32> to vector<8x128xf32>
    %26 = arith.subf %22, %25 : vector<8x128xf32>
    %27 = math.exp %26 : vector<8x128xf32>
    %cst_18 = arith.constant dense<0.000000e+00> : vector<8xf32>
    %28 = vector.multi_reduction <add>, %27, %cst_18 [1] : vector<8x128xf32> to vector<8xf32>
    %29 = vector.shape_cast %28 : vector<8xf32> to vector<8x1xf32>
    %30 = tpu.reciprocal %29 {approx = true} : vector<8x1xf32> -> vector<8x1xf32>
    %31 = vector.broadcast %30 : vector<8x1xf32> to vector<8x128xf32>
    %32 = arith.mulf %27, %31 : vector<8x128xf32>
    %c0_19 = arith.constant 0 : index
    %c0_20 = arith.constant 0 : index
    %33 = vector.load %arg8[%c0_19, %c0_20] : memref<8x128xf32, #tpu.memory_space<vmem>>, vector<8x128xf32>
    tpu.vector_store %arg8[%c0_19, %c0_20], %32 {strides = array<i32>} : memref<8x128xf32, #tpu.memory_space<vmem>>, vector<8x128xf32>,
    return
  }
  func.func @transform_0(%arg0: i32) -> (i32, i32) {
    %c0_i32 = arith.constant 0 : i32
    %c0_i32_0 = arith.constant 0 : i32
    return %arg0, %c0_i32 : i32, i32
  }
  func.func @transform_1(%arg0: i32) -> (i32, i32) {
    %c0_i32 = arith.constant 0 : i32
    %c0_i32_0 = arith.constant 0 : i32
    %c0_i32_1 = arith.constant 0 : i32
    return %c0_i32, %c0_i32_0 : i32, i32
  }
  func.func @transform_2(%arg0: i32) -> (i32, i32) {
    %c0_i32 = arith.constant 0 : i32
    %c0_i32_0 = arith.constant 0 : i32
    %c0_i32_1 = arith.constant 0 : i32
    return %c0_i32, %c0_i32_0 : i32, i32
  }
  func.func @transform_3(%arg0: i32) -> (i32, i32) {
    %c0_i32 = arith.constant 0 : i32
    %c0_i32_0 = arith.constant 0 : i32
    %c0_i32_1 = arith.constant 0 : i32
    return %c0_i32, %c0_i32_0 : i32, i32
  }
  func.func @transform_4(%arg0: i32) -> (i32, i32) {
    %c0_i32 = arith.constant 0 : i32
    %c0_i32_0 = arith.constant 0 : i32
    %c0_i32_1 = arith.constant 0 : i32
    return %c0_i32, %c0_i32_0 : i32, i32
  }
  func.func @transform_5(%arg0: i32) -> (i32, i32) {
    %c0_i32 = arith.constant 0 : i32
    %c0_i32_0 = arith.constant 0 : i32
    %c0_i32_1 = arith.constant 0 : i32
    return %c0_i32, %c0_i32_0 : i32, i32
  }
  func.func @transform_6(%arg0: i32) -> (i32, i32) {
    %c0_i32 = arith.constant 0 : i32
    %c0_i32_0 = arith.constant 0 : i32
    %c0_i32_1 = arith.constant 0 : i32
    return %c0_i32, %c0_i32_0 : i32, i32
  }
  func.func @transform_7(%arg0: i32) -> (i32, i32) {
    %c0_i32 = arith.constant 0 : i32
    %c0_i32_0 = arith.constant 0 : i32
    return %arg0, %c0_i32 : i32, i32
  }
}

</mosaic_0001>

<bundles_post_ra>
// kernel: tpu_custom_call.1
= control target key start
LH: loop header
LB: loop body
LE: loop exit
PB: predicated region body
PF: predicated region fallthrough
CT: control target
= control target key end

     0   :  { %12 = vsyncpa [#allocation3], 0  ;;  %s8761_s0 = inlined_call_operand.hbm [shape: f32[8,3072], index: 0, kind: input, shape index: {}]   ;;  %s8762_s1 = inlined_call_operand.hbm [shape: bf16[3072,512], index: 1, kind: input, shape index: {}]   ;;  %s8763_s2 = inlined_call_operand.hbm [shape: f32[1,512], index: 2, kind: input, shape index: {}]   ;;  %s8764_s3 = inlined_call_operand.hbm [shape: bf16[512,128], index: 3, kind: input, shape index: {}]   ;;  %s8765_s4 = inlined_call_operand.hbm [shape: f32[1,128], index: 4, kind: input, shape index: {}]   ;;  %s8766_s5 = inlined_call_operand.hbm [shape: bf16[128,128], index: 5, kind: input, shape index: {}]   ;;  %s8767_s6 = inlined_call_operand.hbm [shape: f32[1,128], index: 6, kind: input, shape index: {}]   ;;  %s8768_s7 = inlined_call_operand.hbm [shape: f32[8,128], index: 7, kind: output, shape index: {}]  }
   0x1   :  { %13 = vsyncpa [#allocation6], 0 }
   0x2   :  { %14 = vsyncpa [#allocation9], 0 }
   0x3   :  { %15 = vsyncpa [#allocation12], 0 }
   0x4   :  { %16 = vsyncpa [#allocation4], 0  ;;  %s8533_s24 = smov [#allocation5]  }
   0x5   :  { %s32_s25 = sshll.u32 %s8533_s24, 4  ;;  %s33_s25 = int_to_ptr.vmem [resolvable:$true] %s32_s25 }
   0x6   :  { %s8371_s26 = scalar_lea.vmem %s33_s25, 98304  ;;  %p8376_p1 = scmp.lt.s32.totalorder %s33_s25, %s33_s25 }
   0x7   :  { %p8372_p0 = scmp.ne.s32.totalorder %s33_s25, %s8371_s26  ;;  %p8377_p2 = scmp.lt.s32.totalorder %s8371_s26, %s8371_s26 }
   0x9   :  { %p8378_p3 = por %p8377_p2, %p8376_p1 }
   0xb   :  { %p8379_p4 = pnand %p8378_p3, %p8372_p0 }
   0xd   :  { %8382 = shalt.err (!%p8379_p4)
}
   0xe   :  { %s8534_s27 = smov 256   ;;  %s8535_s28 = smov 16  }
   0xf   :  { %38 = dma.hbm_to_vmem [thread:$0]  %s8762_s1, 98304, %s33_s25, [#allocation6], %s8534_s27, %s8534_s27, %s8535_s28  }
  0x10   :  { %s8536_s8 = smov [#allocation8]  }
  0x11   :  { %s54_s9 = sshll.u32 %s8536_s8, 4  ;;  %s55_s9 = int_to_ptr.vmem [resolvable:$true] %s54_s9 }
  0x12   :  { %s8391_s10 = scalar_lea.vmem %s55_s9, 4096  ;;  %p8396_p6 = scmp.lt.s32.totalorder %s55_s9, %s55_s9 }
  0x13   :  { %p8392_p5 = scmp.ne.s32.totalorder %s55_s9, %s8391_s10  ;;  %p8397_p7 = scmp.lt.s32.totalorder %s8391_s10, %s8391_s10 }
  0x15   :  { %p8398_p8 = por %p8397_p7, %p8396_p6 }
  0x17   :  { %p8399_p9 = pnand %p8398_p8, %p8392_p5 }
  0x19   :  { %8402 = shalt.err (!%p8399_p9)
}
  0x1a   :  { %s8537_s11 = smov 64   ;;  %s8538_s12 = smov 4  }
  0x1b   :  { %60 = dma.hbm_to_vmem [thread:$0]  %s8764_s3, 4096, %s55_s9, [#allocation9], %s8537_s11, %s8537_s11, %s8538_s12  }
  0x1c   :  { %s8539_s15 = smov [#allocation11]   ;;  %s8540_s17 = smov [#allocation2]  }
  0x1d   :  { %s76_s16 = sshll.u32 %s8539_s15, 4  ;;  %s23_s1 = sshll.u32 %s8540_s17, 4  ;;  %s77_s16 = int_to_ptr.vmem [resolvable:$true] %s76_s16  ;;  %s24_s1 = int_to_ptr.vmem [resolvable:$true] %s23_s1 }
  0x1e   :  { %s8411_s18 = scalar_lea.vmem %s77_s16, 1024  ;;  %p8416_p11 = scmp.lt.s32.totalorder %s77_s16, %s77_s16 }
  0x1f   :  { %p8412_p10 = scmp.ne.s32.totalorder %s77_s16, %s8411_s18  ;;  %p8417_p12 = scmp.lt.s32.totalorder %s8411_s18, %s8411_s18 }
  0x21   :  { %p8418_p13 = por %p8417_p12, %p8416_p11 }
  0x23   :  { %p8419_p0 = pnand %p8418_p13, %p8412_p10 }
  0x25   :  { %8422 = shalt.err (!%p8419_p0)
}
  0x26   :  { %82 = dma.hbm_to_vmem [thread:$0]  %s8766_s5, 1024, %s77_s16, [#allocation12], %s8537_s11, %s8537_s11, %s8538_s12  }
  0x27   :  { %s8431_s21 = scalar_lea.vmem %s24_s1, 3072  ;;  %p8436_p2 = scmp.lt.s32.totalorder %s24_s1, %s24_s1 }
  0x28   :  { %p8432_p1 = scmp.ne.s32.totalorder %s24_s1, %s8431_s21  ;;  %p8437_p3 = scmp.lt.s32.totalorder %s8431_s21, %s8431_s21 }
  0x2a   :  { %p8438_p4 = por %p8437_p3, %p8436_p2 }
  0x2c   :  { %p8439_p5 = pnand %p8438_p4, %p8432_p1 }
  0x2e   :  { %8442 = shalt.err (!%p8439_p5)
}
  0x2f   :  { %26 = dma.hbm_to_vmem [thread:$0]  %s8761_s0, 3072, %s24_s1, [#allocation3]  }
  0x30   :  { %s8541_s23 = smov [#allocation7]   ;;  %s8542_s25 = smov [#allocation10]  }
  0x31   :  { %s45_s24 = sshll.u32 %s8541_s23, 4  ;;  %s67_s26 = sshll.u32 %s8542_s25, 4  ;;  %s46_s24 = int_to_ptr.vmem [resolvable:$true] %s45_s24  ;;  %s68_s26 = int_to_ptr.vmem [resolvable:$true] %s67_s26 }
  0x32   :  { %s8451_s27 = scalar_lea.vmem %s46_s24, 64  ;;  %p8456_p7 = scmp.lt.s32.totalorder %s46_s24, %s46_s24 }
  0x33   :  { %p8452_p6 = scmp.ne.s32.totalorder %s46_s24, %s8451_s27  ;;  %p8457_p8 = scmp.lt.s32.totalorder %s8451_s27, %s8451_s27 }
  0x35   :  { %p8458_p9 = por %p8457_p8, %p8456_p7 }
  0x37   :  { %p8459_p10 = pnand %p8458_p9, %p8452_p6 }
  0x39   :  { %8462 = shalt.err (!%p8459_p10)
}
  0x3a   :  { %48 = dma.hbm_to_vmem [thread:$0]  %s8763_s2, 64, %s46_s24, [#allocation6]  }
  0x3b   :  { %s8471_s29 = scalar_lea.vmem %s68_s26, 16  ;;  %s8475_s0 = scalar_lea.vmem %s68_s26, 32 }
  0x3c   :  { %p8472_p11 = scmp.ne.s32.totalorder %s68_s26, %s8471_s29  ;;  %p8476_p12 = scmp.lt.s32.totalorder %s68_s26, %s68_s26 }
  0x3d   :  { %p8477_p13 = scmp.lt.s32.totalorder %s8475_s0, %s8471_s29 }
  0x3f   :  { %p8478_p0 = por %p8477_p13, %p8476_p12 }
  0x41   :  { %p8479_p1 = pnand %p8478_p0, %p8472_p11 }
  0x43   :  { %8482 = shalt.err (!%p8479_p1)
}
  0x44   :  { %70 = dma.hbm_to_vmem [thread:$0]  %s8765_s4, 16, %s68_s26, [#allocation9]  }
  0x45   :  { %s8543_s9 = smov [#allocation13]  }
  0x46   :  { %s89_s10 = sshll.u32 %s8543_s9, 4  ;;  %s90_s10 = int_to_ptr.vmem [resolvable:$true] %s89_s10 }
  0x47   :  { %s8491_s11 = scalar_lea.vmem %s90_s10, 16  ;;  %s8495_s12 = scalar_lea.vmem %s90_s10, 32 }
  0x48   :  { %p8492_p2 = scmp.ne.s32.totalorder %s90_s10, %s8491_s11  ;;  %p8496_p3 = scmp.lt.s32.totalorder %s90_s10, %s90_s10 }
  0x49   :  { %p8497_p4 = scmp.lt.s32.totalorder %s8495_s12, %s8491_s11 }
  0x4b   :  { %p8498_p5 = por %p8497_p4, %p8496_p3 }
  0x4d   :  { %p8499_p6 = pnand %p8498_p5, %p8492_p2 }
  0x4f   :  { %8502 = shalt.err (!%p8499_p6)
}
  0x50   :  { %92 = dma.hbm_to_vmem [thread:$0]  %s8767_s6, 16, %s90_s10, [#allocation12]  }
  0x51   :  { %8523 = dma.done.wait [#allocation3], 3072  }
  0x52   :  { %8524 = vsyncadd [#allocation3], 4294964224 }
  0x53   :  { %8525 = dma.done.wait [#allocation6], 98368  }
  0x54   :  { %8526 = vsyncadd [#allocation6], 4294868928 }
  0x55   :  { %8527 = dma.done.wait [#allocation9], 4112  }
  0x56   :  { %8528 = vsyncadd [#allocation9], 4294963184 }
  0x57   :  { %8529 = dma.done.wait [#allocation12], 1040  }
  0x58   :  { %8530 = vsyncadd [#allocation12], 4294966256  ;;  %v7166_v0 = vld [vmem:[#allocation5 + $0xe4] ss:$16 sps:$4 sm:$0xff]   ;;  %v7170_v2 = vld [vmem:[#allocation5 + $0xe0] ss:$16 sps:$4 sm:$0xff]  }
  0x59   :  { %v7168_v1 = vld [vmem:[#allocation5 + $0x2e4] ss:$16 sps:$4 sm:$0xff]   ;;  %4793 = vmatprep.subr.bf16.mxu0 %v7166_v0  ;;  %v7171_v3 = vld [vmem:[#allocation5 + $0x2e0] ss:$16 sps:$4 sm:$0xff]   ;;  %v116_v46 = vld [vmem:[#allocation2 + $0x8] sm:$0xff]  ;;  %vm8545_vm0 = vmmov 0  }
  0x5a   :  { %4834 = vmatprep.subr.bf16.mxu1 %v7168_v1  ;;  %v7172_v4 = vld [vmem:[#allocation5 + $0xc4] ss:$16 sps:$4 sm:$0xff]   ;;  %4794 = vmatpush1.bf16.msra.mxu0 %v7170_v2  ;;  %v7176_v6 = vld [vmem:[#allocation5 + $0xc0] ss:$16 sps:$4 sm:$0xff]   ;;  %v8608_v49 = vpack.c.bf16 %v116_v46, %v116_v46  ;;  %v118_v50 = vld [vmem:[#allocation2 + $0x18] sm:$0xff]  ;;  %s8546_s4 = smov [#allocation14]  }
  0x5b   :  { %4835 = vmatpush1.bf16.msra.mxu1 %v7171_v3  ;;  %v7174_v5 = vld [vmem:[#allocation5 + $0x2c4] ss:$16 sps:$4 sm:$0xff]   ;;  %4795 = vmatprep.subr.bf16.mxu0 %v7172_v4  ;;  %v7177_v7 = vld [vmem:[#allocation5 + $0x2c0] ss:$16 sps:$4 sm:$0xff]   ;;  %v8610_v52 = vpack.c.bf16 %v118_v50, %v118_v50  ;;  %s6257_s6 = sshll.u32 %s8546_s4, 4  ;;  %s6258_s6 = int_to_ptr.vmem [resolvable:$true] %s6257_s6 }
  0x5c   :  { %4836 = vmatprep.subr.bf16.mxu1 %v7174_v5  ;;  %v7178_v8 = vld [vmem:[#allocation5 + $0xa4] ss:$16 sps:$4 sm:$0xff]   ;;  %v7182_v10 = vld [vmem:[#allocation5 + $0xa0] ss:$16 sps:$4 sm:$0xff]   ;;  %4825 = vmatprep.mubr.bf16.mxu0 %v8608_v49  ;;  %s8503_s14 = scalar_lea.vmem %s6258_s6, 128  ;;  %p8508_p8 = scmp.lt.s32.totalorder %s6258_s6, %s6258_s6 }
  0x5d   :  { %v7180_v9 = vld [vmem:[#allocation5 + $0x2a4] ss:$16 sps:$4 sm:$0xff]   ;;  %v7183_v11 = vld [vmem:[#allocation5 + $0x2a0] ss:$16 sps:$4 sm:$0xff]   ;;  %4866 = vmatprep.mubr.bf16.mxu1 %v8610_v52  ;;  %p8504_p7 = scmp.ne.s32.totalorder %s6258_s6, %s8503_s14  ;;  %p8509_p9 = scmp.lt.s32.totalorder %s8503_s14, %s8503_s14 }
  0x5e   :  { %4796 = vmatpush1.bf16.msra.mxu0 %v7176_v6  ;;  %v7184_v12 = vld [vmem:[#allocation5 + $0x84] ss:$16 sps:$4 sm:$0xff]   ;;  %v7188_v14 = vld [vmem:[#allocation5 + $0x80] ss:$16 sps:$4 sm:$0xff]  }
  0x5f   :  { %4837 = vmatpush1.bf16.msra.mxu1 %v7177_v7  ;;  %4797 = vmatprep.subr.bf16.mxu0 %v7178_v8  ;;  %v7186_v13 = vld [vmem:[#allocation5 + $0x284] ss:$16 sps:$4 sm:$0xff]   ;;  %v7189_v15 = vld [vmem:[#allocation5 + $0x280] ss:$16 sps:$4 sm:$0xff]   ;;  %p8510_p10 = por %p8509_p9, %p8508_p8 }
  0x60   :  { %4838 = vmatprep.subr.bf16.mxu1 %v7180_v9  ;;  %v7190_v16 = vld [vmem:[#allocation5 + $0x64] ss:$16 sps:$4 sm:$0xff]   ;;  %v7194_v18 = vld [vmem:[#allocation5 + $0x60] ss:$16 sps:$4 sm:$0xff]  }
  0x61   :  { %v7192_v17 = vld [vmem:[#allocation5 + $0x264] ss:$16 sps:$4 sm:$0xff]   ;;  %v7195_v19 = vld [vmem:[#allocation5 + $0x260] ss:$16 sps:$4 sm:$0xff]   ;;  %p8511_p11 = pnand %p8510_p10, %p8504_p7 }
  0x62   :  { %4798 = vmatpush1.bf16.msra.mxu0 %v7182_v10  ;;  %v7196_v20 = vld [vmem:[#allocation5 + $0x44] ss:$16 sps:$4 sm:$0xff]   ;;  %v7200_v22 = vld [vmem:[#allocation5 + $0x40] ss:$16 sps:$4 sm:$0xff]  }
  0x63   :  { %4839 = vmatpush1.bf16.msra.mxu1 %v7183_v11  ;;  %4799 = vmatprep.subr.bf16.mxu0 %v7184_v12  ;;  %v7198_v21 = vld [vmem:[#allocation5 + $0x244] ss:$16 sps:$4 sm:$0xff]   ;;  %v7201_v23 = vld [vmem:[#allocation5 + $0x240] ss:$16 sps:$4 sm:$0xff]  }
  0x64   :  { %4840 = vmatprep.subr.bf16.mxu1 %v7186_v13  ;;  %v7202_v24 = vld [vmem:[#allocation5 + $0x24] ss:$16 sps:$4 sm:$0xff]   ;;  %v7206_v26 = vld [vmem:[#allocation5 + $0x20] ss:$16 sps:$4 sm:$0xff]  }
  0x65   :  { %v7204_v25 = vld [vmem:[#allocation5 + $0x224] ss:$16 sps:$4 sm:$0xff]   ;;  %v7207_v27 = vld [vmem:[#allocation5 + $0x220] ss:$16 sps:$4 sm:$0xff]  }
  0x66   :  { %4800 = vmatpush1.bf16.msra.mxu0 %v7188_v14  ;;  %v7208_v28 = vld [vmem:[#allocation5 + $0x4] ss:$16 sps:$4 sm:$0xff]   ;;  %v7212_v30 = vld [vmem:[#allocation5] ss:$16 sps:$4 sm:$0xff]  }
  0x67   :  { %4841 = vmatpush1.bf16.msra.mxu1 %v7189_v15  ;;  %4801 = vmatprep.subr.bf16.mxu0 %v7190_v16  ;;  %v7210_v29 = vld [vmem:[#allocation5 + $0x204] ss:$16 sps:$4 sm:$0xff]   ;;  %v7213_v31 = vld [vmem:[#allocation5 + $0x200] ss:$16 sps:$4 sm:$0xff]  }
  0x68   :  { %4842 = vmatprep.subr.bf16.mxu1 %v7192_v17  ;;  %v7214_v32 = vld [vmem:[#allocation5 + $0x1e4] ss:$16 sps:$4 sm:$0xff]   ;;  %v7218_v34 = vld [vmem:[#allocation5 + $0x1e0] ss:$16 sps:$4 sm:$0xff]  }
  0x69   :  { %v7216_v33 = vld [vmem:[#allocation5 + $0x3e4] ss:$16 sps:$4 sm:$0xff]   ;;  %v7219_v35 = vld [vmem:[#allocation5 + $0x3e0] ss:$16 sps:$4 sm:$0xff]  }
  0x6a   :  { %4802 = vmatpush1.bf16.msra.mxu0 %v7194_v18  ;;  %v7220_v36 = vld [vmem:[#allocation5 + $0x1c4] ss:$16 sps:$4 sm:$0xff]   ;;  %v7224_v38 = vld [vmem:[#allocation5 + $0x1c0] ss:$16 sps:$4 sm:$0xff]  }
  0x6b   :  { %4843 = vmatpush1.bf16.msra.mxu1 %v7195_v19  ;;  %4803 = vmatprep.subr.bf16.mxu0 %v7196_v20  ;;  %v7222_v37 = vld [vmem:[#allocation5 + $0x3c4] ss:$16 sps:$4 sm:$0xff]   ;;  %v7225_v39 = vld [vmem:[#allocation5 + $0x3c0] ss:$16 sps:$4 sm:$0xff]  }
  0x6c   :  { %4844 = vmatprep.subr.bf16.mxu1 %v7198_v21  ;;  %v7226_v40 = vld [vmem:[#allocation5 + $0x1a4] ss:$16 sps:$4 sm:$0xff]   ;;  %v7230_v42 = vld [vmem:[#allocation5 + $0x1a0] ss:$16 sps:$4 sm:$0xff]  }
  0x6d   :  { %v7228_v41 = vld [vmem:[#allocation5 + $0x3a4] ss:$16 sps:$4 sm:$0xff]   ;;  %v7231_v43 = vld [vmem:[#allocation5 + $0x3a0] ss:$16 sps:$4 sm:$0xff]  }
  0x6e   :  { %4804 = vmatpush1.bf16.msra.mxu0 %v7200_v22  ;;  %v7232_v44 = vld [vmem:[#allocation5 + $0x184] ss:$16 sps:$4 sm:$0xff]   ;;  %v7236_v47 = vld [vmem:[#allocation5 + $0x180] ss:$16 sps:$4 sm:$0xff]  }
  0x6f   :  { %4845 = vmatpush1.bf16.msra.mxu1 %v7201_v23  ;;  %4805 = vmatprep.subr.bf16.mxu0 %v7202_v24  ;;  %v7234_v45 = vld [vmem:[#allocation5 + $0x384] ss:$16 sps:$4 sm:$0xff]   ;;  %v7237_v48 = vld [vmem:[#allocation5 + $0x380] ss:$16 sps:$4 sm:$0xff]  }
  0x70   :  { %4846 = vmatprep.subr.bf16.mxu1 %v7204_v25  ;;  %v7238_v51 = vld [vmem:[#allocation5 + $0x164] ss:$16 sps:$4 sm:$0xff]   ;;  %v7242_v54 = vld [vmem:[#allocation5 + $0x160] ss:$16 sps:$4 sm:$0xff]  }
  0x71   :  { %v7240_v53 = vld [vmem:[#allocation5 + $0x364] ss:$16 sps:$4 sm:$0xff]   ;;  %v7243_v55 = vld [vmem:[#allocation5 + $0x360] ss:$16 sps:$4 sm:$0xff]  }
  0x72   :  { %4806 = vmatpush1.bf16.msra.mxu0 %v7206_v26  ;;  %v7244_v56 = vld [vmem:[#allocation5 + $0x144] ss:$16 sps:$4 sm:$0xff]   ;;  %v7248_v58 = vld [vmem:[#allocation5 + $0x140] ss:$16 sps:$4 sm:$0xff]  }
  0x73   :  { %4847 = vmatpush1.bf16.msra.mxu1 %v7207_v27  ;;  %4807 = vmatprep.subr.bf16.mxu0 %v7208_v28  ;;  %v7246_v57 = vld [vmem:[#allocation5 + $0x344] ss:$16 sps:$4 sm:$0xff]   ;;  %v7249_v59 = vld [vmem:[#allocation5 + $0x340] ss:$16 sps:$4 sm:$0xff]  }
  0x74   :  { %4848 = vmatprep.subr.bf16.mxu1 %v7210_v29  ;;  %v7250_v60 = vld [vmem:[#allocation5 + $0x124] ss:$16 sps:$4 sm:$0xff]   ;;  %v7254_v62 = vld [vmem:[#allocation5 + $0x120] ss:$16 sps:$4 sm:$0xff]  }
  0x75   :  { %v7252_v61 = vld [vmem:[#allocation5 + $0x324] ss:$16 sps:$4 sm:$0xff]   ;;  %v7255_v63 = vld [vmem:[#allocation5 + $0x320] ss:$16 sps:$4 sm:$0xff]  }
  0x76   :  { %4808 = vmatpush1.bf16.msra.mxu0 %v7212_v30  ;;  %v7256_v0 = vld [vmem:[#allocation5 + $0x104] ss:$16 sps:$4 sm:$0xff]   ;;  %v7260_v2 = vld [vmem:[#allocation5 + $0x100] ss:$16 sps:$4 sm:$0xff]  }
  0x77   :  { %4849 = vmatpush1.bf16.msra.mxu1 %v7213_v31  ;;  %4809 = vmatprep.subr.bf16.mxu0 %v7214_v32  ;;  %v7258_v1 = vld [vmem:[#allocation5 + $0x304] ss:$16 sps:$4 sm:$0xff]   ;;  %v7261_v3 = vld [vmem:[#allocation5 + $0x300] ss:$16 sps:$4 sm:$0xff]  }
  0x78   :  { %4850 = vmatprep.subr.bf16.mxu1 %v7216_v33  ;;  %v115_v4 = vld [vmem:[#allocation2] sm:$0xff]  ;;  %v117_v5 = vld [vmem:[#allocation2 + $0x10] sm:$0xff] }
  0x79   :  { %v7264_v6 = vld [vmem:[#allocation5 + $0x4e4] ss:$16 sps:$4 sm:$0xff]   ;;  %v8614_v8 = vpack.c.bf16 %v115_v4, %v115_v4  ;;  %v8616_v9 = vpack.c.bf16 %v117_v5, %v117_v5  ;;  %v7262_v10 = vld [vmem:[#allocation5 + $0x4e0] ss:$16 sps:$4 sm:$0xff]  }
  0x7a   :  { %4810 = vmatpush2.bf16.msra.mxu0 %v7218_v34  ;;  %v7267_v7 = vld [vmem:[#allocation5 + $0x6e4] ss:$16 sps:$4 sm:$0xff]   ;;  %v7265_v11 = vld [vmem:[#allocation5 + $0x6e0] ss:$16 sps:$4 sm:$0xff]   ;;  %v120_v34 = vld [vmem:[#allocation2 + $0x28] sm:$0xff] }
  0x7b   :  { %4851 = vmatpush2.bf16.msra.mxu1 %v7219_v35  ;;  %4811 = vmatprep.subr.bf16.mxu0 %v7220_v36  ;;  %v7270_v12 = vld [vmem:[#allocation5 + $0x4c4] ss:$16 sps:$4 sm:$0xff]   ;;  %v7268_v14 = vld [vmem:[#allocation5 + $0x4c0] ss:$16 sps:$4 sm:$0xff]  }
  0x7c   :  { %4852 = vmatprep.subr.bf16.mxu1 %v7222_v37  ;;  %v7273_v13 = vld [vmem:[#allocation5 + $0x6c4] ss:$16 sps:$4 sm:$0xff]   ;;  %v7271_v15 = vld [vmem:[#allocation5 + $0x6c0] ss:$16 sps:$4 sm:$0xff]   ;;  %v8620_v37 = vpack.c.bf16 %v120_v34, %v120_v34 }
  0x7d   :  { %v7276_v16 = vld [vmem:[#allocation5 + $0x4a4] ss:$16 sps:$4 sm:$0xff]   ;;  %v7274_v18 = vld [vmem:[#allocation5 + $0x4a0] ss:$16 sps:$4 sm:$0xff]  }
  0x7e   :  { %4812 = vmatpush2.bf16.msra.mxu0 %v7224_v38  ;;  %v7279_v17 = vld [vmem:[#allocation5 + $0x6a4] ss:$16 sps:$4 sm:$0xff]   ;;  %v7277_v19 = vld [vmem:[#allocation5 + $0x6a0] ss:$16 sps:$4 sm:$0xff]   ;;  %v122_v38 = vld [vmem:[#allocation2 + $0x38] sm:$0xff] }
  0x7f   :  { %4853 = vmatpush2.bf16.msra.mxu1 %v7225_v39  ;;  %4813 = vmatprep.subr.bf16.mxu0 %v7226_v40  ;;  %v7282_v20 = vld [vmem:[#allocation5 + $0x484] ss:$16 sps:$4 sm:$0xff]   ;;  %v7280_v22 = vld [vmem:[#allocation5 + $0x480] ss:$16 sps:$4 sm:$0xff]   ;;  %v8622_v40 = vpack.c.bf16 %v122_v38, %v122_v38 }
  0x80   :  { %4854 = vmatprep.subr.bf16.mxu1 %v7228_v41  ;;  %v7285_v21 = vld [vmem:[#allocation5 + $0x684] ss:$16 sps:$4 sm:$0xff]   ;;  %v7283_v23 = vld [vmem:[#allocation5 + $0x680] ss:$16 sps:$4 sm:$0xff]  }
  0x81   :  { %v7288_v24 = vld [vmem:[#allocation5 + $0x464] ss:$16 sps:$4 sm:$0xff]   ;;  %v7286_v26 = vld [vmem:[#allocation5 + $0x460] ss:$16 sps:$4 sm:$0xff]  }
  0x82   :  { %4814 = vmatpush2.bf16.msra.mxu0 %v7230_v42  ;;  %v7291_v25 = vld [vmem:[#allocation5 + $0x664] ss:$16 sps:$4 sm:$0xff]   ;;  %v7289_v27 = vld [vmem:[#allocation5 + $0x660] ss:$16 sps:$4 sm:$0xff]  }
  0x83   :  { %4855 = vmatpush2.bf16.msra.mxu1 %v7231_v43  ;;  %4815 = vmatprep.subr.bf16.mxu0 %v7232_v44  ;;  %v7294_v28 = vld [vmem:[#allocation5 + $0x444] ss:$16 sps:$4 sm:$0xff]   ;;  %v7292_v30 = vld [vmem:[#allocation5 + $0x440] ss:$16 sps:$4 sm:$0xff]  }
  0x84   :  { %4856 = vmatprep.subr.bf16.mxu1 %v7234_v45  ;;  %v7297_v29 = vld [vmem:[#allocation5 + $0x644] ss:$16 sps:$4 sm:$0xff]   ;;  %v7295_v31 = vld [vmem:[#allocation5 + $0x640] ss:$16 sps:$4 sm:$0xff]  }
  0x85   :  { %v7300_v32 = vld [vmem:[#allocation5 + $0x424] ss:$16 sps:$4 sm:$0xff]   ;;  %v7298_v35 = vld [vmem:[#allocation5 + $0x420] ss:$16 sps:$4 sm:$0xff]  }
  0x86   :  { %4816 = vmatpush2.bf16.msra.mxu0 %v7236_v47  ;;  %v7303_v33 = vld [vmem:[#allocation5 + $0x624] ss:$16 sps:$4 sm:$0xff]   ;;  %v7301_v36 = vld [vmem:[#allocation5 + $0x620] ss:$16 sps:$4 sm:$0xff]  }
  0x87   :  { %4857 = vmatpush2.bf16.msra.mxu1 %v7237_v48  ;;  %4817 = vmatprep.subr.bf16.mxu0 %v7238_v51  ;;  %v7306_v39 = vld [vmem:[#allocation5 + $0x404] ss:$16 sps:$4 sm:$0xff]   ;;  %v7304_v42 = vld [vmem:[#allocation5 + $0x400] ss:$16 sps:$4 sm:$0xff]  }
  0x88   :  { %4858 = vmatprep.subr.bf16.mxu1 %v7240_v53  ;;  %v7309_v41 = vld [vmem:[#allocation5 + $0x604] ss:$16 sps:$4 sm:$0xff]   ;;  %v7307_v43 = vld [vmem:[#allocation5 + $0x600] ss:$16 sps:$4 sm:$0xff]  }
  0x89   :  { %v7312_v44 = vld [vmem:[#allocation5 + $0x5e4] ss:$16 sps:$4 sm:$0xff]   ;;  %v7310_v46 = vld [vmem:[#allocation5 + $0x5e0] ss:$16 sps:$4 sm:$0xff]  }
  0x8a   :  { %4818 = vmatpush2.bf16.msra.mxu0 %v7242_v54  ;;  %v7315_v45 = vld [vmem:[#allocation5 + $0x7e4] ss:$16 sps:$4 sm:$0xff]   ;;  %v7313_v47 = vld [vmem:[#allocation5 + $0x7e0] ss:$16 sps:$4 sm:$0xff]  }
  0x8b   :  { %4859 = vmatpush2.bf16.msra.mxu1 %v7243_v55  ;;  %4819 = vmatprep.subr.bf16.mxu0 %v7244_v56  ;;  %v7318_v48 = vld [vmem:[#allocation5 + $0x5c4] ss:$16 sps:$4 sm:$0xff]   ;;  %v7316_v51 = vld [vmem:[#allocation5 + $0x5c0] ss:$16 sps:$4 sm:$0xff]  }
  0x8c   :  { %4860 = vmatprep.subr.bf16.mxu1 %v7246_v57  ;;  %v7321_v50 = vld [vmem:[#allocation5 + $0x7c4] ss:$16 sps:$4 sm:$0xff]   ;;  %v7319_v53 = vld [vmem:[#allocation5 + $0x7c0] ss:$16 sps:$4 sm:$0xff]  }
  0x8d   :  { %v7324_v54 = vld [vmem:[#allocation5 + $0x5a4] ss:$16 sps:$4 sm:$0xff]   ;;  %v7322_v56 = vld [vmem:[#allocation5 + $0x5a0] ss:$16 sps:$4 sm:$0xff]  }
  0x8e   :  { %4820 = vmatpush2.bf16.msra.mxu0 %v7248_v58  ;;  %v7327_v55 = vld [vmem:[#allocation5 + $0x7a4] ss:$16 sps:$4 sm:$0xff]   ;;  %v7325_v57 = vld [vmem:[#allocation5 + $0x7a0] ss:$16 sps:$4 sm:$0xff]  }
  0x8f   :  { %4861 = vmatpush2.bf16.msra.mxu1 %v7249_v59  ;;  %4821 = vmatprep.subr.bf16.mxu0 %v7250_v60  ;;  %v7330_v58 = vld [vmem:[#allocation5 + $0x584] ss:$16 sps:$4 sm:$0xff]   ;;  %v7328_v60 = vld [vmem:[#allocation5 + $0x580] ss:$16 sps:$4 sm:$0xff]  }
  0x90   :  { %4862 = vmatprep.subr.bf16.mxu1 %v7252_v61  ;;  %v7333_v59 = vld [vmem:[#allocation5 + $0x784] ss:$16 sps:$4 sm:$0xff]   ;;  %v7331_v61 = vld [vmem:[#allocation5 + $0x780] ss:$16 sps:$4 sm:$0xff]  }
  0x91   :  { %v7340_v4 = vld [vmem:[#allocation5 + $0x540] ss:$16 sps:$4 sm:$0xff]   ;;  %v7381_v38 = vld [vmem:[#allocation5 + $0xa84] ss:$16 sps:$4 sm:$0xff]  }
  0x92   :  { %4822 = vmatpush2.bf16.msra.mxu0 %v7254_v62  ;;  %v7336_v62 = vld [vmem:[#allocation5 + $0x564] ss:$16 sps:$4 sm:$0xff]   ;;  %v7343_v5 = vld [vmem:[#allocation5 + $0x740] ss:$16 sps:$4 sm:$0xff]  }
  0x93   :  { %4863 = vmatpush2.bf16.msra.mxu1 %v7255_v63  ;;  %4823 = vmatprep.subr.bf16.mxu0 %v7256_v0  ;;  %v7339_v63 = vld [vmem:[#allocation5 + $0x764] ss:$16 sps:$4 sm:$0xff]   ;;  %v7334_v0 = vld [vmem:[#allocation5 + $0x560] ss:$16 sps:$4 sm:$0xff]  }
  0x94   :  { %4864 = vmatprep.subr.bf16.mxu1 %v7258_v1  ;;  %v7337_v1 = vld [vmem:[#allocation5 + $0x760] ss:$16 sps:$4 sm:$0xff]  }
  0x95   :  { %v7370_v34 = vld [vmem:[#allocation5 + $0x8a0] ss:$16 sps:$4 sm:$0xff]  }
  0x96   :  { %4824 = vmatpush2.bf16.msra.mxu0 %v7260_v2  ;;  %v7342_v2 = vld [vmem:[#allocation5 + $0x544] ss:$16 sps:$4 sm:$0xff]  }
  0x97   :  { %4865 = vmatpush2.bf16.msra.mxu1 %v7261_v3  ;;  %4875 = vmatprep.subr.bf16.mxu0 %v7264_v6  ;;  %v7345_v3 = vld [vmem:[#allocation5 + $0x744] ss:$16 sps:$4 sm:$0xff]  }
  0x98   :  { %4916 = vmatprep.subr.bf16.mxu1 %v7267_v7  ;;  %v7348_v6 = vld [vmem:[#allocation5 + $0x524] ss:$16 sps:$4 sm:$0xff]  }
  0x99   :  { %4826 = vmatmul.mubr.bf16.vlgmr.msra.gmra.mxu0 %v8614_v8  ;;  %v7351_v7 = vld [vmem:[#allocation5 + $0x724] ss:$16 sps:$4 sm:$0xff]  }
  0x9a   :  { %4867 = vmatmul.mubr.bf16.vlgmr.msra.gmra.mxu1 %v8616_v9  ;;  %4876 = vmatpush1.bf16.msra.mxu0 %v7262_v10  ;;  %v7346_v10 = vld [vmem:[#allocation5 + $0x520] ss:$16 sps:$4 sm:$0xff]  }
  0x9b   :  { %4917 = vmatpush1.bf16.msra.mxu1 %v7265_v11  ;;  %4877 = vmatprep.subr.bf16.mxu0 %v7270_v12  ;;  %v7349_v11 = vld [vmem:[#allocation5 + $0x720] ss:$16 sps:$4 sm:$0xff]   ;;  %v7354_v12 = vld [vmem:[#allocation5 + $0x504] ss:$16 sps:$4 sm:$0xff]  }
  0x9c   :  { %4918 = vmatprep.subr.bf16.mxu1 %v7273_v13  ;;  %4907 = vmatprep.mubr.bf16.mxu0 %v8620_v37  ;;  %v7357_v13 = vld [vmem:[#allocation5 + $0x704] ss:$16 sps:$4 sm:$0xff]  }
  0x9d   :  { %4948 = vmatprep.mubr.bf16.mxu1 %v8622_v40 }
  0x9e   :  { %4878 = vmatpush1.bf16.msra.mxu0 %v7268_v14  ;;  %v7352_v14 = vld [vmem:[#allocation5 + $0x500] ss:$16 sps:$4 sm:$0xff]  }
  0x9f   :  { %4919 = vmatpush1.bf16.msra.mxu1 %v7271_v15  ;;  %4879 = vmatprep.subr.bf16.mxu0 %v7276_v16  ;;  %v7355_v15 = vld [vmem:[#allocation5 + $0x700] ss:$16 sps:$4 sm:$0xff]  }
  0xa0   :  { %4920 = vmatprep.subr.bf16.mxu1 %v7279_v17  ;;  %v119_v16 = vld [vmem:[#allocation2 + $0x20] sm:$0xff]  ;;  %v121_v17 = vld [vmem:[#allocation2 + $0x30] sm:$0xff] }
  0xa2   :  { %4880 = vmatpush1.bf16.msra.mxu0 %v7274_v18  ;;  %v7360_v18 = vld [vmem:[#allocation5 + $0x8e4] ss:$16 sps:$4 sm:$0xff]  }
  0xa3   :  { %4921 = vmatpush1.bf16.msra.mxu1 %v7277_v19  ;;  %4881 = vmatprep.subr.bf16.mxu0 %v7282_v20  ;;  %v7363_v19 = vld [vmem:[#allocation5 + $0xae4] ss:$16 sps:$4 sm:$0xff]   ;;  %v8626_v20 = vpack.c.bf16 %v119_v16, %v119_v16  ;;  %v7430_v16 = vld [vmem:[#allocation5 + $0x960] ss:$16 sps:$4 sm:$0xff]  }
  0xa4   :  { %4922 = vmatprep.subr.bf16.mxu1 %v7285_v21  ;;  %v8628_v21 = vpack.c.bf16 %v121_v17, %v121_v17  ;;  %v7433_v17 = vld [vmem:[#allocation5 + $0xb60] ss:$16 sps:$4 sm:$0xff]  }
  0xa6   :  { %4882 = vmatpush1.bf16.msra.mxu0 %v7280_v22  ;;  %v7358_v22 = vld [vmem:[#allocation5 + $0x8e0] ss:$16 sps:$4 sm:$0xff]  }
  0xa7   :  { %4923 = vmatpush1.bf16.msra.mxu1 %v7283_v23  ;;  %4883 = vmatprep.subr.bf16.mxu0 %v7288_v24  ;;  %v7361_v23 = vld [vmem:[#allocation5 + $0xae0] ss:$16 sps:$4 sm:$0xff]   ;;  %v7366_v24 = vld [vmem:[#allocation5 + $0x8c4] ss:$16 sps:$4 sm:$0xff]  }
  0xa8   :  { %4924 = vmatprep.subr.bf16.mxu1 %v7291_v25  ;;  %v7369_v25 = vld [vmem:[#allocation5 + $0xac4] ss:$16 sps:$4 sm:$0xff]  }
  0xaa   :  { %4884 = vmatpush1.bf16.msra.mxu0 %v7286_v26  ;;  %v124_v26 = vld [vmem:[#allocation2 + $0x48] sm:$0xff] }
  0xab   :  { %4925 = vmatpush1.bf16.msra.mxu1 %v7289_v27  ;;  %4885 = vmatprep.subr.bf16.mxu0 %v7294_v28  ;;  %v7364_v27 = vld [vmem:[#allocation5 + $0x8c0] ss:$16 sps:$4 sm:$0xff]  }
  0xac   :  { %4926 = vmatprep.subr.bf16.mxu1 %v7297_v29  ;;  %v7367_v28 = vld [vmem:[#allocation5 + $0xac0] ss:$16 sps:$4 sm:$0xff]   ;;  %v8632_v29 = vpack.c.bf16 %v124_v26, %v124_v26 }
  0xad   :  { %v7442_v26 = vld [vmem:[#allocation5 + $0x920] ss:$16 sps:$4 sm:$0xff]  }
  0xae   :  { %4886 = vmatpush1.bf16.msra.mxu0 %v7292_v30  ;;  %v126_v30 = vld [vmem:[#allocation2 + $0x58] sm:$0xff] }
  0xaf   :  { %4927 = vmatpush1.bf16.msra.mxu1 %v7295_v31  ;;  %4887 = vmatprep.subr.bf16.mxu0 %v7300_v32  ;;  %v7372_v31 = vld [vmem:[#allocation5 + $0x8a4] ss:$16 sps:$4 sm:$0xff]   ;;  %v8634_v32 = vpack.c.bf16 %v126_v30, %v126_v30 }
  0xb0   :  { %4928 = vmatprep.subr.bf16.mxu1 %v7303_v33  ;;  %v7375_v33 = vld [vmem:[#allocation5 + $0xaa4] ss:$16 sps:$4 sm:$0xff]  }
  0xb1   :  { %v7453_v30 = vld [vmem:[#allocation5 + $0xb04] ss:$16 sps:$4 sm:$0xff]  }
  0xb2   :  { %4888 = vmatpush1.bf16.msra.mxu0 %v7298_v35  ;;  %v7373_v35 = vld [vmem:[#allocation5 + $0xaa0] ss:$16 sps:$4 sm:$0xff]  }
  0xb3   :  { %4929 = vmatpush1.bf16.msra.mxu1 %v7301_v36  ;;  %4889 = vmatprep.subr.bf16.mxu0 %v7306_v39  ;;  %v7378_v36 = vld [vmem:[#allocation5 + $0x884] ss:$16 sps:$4 sm:$0xff]   ;;  %v7376_v39 = vld [vmem:[#allocation5 + $0x880] ss:$16 sps:$4 sm:$0xff]  }
  0xb4   :  { %4930 = vmatprep.subr.bf16.mxu1 %v7309_v41  ;;  %v7379_v41 = vld [vmem:[#allocation5 + $0xa80] ss:$16 sps:$4 sm:$0xff]  }
  0xb6   :  { %4890 = vmatpush1.bf16.msra.mxu0 %v7304_v42  ;;  %v7384_v42 = vld [vmem:[#allocation5 + $0x864] ss:$16 sps:$4 sm:$0xff]  }
  0xb7   :  { %4931 = vmatpush1.bf16.msra.mxu1 %v7307_v43  ;;  %4891 = vmatprep.subr.bf16.mxu0 %v7312_v44  ;;  %v7387_v43 = vld [vmem:[#allocation5 + $0xa64] ss:$16 sps:$4 sm:$0xff]   ;;  %v7382_v44 = vld [vmem:[#allocation5 + $0x860] ss:$16 sps:$4 sm:$0xff]  }
  0xb8   :  { %4932 = vmatprep.subr.bf16.mxu1 %v7315_v45  ;;  %v7385_v45 = vld [vmem:[#allocation5 + $0xa60] ss:$16 sps:$4 sm:$0xff]  }
  0xba   :  { %4892 = vmatpush2.bf16.msra.mxu0 %v7310_v46  ;;  %v7390_v46 = vld [vmem:[#allocation5 + $0x844] ss:$16 sps:$4 sm:$0xff]  }
  0xbb   :  { %4933 = vmatpush2.bf16.msra.mxu1 %v7313_v47  ;;  %4893 = vmatprep.subr.bf16.mxu0 %v7318_v48  ;;  %v7393_v47 = vld [vmem:[#allocation5 + $0xa44] ss:$16 sps:$4 sm:$0xff]   ;;  %v7388_v48 = vld [vmem:[#allocation5 + $0x840] ss:$16 sps:$4 sm:$0xff]  }
  0xbc   :  { %4934 = vmatprep.subr.bf16.mxu1 %v7321_v50  ;;  %v7391_v50 = vld [vmem:[#allocation5 + $0xa40] ss:$16 sps:$4 sm:$0xff]  }
  0xbe   :  { %4894 = vmatpush2.bf16.msra.mxu0 %v7316_v51  ;;  %v7396_v51 = vld [vmem:[#allocation5 + $0x824] ss:$16 sps:$4 sm:$0xff]  }
  0xbf   :  { %4935 = vmatpush2.bf16.msra.mxu1 %v7319_v53  ;;  %4895 = vmatprep.subr.bf16.mxu0 %v7324_v54  ;;  %v7399_v53 = vld [vmem:[#allocation5 + $0xa24] ss:$16 sps:$4 sm:$0xff]   ;;  %v7394_v54 = vld [vmem:[#allocation5 + $0x820] ss:$16 sps:$4 sm:$0xff]  }
  0xc0   :  { %4936 = vmatprep.subr.bf16.mxu1 %v7327_v55  ;;  %v7397_v55 = vld [vmem:[#allocation5 + $0xa20] ss:$16 sps:$4 sm:$0xff]  }
  0xc2   :  { %4896 = vmatpush2.bf16.msra.mxu0 %v7322_v56  ;;  %v7402_v56 = vld [vmem:[#allocation5 + $0x804] ss:$16 sps:$4 sm:$0xff]  }
  0xc3   :  { %4937 = vmatpush2.bf16.msra.mxu1 %v7325_v57  ;;  %4897 = vmatprep.subr.bf16.mxu0 %v7330_v58  ;;  %v7405_v57 = vld [vmem:[#allocation5 + $0xa04] ss:$16 sps:$4 sm:$0xff]   ;;  %v7400_v58 = vld [vmem:[#allocation5 + $0x800] ss:$16 sps:$4 sm:$0xff]  }
  0xc4   :  { %4938 = vmatprep.subr.bf16.mxu1 %v7333_v59  ;;  %v7403_v59 = vld [vmem:[#allocation5 + $0xa00] ss:$16 sps:$4 sm:$0xff]  }
  0xc6   :  { %4898 = vmatpush2.bf16.msra.mxu0 %v7328_v60  ;;  %v7408_v60 = vld [vmem:[#allocation5 + $0x9e4] ss:$16 sps:$4 sm:$0xff]  }
  0xc7   :  { %4939 = vmatpush2.bf16.msra.mxu1 %v7331_v61  ;;  %4899 = vmatprep.subr.bf16.mxu0 %v7336_v62  ;;  %v7411_v61 = vld [vmem:[#allocation5 + $0xbe4] ss:$16 sps:$4 sm:$0xff]   ;;  %v7406_v62 = vld [vmem:[#allocation5 + $0x9e0] ss:$16 sps:$4 sm:$0xff]  }
  0xc8   :  { %4940 = vmatprep.subr.bf16.mxu1 %v7339_v63  ;;  %v7409_v63 = vld [vmem:[#allocation5 + $0xbe0] ss:$16 sps:$4 sm:$0xff]  }
  0xca   :  { %4900 = vmatpush2.bf16.msra.mxu0 %v7334_v0  ;;  %v7414_v0 = vld [vmem:[#allocation5 + $0x9c4] ss:$16 sps:$4 sm:$0xff]  }
  0xcb   :  { %4941 = vmatpush2.bf16.msra.mxu1 %v7337_v1  ;;  %4901 = vmatprep.subr.bf16.mxu0 %v7342_v2  ;;  %v7417_v1 = vld [vmem:[#allocation5 + $0xbc4] ss:$16 sps:$4 sm:$0xff]   ;;  %v7412_v2 = vld [vmem:[#allocation5 + $0x9c0] ss:$16 sps:$4 sm:$0xff]  }
  0xcc   :  { %4942 = vmatprep.subr.bf16.mxu1 %v7345_v3  ;;  %v7415_v3 = vld [vmem:[#allocation5 + $0xbc0] ss:$16 sps:$4 sm:$0xff]  }
  0xce   :  { %4902 = vmatpush2.bf16.msra.mxu0 %v7340_v4  ;;  %v7420_v4 = vld [vmem:[#allocation5 + $0x9a4] ss:$16 sps:$4 sm:$0xff]  }
  0xcf   :  { %4943 = vmatpush2.bf16.msra.mxu1 %v7343_v5  ;;  %4903 = vmatprep.subr.bf16.mxu0 %v7348_v6  ;;  %v7423_v5 = vld [vmem:[#allocation5 + $0xba4] ss:$16 sps:$4 sm:$0xff]   ;;  %v7418_v6 = vld [vmem:[#allocation5 + $0x9a0] ss:$16 sps:$4 sm:$0xff]  }
  0xd0   :  { %4944 = vmatprep.subr.bf16.mxu1 %v7351_v7  ;;  %v7421_v7 = vld [vmem:[#allocation5 + $0xba0] ss:$16 sps:$4 sm:$0xff]  }
  0xd2   :  { %4904 = vmatpush2.bf16.msra.mxu0 %v7346_v10  ;;  %v7426_v10 = vld [vmem:[#allocation5 + $0x984] ss:$16 sps:$4 sm:$0xff]  }
  0xd3   :  { %4945 = vmatpush2.bf16.msra.mxu1 %v7349_v11  ;;  %4905 = vmatprep.subr.bf16.mxu0 %v7354_v12  ;;  %v7429_v11 = vld [vmem:[#allocation5 + $0xb84] ss:$16 sps:$4 sm:$0xff]   ;;  %v7424_v12 = vld [vmem:[#allocation5 + $0x980] ss:$16 sps:$4 sm:$0xff]  }
  0xd4   :  { %4946 = vmatprep.subr.bf16.mxu1 %v7357_v13  ;;  %v7427_v13 = vld [vmem:[#allocation5 + $0xb80] ss:$16 sps:$4 sm:$0xff]  }
  0xd6   :  { %4906 = vmatpush2.bf16.msra.mxu0 %v7352_v14  ;;  %v7432_v14 = vld [vmem:[#allocation5 + $0x964] ss:$16 sps:$4 sm:$0xff]  }
  0xd7   :  { %4947 = vmatpush2.bf16.msra.mxu1 %v7355_v15  ;;  %4957 = vmatprep.subr.bf16.mxu0 %v7360_v18  ;;  %v7435_v15 = vld [vmem:[#allocation5 + $0xb64] ss:$16 sps:$4 sm:$0xff]  }
  0xd8   :  { %4998 = vmatprep.subr.bf16.mxu1 %v7363_v19  ;;  %v7438_v18 = vld [vmem:[#allocation5 + $0x944] ss:$16 sps:$4 sm:$0xff]  }
  0xd9   :  { %4908 = vmatmul.mubr.bf16.vlgmr.msra.gmra.mxu0 %v8626_v20  ;;  %v7441_v19 = vld [vmem:[#allocation5 + $0xb44] ss:$16 sps:$4 sm:$0xff]  }
  0xda   :  { %4949 = vmatmul.mubr.bf16.vlgmr.msra.gmra.mxu1 %v8628_v21  ;;  %4958 = vmatpush1.bf16.msra.mxu0 %v7358_v22  ;;  %v7436_v22 = vld [vmem:[#allocation5 + $0x940] ss:$16 sps:$4 sm:$0xff]  }
  0xdb   :  { %4999 = vmatpush1.bf16.msra.mxu1 %v7361_v23  ;;  %4959 = vmatprep.subr.bf16.mxu0 %v7366_v24  ;;  %v7439_v23 = vld [vmem:[#allocation5 + $0xb40] ss:$16 sps:$4 sm:$0xff]   ;;  %v7444_v24 = vld [vmem:[#allocation5 + $0x924] ss:$16 sps:$4 sm:$0xff]  }
  0xdc   :  { %5000 = vmatprep.subr.bf16.mxu1 %v7369_v25  ;;  %4989 = vmatprep.mubr.bf16.mxu0 %v8632_v29  ;;  %v7447_v25 = vld [vmem:[#allocation5 + $0xb24] ss:$16 sps:$4 sm:$0xff]  }
  0xdd   :  { %5030 = vmatprep.mubr.bf16.mxu1 %v8634_v32 }
  0xde   :  { %4960 = vmatpush1.bf16.msra.mxu0 %v7364_v27  ;;  %v7445_v27 = vld [vmem:[#allocation5 + $0xb20] ss:$16 sps:$4 sm:$0xff]  }
  0xdf   :  { %5001 = vmatpush1.bf16.msra.mxu1 %v7367_v28  ;;  %4961 = vmatprep.subr.bf16.mxu0 %v7372_v31  ;;  %v7450_v28 = vld [vmem:[#allocation5 + $0x904] ss:$16 sps:$4 sm:$0xff]   ;;  %v7448_v31 = vld [vmem:[#allocation5 + $0x900] ss:$16 sps:$4 sm:$0xff]  }
  0xe0   :  { %5002 = vmatprep.subr.bf16.mxu1 %v7375_v33  ;;  %v7451_v33 = vld [vmem:[#allocation5 + $0xb00] ss:$16 sps:$4 sm:$0xff]  }
  0xe2   :  { %4962 = vmatpush1.bf16.msra.mxu0 %v7370_v34  ;;  %v123_v34 = vld [vmem:[#allocation2 + $0x40] sm:$0xff] }
  0xe3   :  { %5003 = vmatpush1.bf16.msra.mxu1 %v7373_v35  ;;  %4963 = vmatprep.subr.bf16.mxu0 %v7378_v36  ;;  %v125_v35 = vld [vmem:[#allocation2 + $0x50] sm:$0xff] }
  0xe4   :  { %5004 = vmatprep.subr.bf16.mxu1 %v7381_v38  ;;  %v7456_v36 = vld [vmem:[#allocation5 + $0xce4] ss:$16 sps:$4 sm:$0xff]  }
  0xe5   :  { %v7459_v38 = vld [vmem:[#allocation5 + $0xee4] ss:$16 sps:$4 sm:$0xff]  }
  0xe6   :  { %4964 = vmatpush1.bf16.msra.mxu0 %v7376_v39  ;;  %v7454_v39 = vld [vmem:[#allocation5 + $0xce0] ss:$16 sps:$4 sm:$0xff]  }
  0xe7   :  { %5005 = vmatpush1.bf16.msra.mxu1 %v7379_v41  ;;  %4965 = vmatprep.subr.bf16.mxu0 %v7384_v42  ;;  %v128_v41 = vld [vmem:[#allocation2 + $0x68] sm:$0xff]  ;;  %v8638_v42 = vpack.c.bf16 %v123_v34, %v123_v34  ;;  %v7520_v34 = vld [vmem:[#allocation5 + $0xd80] ss:$16 sps:$4 sm:$0xff]  }
  0xe8   :  { %5006 = vmatprep.subr.bf16.mxu1 %v7387_v43  ;;  %v8640_v43 = vpack.c.bf16 %v125_v35, %v125_v35  ;;  %v7523_v35 = vld [vmem:[#allocation5 + $0xf80] ss:$16 sps:$4 sm:$0xff]  }
  0xea   :  { %4966 = vmatpush1.bf16.msra.mxu0 %v7382_v44  ;;  %v130_v44 = vld [vmem:[#allocation2 + $0x78] sm:$0xff] }
  0xeb   :  { %5007 = vmatpush1.bf16.msra.mxu1 %v7385_v45  ;;  %4967 = vmatprep.subr.bf16.mxu0 %v7390_v46  ;;  %v7457_v45 = vld [vmem:[#allocation5 + $0xee0] ss:$16 sps:$4 sm:$0xff]   ;;  %v7462_v46 = vld [vmem:[#allocation5 + $0xcc4] ss:$16 sps:$4 sm:$0xff]  }
  0xec   :  { %5008 = vmatprep.subr.bf16.mxu1 %v7393_v47  ;;  %v7465_v47 = vld [vmem:[#allocation5 + $0xec4] ss:$16 sps:$4 sm:$0xff]  }
  0xee   :  { %4968 = vmatpush1.bf16.msra.mxu0 %v7388_v48  ;;  %v8642_v48 = vpack.c.bf16 %v128_v41, %v128_v41  ;;  %v7529_v41 = vld [vmem:[#allocation5 + $0xf60] ss:$16 sps:$4 sm:$0xff]  }
  0xef   :  { %5009 = vmatpush1.bf16.msra.mxu1 %v7391_v50  ;;  %4969 = vmatprep.subr.bf16.mxu0 %v7396_v51  ;;  %v8644_v50 = vpack.c.bf16 %v130_v44, %v130_v44  ;;  %v7460_v51 = vld [vmem:[#allocation5 + $0xcc0] ss:$16 sps:$4 sm:$0xff]   ;;  %v7534_v44 = vld [vmem:[#allocation5 + $0xd44] ss:$16 sps:$4 sm:$0xff]  }
  0xf0   :  { %5010 = vmatprep.subr.bf16.mxu1 %v7399_v53  ;;  %v7463_v53 = vld [vmem:[#allocation5 + $0xec0] ss:$16 sps:$4 sm:$0xff]  }
  0xf2   :  { %4970 = vmatpush1.bf16.msra.mxu0 %v7394_v54  ;;  %v7468_v54 = vld [vmem:[#allocation5 + $0xca4] ss:$16 sps:$4 sm:$0xff]  }
  0xf3   :  { %5011 = vmatpush1.bf16.msra.mxu1 %v7397_v55  ;;  %4971 = vmatprep.subr.bf16.mxu0 %v7402_v56  ;;  %v7471_v55 = vld [vmem:[#allocation5 + $0xea4] ss:$16 sps:$4 sm:$0xff]   ;;  %v7466_v56 = vld [vmem:[#allocation5 + $0xca0] ss:$16 sps:$4 sm:$0xff]  }
  0xf4   :  { %5012 = vmatprep.subr.bf16.mxu1 %v7405_v57  ;;  %v7469_v57 = vld [vmem:[#allocation5 + $0xea0] ss:$16 sps:$4 sm:$0xff]  }
  0xf6   :  { %4972 = vmatpush1.bf16.msra.mxu0 %v7400_v58  ;;  %v7474_v58 = vld [vmem:[#allocation5 + $0xc84] ss:$16 sps:$4 sm:$0xff]  }
  0xf7   :  { %5013 = vmatpush1.bf16.msra.mxu1 %v7403_v59  ;;  %4973 = vmatprep.subr.bf16.mxu0 %v7408_v60  ;;  %v7477_v59 = vld [vmem:[#allocation5 + $0xe84] ss:$16 sps:$4 sm:$0xff]   ;;  %v7472_v60 = vld [vmem:[#allocation5 + $0xc80] ss:$16 sps:$4 sm:$0xff]  }
  0xf8   :  { %5014 = vmatprep.subr.bf16.mxu1 %v7411_v61  ;;  %v7475_v61 = vld [vmem:[#allocation5 + $0xe80] ss:$16 sps:$4 sm:$0xff]  }
  0xfa   :  { %4974 = vmatpush2.bf16.msra.mxu0 %v7406_v62  ;;  %v7480_v62 = vld [vmem:[#allocation5 + $0xc64] ss:$16 sps:$4 sm:$0xff]  }
  0xfb   :  { %5015 = vmatpush2.bf16.msra.mxu1 %v7409_v63  ;;  %4975 = vmatprep.subr.bf16.mxu0 %v7414_v0  ;;  %v7483_v63 = vld [vmem:[#allocation5 + $0xe64] ss:$16 sps:$4 sm:$0xff]   ;;  %v7478_v0 = vld [vmem:[#allocation5 + $0xc60] ss:$16 sps:$4 sm:$0xff]  }
  0xfc   :  { %5016 = vmatprep.subr.bf16.mxu1 %v7417_v1  ;;  %v7481_v1 = vld [vmem:[#allocation5 + $0xe60] ss:$16 sps:$4 sm:$0xff]  }
  0xfe   :  { %4976 = vmatpush2.bf16.msra.mxu0 %v7412_v2  ;;  %v7486_v2 = vld [vmem:[#allocation5 + $0xc44] ss:$16 sps:$4 sm:$0xff]  }
  0xff   :  { %5017 = vmatpush2.bf16.msra.mxu1 %v7415_v3  ;;  %4977 = vmatprep.subr.bf16.mxu0 %v7420_v4  ;;  %v7489_v3 = vld [vmem:[#allocation5 + $0xe44] ss:$16 sps:$4 sm:$0xff]   ;;  %v7484_v4 = vld [vmem:[#allocation5 + $0xc40] ss:$16 sps:$4 sm:$0xff]  }
 0x100   :  { %5018 = vmatprep.subr.bf16.mxu1 %v7423_v5  ;;  %v7487_v5 = vld [vmem:[#allocation5 + $0xe40] ss:$16 sps:$4 sm:$0xff]  }
 0x102   :  { %4978 = vmatpush2.bf16.msra.mxu0 %v7418_v6  ;;  %v7492_v6 = vld [vmem:[#allocation5 + $0xc24] ss:$16 sps:$4 sm:$0xff]  }
 0x103   :  { %5019 = vmatpush2.bf16.msra.mxu1 %v7421_v7  ;;  %4979 = vmatprep.subr.bf16.mxu0 %v7426_v10  ;;  %v7495_v7 = vld [vmem:[#allocation5 + $0xe24] ss:$16 sps:$4 sm:$0xff]   ;;  %v7490_v10 = vld [vmem:[#allocation5 + $0xc20] ss:$16 sps:$4 sm:$0xff]  }
 0x104   :  { %5020 = vmatprep.subr.bf16.mxu1 %v7429_v11  ;;  %v7493_v11 = vld [vmem:[#allocation5 + $0xe20] ss:$16 sps:$4 sm:$0xff]  }
 0x106   :  { %4980 = vmatpush2.bf16.msra.mxu0 %v7424_v12  ;;  %v7498_v12 = vld [vmem:[#allocation5 + $0xc04] ss:$16 sps:$4 sm:$0xff]  }
 0x107   :  { %5021 = vmatpush2.bf16.msra.mxu1 %v7427_v13  ;;  %4981 = vmatprep.subr.bf16.mxu0 %v7432_v14  ;;  %v7501_v13 = vld [vmem:[#allocation5 + $0xe04] ss:$16 sps:$4 sm:$0xff]   ;;  %v7496_v14 = vld [vmem:[#allocation5 + $0xc00] ss:$16 sps:$4 sm:$0xff]  }
 0x108   :  { %5022 = vmatprep.subr.bf16.mxu1 %v7435_v15  ;;  %v7499_v15 = vld [vmem:[#allocation5 + $0xe00] ss:$16 sps:$4 sm:$0xff]  }
 0x10a   :  { %4982 = vmatpush2.bf16.msra.mxu0 %v7430_v16  ;;  %v7504_v16 = vld [vmem:[#allocation5 + $0xde4] ss:$16 sps:$4 sm:$0xff]  }
 0x10b   :  { %5023 = vmatpush2.bf16.msra.mxu1 %v7433_v17  ;;  %4983 = vmatprep.subr.bf16.mxu0 %v7438_v18  ;;  %v7507_v17 = vld [vmem:[#allocation5 + $0xfe4] ss:$16 sps:$4 sm:$0xff]   ;;  %v7502_v18 = vld [vmem:[#allocation5 + $0xde0] ss:$16 sps:$4 sm:$0xff]  }
 0x10c   :  { %5024 = vmatprep.subr.bf16.mxu1 %v7441_v19  ;;  %v7505_v19 = vld [vmem:[#allocation5 + $0xfe0] ss:$16 sps:$4 sm:$0xff]  }
 0x10e   :  { %4984 = vmatpush2.bf16.msra.mxu0 %v7436_v22  ;;  %v7510_v22 = vld [vmem:[#allocation5 + $0xdc4] ss:$16 sps:$4 sm:$0xff]  }
 0x10f   :  { %5025 = vmatpush2.bf16.msra.mxu1 %v7439_v23  ;;  %4985 = vmatprep.subr.bf16.mxu0 %v7444_v24  ;;  %v7513_v23 = vld [vmem:[#allocation5 + $0xfc4] ss:$16 sps:$4 sm:$0xff]   ;;  %v7508_v24 = vld [vmem:[#allocation5 + $0xdc0] ss:$16 sps:$4 sm:$0xff]  }
 0x110   :  { %5026 = vmatprep.subr.bf16.mxu1 %v7447_v25  ;;  %v7511_v25 = vld [vmem:[#allocation5 + $0xfc0] ss:$16 sps:$4 sm:$0xff]  }
 0x112   :  { %4986 = vmatpush2.bf16.msra.mxu0 %v7442_v26  ;;  %v7516_v26 = vld [vmem:[#allocation5 + $0xda4] ss:$16 sps:$4 sm:$0xff]  }
 0x113   :  { %5027 = vmatpush2.bf16.msra.mxu1 %v7445_v27  ;;  %4987 = vmatprep.subr.bf16.mxu0 %v7450_v28  ;;  %v7519_v27 = vld [vmem:[#allocation5 + $0xfa4] ss:$16 sps:$4 sm:$0xff]   ;;  %v7514_v28 = vld [vmem:[#allocation5 + $0xda0] ss:$16 sps:$4 sm:$0xff]  }
 0x114   :  { %5028 = vmatprep.subr.bf16.mxu1 %v7453_v30  ;;  %v7517_v30 = vld [vmem:[#allocation5 + $0xfa0] ss:$16 sps:$4 sm:$0xff]  }
 0x116   :  { %4988 = vmatpush2.bf16.msra.mxu0 %v7448_v31  ;;  %v7522_v31 = vld [vmem:[#allocation5 + $0xd84] ss:$16 sps:$4 sm:$0xff]  }
 0x117   :  { %5029 = vmatpush2.bf16.msra.mxu1 %v7451_v33  ;;  %5039 = vmatprep.subr.bf16.mxu0 %v7456_v36  ;;  %v7525_v33 = vld [vmem:[#allocation5 + $0xf84] ss:$16 sps:$4 sm:$0xff]  }
 0x118   :  { %5080 = vmatprep.subr.bf16.mxu1 %v7459_v38  ;;  %v7528_v36 = vld [vmem:[#allocation5 + $0xd64] ss:$16 sps:$4 sm:$0xff]  }
 0x119   :  { %4990 = vmatmul.mubr.bf16.vlgmr.msra.gmra.mxu0 %v8638_v42  ;;  %v7531_v38 = vld [vmem:[#allocation5 + $0xf64] ss:$16 sps:$4 sm:$0xff]  }
 0x11a   :  { %5031 = vmatmul.mubr.bf16.vlgmr.msra.gmra.mxu1 %v8640_v43  ;;  %5040 = vmatpush1.bf16.msra.mxu0 %v7454_v39  ;;  %v7526_v39 = vld [vmem:[#allocation5 + $0xd60] ss:$16 sps:$4 sm:$0xff]  }
 0x11b   :  { %5081 = vmatpush1.bf16.msra.mxu1 %v7457_v45  ;;  %5041 = vmatprep.subr.bf16.mxu0 %v7462_v46  ;;  %v7537_v45 = vld [vmem:[#allocation5 + $0xf44] ss:$16 sps:$4 sm:$0xff]   ;;  %v7532_v46 = vld [vmem:[#allocation5 + $0xd40] ss:$16 sps:$4 sm:$0xff]  }
 0x11c   :  { %5082 = vmatprep.subr.bf16.mxu1 %v7465_v47  ;;  %5071 = vmatprep.mubr.bf16.mxu0 %v8642_v48  ;;  %v7535_v47 = vld [vmem:[#allocation5 + $0xf40] ss:$16 sps:$4 sm:$0xff]  }
 0x11d   :  { %5112 = vmatprep.mubr.bf16.mxu1 %v8644_v50 }
 0x11e   :  { %5042 = vmatpush1.bf16.msra.mxu0 %v7460_v51  ;;  %v933_v51 = vlaneseq }
 0x11f   :  { %5083 = vmatpush1.bf16.msra.mxu1 %v7463_v53  ;;  %5043 = vmatprep.subr.bf16.mxu0 %v7468_v54  ;;  %v7540_v53 = vld [vmem:[#allocation5 + $0xd24] ss:$16 sps:$4 sm:$0xff]  }
 0x120   :  { %5084 = vmatprep.subr.bf16.mxu1 %v7471_v55  ;;  %v7543_v54 = vld [vmem:[#allocation5 + $0xf24] ss:$16 sps:$4 sm:$0xff]   ;;  %v7538_v55 = vld [vmem:[#allocation5 + $0xd20] ss:$16 sps:$4 sm:$0xff]  }
 0x122   :  { %5044 = vmatpush1.bf16.msra.mxu0 %v7466_v56  ;;  %v7541_v56 = vld [vmem:[#allocation5 + $0xf20] ss:$16 sps:$4 sm:$0xff]  }
 0x123   :  { %5085 = vmatpush1.bf16.msra.mxu1 %v7469_v57  ;;  %5045 = vmatprep.subr.bf16.mxu0 %v7474_v58  ;;  %v8650_v57 = vshrl.u32 %v933_v51, 7  ;;  %v7546_v58 = vld [vmem:[#allocation5 + $0xd04] ss:$16 sps:$4 sm:$0xff]   ;;  %v7571_v51 = vld [vmem:[#allocation5 + $0x1280] ss:$16 sps:$4 sm:$0xff]  }
 0x124   :  { %5086 = vmatprep.subr.bf16.mxu1 %v7477_v59  ;;  %v7549_v59 = vld [vmem:[#allocation5 + $0xf04] ss:$16 sps:$4 sm:$0xff]  }
 0x126   :  { %5046 = vmatpush1.bf16.msra.mxu0 %v7472_v60  ;;  %v7544_v60 = vld [vmem:[#allocation5 + $0xd00] ss:$16 sps:$4 sm:$0xff]  }
 0x127   :  { %5087 = vmatpush1.bf16.msra.mxu1 %v7475_v61  ;;  %5047 = vmatprep.subr.bf16.mxu0 %v7480_v62  ;;  %v7547_v61 = vld [vmem:[#allocation5 + $0xf00] ss:$16 sps:$4 sm:$0xff]  }
 0x128   :  { %5088 = vmatprep.subr.bf16.mxu1 %v7483_v63  ;;  %v931_v62 = vld [vmem:[#allocation7] sm:$0xf] }
 0x129   :  { %v127_v63 = vld [vmem:[#allocation2 + $0x60] sm:$0xff] }
 0x12a   :  { %5048 = vmatpush1.bf16.msra.mxu0 %v7478_v0  ;;  %v935_v0 = vsub.s32 0, %v8650_v57 }
 0x12b   :  { %5089 = vmatpush1.bf16.msra.mxu1 %v7481_v1  ;;  %5049 = vmatprep.subr.bf16.mxu0 %v7486_v2  ;;  %v129_v1 = vld [vmem:[#allocation2 + $0x70] sm:$0xff] }
 0x12c   :  { %5090 = vmatprep.subr.bf16.mxu1 %v7489_v3  ;;  %v7552_v2 = vld [vmem:[#allocation5 + $0x10e4] ss:$16 sps:$4 sm:$0xff]  }
 0x12d   :  { %v7555_v3 = vld [vmem:[#allocation5 + $0x12e4] ss:$16 sps:$4 sm:$0xff]  }
 0x12e   :  { %5050 = vmatpush1.bf16.msra.mxu0 %v7484_v4  ;;  %v7550_v4 = vld [vmem:[#allocation5 + $0x10e0] ss:$16 sps:$4 sm:$0xff]  }
 0x12f   :  { %5091 = vmatpush1.bf16.msra.mxu1 %v7487_v5  ;;  %5051 = vmatprep.subr.bf16.mxu0 %v7492_v6  ;;  %v939_v5 = vsub.s32 1, %v8650_v57  ;;  %v132_v6 = vld [vmem:[#allocation2 + $0x88] sm:$0xff] }
 0x130   :  { %5092 = vmatprep.subr.bf16.mxu1 %v7495_v7  ;;  %v8654_v7 = vpack.c.bf16 %v127_v63, %v127_v63  ;;  %v7591_v63 = vld [vmem:[#allocation5 + $0x1224] ss:$16 sps:$4 sm:$0xff]  }
 0x132   :  { %5052 = vmatpush1.bf16.msra.mxu0 %v7490_v10  ;;  %v8656_v10 = vpack.c.bf16 %v129_v1, %v129_v1  ;;  %v7589_v1 = vld [vmem:[#allocation5 + $0x1220] ss:$16 sps:$4 sm:$0xff]  }
 0x133   :  { %5093 = vmatpush1.bf16.msra.mxu1 %v7493_v11  ;;  %5053 = vmatprep.subr.bf16.mxu0 %v7498_v12  ;;  %v134_v11 = vld [vmem:[#allocation2 + $0x98] sm:$0xff]  ;;  %v936_v12 = vrot.slane %v931_v62, %v935_v0  ;;  %v7586_v0 = vld [vmem:[#allocation5 + $0x1020] ss:$16 sps:$4 sm:$0xff]  }
 0x134   :  { %5094 = vmatprep.subr.bf16.mxu1 %v7501_v13  ;;  %v7553_v13 = vld [vmem:[#allocation5 + $0x12e0] ss:$16 sps:$4 sm:$0xff]  }
 0x136   :  { %5054 = vmatpush1.bf16.msra.mxu0 %v7496_v14  ;;  %v7558_v14 = vld [vmem:[#allocation5 + $0x10c4] ss:$16 sps:$4 sm:$0xff]  }
 0x137   :  { %5095 = vmatpush1.bf16.msra.mxu1 %v7499_v15  ;;  %5055 = vmatprep.subr.bf16.mxu0 %v7504_v16  ;;  %v7561_v15 = vld [vmem:[#allocation5 + $0x12c4] ss:$16 sps:$4 sm:$0xff]   ;;  %v940_v16 = vrot.slane %v931_v62, %v939_v5  ;;  %v7595_v5 = vld [vmem:[#allocation5 + $0x1200] ss:$16 sps:$4 sm:$0xff]  }
 0x138   :  { %5096 = vmatprep.subr.bf16.mxu1 %v7507_v17  ;;  %v8658_v17 = vpack.c.bf16 %v132_v6, %v132_v6  ;;  %v7588_v62 = vld [vmem:[#allocation5 + $0x1024] ss:$16 sps:$4 sm:$0xff]  }
 0x139   :  { %v7600_v6 = vld [vmem:[#allocation5 + $0x11e4] ss:$16 sps:$4 sm:$0xff]  }
 0x13a   :  { %5056 = vmatpush2.bf16.msra.mxu0 %v7502_v18  ;;  %v8660_v18 = vpack.c.bf16 %v134_v11, %v134_v11  ;;  %v7603_v11 = vld [vmem:[#allocation5 + $0x13e4] ss:$16 sps:$4 sm:$0xff]  }
 0x13b   :  { %5097 = vmatpush2.bf16.msra.mxu1 %v7505_v19  ;;  %5057 = vmatprep.subr.bf16.mxu0 %v7510_v22 }
 0x13c   :  { %5098 = vmatprep.subr.bf16.mxu1 %v7513_v23  ;;  %v7556_v23 = vld [vmem:[#allocation5 + $0x10c0] ss:$16 sps:$4 sm:$0xff]  }
 0x13e   :  { %5058 = vmatpush2.bf16.msra.mxu0 %v7508_v24 }
 0x13f   :  { %5099 = vmatpush2.bf16.msra.mxu1 %v7511_v25  ;;  %5059 = vmatprep.subr.bf16.mxu0 %v7516_v26  ;;  %v7559_v25 = vld [vmem:[#allocation5 + $0x12c0] ss:$16 sps:$4 sm:$0xff]  }
 0x140   :  { %5100 = vmatprep.subr.bf16.mxu1 %v7519_v27 }
 0x142   :  { %5060 = vmatpush2.bf16.msra.mxu0 %v7514_v28  ;;  %v7564_v28 = vld [vmem:[#allocation5 + $0x10a4] ss:$16 sps:$4 sm:$0xff]  }
 0x143   :  { %5101 = vmatpush2.bf16.msra.mxu1 %v7517_v30  ;;  %5061 = vmatprep.subr.bf16.mxu0 %v7522_v31  ;;  %v7567_v30 = vld [vmem:[#allocation5 + $0x12a4] ss:$16 sps:$4 sm:$0xff]  }
 0x144   :  { %5102 = vmatprep.subr.bf16.mxu1 %v7525_v33 }
 0x146   :  { %5062 = vmatpush2.bf16.msra.mxu0 %v7520_v34 }
 0x147   :  { %5103 = vmatpush2.bf16.msra.mxu1 %v7523_v35  ;;  %5063 = vmatprep.subr.bf16.mxu0 %v7528_v36  ;;  %v7562_v36 = vld [vmem:[#allocation5 + $0x10a0] ss:$16 sps:$4 sm:$0xff]  }
 0x148   :  { %5104 = vmatprep.subr.bf16.mxu1 %v7531_v38 }
 0x14a   :  { %5064 = vmatpush2.bf16.msra.mxu0 %v7526_v39  ;;  %v7565_v39 = vld [vmem:[#allocation5 + $0x12a0] ss:$16 sps:$4 sm:$0xff]  }
 0x14b   :  { %5105 = vmatpush2.bf16.msra.mxu1 %v7529_v41  ;;  %5065 = vmatprep.subr.bf16.mxu0 %v7534_v44 }
 0x14c   :  { %5106 = vmatprep.subr.bf16.mxu1 %v7537_v45  ;;  %v7570_v45 = vld [vmem:[#allocation5 + $0x1084] ss:$16 sps:$4 sm:$0xff]  }
 0x14e   :  { %5066 = vmatpush2.bf16.msra.mxu0 %v7532_v46  ;;  %v7573_v46 = vld [vmem:[#allocation5 + $0x1284] ss:$16 sps:$4 sm:$0xff]  }
 0x14f   :  { %5107 = vmatpush2.bf16.msra.mxu1 %v7535_v47  ;;  %5067 = vmatprep.subr.bf16.mxu0 %v7540_v53  ;;  %v7568_v47 = vld [vmem:[#allocation5 + $0x1080] ss:$16 sps:$4 sm:$0xff]   ;;  %v7576_v53 = vld [vmem:[#allocation5 + $0x1064] ss:$16 sps:$4 sm:$0xff]  }
 0x150   :  { %5108 = vmatprep.subr.bf16.mxu1 %v7543_v54  ;;  %v7579_v54 = vld [vmem:[#allocation5 + $0x1264] ss:$16 sps:$4 sm:$0xff]  }
 0x152   :  { %5068 = vmatpush2.bf16.msra.mxu0 %v7538_v55  ;;  %v7574_v55 = vld [vmem:[#allocation5 + $0x1060] ss:$16 sps:$4 sm:$0xff]  }
 0x153   :  { %5109 = vmatpush2.bf16.msra.mxu1 %v7541_v56  ;;  %5069 = vmatprep.subr.bf16.mxu0 %v7546_v58  ;;  %v7577_v56 = vld [vmem:[#allocation5 + $0x1260] ss:$16 sps:$4 sm:$0xff]   ;;  %v7582_v58 = vld [vmem:[#allocation5 + $0x1044] ss:$16 sps:$4 sm:$0xff]  }
 0x154   :  { %5110 = vmatprep.subr.bf16.mxu1 %v7549_v59  ;;  %v7585_v59 = vld [vmem:[#allocation5 + $0x1244] ss:$16 sps:$4 sm:$0xff]  }
 0x156   :  { %5070 = vmatpush2.bf16.msra.mxu0 %v7544_v60  ;;  %v7580_v60 = vld [vmem:[#allocation5 + $0x1040] ss:$16 sps:$4 sm:$0xff]  }
 0x157   :  { %5111 = vmatpush2.bf16.msra.mxu1 %v7547_v61  ;;  %5121 = vmatprep.subr.bf16.mxu0 %v7552_v2  ;;  %v7583_v61 = vld [vmem:[#allocation5 + $0x1240] ss:$16 sps:$4 sm:$0xff]   ;;  %v7594_v2 = vld [vmem:[#allocation5 + $0x1004] ss:$16 sps:$4 sm:$0xff]  }
 0x158   :  { %5162 = vmatprep.subr.bf16.mxu1 %v7555_v3  ;;  %v7597_v3 = vld [vmem:[#allocation5 + $0x1204] ss:$16 sps:$4 sm:$0xff]  }
 0x159   :  { %v4827_v19 = vpop.f32.mrf.mxu0  ;;  %5072 = vmatmul.mubr.bf16.vlgmr.msra.gmra.mxu0 %v8654_v7 }
 0x15a   :  { %v4868_v22 = vpop.f32.mrf.mxu1  ;;  %5113 = vmatmul.mubr.bf16.vlgmr.msra.gmra.mxu1 %v8656_v10  ;;  %v4828_v24 = vadd.f32 %v4827_v19, %v936_v12  ;;  %5122 = vmatpush1.bf16.msra.mxu0 %v7550_v4  ;;  %v7592_v4 = vld [vmem:[#allocation5 + $0x1000] ss:$16 sps:$4 sm:$0xff]  }
 0x15b   :  { %5163 = vmatpush1.bf16.msra.mxu1 %v7553_v13  ;;  %v4829_v26 = vpop.f32.mrf.mxu0  ;;  %5123 = vmatprep.subr.bf16.mxu0 %v7558_v14  ;;  %v7598_v12 = vld [vmem:[#allocation5 + $0x11e0] ss:$16 sps:$4 sm:$0xff]   ;;  %v7606_v14 = vld [vmem:[#allocation5 + $0x11c4] ss:$16 sps:$4 sm:$0xff]  }
 0x15c   :  { %v4870_v27 = vpop.f32.mrf.mxu1  ;;  %5164 = vmatprep.subr.bf16.mxu1 %v7561_v15  ;;  %v8664_v31 = vadd.f32 %v4868_v22, %v4828_v24  ;;  %v4830_v33 = vadd.f32 %v4829_v26, %v940_v16  ;;  %5153 = vmatprep.mubr.bf16.mxu0 %v8658_v17  ;;  %v7601_v13 = vld [vmem:[#allocation5 + $0x13e0] ss:$16 sps:$4 sm:$0xff]   ;;  %v7609_v15 = vld [vmem:[#allocation5 + $0x13c4] ss:$16 sps:$4 sm:$0xff]  }
 0x15d   :  { %5194 = vmatprep.mubr.bf16.mxu1 %v8660_v18  ;;  %v4831_v34 = vpop.f32.mrf.mxu0  ;;  %v7604_v16 = vld [vmem:[#allocation5 + $0x11c0] ss:$16 sps:$4 sm:$0xff]   ;;  %v7612_v22 = vld [vmem:[#allocation5 + $0x11a4] ss:$16 sps:$4 sm:$0xff]  }
 0x15e   :  { %v4872_v35 = vpop.f32.mrf.mxu1  ;;  %v8668_v38 = vadd.f32 %v4870_v27, %v4830_v33  ;;  %5124 = vmatpush1.bf16.msra.mxu0 %v7556_v23  ;;  %v7607_v19 = vld [vmem:[#allocation5 + $0x13c0] ss:$16 sps:$4 sm:$0xff]   ;;  %v7615_v23 = vld [vmem:[#allocation5 + $0x13a4] ss:$16 sps:$4 sm:$0xff]  }
 0x15f   :  { %5165 = vmatpush1.bf16.msra.mxu1 %v7559_v25  ;;  %v4832_v41 = vpop.f32.mrf.mxu0  ;;  %5125 = vmatprep.subr.bf16.mxu0 %v7564_v28  ;;  %v7610_v24 = vld [vmem:[#allocation5 + $0x11a0] ss:$16 sps:$4 sm:$0xff]   ;;  %v7618_v26 = vld [vmem:[#allocation5 + $0x1184] ss:$16 sps:$4 sm:$0xff]  }
 0x160   :  { %v4873_v44 = vpop.f32.mrf.mxu1  ;;  %5166 = vmatprep.subr.bf16.mxu1 %v7567_v30  ;;  %v7613_v25 = vld [vmem:[#allocation5 + $0x13a0] ss:$16 sps:$4 sm:$0xff]   ;;  %v7621_v27 = vld [vmem:[#allocation5 + $0x1384] ss:$16 sps:$4 sm:$0xff]  }
 0x161   :  { %v7616_v28 = vld [vmem:[#allocation5 + $0x1180] ss:$16 sps:$4 sm:$0xff]   ;;  %v7624_v33 = vld [vmem:[#allocation5 + $0x1164] ss:$16 sps:$4 sm:$0xff]  }
 0x162   :  { %5126 = vmatpush1.bf16.msra.mxu0 %v7562_v36  ;;  %v7619_v30 = vld [vmem:[#allocation5 + $0x1380] ss:$16 sps:$4 sm:$0xff]   ;;  %v7627_v34 = vld [vmem:[#allocation5 + $0x1364] ss:$16 sps:$4 sm:$0xff]  }
 0x163   :  { %5167 = vmatpush1.bf16.msra.mxu1 %v7565_v39  ;;  %5127 = vmatprep.subr.bf16.mxu0 %v7570_v45  ;;  %v7622_v35 = vld [vmem:[#allocation5 + $0x1160] ss:$16 sps:$4 sm:$0xff]   ;;  %v7630_v39 = vld [vmem:[#allocation5 + $0x1144] ss:$16 sps:$4 sm:$0xff]  }
 0x164   :  { %5168 = vmatprep.subr.bf16.mxu1 %v7573_v46  ;;  %v7625_v36 = vld [vmem:[#allocation5 + $0x1360] ss:$16 sps:$4 sm:$0xff]   ;;  %v7633_v41 = vld [vmem:[#allocation5 + $0x1344] ss:$16 sps:$4 sm:$0xff]  }
 0x165   :  { %v7628_v44 = vld [vmem:[#allocation5 + $0x1140] ss:$16 sps:$4 sm:$0xff]   ;;  %v7636_v46 = vld [vmem:[#allocation5 + $0x1124] ss:$16 sps:$4 sm:$0xff]  }
 0x166   :  { %5128 = vmatpush1.bf16.msra.mxu0 %v7568_v47  ;;  %v7631_v45 = vld [vmem:[#allocation5 + $0x1340] ss:$16 sps:$4 sm:$0xff]   ;;  %v7639_v47 = vld [vmem:[#allocation5 + $0x1324] ss:$16 sps:$4 sm:$0xff]  }
 0x167   :  { %5169 = vmatpush1.bf16.msra.mxu1 %v7571_v51  ;;  %5129 = vmatprep.subr.bf16.mxu0 %v7576_v53  ;;  %v7634_v51 = vld [vmem:[#allocation5 + $0x1120] ss:$16 sps:$4 sm:$0xff]  }
 0x168   :  { %5170 = vmatprep.subr.bf16.mxu1 %v7579_v54  ;;  %v7637_v53 = vld [vmem:[#allocation5 + $0x1320] ss:$16 sps:$4 sm:$0xff]   ;;  %v7642_v54 = vld [vmem:[#allocation5 + $0x1104] ss:$16 sps:$4 sm:$0xff]  }
 0x16a   :  { %5130 = vmatpush1.bf16.msra.mxu0 %v7574_v55  ;;  %v7645_v55 = vld [vmem:[#allocation5 + $0x1304] ss:$16 sps:$4 sm:$0xff]  }
 0x16b   :  { %5171 = vmatpush1.bf16.msra.mxu1 %v7577_v56  ;;  %5131 = vmatprep.subr.bf16.mxu0 %v7582_v58  ;;  %v7640_v56 = vld [vmem:[#allocation5 + $0x1100] ss:$16 sps:$4 sm:$0xff]  }
 0x16c   :  { %5172 = vmatprep.subr.bf16.mxu1 %v7585_v59  ;;  %v7643_v58 = vld [vmem:[#allocation5 + $0x1300] ss:$16 sps:$4 sm:$0xff]  }
 0x16d   :  { %v131_v59 = vld [vmem:[#allocation2 + $0x80] sm:$0xff] }
 0x16e   :  { %5132 = vmatpush1.bf16.msra.mxu0 %v7580_v60  ;;  %v133_v60 = vld [vmem:[#allocation2 + $0x90] sm:$0xff] }
 0x16f   :  { %5173 = vmatpush1.bf16.msra.mxu1 %v7583_v61  ;;  %5133 = vmatprep.subr.bf16.mxu0 %v7588_v62  ;;  %v7648_v61 = vld [vmem:[#allocation5 + $0x14e4] ss:$16 sps:$4 sm:$0xff]  }
 0x170   :  { %5174 = vmatprep.subr.bf16.mxu1 %v7591_v63  ;;  %v7651_v62 = vld [vmem:[#allocation5 + $0x16e4] ss:$16 sps:$4 sm:$0xff]   ;;  %v136_v63 = vld [vmem:[#allocation2 + $0xa8] sm:$0xff] }
 0x172   :  { %5134 = vmatpush1.bf16.msra.mxu0 %v7586_v0  ;;  %v138_v0 = vld [vmem:[#allocation2 + $0xb8] sm:$0xff] }
 0x173   :  { %5175 = vmatpush1.bf16.msra.mxu1 %v7589_v1  ;;  %5135 = vmatprep.subr.bf16.mxu0 %v7594_v2  ;;  %v7646_v1 = vld [vmem:[#allocation5 + $0x14e0] ss:$16 sps:$4 sm:$0xff]  }
 0x174   :  { %5176 = vmatprep.subr.bf16.mxu1 %v7597_v3  ;;  %v7649_v2 = vld [vmem:[#allocation5 + $0x16e0] ss:$16 sps:$4 sm:$0xff]   ;;  %v8670_v3 = vpack.c.bf16 %v131_v59, %v131_v59  ;;  %v7687_v59 = vld [vmem:[#allocation5 + $0x1624] ss:$16 sps:$4 sm:$0xff]  }
 0x176   :  { %5136 = vmatpush1.bf16.msra.mxu0 %v7592_v4  ;;  %v8672_v4 = vpack.c.bf16 %v133_v60, %v133_v60  ;;  %v7682_v60 = vld [vmem:[#allocation5 + $0x1420] ss:$16 sps:$4 sm:$0xff]  }
 0x177   :  { %5177 = vmatpush1.bf16.msra.mxu1 %v7595_v5  ;;  %5137 = vmatprep.subr.bf16.mxu0 %v7600_v6  ;;  %v7654_v5 = vld [vmem:[#allocation5 + $0x14c4] ss:$16 sps:$4 sm:$0xff]  }
 0x178   :  { %5178 = vmatprep.subr.bf16.mxu1 %v7603_v11  ;;  %v7657_v6 = vld [vmem:[#allocation5 + $0x16c4] ss:$16 sps:$4 sm:$0xff]   ;;  %v7652_v11 = vld [vmem:[#allocation5 + $0x14c0] ss:$16 sps:$4 sm:$0xff]  }
 0x17a   :  { %5138 = vmatpush2.bf16.msra.mxu0 %v7598_v12  ;;  %v7655_v12 = vld [vmem:[#allocation5 + $0x16c0] ss:$16 sps:$4 sm:$0xff]  }
 0x17b   :  { %5179 = vmatpush2.bf16.msra.mxu1 %v7601_v13  ;;  %5139 = vmatprep.subr.bf16.mxu0 %v7606_v14  ;;  %v8674_v13 = vpack.c.bf16 %v136_v63, %v136_v63  ;;  %v8676_v14 = vpack.c.bf16 %v138_v0, %v138_v0  ;;  %v7693_v63 = vld [vmem:[#allocation5 + $0x1604] ss:$16 sps:$4 sm:$0xff]   ;;  %v7688_v0 = vld [vmem:[#allocation5 + $0x1400] ss:$16 sps:$4 sm:$0xff]  }
 0x17c   :  { %5180 = vmatprep.subr.bf16.mxu1 %v7609_v15 }
 0x17e   :  { %5140 = vmatpush2.bf16.msra.mxu0 %v7604_v16 }
 0x17f   :  { %5181 = vmatpush2.bf16.msra.mxu1 %v7607_v19  ;;  %5141 = vmatprep.subr.bf16.mxu0 %v7612_v22 }
 0x180   :  { %5182 = vmatprep.subr.bf16.mxu1 %v7615_v23 }
 0x182   :  { %5142 = vmatpush2.bf16.msra.mxu0 %v7610_v24  ;;  %v7660_v24 = vld [vmem:[#allocation5 + $0x14a4] ss:$16 sps:$4 sm:$0xff]  }
 0x183   :  { %5183 = vmatpush2.bf16.msra.mxu1 %v7613_v25  ;;  %5143 = vmatprep.subr.bf16.mxu0 %v7618_v26  ;;  %v7663_v25 = vld [vmem:[#allocation5 + $0x16a4] ss:$16 sps:$4 sm:$0xff]  }
 0x184   :  { %5184 = vmatprep.subr.bf16.mxu1 %v7621_v27 }
 0x186   :  { %5144 = vmatpush2.bf16.msra.mxu0 %v7616_v28  ;;  %v7658_v28 = vld [vmem:[#allocation5 + $0x14a0] ss:$16 sps:$4 sm:$0xff]  }
 0x187   :  { %5185 = vmatpush2.bf16.msra.mxu1 %v7619_v30  ;;  %5145 = vmatprep.subr.bf16.mxu0 %v7624_v33  ;;  %v7661_v30 = vld [vmem:[#allocation5 + $0x16a0] ss:$16 sps:$4 sm:$0xff]  }
 0x188   :  { %5186 = vmatprep.subr.bf16.mxu1 %v7627_v34 }
 0x18a   :  { %5146 = vmatpush2.bf16.msra.mxu0 %v7622_v35 }
 0x18b   :  { %5187 = vmatpush2.bf16.msra.mxu1 %v7625_v36  ;;  %5147 = vmatprep.subr.bf16.mxu0 %v7630_v39  ;;  %v7666_v39 = vld [vmem:[#allocation5 + $0x1484] ss:$16 sps:$4 sm:$0xff]  }
 0x18c   :  { %5188 = vmatprep.subr.bf16.mxu1 %v7633_v41  ;;  %v7669_v41 = vld [vmem:[#allocation5 + $0x1684] ss:$16 sps:$4 sm:$0xff]  }
 0x18e   :  { %5148 = vmatpush2.bf16.msra.mxu0 %v7628_v44  ;;  %v7667_v44 = vld [vmem:[#allocation5 + $0x1680] ss:$16 sps:$4 sm:$0xff]  }
 0x18f   :  { %5189 = vmatpush2.bf16.msra.mxu1 %v7631_v45  ;;  %5149 = vmatprep.subr.bf16.mxu0 %v7636_v46  ;;  %v7672_v45 = vld [vmem:[#allocation5 + $0x1464] ss:$16 sps:$4 sm:$0xff]  }
 0x190   :  { %5190 = vmatprep.subr.bf16.mxu1 %v7639_v47  ;;  %v7675_v46 = vld [vmem:[#allocation5 + $0x1664] ss:$16 sps:$4 sm:$0xff]   ;;  %v7670_v47 = vld [vmem:[#allocation5 + $0x1460] ss:$16 sps:$4 sm:$0xff]  }
 0x192   :  { %5150 = vmatpush2.bf16.msra.mxu0 %v7634_v51  ;;  %v7673_v51 = vld [vmem:[#allocation5 + $0x1660] ss:$16 sps:$4 sm:$0xff]  }
 0x193   :  { %5191 = vmatpush2.bf16.msra.mxu1 %v7637_v53  ;;  %5151 = vmatprep.subr.bf16.mxu0 %v7642_v54  ;;  %v7678_v53 = vld [vmem:[#allocation5 + $0x1444] ss:$16 sps:$4 sm:$0xff]  }
 0x194   :  { %5192 = vmatprep.subr.bf16.mxu1 %v7645_v55  ;;  %v7681_v54 = vld [vmem:[#allocation5 + $0x1644] ss:$16 sps:$4 sm:$0xff]   ;;  %v7676_v55 = vld [vmem:[#allocation5 + $0x1440] ss:$16 sps:$4 sm:$0xff]  }
 0x196   :  { %5152 = vmatpush2.bf16.msra.mxu0 %v7640_v56  ;;  %v7679_v56 = vld [vmem:[#allocation5 + $0x1640] ss:$16 sps:$4 sm:$0xff]  }
 0x197   :  { %5193 = vmatpush2.bf16.msra.mxu1 %v7643_v58  ;;  %5203 = vmatprep.subr.bf16.mxu0 %v7648_v61  ;;  %v7684_v58 = vld [vmem:[#allocation5 + $0x1424] ss:$16 sps:$4 sm:$0xff]   ;;  %v7685_v61 = vld [vmem:[#allocation5 + $0x1620] ss:$16 sps:$4 sm:$0xff]  }
 0x198   :  { %5244 = vmatprep.subr.bf16.mxu1 %v7651_v62  ;;  %v7690_v62 = vld [vmem:[#allocation5 + $0x1404] ss:$16 sps:$4 sm:$0xff]  }
 0x199   :  { %v4909_v15 = vpop.f32.mrf.mxu0  ;;  %5154 = vmatmul.mubr.bf16.vlgmr.msra.gmra.mxu0 %v8670_v3 }
 0x19a   :  { %v4950_v16 = vpop.f32.mrf.mxu1  ;;  %5195 = vmatmul.mubr.bf16.vlgmr.msra.gmra.mxu1 %v8672_v4  ;;  %v4910_v19 = vadd.f32 %v4909_v15, %v8664_v31  ;;  %5204 = vmatpush1.bf16.msra.mxu0 %v7646_v1  ;;  %v7691_v1 = vld [vmem:[#allocation5 + $0x1600] ss:$16 sps:$4 sm:$0xff]   ;;  %v7705_v15 = vld [vmem:[#allocation5 + $0x17c4] ss:$16 sps:$4 sm:$0xff]  }
 0x19b   :  { %5245 = vmatpush1.bf16.msra.mxu1 %v7649_v2  ;;  %v4911_v22 = vpop.f32.mrf.mxu0  ;;  %5205 = vmatprep.subr.bf16.mxu0 %v7654_v5  ;;  %v7696_v2 = vld [vmem:[#allocation5 + $0x15e4] ss:$16 sps:$4 sm:$0xff]  }
 0x19c   :  { %v4952_v23 = vpop.f32.mrf.mxu1  ;;  %5246 = vmatprep.subr.bf16.mxu1 %v7657_v6  ;;  %v8681_v26 = vadd.f32 %v4950_v16, %v4910_v19  ;;  %v4912_v27 = vadd.f32 %v4911_v22, %v8668_v38  ;;  %5235 = vmatprep.mubr.bf16.mxu0 %v8674_v13  ;;  %v7664_v38 = vld [vmem:[#allocation5 + $0x1480] ss:$16 sps:$4 sm:$0xff]   ;;  %v7699_v5 = vld [vmem:[#allocation5 + $0x17e4] ss:$16 sps:$4 sm:$0xff]  }
 0x19d   :  { %5276 = vmatprep.mubr.bf16.mxu1 %v8676_v14  ;;  %v4913_v33 = vpop.f32.mrf.mxu0  ;;  %v7694_v6 = vld [vmem:[#allocation5 + $0x15e0] ss:$16 sps:$4 sm:$0xff]   ;;  %v7708_v22 = vld [vmem:[#allocation5 + $0x15a4] ss:$16 sps:$4 sm:$0xff]  }
 0x19e   :  { %v4954_v31 = vpop.f32.mrf.mxu1  ;;  %v8686_v34 = vadd.f32 %v4952_v23, %v4912_v27  ;;  %5206 = vmatpush1.bf16.msra.mxu0 %v7652_v11  ;;  %v7697_v11 = vld [vmem:[#allocation5 + $0x17e0] ss:$16 sps:$4 sm:$0xff]   ;;  %v7711_v23 = vld [vmem:[#allocation5 + $0x17a4] ss:$16 sps:$4 sm:$0xff]  }
 0x19f   :  { %5247 = vmatpush1.bf16.msra.mxu1 %v7655_v12  ;;  %v4914_v35 = vpop.f32.mrf.mxu0  ;;  %5207 = vmatprep.subr.bf16.mxu0 %v7660_v24  ;;  %v7702_v12 = vld [vmem:[#allocation5 + $0x15c4] ss:$16 sps:$4 sm:$0xff]   ;;  %v7700_v16 = vld [vmem:[#allocation5 + $0x15c0] ss:$16 sps:$4 sm:$0xff]  }
 0x1a0   :  { %v4955_v36 = vpop.f32.mrf.mxu1  ;;  %5248 = vmatprep.subr.bf16.mxu1 %v7663_v25  ;;  %v7703_v19 = vld [vmem:[#allocation5 + $0x17c0] ss:$16 sps:$4 sm:$0xff]   ;;  %v7714_v27 = vld [vmem:[#allocation5 + $0x1584] ss:$16 sps:$4 sm:$0xff]  }
 0x1a1   :  { %v7706_v24 = vld [vmem:[#allocation5 + $0x15a0] ss:$16 sps:$4 sm:$0xff]   ;;  %v7720_v31 = vld [vmem:[#allocation5 + $0x1564] ss:$16 sps:$4 sm:$0xff]  }
 0x1a2   :  { %5208 = vmatpush1.bf16.msra.mxu0 %v7658_v28  ;;  %v7709_v25 = vld [vmem:[#allocation5 + $0x17a0] ss:$16 sps:$4 sm:$0xff]   ;;  %v7717_v28 = vld [vmem:[#allocation5 + $0x1784] ss:$16 sps:$4 sm:$0xff]  }
 0x1a3   :  { %5249 = vmatpush1.bf16.msra.mxu1 %v7661_v30  ;;  %5209 = vmatprep.subr.bf16.mxu0 %v7666_v39  ;;  %v7712_v30 = vld [vmem:[#allocation5 + $0x1580] ss:$16 sps:$4 sm:$0xff]   ;;  %v7723_v35 = vld [vmem:[#allocation5 + $0x1764] ss:$16 sps:$4 sm:$0xff]  }
 0x1a4   :  { %5250 = vmatprep.subr.bf16.mxu1 %v7669_v41  ;;  %v7715_v33 = vld [vmem:[#allocation5 + $0x1780] ss:$16 sps:$4 sm:$0xff]   ;;  %v7726_v41 = vld [vmem:[#allocation5 + $0x1544] ss:$16 sps:$4 sm:$0xff]  }
 0x1a5   :  { %v7718_v36 = vld [vmem:[#allocation5 + $0x1560] ss:$16 sps:$4 sm:$0xff]  }
 0x1a6   :  { %5210 = vmatpush1.bf16.msra.mxu0 %v7664_v38  ;;  %v7721_v39 = vld [vmem:[#allocation5 + $0x1760] ss:$16 sps:$4 sm:$0xff]   ;;  %v7729_v38 = vld [vmem:[#allocation5 + $0x1744] ss:$16 sps:$4 sm:$0xff]  }
 0x1a7   :  { %5251 = vmatpush1.bf16.msra.mxu1 %v7667_v44  ;;  %5211 = vmatprep.subr.bf16.mxu0 %v7672_v45  ;;  %v7724_v44 = vld [vmem:[#allocation5 + $0x1540] ss:$16 sps:$4 sm:$0xff]  }
 0x1a8   :  { %5252 = vmatprep.subr.bf16.mxu1 %v7675_v46  ;;  %v7727_v45 = vld [vmem:[#allocation5 + $0x1740] ss:$16 sps:$4 sm:$0xff]   ;;  %v7732_v46 = vld [vmem:[#allocation5 + $0x1524] ss:$16 sps:$4 sm:$0xff]  }
 0x1aa   :  { %5212 = vmatpush1.bf16.msra.mxu0 %v7670_v47  ;;  %v7735_v47 = vld [vmem:[#allocation5 + $0x1724] ss:$16 sps:$4 sm:$0xff]  }
 0x1ab   :  { %5253 = vmatpush1.bf16.msra.mxu1 %v7673_v51  ;;  %5213 = vmatprep.subr.bf16.mxu0 %v7678_v53  ;;  %v7730_v51 = vld [vmem:[#allocation5 + $0x1520] ss:$16 sps:$4 sm:$0xff]  }
 0x1ac   :  { %5254 = vmatprep.subr.bf16.mxu1 %v7681_v54  ;;  %v7733_v53 = vld [vmem:[#allocation5 + $0x1720] ss:$16 sps:$4 sm:$0xff]   ;;  %v7738_v54 = vld [vmem:[#allocation5 + $0x1504] ss:$16 sps:$4 sm:$0xff]  }
 0x1ae   :  { %5214 = vmatpush1.bf16.msra.mxu0 %v7676_v55  ;;  %v7741_v55 = vld [vmem:[#allocation5 + $0x1704] ss:$16 sps:$4 sm:$0xff]  }
 0x1af   :  { %5255 = vmatpush1.bf16.msra.mxu1 %v7679_v56  ;;  %5215 = vmatprep.subr.bf16.mxu0 %v7684_v58  ;;  %v7736_v56 = vld [vmem:[#allocation5 + $0x1500] ss:$16 sps:$4 sm:$0xff]  }
 0x1b0   :  { %5256 = vmatprep.subr.bf16.mxu1 %v7687_v59  ;;  %v7739_v58 = vld [vmem:[#allocation5 + $0x1700] ss:$16 sps:$4 sm:$0xff]  }
 0x1b1   :  { %v135_v59 = vld [vmem:[#allocation2 + $0xa0] sm:$0xff] }
 0x1b2   :  { %5216 = vmatpush1.bf16.msra.mxu0 %v7682_v60  ;;  %v137_v60 = vld [vmem:[#allocation2 + $0xb0] sm:$0xff] }
 0x1b3   :  { %5257 = vmatpush1.bf16.msra.mxu1 %v7685_v61  ;;  %5217 = vmatprep.subr.bf16.mxu0 %v7690_v62  ;;  %v7744_v61 = vld [vmem:[#allocation5 + $0xec] ss:$16 sps:$4 sm:$0xff]  }
 0x1b4   :  { %5258 = vmatprep.subr.bf16.mxu1 %v7693_v63  ;;  %v7747_v62 = vld [vmem:[#allocation5 + $0x2ec] ss:$16 sps:$4 sm:$0xff]   ;;  %v7742_v63 = vld [vmem:[#allocation5 + $0xe8] ss:$16 sps:$4 sm:$0xff]  }
 0x1b6   :  { %5218 = vmatpush1.bf16.msra.mxu0 %v7688_v0  ;;  %v7745_v0 = vld [vmem:[#allocation5 + $0x2e8] ss:$16 sps:$4 sm:$0xff]  }
 0x1b7   :  { %5259 = vmatpush1.bf16.msra.mxu1 %v7691_v1  ;;  %5219 = vmatprep.subr.bf16.mxu0 %v7696_v2  ;;  %v8688_v1 = vpack.c.bf16 %v135_v59, %v135_v59  ;;  %v8690_v2 = vpack.c.bf16 %v137_v60, %v137_v60  ;;  %v7781_v59 = vld [vmem:[#allocation5 + $0x228] ss:$16 sps:$4 sm:$0xff]   ;;  %v7786_v60 = vld [vmem:[#allocation5 + $0xc] ss:$16 sps:$4 sm:$0xff]  }
 0x1b8   :  { %5260 = vmatprep.subr.bf16.mxu1 %v7699_v5  ;;  %v7750_v5 = vld [vmem:[#allocation5 + $0xcc] ss:$16 sps:$4 sm:$0xff]  }
 0x1ba   :  { %5220 = vmatpush2.bf16.msra.mxu0 %v7694_v6  ;;  %v7753_v6 = vld [vmem:[#allocation5 + $0x2cc] ss:$16 sps:$4 sm:$0xff]  }
 0x1bb   :  { %5261 = vmatpush2.bf16.msra.mxu1 %v7697_v11  ;;  %5221 = vmatprep.subr.bf16.mxu0 %v7702_v12  ;;  %v7748_v11 = vld [vmem:[#allocation5 + $0xc8] ss:$16 sps:$4 sm:$0xff]  }
 0x1bc   :  { %5262 = vmatprep.subr.bf16.mxu1 %v7705_v15  ;;  %v7751_v12 = vld [vmem:[#allocation5 + $0x2c8] ss:$16 sps:$4 sm:$0xff]  }
 0x1be   :  { %5222 = vmatpush2.bf16.msra.mxu0 %v7700_v16 }
 0x1bf   :  { %5263 = vmatpush2.bf16.msra.mxu1 %v7703_v19  ;;  %5223 = vmatprep.subr.bf16.mxu0 %v7708_v22 }
 0x1c0   :  { %5264 = vmatprep.subr.bf16.mxu1 %v7711_v23 }
 0x1c2   :  { %5224 = vmatpush2.bf16.msra.mxu0 %v7706_v24  ;;  %v7756_v24 = vld [vmem:[#allocation5 + $0xac] ss:$16 sps:$4 sm:$0xff]  }
 0x1c3   :  { %5265 = vmatpush2.bf16.msra.mxu1 %v7709_v25  ;;  %5225 = vmatprep.subr.bf16.mxu0 %v7714_v27  ;;  %v7759_v25 = vld [vmem:[#allocation5 + $0x2ac] ss:$16 sps:$4 sm:$0xff]  }
 0x1c4   :  { %5266 = vmatprep.subr.bf16.mxu1 %v7717_v28 }
 0x1c6   :  { %5226 = vmatpush2.bf16.msra.mxu0 %v7712_v30  ;;  %v7754_v30 = vld [vmem:[#allocation5 + $0xa8] ss:$16 sps:$4 sm:$0xff]  }
 0x1c7   :  { %5267 = vmatpush2.bf16.msra.mxu1 %v7715_v33  ;;  %5227 = vmatprep.subr.bf16.mxu0 %v7720_v31  ;;  %v7757_v33 = vld [vmem:[#allocation5 + $0x2a8] ss:$16 sps:$4 sm:$0xff]  }
 0x1c8   :  { %5268 = vmatprep.subr.bf16.mxu1 %v7723_v35 }
 0x1ca   :  { %5228 = vmatpush2.bf16.msra.mxu0 %v7718_v36 }
 0x1cb   :  { %5269 = vmatpush2.bf16.msra.mxu1 %v7721_v39  ;;  %5229 = vmatprep.subr.bf16.mxu0 %v7726_v41  ;;  %v7762_v41 = vld [vmem:[#allocation5 + $0x8c] ss:$16 sps:$4 sm:$0xff]  }
 0x1cc   :  { %5270 = vmatprep.subr.bf16.mxu1 %v7729_v38  ;;  %v7765_v38 = vld [vmem:[#allocation5 + $0x28c] ss:$16 sps:$4 sm:$0xff]  }
 0x1ce   :  { %5230 = vmatpush2.bf16.msra.mxu0 %v7724_v44  ;;  %v7763_v44 = vld [vmem:[#allocation5 + $0x288] ss:$16 sps:$4 sm:$0xff]  }
 0x1cf   :  { %5271 = vmatpush2.bf16.msra.mxu1 %v7727_v45  ;;  %5231 = vmatprep.subr.bf16.mxu0 %v7732_v46  ;;  %v7766_v45 = vld [vmem:[#allocation5 + $0x68] ss:$16 sps:$4 sm:$0xff]  }
 0x1d0   :  { %5272 = vmatprep.subr.bf16.mxu1 %v7735_v47  ;;  %v7769_v46 = vld [vmem:[#allocation5 + $0x268] ss:$16 sps:$4 sm:$0xff]   ;;  %v7774_v47 = vld [vmem:[#allocation5 + $0x4c] ss:$16 sps:$4 sm:$0xff]  }
 0x1d2   :  { %5232 = vmatpush2.bf16.msra.mxu0 %v7730_v51  ;;  %v7777_v51 = vld [vmem:[#allocation5 + $0x24c] ss:$16 sps:$4 sm:$0xff]  }
 0x1d3   :  { %5273 = vmatpush2.bf16.msra.mxu1 %v7733_v53  ;;  %5233 = vmatprep.subr.bf16.mxu0 %v7738_v54  ;;  %v7772_v53 = vld [vmem:[#allocation5 + $0x48] ss:$16 sps:$4 sm:$0xff]  }
 0x1d4   :  { %5274 = vmatprep.subr.bf16.mxu1 %v7741_v55  ;;  %v7775_v54 = vld [vmem:[#allocation5 + $0x248] ss:$16 sps:$4 sm:$0xff]   ;;  %v7780_v55 = vld [vmem:[#allocation5 + $0x2c] ss:$16 sps:$4 sm:$0xff]  }
 0x1d6   :  { %5234 = vmatpush2.bf16.msra.mxu0 %v7736_v56  ;;  %v7783_v56 = vld [vmem:[#allocation5 + $0x22c] ss:$16 sps:$4 sm:$0xff]  }
 0x1d7   :  { %5275 = vmatpush2.bf16.msra.mxu1 %v7739_v58  ;;  %5285 = vmatprep.subr.bf16.mxu0 %v7744_v61  ;;  %v7778_v58 = vld [vmem:[#allocation5 + $0x28] ss:$16 sps:$4 sm:$0xff]   ;;  %v7789_v61 = vld [vmem:[#allocation5 + $0x20c] ss:$16 sps:$4 sm:$0xff]  }
 0x1d8   :  { %5326 = vmatprep.subr.bf16.mxu1 %v7747_v62  ;;  %v7784_v62 = vld [vmem:[#allocation5 + $0x8] ss:$16 sps:$4 sm:$0xff]  }
 0x1d9   :  { %v4991_v15 = vpop.f32.mrf.mxu0  ;;  %5236 = vmatmul.mubr.bf16.vlgmr.msra.gmra.mxu0 %v8688_v1 }
 0x1da   :  { %v5032_v16 = vpop.f32.mrf.mxu1  ;;  %5277 = vmatmul.mubr.bf16.vlgmr.msra.gmra.mxu1 %v8690_v2  ;;  %v4992_v19 = vadd.f32 %v4991_v15, %v8681_v26  ;;  %5286 = vmatpush1.bf16.msra.mxu0 %v7742_v63  ;;  %v7787_v63 = vld [vmem:[#allocation5 + $0x208] ss:$16 sps:$4 sm:$0xff]   ;;  %v7801_v15 = vld [vmem:[#allocation5 + $0x3cc] ss:$16 sps:$4 sm:$0xff]  }
 0x1db   :  { %5327 = vmatpush1.bf16.msra.mxu1 %v7745_v0  ;;  %v4993_v22 = vpop.f32.mrf.mxu0  ;;  %5287 = vmatprep.subr.bf16.mxu0 %v7750_v5  ;;  %v7792_v0 = vld [vmem:[#allocation5 + $0x1ec] ss:$16 sps:$4 sm:$0xff]  }
 0x1dc   :  { %v5034_v23 = vpop.f32.mrf.mxu1  ;;  %5328 = vmatprep.subr.bf16.mxu1 %v7753_v6  ;;  %v8695_v27 = vadd.f32 %v5032_v16, %v4992_v19  ;;  %v4994_v28 = vadd.f32 %v4993_v22, %v8686_v34  ;;  %5317 = vmatprep.mubr.bf16.mxu0 %v8608_v49  ;;  %v7760_v34 = vld [vmem:[#allocation5 + $0x88] ss:$16 sps:$4 sm:$0xff]   ;;  %v7768_v49 = vld [vmem:[#allocation5 + $0x6c] ss:$16 sps:$4 sm:$0xff]  }
 0x1dd   :  { %5358 = vmatprep.mubr.bf16.mxu1 %v8610_v52  ;;  %v4995_v31 = vpop.f32.mrf.mxu0  ;;  %v7771_v52 = vld [vmem:[#allocation5 + $0x26c] ss:$16 sps:$4 sm:$0xff]   ;;  %v7790_v6 = vld [vmem:[#allocation5 + $0x1e8] ss:$16 sps:$4 sm:$0xff]  }
 0x1de   :  { %v5036_v26 = vpop.f32.mrf.mxu1  ;;  %v8700_v35 = vadd.f32 %v5034_v23, %v4994_v28  ;;  %5288 = vmatpush1.bf16.msra.mxu0 %v7748_v11  ;;  %v7795_v5 = vld [vmem:[#allocation5 + $0x3ec] ss:$16 sps:$4 sm:$0xff]   ;;  %v7793_v11 = vld [vmem:[#allocation5 + $0x3e8] ss:$16 sps:$4 sm:$0xff]  }
 0x1df   :  { %5329 = vmatpush1.bf16.msra.mxu1 %v7751_v12  ;;  %v4996_v36 = vpop.f32.mrf.mxu0  ;;  %5289 = vmatprep.subr.bf16.mxu0 %v7756_v24  ;;  %v7798_v12 = vld [vmem:[#allocation5 + $0x1cc] ss:$16 sps:$4 sm:$0xff]   ;;  %v7796_v16 = vld [vmem:[#allocation5 + $0x1c8] ss:$16 sps:$4 sm:$0xff]  }
 0x1e0   :  { %v5037_v39 = vpop.f32.mrf.mxu1  ;;  %5330 = vmatprep.subr.bf16.mxu1 %v7759_v25  ;;  %v7799_v19 = vld [vmem:[#allocation5 + $0x3c8] ss:$16 sps:$4 sm:$0xff]   ;;  %v7804_v22 = vld [vmem:[#allocation5 + $0x1ac] ss:$16 sps:$4 sm:$0xff]  }
 0x1e1   :  { %v7807_v23 = vld [vmem:[#allocation5 + $0x3ac] ss:$16 sps:$4 sm:$0xff]   ;;  %v7802_v24 = vld [vmem:[#allocation5 + $0x1a8] ss:$16 sps:$4 sm:$0xff]  }
 0x1e2   :  { %5290 = vmatpush1.bf16.msra.mxu0 %v7754_v30  ;;  %v7805_v25 = vld [vmem:[#allocation5 + $0x3a8] ss:$16 sps:$4 sm:$0xff]   ;;  %v7810_v28 = vld [vmem:[#allocation5 + $0x18c] ss:$16 sps:$4 sm:$0xff]  }
 0x1e3   :  { %5331 = vmatpush1.bf16.msra.mxu1 %v7757_v33  ;;  %5291 = vmatprep.subr.bf16.mxu0 %v7762_v41  ;;  %v7813_v30 = vld [vmem:[#allocation5 + $0x38c] ss:$16 sps:$4 sm:$0xff]   ;;  %v7808_v33 = vld [vmem:[#allocation5 + $0x188] ss:$16 sps:$4 sm:$0xff]  }
 0x1e4   :  { %5332 = vmatprep.subr.bf16.mxu1 %v7765_v38  ;;  %v7811_v31 = vld [vmem:[#allocation5 + $0x388] ss:$16 sps:$4 sm:$0xff]   ;;  %v7816_v26 = vld [vmem:[#allocation5 + $0x16c] ss:$16 sps:$4 sm:$0xff]  }
 0x1e5   :  { %v7819_v36 = vld [vmem:[#allocation5 + $0x36c] ss:$16 sps:$4 sm:$0xff]   ;;  %v7814_v39 = vld [vmem:[#allocation5 + $0x168] ss:$16 sps:$4 sm:$0xff]  }
 0x1e6   :  { %5292 = vmatpush1.bf16.msra.mxu0 %v7760_v34  ;;  %v7817_v41 = vld [vmem:[#allocation5 + $0x368] ss:$16 sps:$4 sm:$0xff]   ;;  %v7822_v38 = vld [vmem:[#allocation5 + $0x14c] ss:$16 sps:$4 sm:$0xff]  }
 0x1e7   :  { %5333 = vmatpush1.bf16.msra.mxu1 %v7763_v44  ;;  %5293 = vmatprep.subr.bf16.mxu0 %v7768_v49  ;;  %v7825_v34 = vld [vmem:[#allocation5 + $0x34c] ss:$16 sps:$4 sm:$0xff]   ;;  %v7820_v44 = vld [vmem:[#allocation5 + $0x148] ss:$16 sps:$4 sm:$0xff]  }
 0x1e8   :  { %5334 = vmatprep.subr.bf16.mxu1 %v7771_v52  ;;  %v7823_v49 = vld [vmem:[#allocation5 + $0x348] ss:$16 sps:$4 sm:$0xff]   ;;  %v7828_v52 = vld [vmem:[#allocation5 + $0x12c] ss:$16 sps:$4 sm:$0xff]  }
 0x1ea   :  { %5294 = vmatpush1.bf16.msra.mxu0 %v7766_v45  ;;  %v7831_v45 = vld [vmem:[#allocation5 + $0x32c] ss:$16 sps:$4 sm:$0xff]  }
 0x1eb   :  { %5335 = vmatpush1.bf16.msra.mxu1 %v7769_v46  ;;  %5295 = vmatprep.subr.bf16.mxu0 %v7774_v47  ;;  %v7826_v46 = vld [vmem:[#allocation5 + $0x128] ss:$16 sps:$4 sm:$0xff]  }
 0x1ec   :  { %5336 = vmatprep.subr.bf16.mxu1 %v7777_v51  ;;  %v7829_v47 = vld [vmem:[#allocation5 + $0x328] ss:$16 sps:$4 sm:$0xff]   ;;  %v7834_v51 = vld [vmem:[#allocation5 + $0x10c] ss:$16 sps:$4 sm:$0xff]  }
 0x1ee   :  { %5296 = vmatpush1.bf16.msra.mxu0 %v7772_v53  ;;  %v7837_v53 = vld [vmem:[#allocation5 + $0x30c] ss:$16 sps:$4 sm:$0xff]  }
 0x1ef   :  { %5337 = vmatpush1.bf16.msra.mxu1 %v7775_v54  ;;  %5297 = vmatprep.subr.bf16.mxu0 %v7780_v55  ;;  %v7832_v54 = vld [vmem:[#allocation5 + $0x108] ss:$16 sps:$4 sm:$0xff]  }
 0x1f0   :  { %5338 = vmatprep.subr.bf16.mxu1 %v7783_v56  ;;  %v7835_v55 = vld [vmem:[#allocation5 + $0x308] ss:$16 sps:$4 sm:$0xff]   ;;  %v7840_v56 = vld [vmem:[#allocation5 + $0x4ec] ss:$16 sps:$4 sm:$0xff]  }
 0x1f2   :  { %5298 = vmatpush1.bf16.msra.mxu0 %v7778_v58  ;;  %v7843_v58 = vld [vmem:[#allocation5 + $0x6ec] ss:$16 sps:$4 sm:$0xff]  }
 0x1f3   :  { %5339 = vmatpush1.bf16.msra.mxu1 %v7781_v59  ;;  %5299 = vmatprep.subr.bf16.mxu0 %v7786_v60  ;;  %v7838_v59 = vld [vmem:[#allocation5 + $0x4e8] ss:$16 sps:$4 sm:$0xff]  }
 0x1f4   :  { %5340 = vmatprep.subr.bf16.mxu1 %v7789_v61  ;;  %v7841_v60 = vld [vmem:[#allocation5 + $0x6e8] ss:$16 sps:$4 sm:$0xff]   ;;  %v7846_v61 = vld [vmem:[#allocation5 + $0x4cc] ss:$16 sps:$4 sm:$0xff]  }
 0x1f6   :  { %5300 = vmatpush1.bf16.msra.mxu0 %v7784_v62  ;;  %v7849_v62 = vld [vmem:[#allocation5 + $0x6cc] ss:$16 sps:$4 sm:$0xff]  }
 0x1f7   :  { %5341 = vmatpush1.bf16.msra.mxu1 %v7787_v63  ;;  %5301 = vmatprep.subr.bf16.mxu0 %v7792_v0  ;;  %v7844_v63 = vld [vmem:[#allocation5 + $0x4c8] ss:$16 sps:$4 sm:$0xff]  }
 0x1f8   :  { %5342 = vmatprep.subr.bf16.mxu1 %v7795_v5  ;;  %v7847_v0 = vld [vmem:[#allocation5 + $0x6c8] ss:$16 sps:$4 sm:$0xff]  }
 0x1fa   :  { %5302 = vmatpush2.bf16.msra.mxu0 %v7790_v6 }
 0x1fb   :  { %5343 = vmatpush2.bf16.msra.mxu1 %v7793_v11  ;;  %5303 = vmatprep.subr.bf16.mxu0 %v7798_v12 }
 0x1fc   :  { %5344 = vmatprep.subr.bf16.mxu1 %v7801_v15 }
 0x1fe   :  { %5304 = vmatpush2.bf16.msra.mxu0 %v7796_v16  ;;  %v7852_v16 = vld [vmem:[#allocation5 + $0x4ac] ss:$16 sps:$4 sm:$0xff]  }
 0x1ff   :  { %5345 = vmatpush2.bf16.msra.mxu1 %v7799_v19  ;;  %5305 = vmatprep.subr.bf16.mxu0 %v7804_v22  ;;  %v7855_v19 = vld [vmem:[#allocation5 + $0x6ac] ss:$16 sps:$4 sm:$0xff]  }
 0x200   :  { %5346 = vmatprep.subr.bf16.mxu1 %v7807_v23 }
 0x202   :  { %5306 = vmatpush2.bf16.msra.mxu0 %v7802_v24  ;;  %v7850_v24 = vld [vmem:[#allocation5 + $0x4a8] ss:$16 sps:$4 sm:$0xff]  }
 0x203   :  { %5347 = vmatpush2.bf16.msra.mxu1 %v7805_v25  ;;  %5307 = vmatprep.subr.bf16.mxu0 %v7810_v28  ;;  %v7853_v25 = vld [vmem:[#allocation5 + $0x6a8] ss:$16 sps:$4 sm:$0xff]  }
 0x204   :  { %5348 = vmatprep.subr.bf16.mxu1 %v7813_v30 }
 0x206   :  { %5308 = vmatpush2.bf16.msra.mxu0 %v7808_v33  ;;  %v7858_v33 = vld [vmem:[#allocation5 + $0x48c] ss:$16 sps:$4 sm:$0xff]  }
 0x207   :  { %5349 = vmatpush2.bf16.msra.mxu1 %v7811_v31  ;;  %5309 = vmatprep.subr.bf16.mxu0 %v7816_v26  ;;  %v7861_v31 = vld [vmem:[#allocation5 + $0x68c] ss:$16 sps:$4 sm:$0xff]   ;;  %v7859_v26 = vld [vmem:[#allocation5 + $0x688] ss:$16 sps:$4 sm:$0xff]  }
 0x208   :  { %5350 = vmatprep.subr.bf16.mxu1 %v7819_v36  ;;  %v7862_v36 = vld [vmem:[#allocation5 + $0x468] ss:$16 sps:$4 sm:$0xff]  }
 0x20a   :  { %5310 = vmatpush2.bf16.msra.mxu0 %v7814_v39  ;;  %v7865_v39 = vld [vmem:[#allocation5 + $0x668] ss:$16 sps:$4 sm:$0xff]  }
 0x20b   :  { %5351 = vmatpush2.bf16.msra.mxu1 %v7817_v41  ;;  %5311 = vmatprep.subr.bf16.mxu0 %v7822_v38  ;;  %v7870_v41 = vld [vmem:[#allocation5 + $0x44c] ss:$16 sps:$4 sm:$0xff]  }
 0x20c   :  { %5352 = vmatprep.subr.bf16.mxu1 %v7825_v34  ;;  %v7873_v38 = vld [vmem:[#allocation5 + $0x64c] ss:$16 sps:$4 sm:$0xff]   ;;  %v7868_v34 = vld [vmem:[#allocation5 + $0x448] ss:$16 sps:$4 sm:$0xff]  }
 0x20e   :  { %5312 = vmatpush2.bf16.msra.mxu0 %v7820_v44  ;;  %v7871_v44 = vld [vmem:[#allocation5 + $0x648] ss:$16 sps:$4 sm:$0xff]  }
 0x20f   :  { %5353 = vmatpush2.bf16.msra.mxu1 %v7823_v49  ;;  %5313 = vmatprep.subr.bf16.mxu0 %v7828_v52  ;;  %v7876_v49 = vld [vmem:[#allocation5 + $0x42c] ss:$16 sps:$4 sm:$0xff]  }
 0x210   :  { %5354 = vmatprep.subr.bf16.mxu1 %v7831_v45  ;;  %v7879_v52 = vld [vmem:[#allocation5 + $0x62c] ss:$16 sps:$4 sm:$0xff]   ;;  %v7874_v45 = vld [vmem:[#allocation5 + $0x428] ss:$16 sps:$4 sm:$0xff]  }
 0x212   :  { %5314 = vmatpush2.bf16.msra.mxu0 %v7826_v46  ;;  %v7877_v46 = vld [vmem:[#allocation5 + $0x628] ss:$16 sps:$4 sm:$0xff]  }
 0x213   :  { %5355 = vmatpush2.bf16.msra.mxu1 %v7829_v47  ;;  %5315 = vmatprep.subr.bf16.mxu0 %v7834_v51  ;;  %v7882_v47 = vld [vmem:[#allocation5 + $0x40c] ss:$16 sps:$4 sm:$0xff]  }
 0x214   :  { %5356 = vmatprep.subr.bf16.mxu1 %v7837_v53  ;;  %v7885_v51 = vld [vmem:[#allocation5 + $0x60c] ss:$16 sps:$4 sm:$0xff]   ;;  %v7880_v53 = vld [vmem:[#allocation5 + $0x408] ss:$16 sps:$4 sm:$0xff]  }
 0x216   :  { %5316 = vmatpush2.bf16.msra.mxu0 %v7832_v54  ;;  %v7883_v54 = vld [vmem:[#allocation5 + $0x608] ss:$16 sps:$4 sm:$0xff]  }
 0x217   :  { %5357 = vmatpush2.bf16.msra.mxu1 %v7835_v55  ;;  %5367 = vmatprep.subr.bf16.mxu0 %v7840_v56  ;;  %v7888_v55 = vld [vmem:[#allocation5 + $0x5ec] ss:$16 sps:$4 sm:$0xff]  }
 0x218   :  { %5408 = vmatprep.subr.bf16.mxu1 %v7843_v58  ;;  %v7891_v56 = vld [vmem:[#allocation5 + $0x7ec] ss:$16 sps:$4 sm:$0xff]   ;;  %v7886_v58 = vld [vmem:[#allocation5 + $0x5e8] ss:$16 sps:$4 sm:$0xff]  }
 0x219   :  { %v5073_v5 = vpop.f32.mrf.mxu0  ;;  %5318 = vmatmul.mubr.bf16.vlgmr.msra.gmra.mxu0 %v8614_v8 }
 0x21a   :  { %v5114_v6 = vpop.f32.mrf.mxu1  ;;  %5359 = vmatmul.mubr.bf16.vlgmr.msra.gmra.mxu1 %v8616_v9  ;;  %v5074_v11 = vadd.f32 %v5073_v5, %v8695_v27  ;;  %5368 = vmatpush1.bf16.msra.mxu0 %v7838_v59  ;;  %v7889_v59 = vld [vmem:[#allocation5 + $0x7e8] ss:$16 sps:$4 sm:$0xff]   ;;  %v7903_v5 = vld [vmem:[#allocation5 + $0x7ac] ss:$16 sps:$4 sm:$0xff]  }
 0x21b   :  { %5409 = vmatpush1.bf16.msra.mxu1 %v7841_v60  ;;  %v5075_v12 = vpop.f32.mrf.mxu0  ;;  %5369 = vmatprep.subr.bf16.mxu0 %v7846_v61  ;;  %v7894_v60 = vld [vmem:[#allocation5 + $0x5cc] ss:$16 sps:$4 sm:$0xff]  }
 0x21c   :  { %v5116_v15 = vpop.f32.mrf.mxu1  ;;  %5410 = vmatprep.subr.bf16.mxu1 %v7849_v62  ;;  %v8705_v22 = vadd.f32 %v5114_v6, %v5074_v11  ;;  %v5076_v23 = vadd.f32 %v5075_v12, %v8700_v35  ;;  %5399 = vmatprep.mubr.bf16.mxu0 %v8620_v37  ;;  %v7856_v35 = vld [vmem:[#allocation5 + $0x488] ss:$16 sps:$4 sm:$0xff]   ;;  %v7864_v37 = vld [vmem:[#allocation5 + $0x46c] ss:$16 sps:$4 sm:$0xff]  }
 0x21d   :  { %5440 = vmatprep.mubr.bf16.mxu1 %v8622_v40  ;;  %v5077_v8 = vpop.f32.mrf.mxu0  ;;  %v7867_v40 = vld [vmem:[#allocation5 + $0x66c] ss:$16 sps:$4 sm:$0xff]   ;;  %v7892_v62 = vld [vmem:[#allocation5 + $0x5c8] ss:$16 sps:$4 sm:$0xff]  }
 0x21e   :  { %v5118_v9 = vpop.f32.mrf.mxu1  ;;  %v8710_v27 = vadd.f32 %v5116_v15, %v5076_v23  ;;  %5370 = vmatpush1.bf16.msra.mxu0 %v7844_v63  ;;  %v7897_v61 = vld [vmem:[#allocation5 + $0x7cc] ss:$16 sps:$4 sm:$0xff]   ;;  %v7895_v63 = vld [vmem:[#allocation5 + $0x7c8] ss:$16 sps:$4 sm:$0xff]  }
 0x21f   :  { %5411 = vmatpush1.bf16.msra.mxu1 %v7847_v0  ;;  %v5078_v28 = vpop.f32.mrf.mxu0  ;;  %5371 = vmatprep.subr.bf16.mxu0 %v7852_v16  ;;  %v7900_v0 = vld [vmem:[#allocation5 + $0x5ac] ss:$16 sps:$4 sm:$0xff]   ;;  %v7898_v6 = vld [vmem:[#allocation5 + $0x5a8] ss:$16 sps:$4 sm:$0xff]  }
 0x220   :  { %v5119_v30 = vpop.f32.mrf.mxu1  ;;  %5412 = vmatprep.subr.bf16.mxu1 %v7855_v19  ;;  %v7901_v11 = vld [vmem:[#allocation5 + $0x7a8] ss:$16 sps:$4 sm:$0xff]   ;;  %v7906_v12 = vld [vmem:[#allocation5 + $0x58c] ss:$16 sps:$4 sm:$0xff]  }
 0x221   :  { %v7909_v15 = vld [vmem:[#allocation5 + $0x78c] ss:$16 sps:$4 sm:$0xff]   ;;  %v7904_v16 = vld [vmem:[#allocation5 + $0x588] ss:$16 sps:$4 sm:$0xff]  }
 0x222   :  { %5372 = vmatpush1.bf16.msra.mxu0 %v7850_v24  ;;  %v7907_v19 = vld [vmem:[#allocation5 + $0x788] ss:$16 sps:$4 sm:$0xff]   ;;  %v7912_v23 = vld [vmem:[#allocation5 + $0x56c] ss:$16 sps:$4 sm:$0xff]  }
 0x223   :  { %5413 = vmatpush1.bf16.msra.mxu1 %v7853_v25  ;;  %5373 = vmatprep.subr.bf16.mxu0 %v7858_v33  ;;  %v7915_v24 = vld [vmem:[#allocation5 + $0x76c] ss:$16 sps:$4 sm:$0xff]   ;;  %v7910_v25 = vld [vmem:[#allocation5 + $0x568] ss:$16 sps:$4 sm:$0xff]  }
 0x224   :  { %5414 = vmatprep.subr.bf16.mxu1 %v7861_v31  ;;  %v7913_v8 = vld [vmem:[#allocation5 + $0x768] ss:$16 sps:$4 sm:$0xff]   ;;  %v7918_v9 = vld [vmem:[#allocation5 + $0x54c] ss:$16 sps:$4 sm:$0xff]  }
 0x225   :  { %v7921_v28 = vld [vmem:[#allocation5 + $0x74c] ss:$16 sps:$4 sm:$0xff]   ;;  %v7916_v30 = vld [vmem:[#allocation5 + $0x548] ss:$16 sps:$4 sm:$0xff]  }
 0x226   :  { %5374 = vmatpush1.bf16.msra.mxu0 %v7856_v35  ;;  %v7919_v33 = vld [vmem:[#allocation5 + $0x748] ss:$16 sps:$4 sm:$0xff]   ;;  %v7924_v31 = vld [vmem:[#allocation5 + $0x52c] ss:$16 sps:$4 sm:$0xff]  }
 0x227   :  { %5415 = vmatpush1.bf16.msra.mxu1 %v7859_v26  ;;  %5375 = vmatprep.subr.bf16.mxu0 %v7864_v37  ;;  %v7927_v35 = vld [vmem:[#allocation5 + $0x72c] ss:$16 sps:$4 sm:$0xff]   ;;  %v7922_v26 = vld [vmem:[#allocation5 + $0x528] ss:$16 sps:$4 sm:$0xff]  }
 0x228   :  { %5416 = vmatprep.subr.bf16.mxu1 %v7867_v40  ;;  %v7925_v37 = vld [vmem:[#allocation5 + $0x728] ss:$16 sps:$4 sm:$0xff]   ;;  %v7930_v40 = vld [vmem:[#allocation5 + $0x50c] ss:$16 sps:$4 sm:$0xff]  }
 0x22a   :  { %5376 = vmatpush1.bf16.msra.mxu0 %v7862_v36  ;;  %v7933_v36 = vld [vmem:[#allocation5 + $0x70c] ss:$16 sps:$4 sm:$0xff]  }
 0x22b   :  { %5417 = vmatpush1.bf16.msra.mxu1 %v7865_v39  ;;  %5377 = vmatprep.subr.bf16.mxu0 %v7870_v41  ;;  %v7928_v39 = vld [vmem:[#allocation5 + $0x508] ss:$16 sps:$4 sm:$0xff]  }
 0x22c   :  { %5418 = vmatprep.subr.bf16.mxu1 %v7873_v38  ;;  %v7931_v41 = vld [vmem:[#allocation5 + $0x708] ss:$16 sps:$4 sm:$0xff]   ;;  %v7936_v38 = vld [vmem:[#allocation5 + $0x8ec] ss:$16 sps:$4 sm:$0xff]  }
 0x22e   :  { %5378 = vmatpush1.bf16.msra.mxu0 %v7868_v34  ;;  %v7939_v34 = vld [vmem:[#allocation5 + $0xaec] ss:$16 sps:$4 sm:$0xff]  }
 0x22f   :  { %5419 = vmatpush1.bf16.msra.mxu1 %v7871_v44  ;;  %5379 = vmatprep.subr.bf16.mxu0 %v7876_v49  ;;  %v7934_v44 = vld [vmem:[#allocation5 + $0x8e8] ss:$16 sps:$4 sm:$0xff]  }
 0x230   :  { %5420 = vmatprep.subr.bf16.mxu1 %v7879_v52  ;;  %v7937_v49 = vld [vmem:[#allocation5 + $0xae8] ss:$16 sps:$4 sm:$0xff]   ;;  %v7942_v52 = vld [vmem:[#allocation5 + $0x8cc] ss:$16 sps:$4 sm:$0xff]  }
 0x232   :  { %5380 = vmatpush1.bf16.msra.mxu0 %v7874_v45  ;;  %v7945_v45 = vld [vmem:[#allocation5 + $0xacc] ss:$16 sps:$4 sm:$0xff]  }
 0x233   :  { %5421 = vmatpush1.bf16.msra.mxu1 %v7877_v46  ;;  %5381 = vmatprep.subr.bf16.mxu0 %v7882_v47 }
 0x234   :  { %5422 = vmatprep.subr.bf16.mxu1 %v7885_v51 }
 0x236   :  { %5382 = vmatpush1.bf16.msra.mxu0 %v7880_v53  ;;  %v7940_v53 = vld [vmem:[#allocation5 + $0x8c8] ss:$16 sps:$4 sm:$0xff]  }
 0x237   :  { %5423 = vmatpush1.bf16.msra.mxu1 %v7883_v54  ;;  %5383 = vmatprep.subr.bf16.mxu0 %v7888_v55  ;;  %v7943_v54 = vld [vmem:[#allocation5 + $0xac8] ss:$16 sps:$4 sm:$0xff]  }
 0x238   :  { %5424 = vmatprep.subr.bf16.mxu1 %v7891_v56 }
 0x23a   :  { %5384 = vmatpush2.bf16.msra.mxu0 %v7886_v58  ;;  %v7948_v58 = vld [vmem:[#allocation5 + $0x8ac] ss:$16 sps:$4 sm:$0xff]  }
 0x23b   :  { %5425 = vmatpush2.bf16.msra.mxu1 %v7889_v59  ;;  %5385 = vmatprep.subr.bf16.mxu0 %v7894_v60  ;;  %v7951_v59 = vld [vmem:[#allocation5 + $0xaac] ss:$16 sps:$4 sm:$0xff]  }
 0x23c   :  { %5426 = vmatprep.subr.bf16.mxu1 %v7897_v61 }
 0x23e   :  { %5386 = vmatpush2.bf16.msra.mxu0 %v7892_v62  ;;  %v7946_v62 = vld [vmem:[#allocation5 + $0x8a8] ss:$16 sps:$4 sm:$0xff]  }
 0x23f   :  { %5427 = vmatpush2.bf16.msra.mxu1 %v7895_v63  ;;  %5387 = vmatprep.subr.bf16.mxu0 %v7900_v0  ;;  %v7949_v63 = vld [vmem:[#allocation5 + $0xaa8] ss:$16 sps:$4 sm:$0xff]  }
 0x240   :  { %5428 = vmatprep.subr.bf16.mxu1 %v7903_v5 }
 0x242   :  { %5388 = vmatpush2.bf16.msra.mxu0 %v7898_v6  ;;  %v7954_v6 = vld [vmem:[#allocation5 + $0x88c] ss:$16 sps:$4 sm:$0xff]  }
 0x243   :  { %5429 = vmatpush2.bf16.msra.mxu1 %v7901_v11  ;;  %5389 = vmatprep.subr.bf16.mxu0 %v7906_v12  ;;  %v7957_v11 = vld [vmem:[#allocation5 + $0xa8c] ss:$16 sps:$4 sm:$0xff]  }
 0x244   :  { %5430 = vmatprep.subr.bf16.mxu1 %v7909_v15  ;;  %v7963_v12 = vld [vmem:[#allocation5 + $0xa6c] ss:$16 sps:$4 sm:$0xff]   ;;  %v7958_v15 = vld [vmem:[#allocation5 + $0x868] ss:$16 sps:$4 sm:$0xff]  }
 0x246   :  { %5390 = vmatpush2.bf16.msra.mxu0 %v7904_v16  ;;  %v7961_v16 = vld [vmem:[#allocation5 + $0xa68] ss:$16 sps:$4 sm:$0xff]  }
 0x247   :  { %5431 = vmatpush2.bf16.msra.mxu1 %v7907_v19  ;;  %5391 = vmatprep.subr.bf16.mxu0 %v7912_v23  ;;  %v7966_v19 = vld [vmem:[#allocation5 + $0x84c] ss:$16 sps:$4 sm:$0xff]  }
 0x248   :  { %5432 = vmatprep.subr.bf16.mxu1 %v7915_v24  ;;  %v7969_v23 = vld [vmem:[#allocation5 + $0xa4c] ss:$16 sps:$4 sm:$0xff]   ;;  %v7964_v24 = vld [vmem:[#allocation5 + $0x848] ss:$16 sps:$4 sm:$0xff]  }
 0x24a   :  { %5392 = vmatpush2.bf16.msra.mxu0 %v7910_v25  ;;  %v7967_v25 = vld [vmem:[#allocation5 + $0xa48] ss:$16 sps:$4 sm:$0xff]  }
 0x24b   :  { %5433 = vmatpush2.bf16.msra.mxu1 %v7913_v8  ;;  %5393 = vmatprep.subr.bf16.mxu0 %v7918_v9  ;;  %v7972_v8 = vld [vmem:[#allocation5 + $0x82c] ss:$16 sps:$4 sm:$0xff]  }
 0x24c   :  { %5434 = vmatprep.subr.bf16.mxu1 %v7921_v28  ;;  %v7975_v9 = vld [vmem:[#allocation5 + $0xa2c] ss:$16 sps:$4 sm:$0xff]   ;;  %v7970_v28 = vld [vmem:[#allocation5 + $0x828] ss:$16 sps:$4 sm:$0xff]  }
 0x24e   :  { %5394 = vmatpush2.bf16.msra.mxu0 %v7916_v30  ;;  %v7973_v30 = vld [vmem:[#allocation5 + $0xa28] ss:$16 sps:$4 sm:$0xff]  }
 0x24f   :  { %5435 = vmatpush2.bf16.msra.mxu1 %v7919_v33  ;;  %5395 = vmatprep.subr.bf16.mxu0 %v7924_v31  ;;  %v7978_v33 = vld [vmem:[#allocation5 + $0x80c] ss:$16 sps:$4 sm:$0xff]  }
 0x250   :  { %5436 = vmatprep.subr.bf16.mxu1 %v7927_v35  ;;  %v7981_v31 = vld [vmem:[#allocation5 + $0xa0c] ss:$16 sps:$4 sm:$0xff]   ;;  %v7976_v35 = vld [vmem:[#allocation5 + $0x808] ss:$16 sps:$4 sm:$0xff]  }
 0x252   :  { %5396 = vmatpush2.bf16.msra.mxu0 %v7922_v26  ;;  %v7979_v26 = vld [vmem:[#allocation5 + $0xa08] ss:$16 sps:$4 sm:$0xff]  }
 0x253   :  { %5437 = vmatpush2.bf16.msra.mxu1 %v7925_v37  ;;  %5397 = vmatprep.subr.bf16.mxu0 %v7930_v40  ;;  %v7984_v37 = vld [vmem:[#allocation5 + $0x9ec] ss:$16 sps:$4 sm:$0xff]  }
 0x254   :  { %5438 = vmatprep.subr.bf16.mxu1 %v7933_v36  ;;  %v7987_v40 = vld [vmem:[#allocation5 + $0xbec] ss:$16 sps:$4 sm:$0xff]   ;;  %v7982_v36 = vld [vmem:[#allocation5 + $0x9e8] ss:$16 sps:$4 sm:$0xff]  }
 0x256   :  { %5398 = vmatpush2.bf16.msra.mxu0 %v7928_v39  ;;  %v7985_v39 = vld [vmem:[#allocation5 + $0xbe8] ss:$16 sps:$4 sm:$0xff]  }
 0x257   :  { %5439 = vmatpush2.bf16.msra.mxu1 %v7931_v41  ;;  %5449 = vmatprep.subr.bf16.mxu0 %v7936_v38  ;;  %v7990_v41 = vld [vmem:[#allocation5 + $0x9cc] ss:$16 sps:$4 sm:$0xff]  }
 0x258   :  { %5490 = vmatprep.subr.bf16.mxu1 %v7939_v34  ;;  %v7993_v38 = vld [vmem:[#allocation5 + $0xbcc] ss:$16 sps:$4 sm:$0xff]   ;;  %v7988_v34 = vld [vmem:[#allocation5 + $0x9c8] ss:$16 sps:$4 sm:$0xff]  }
 0x259   :  { %v5155_v46 = vpop.f32.mrf.mxu0  ;;  %5400 = vmatmul.mubr.bf16.vlgmr.msra.gmra.mxu0 %v8626_v20 }
 0x25a   :  { %v5196_v47 = vpop.f32.mrf.mxu1  ;;  %5441 = vmatmul.mubr.bf16.vlgmr.msra.gmra.mxu1 %v8628_v21  ;;  %v5156_v51 = vadd.f32 %v5155_v46, %v8705_v22  ;;  %5450 = vmatpush1.bf16.msra.mxu0 %v7934_v44  ;;  %v7991_v44 = vld [vmem:[#allocation5 + $0xbc8] ss:$16 sps:$4 sm:$0xff]  }
 0x25b   :  { %5491 = vmatpush1.bf16.msra.mxu1 %v7937_v49  ;;  %v5157_v55 = vpop.f32.mrf.mxu0  ;;  %5451 = vmatprep.subr.bf16.mxu0 %v7942_v52  ;;  %v7996_v49 = vld [vmem:[#allocation5 + $0x9ac] ss:$16 sps:$4 sm:$0xff]   ;;  %v7997_v46 = vld [vmem:[#allocation5 + $0xba8] ss:$16 sps:$4 sm:$0xff]  }
 0x25c   :  { %v5198_v56 = vpop.f32.mrf.mxu1  ;;  %5492 = vmatprep.subr.bf16.mxu1 %v7945_v45  ;;  %v8715_v60 = vadd.f32 %v5196_v47, %v5156_v51  ;;  %v5158_v61 = vadd.f32 %v5157_v55, %v8710_v27  ;;  %5481 = vmatprep.mubr.bf16.mxu0 %v8632_v29  ;;  %v7952_v27 = vld [vmem:[#allocation5 + $0x888] ss:$16 sps:$4 sm:$0xff]   ;;  %v7999_v52 = vld [vmem:[#allocation5 + $0xbac] ss:$16 sps:$4 sm:$0xff]  }
 0x25d   :  { %5522 = vmatprep.mubr.bf16.mxu1 %v8634_v32  ;;  %v5159_v20 = vpop.f32.mrf.mxu0  ;;  %v7955_v29 = vld [vmem:[#allocation5 + $0xa88] ss:$16 sps:$4 sm:$0xff]   ;;  %v7960_v32 = vld [vmem:[#allocation5 + $0x86c] ss:$16 sps:$4 sm:$0xff]  }
 0x25e   :  { %v5200_v21 = vpop.f32.mrf.mxu1  ;;  %v8720_v22 = vadd.f32 %v5198_v56, %v5158_v61  ;;  %5452 = vmatpush1.bf16.msra.mxu0 %v7940_v53  ;;  %v7994_v45 = vld [vmem:[#allocation5 + $0x9a8] ss:$16 sps:$4 sm:$0xff]   ;;  %v8002_v47 = vld [vmem:[#allocation5 + $0x98c] ss:$16 sps:$4 sm:$0xff]  }
 0x25f   :  { %5493 = vmatpush1.bf16.msra.mxu1 %v7943_v54  ;;  %v5160_v0 = vpop.f32.mrf.mxu0  ;;  %5453 = vmatprep.subr.bf16.mxu0 %v7948_v58  ;;  %v8005_v51 = vld [vmem:[#allocation5 + $0xb8c] ss:$16 sps:$4 sm:$0xff]   ;;  %v8000_v53 = vld [vmem:[#allocation5 + $0x988] ss:$16 sps:$4 sm:$0xff]  }
 0x260   :  { %v5201_v5 = vpop.f32.mrf.mxu1  ;;  %5494 = vmatprep.subr.bf16.mxu1 %v7951_v59  ;;  %v8003_v54 = vld [vmem:[#allocation5 + $0xb88] ss:$16 sps:$4 sm:$0xff]   ;;  %v8008_v55 = vld [vmem:[#allocation5 + $0x96c] ss:$16 sps:$4 sm:$0xff]  }
 0x261   :  { %v8011_v56 = vld [vmem:[#allocation5 + $0xb6c] ss:$16 sps:$4 sm:$0xff]   ;;  %v8006_v58 = vld [vmem:[#allocation5 + $0x968] ss:$16 sps:$4 sm:$0xff]  }
 0x262   :  { %5454 = vmatpush1.bf16.msra.mxu0 %v7946_v62  ;;  %v8009_v59 = vld [vmem:[#allocation5 + $0xb68] ss:$16 sps:$4 sm:$0xff]   ;;  %v8014_v61 = vld [vmem:[#allocation5 + $0x94c] ss:$16 sps:$4 sm:$0xff]  }
 0x263   :  { %5495 = vmatpush1.bf16.msra.mxu1 %v7949_v63  ;;  %5455 = vmatprep.subr.bf16.mxu0 %v7954_v6  ;;  %v8017_v20 = vld [vmem:[#allocation5 + $0xb4c] ss:$16 sps:$4 sm:$0xff]   ;;  %v8012_v21 = vld [vmem:[#allocation5 + $0x948] ss:$16 sps:$4 sm:$0xff]  }
 0x264   :  { %5496 = vmatprep.subr.bf16.mxu1 %v7957_v11  ;;  %v8015_v62 = vld [vmem:[#allocation5 + $0xb48] ss:$16 sps:$4 sm:$0xff]   ;;  %v8020_v63 = vld [vmem:[#allocation5 + $0x92c] ss:$16 sps:$4 sm:$0xff]  }
 0x265   :  { %v8023_v0 = vld [vmem:[#allocation5 + $0xb2c] ss:$16 sps:$4 sm:$0xff]   ;;  %v8018_v5 = vld [vmem:[#allocation5 + $0x928] ss:$16 sps:$4 sm:$0xff]  }
 0x266   :  { %5456 = vmatpush1.bf16.msra.mxu0 %v7952_v27  ;;  %v8021_v6 = vld [vmem:[#allocation5 + $0xb28] ss:$16 sps:$4 sm:$0xff]   ;;  %v8026_v11 = vld [vmem:[#allocation5 + $0x90c] ss:$16 sps:$4 sm:$0xff]  }
 0x267   :  { %5497 = vmatpush1.bf16.msra.mxu1 %v7955_v29  ;;  %5457 = vmatprep.subr.bf16.mxu0 %v7960_v32  ;;  %v8029_v27 = vld [vmem:[#allocation5 + $0xb0c] ss:$16 sps:$4 sm:$0xff]   ;;  %v8024_v29 = vld [vmem:[#allocation5 + $0x908] ss:$16 sps:$4 sm:$0xff]  }
 0x268   :  { %5498 = vmatprep.subr.bf16.mxu1 %v7963_v12  ;;  %v8027_v32 = vld [vmem:[#allocation5 + $0xb08] ss:$16 sps:$4 sm:$0xff]   ;;  %v8032_v12 = vld [vmem:[#allocation5 + $0xcec] ss:$16 sps:$4 sm:$0xff]  }
 0x26a   :  { %5458 = vmatpush1.bf16.msra.mxu0 %v7958_v15  ;;  %v8035_v15 = vld [vmem:[#allocation5 + $0xeec] ss:$16 sps:$4 sm:$0xff]  }
 0x26b   :  { %5499 = vmatpush1.bf16.msra.mxu1 %v7961_v16  ;;  %5459 = vmatprep.subr.bf16.mxu0 %v7966_v19  ;;  %v8030_v16 = vld [vmem:[#allocation5 + $0xce8] ss:$16 sps:$4 sm:$0xff]  }
 0x26c   :  { %5500 = vmatprep.subr.bf16.mxu1 %v7969_v23  ;;  %v8033_v19 = vld [vmem:[#allocation5 + $0xee8] ss:$16 sps:$4 sm:$0xff]   ;;  %v8038_v23 = vld [vmem:[#allocation5 + $0xccc] ss:$16 sps:$4 sm:$0xff]  }
 0x26e   :  { %5460 = vmatpush1.bf16.msra.mxu0 %v7964_v24  ;;  %v8041_v24 = vld [vmem:[#allocation5 + $0xecc] ss:$16 sps:$4 sm:$0xff]  }
 0x26f   :  { %5501 = vmatpush1.bf16.msra.mxu1 %v7967_v25  ;;  %5461 = vmatprep.subr.bf16.mxu0 %v7972_v8 }
 0x270   :  { %5502 = vmatprep.subr.bf16.mxu1 %v7975_v9 }
 0x272   :  { %5462 = vmatpush1.bf16.msra.mxu0 %v7970_v28  ;;  %v8036_v28 = vld [vmem:[#allocation5 + $0xcc8] ss:$16 sps:$4 sm:$0xff]  }
 0x273   :  { %5503 = vmatpush1.bf16.msra.mxu1 %v7973_v30  ;;  %5463 = vmatprep.subr.bf16.mxu0 %v7978_v33  ;;  %v8039_v30 = vld [vmem:[#allocation5 + $0xec8] ss:$16 sps:$4 sm:$0xff]  }
 0x274   :  { %5504 = vmatprep.subr.bf16.mxu1 %v7981_v31 }
 0x276   :  { %5464 = vmatpush1.bf16.msra.mxu0 %v7976_v35  ;;  %v8044_v35 = vld [vmem:[#allocation5 + $0xcac] ss:$16 sps:$4 sm:$0xff]  }
 0x277   :  { %5505 = vmatpush1.bf16.msra.mxu1 %v7979_v26  ;;  %5465 = vmatprep.subr.bf16.mxu0 %v7984_v37  ;;  %v8047_v26 = vld [vmem:[#allocation5 + $0xeac] ss:$16 sps:$4 sm:$0xff]  }
 0x278   :  { %5506 = vmatprep.subr.bf16.mxu1 %v7987_v40 }
 0x27a   :  { %5466 = vmatpush2.bf16.msra.mxu0 %v7982_v36  ;;  %v8042_v36 = vld [vmem:[#allocation5 + $0xca8] ss:$16 sps:$4 sm:$0xff]  }
 0x27b   :  { %5507 = vmatpush2.bf16.msra.mxu1 %v7985_v39  ;;  %5467 = vmatprep.subr.bf16.mxu0 %v7990_v41  ;;  %v8045_v39 = vld [vmem:[#allocation5 + $0xea8] ss:$16 sps:$4 sm:$0xff]  }
 0x27c   :  { %5508 = vmatprep.subr.bf16.mxu1 %v7993_v38 }
 0x27e   :  { %5468 = vmatpush2.bf16.msra.mxu0 %v7988_v34  ;;  %v8050_v34 = vld [vmem:[#allocation5 + $0xc8c] ss:$16 sps:$4 sm:$0xff]  }
 0x27f   :  { %5509 = vmatpush2.bf16.msra.mxu1 %v7991_v44  ;;  %5469 = vmatprep.subr.bf16.mxu0 %v7996_v49  ;;  %v8053_v44 = vld [vmem:[#allocation5 + $0xe8c] ss:$16 sps:$4 sm:$0xff]  }
 0x280   :  { %5510 = vmatprep.subr.bf16.mxu1 %v7999_v52  ;;  %v8059_v49 = vld [vmem:[#allocation5 + $0xe6c] ss:$16 sps:$4 sm:$0xff]   ;;  %v8054_v52 = vld [vmem:[#allocation5 + $0xc68] ss:$16 sps:$4 sm:$0xff]  }
 0x282   :  { %5470 = vmatpush2.bf16.msra.mxu0 %v7994_v45  ;;  %v8057_v45 = vld [vmem:[#allocation5 + $0xe68] ss:$16 sps:$4 sm:$0xff]  }
 0x283   :  { %5511 = vmatpush2.bf16.msra.mxu1 %v7997_v46  ;;  %5471 = vmatprep.subr.bf16.mxu0 %v8002_v47  ;;  %v8062_v46 = vld [vmem:[#allocation5 + $0xc4c] ss:$16 sps:$4 sm:$0xff]  }
 0x284   :  { %5512 = vmatprep.subr.bf16.mxu1 %v8005_v51  ;;  %v8065_v47 = vld [vmem:[#allocation5 + $0xe4c] ss:$16 sps:$4 sm:$0xff]   ;;  %v8060_v51 = vld [vmem:[#allocation5 + $0xc48] ss:$16 sps:$4 sm:$0xff]  }
 0x286   :  { %5472 = vmatpush2.bf16.msra.mxu0 %v8000_v53  ;;  %v8063_v53 = vld [vmem:[#allocation5 + $0xe48] ss:$16 sps:$4 sm:$0xff]  }
 0x287   :  { %5513 = vmatpush2.bf16.msra.mxu1 %v8003_v54  ;;  %5473 = vmatprep.subr.bf16.mxu0 %v8008_v55  ;;  %v8068_v54 = vld [vmem:[#allocation5 + $0xc2c] ss:$16 sps:$4 sm:$0xff]  }
 0x288   :  { %5514 = vmatprep.subr.bf16.mxu1 %v8011_v56  ;;  %v8071_v55 = vld [vmem:[#allocation5 + $0xe2c] ss:$16 sps:$4 sm:$0xff]   ;;  %v8066_v56 = vld [vmem:[#allocation5 + $0xc28] ss:$16 sps:$4 sm:$0xff]  }
 0x28a   :  { %5474 = vmatpush2.bf16.msra.mxu0 %v8006_v58  ;;  %v8069_v58 = vld [vmem:[#allocation5 + $0xe28] ss:$16 sps:$4 sm:$0xff]  }
 0x28b   :  { %5515 = vmatpush2.bf16.msra.mxu1 %v8009_v59  ;;  %5475 = vmatprep.subr.bf16.mxu0 %v8014_v61  ;;  %v8074_v59 = vld [vmem:[#allocation5 + $0xc0c] ss:$16 sps:$4 sm:$0xff]  }
 0x28c   :  { %5516 = vmatprep.subr.bf16.mxu1 %v8017_v20  ;;  %v8077_v61 = vld [vmem:[#allocation5 + $0xe0c] ss:$16 sps:$4 sm:$0xff]   ;;  %v8072_v20 = vld [vmem:[#allocation5 + $0xc08] ss:$16 sps:$4 sm:$0xff]  }
 0x28e   :  { %5476 = vmatpush2.bf16.msra.mxu0 %v8012_v21  ;;  %v8075_v21 = vld [vmem:[#allocation5 + $0xe08] ss:$16 sps:$4 sm:$0xff]  }
 0x28f   :  { %5517 = vmatpush2.bf16.msra.mxu1 %v8015_v62  ;;  %5477 = vmatprep.subr.bf16.mxu0 %v8020_v63  ;;  %v8080_v62 = vld [vmem:[#allocation5 + $0xdec] ss:$16 sps:$4 sm:$0xff]  }
 0x290   :  { %5518 = vmatprep.subr.bf16.mxu1 %v8023_v0  ;;  %v8083_v63 = vld [vmem:[#allocation5 + $0xfec] ss:$16 sps:$4 sm:$0xff]   ;;  %v8078_v0 = vld [vmem:[#allocation5 + $0xde8] ss:$16 sps:$4 sm:$0xff]  }
 0x292   :  { %5478 = vmatpush2.bf16.msra.mxu0 %v8018_v5  ;;  %v8081_v5 = vld [vmem:[#allocation5 + $0xfe8] ss:$16 sps:$4 sm:$0xff]  }
 0x293   :  { %5519 = vmatpush2.bf16.msra.mxu1 %v8021_v6  ;;  %5479 = vmatprep.subr.bf16.mxu0 %v8026_v11  ;;  %v8086_v6 = vld [vmem:[#allocation5 + $0xdcc] ss:$16 sps:$4 sm:$0xff]  }
 0x294   :  { %5520 = vmatprep.subr.bf16.mxu1 %v8029_v27  ;;  %v8089_v11 = vld [vmem:[#allocation5 + $0xfcc] ss:$16 sps:$4 sm:$0xff]   ;;  %v8084_v27 = vld [vmem:[#allocation5 + $0xdc8] ss:$16 sps:$4 sm:$0xff]  }
 0x296   :  { %5480 = vmatpush2.bf16.msra.mxu0 %v8024_v29  ;;  %v8087_v29 = vld [vmem:[#allocation5 + $0xfc8] ss:$16 sps:$4 sm:$0xff]  }
 0x297   :  { %5521 = vmatpush2.bf16.msra.mxu1 %v8027_v32  ;;  %5531 = vmatprep.subr.bf16.mxu0 %v8032_v12  ;;  %v8092_v32 = vld [vmem:[#allocation5 + $0xdac] ss:$16 sps:$4 sm:$0xff]  }
 0x298   :  { %5572 = vmatprep.subr.bf16.mxu1 %v8035_v15  ;;  %v8095_v12 = vld [vmem:[#allocation5 + $0xfac] ss:$16 sps:$4 sm:$0xff]   ;;  %v8090_v15 = vld [vmem:[#allocation5 + $0xda8] ss:$16 sps:$4 sm:$0xff]  }
 0x299   :  { %v5237_v25 = vpop.f32.mrf.mxu0  ;;  %5482 = vmatmul.mubr.bf16.vlgmr.msra.gmra.mxu0 %v8638_v42 }
 0x29a   :  { %v5278_v8 = vpop.f32.mrf.mxu1  ;;  %5523 = vmatmul.mubr.bf16.vlgmr.msra.gmra.mxu1 %v8640_v43  ;;  %v5238_v9 = vadd.f32 %v5237_v25, %v8715_v60  ;;  %5532 = vmatpush1.bf16.msra.mxu0 %v8030_v16  ;;  %v8093_v16 = vld [vmem:[#allocation5 + $0xfa8] ss:$16 sps:$4 sm:$0xff]  }
 0x29b   :  { %5573 = vmatpush1.bf16.msra.mxu1 %v8033_v19  ;;  %v5239_v33 = vpop.f32.mrf.mxu0  ;;  %5533 = vmatprep.subr.bf16.mxu0 %v8038_v23  ;;  %v8098_v19 = vld [vmem:[#allocation5 + $0xd8c] ss:$16 sps:$4 sm:$0xff]   ;;  %v8099_v25 = vld [vmem:[#allocation5 + $0xf88] ss:$16 sps:$4 sm:$0xff]  }
 0x29c   :  { %v5280_v31 = vpop.f32.mrf.mxu1  ;;  %5574 = vmatprep.subr.bf16.mxu1 %v8041_v24  ;;  %v8725_v37 = vadd.f32 %v5278_v8, %v5238_v9  ;;  %v5240_v40 = vadd.f32 %v5239_v33, %v8720_v22  ;;  %5563 = vmatprep.mubr.bf16.mxu0 %v8642_v48  ;;  %v8048_v22 = vld [vmem:[#allocation5 + $0xc88] ss:$16 sps:$4 sm:$0xff]   ;;  %v8101_v23 = vld [vmem:[#allocation5 + $0xf8c] ss:$16 sps:$4 sm:$0xff]  }
 0x29d   :  { %5604 = vmatprep.mubr.bf16.mxu1 %v8644_v50  ;;  %v5241_v42 = vpop.f32.mrf.mxu0  ;;  %v8051_v48 = vld [vmem:[#allocation5 + $0xe88] ss:$16 sps:$4 sm:$0xff]   ;;  %v8056_v50 = vld [vmem:[#allocation5 + $0xc6c] ss:$16 sps:$4 sm:$0xff]  }
 0x29e   :  { %v5282_v43 = vpop.f32.mrf.mxu1  ;;  %v8730_v60 = vadd.f32 %v5280_v31, %v5240_v40  ;;  %5534 = vmatpush1.bf16.msra.mxu0 %v8036_v28  ;;  %v8096_v24 = vld [vmem:[#allocation5 + $0xd88] ss:$16 sps:$4 sm:$0xff]   ;;  %v8104_v8 = vld [vmem:[#allocation5 + $0xd6c] ss:$16 sps:$4 sm:$0xff]  }
 0x29f   :  { %5575 = vmatpush1.bf16.msra.mxu1 %v8039_v30  ;;  %v5242_v41 = vpop.f32.mrf.mxu0  ;;  %5535 = vmatprep.subr.bf16.mxu0 %v8044_v35  ;;  %v8107_v9 = vld [vmem:[#allocation5 + $0xf6c] ss:$16 sps:$4 sm:$0xff]   ;;  %v8102_v28 = vld [vmem:[#allocation5 + $0xd68] ss:$16 sps:$4 sm:$0xff]  }
 0x2a0   :  { %v5283_v38 = vpop.f32.mrf.mxu1  ;;  %5576 = vmatprep.subr.bf16.mxu1 %v8047_v26  ;;  %v8105_v30 = vld [vmem:[#allocation5 + $0xf68] ss:$16 sps:$4 sm:$0xff]   ;;  %v8110_v33 = vld [vmem:[#allocation5 + $0xd4c] ss:$16 sps:$4 sm:$0xff]  }
 0x2a1   :  { %v8113_v31 = vld [vmem:[#allocation5 + $0xf4c] ss:$16 sps:$4 sm:$0xff]   ;;  %v8108_v35 = vld [vmem:[#allocation5 + $0xd48] ss:$16 sps:$4 sm:$0xff]  }
 0x2a2   :  { %5536 = vmatpush1.bf16.msra.mxu0 %v8042_v36  ;;  %v8111_v26 = vld [vmem:[#allocation5 + $0xf48] ss:$16 sps:$4 sm:$0xff]   ;;  %v8116_v40 = vld [vmem:[#allocation5 + $0xd2c] ss:$16 sps:$4 sm:$0xff]  }
 0x2a3   :  { %5577 = vmatpush1.bf16.msra.mxu1 %v8045_v39  ;;  %5537 = vmatprep.subr.bf16.mxu0 %v8050_v34  ;;  %v8119_v42 = vld [vmem:[#allocation5 + $0xf2c] ss:$16 sps:$4 sm:$0xff]   ;;  %v8114_v43 = vld [vmem:[#allocation5 + $0xd28] ss:$16 sps:$4 sm:$0xff]  }
 0x2a4   :  { %5578 = vmatprep.subr.bf16.mxu1 %v8053_v44  ;;  %v8117_v36 = vld [vmem:[#allocation5 + $0xf28] ss:$16 sps:$4 sm:$0xff]   ;;  %v8122_v39 = vld [vmem:[#allocation5 + $0xd0c] ss:$16 sps:$4 sm:$0xff]   ;;  %v943_v44 = vsub.s32 2, %v8650_v57 }
 0x2a5   :  { %v8125_v41 = vld [vmem:[#allocation5 + $0xf0c] ss:$16 sps:$4 sm:$0xff]   ;;  %v8120_v38 = vld [vmem:[#allocation5 + $0xd08] ss:$16 sps:$4 sm:$0xff]  }
 0x2a6   :  { %5538 = vmatpush1.bf16.msra.mxu0 %v8048_v22  ;;  %v8123_v34 = vld [vmem:[#allocation5 + $0xf08] ss:$16 sps:$4 sm:$0xff]   ;;  %v8128_v22 = vld [vmem:[#allocation5 + $0x10ec] ss:$16 sps:$4 sm:$0xff]  }
 0x2a7   :  { %5579 = vmatpush1.bf16.msra.mxu1 %v8051_v48  ;;  %5539 = vmatprep.subr.bf16.mxu0 %v8056_v50  ;;  %v8131_v48 = vld [vmem:[#allocation5 + $0x12ec] ss:$16 sps:$4 sm:$0xff]   ;;  %v947_v50 = vsub.s32 3, %v8650_v57  ;;  %v8132_v57 = vld [vmem:[#allocation5 + $0x10c8] ss:$16 sps:$4 sm:$0xff]  }
 0x2a8   :  { %5580 = vmatprep.subr.bf16.mxu1 %v8059_v49  ;;  %v8362_v49 = vld [vmem:[#allocation7] sm:$0xf] }
 0x2aa   :  { %5540 = vmatpush1.bf16.msra.mxu0 %v8054_v52  ;;  %v944_v52 = vrot.slane %v8362_v49, %v943_v44  ;;  %v8183_v44 = vld [vmem:[#allocation5 + $0x13c8] ss:$16 sps:$4 sm:$0xff]  }
 0x2ab   :  { %5581 = vmatpush1.bf16.msra.mxu1 %v8057_v45  ;;  %5541 = vmatprep.subr.bf16.mxu0 %v8062_v46  ;;  %v8126_v45 = vld [vmem:[#allocation5 + $0x10e8] ss:$16 sps:$4 sm:$0xff]  }
 0x2ac   :  { %5582 = vmatprep.subr.bf16.mxu1 %v8065_v47  ;;  %v8129_v46 = vld [vmem:[#allocation5 + $0x12e8] ss:$16 sps:$4 sm:$0xff]   ;;  %v8134_v47 = vld [vmem:[#allocation5 + $0x10cc] ss:$16 sps:$4 sm:$0xff]  }
 0x2ae   :  { %5542 = vmatpush1.bf16.msra.mxu0 %v8060_v51  ;;  %v8137_v51 = vld [vmem:[#allocation5 + $0x12cc] ss:$16 sps:$4 sm:$0xff]  }
 0x2af   :  { %5583 = vmatpush1.bf16.msra.mxu1 %v8063_v53  ;;  %5543 = vmatprep.subr.bf16.mxu0 %v8068_v54  ;;  %v948_v53 = vrot.slane %v8362_v49, %v947_v50  ;;  %v8186_v50 = vld [vmem:[#allocation5 + $0x11a8] ss:$16 sps:$4 sm:$0xff]  }
 0x2b0   :  { %5584 = vmatprep.subr.bf16.mxu1 %v8071_v55  ;;  %v8189_v49 = vld [vmem:[#allocation5 + $0x13a8] ss:$16 sps:$4 sm:$0xff]  }
 0x2b2   :  { %5544 = vmatpush1.bf16.msra.mxu0 %v8066_v56 }
 0x2b3   :  { %5585 = vmatpush1.bf16.msra.mxu1 %v8069_v58  ;;  %5545 = vmatprep.subr.bf16.mxu0 %v8074_v59  ;;  %v8135_v58 = vld [vmem:[#allocation5 + $0x12c8] ss:$16 sps:$4 sm:$0xff]  }
 0x2b4   :  { %5586 = vmatprep.subr.bf16.mxu1 %v8077_v61 }
 0x2b6   :  { %5546 = vmatpush1.bf16.msra.mxu0 %v8072_v20  ;;  %v8140_v20 = vld [vmem:[#allocation5 + $0x10ac] ss:$16 sps:$4 sm:$0xff]  }
 0x2b7   :  { %5587 = vmatpush1.bf16.msra.mxu1 %v8075_v21  ;;  %5547 = vmatprep.subr.bf16.mxu0 %v8080_v62  ;;  %v8143_v21 = vld [vmem:[#allocation5 + $0x12ac] ss:$16 sps:$4 sm:$0xff]  }
 0x2b8   :  { %5588 = vmatprep.subr.bf16.mxu1 %v8083_v63 }
 0x2ba   :  { %5548 = vmatpush2.bf16.msra.mxu0 %v8078_v0 }
 0x2bb   :  { %5589 = vmatpush2.bf16.msra.mxu1 %v8081_v5  ;;  %5549 = vmatprep.subr.bf16.mxu0 %v8086_v6  ;;  %v8138_v5 = vld [vmem:[#allocation5 + $0x10a8] ss:$16 sps:$4 sm:$0xff]  }
 0x2bc   :  { %5590 = vmatprep.subr.bf16.mxu1 %v8089_v11  ;;  %v8141_v6 = vld [vmem:[#allocation5 + $0x12a8] ss:$16 sps:$4 sm:$0xff]  }
 0x2be   :  { %5550 = vmatpush2.bf16.msra.mxu0 %v8084_v27 }
 0x2bf   :  { %5591 = vmatpush2.bf16.msra.mxu1 %v8087_v29  ;;  %5551 = vmatprep.subr.bf16.mxu0 %v8092_v32  ;;  %v8146_v29 = vld [vmem:[#allocation5 + $0x108c] ss:$16 sps:$4 sm:$0xff]  }
 0x2c0   :  { %5592 = vmatprep.subr.bf16.mxu1 %v8095_v12  ;;  %v8149_v32 = vld [vmem:[#allocation5 + $0x128c] ss:$16 sps:$4 sm:$0xff]   ;;  %v8144_v12 = vld [vmem:[#allocation5 + $0x1088] ss:$16 sps:$4 sm:$0xff]  }
 0x2c2   :  { %5552 = vmatpush2.bf16.msra.mxu0 %v8090_v15  ;;  %v8155_v15 = vld [vmem:[#allocation5 + $0x126c] ss:$16 sps:$4 sm:$0xff]  }
 0x2c3   :  { %5593 = vmatpush2.bf16.msra.mxu1 %v8093_v16  ;;  %5553 = vmatprep.subr.bf16.mxu0 %v8098_v19  ;;  %v8150_v16 = vld [vmem:[#allocation5 + $0x1068] ss:$16 sps:$4 sm:$0xff]  }
 0x2c4   :  { %5594 = vmatprep.subr.bf16.mxu1 %v8101_v23  ;;  %v8153_v19 = vld [vmem:[#allocation5 + $0x1268] ss:$16 sps:$4 sm:$0xff]   ;;  %v8158_v23 = vld [vmem:[#allocation5 + $0x104c] ss:$16 sps:$4 sm:$0xff]  }
 0x2c6   :  { %5554 = vmatpush2.bf16.msra.mxu0 %v8096_v24  ;;  %v8161_v24 = vld [vmem:[#allocation5 + $0x124c] ss:$16 sps:$4 sm:$0xff]  }
 0x2c7   :  { %5595 = vmatpush2.bf16.msra.mxu1 %v8099_v25  ;;  %5555 = vmatprep.subr.bf16.mxu0 %v8104_v8  ;;  %v8156_v25 = vld [vmem:[#allocation5 + $0x1048] ss:$16 sps:$4 sm:$0xff]  }
 0x2c8   :  { %5596 = vmatprep.subr.bf16.mxu1 %v8107_v9  ;;  %v8159_v8 = vld [vmem:[#allocation5 + $0x1248] ss:$16 sps:$4 sm:$0xff]   ;;  %v8164_v9 = vld [vmem:[#allocation5 + $0x102c] ss:$16 sps:$4 sm:$0xff]  }
 0x2ca   :  { %5556 = vmatpush2.bf16.msra.mxu0 %v8102_v28  ;;  %v8167_v28 = vld [vmem:[#allocation5 + $0x122c] ss:$16 sps:$4 sm:$0xff]  }
 0x2cb   :  { %5597 = vmatpush2.bf16.msra.mxu1 %v8105_v30  ;;  %5557 = vmatprep.subr.bf16.mxu0 %v8110_v33  ;;  %v8162_v30 = vld [vmem:[#allocation5 + $0x1028] ss:$16 sps:$4 sm:$0xff]  }
 0x2cc   :  { %5598 = vmatprep.subr.bf16.mxu1 %v8113_v31  ;;  %v8165_v33 = vld [vmem:[#allocation5 + $0x1228] ss:$16 sps:$4 sm:$0xff]   ;;  %v8170_v31 = vld [vmem:[#allocation5 + $0x100c] ss:$16 sps:$4 sm:$0xff]  }
 0x2ce   :  { %5558 = vmatpush2.bf16.msra.mxu0 %v8108_v35  ;;  %v8173_v35 = vld [vmem:[#allocation5 + $0x120c] ss:$16 sps:$4 sm:$0xff]  }
 0x2cf   :  { %5599 = vmatpush2.bf16.msra.mxu1 %v8111_v26  ;;  %5559 = vmatprep.subr.bf16.mxu0 %v8116_v40  ;;  %v8168_v26 = vld [vmem:[#allocation5 + $0x1008] ss:$16 sps:$4 sm:$0xff]  }
 0x2d0   :  { %5600 = vmatprep.subr.bf16.mxu1 %v8119_v42  ;;  %v8171_v40 = vld [vmem:[#allocation5 + $0x1208] ss:$16 sps:$4 sm:$0xff]   ;;  %v8176_v42 = vld [vmem:[#allocation5 + $0x11ec] ss:$16 sps:$4 sm:$0xff]  }
 0x2d2   :  { %5560 = vmatpush2.bf16.msra.mxu0 %v8114_v43  ;;  %v8179_v43 = vld [vmem:[#allocation5 + $0x13ec] ss:$16 sps:$4 sm:$0xff]  }
 0x2d3   :  { %5601 = vmatpush2.bf16.msra.mxu1 %v8117_v36  ;;  %5561 = vmatprep.subr.bf16.mxu0 %v8122_v39  ;;  %v8174_v36 = vld [vmem:[#allocation5 + $0x11e8] ss:$16 sps:$4 sm:$0xff]  }
 0x2d4   :  { %5602 = vmatprep.subr.bf16.mxu1 %v8125_v41  ;;  %v8177_v39 = vld [vmem:[#allocation5 + $0x13e8] ss:$16 sps:$4 sm:$0xff]   ;;  %v8182_v41 = vld [vmem:[#allocation5 + $0x11cc] ss:$16 sps:$4 sm:$0xff]  }
 0x2d6   :  { %5562 = vmatpush2.bf16.msra.mxu0 %v8120_v38  ;;  %v8185_v38 = vld [vmem:[#allocation5 + $0x13cc] ss:$16 sps:$4 sm:$0xff]  }
 0x2d7   :  { %5603 = vmatpush2.bf16.msra.mxu1 %v8123_v34  ;;  %5613 = vmatprep.subr.bf16.mxu0 %v8128_v22  ;;  %v8180_v34 = vld [vmem:[#allocation5 + $0x11c8] ss:$16 sps:$4 sm:$0xff]   ;;  %v8188_v22 = vld [vmem:[#allocation5 + $0x11ac] ss:$16 sps:$4 sm:$0xff]  }
 0x2d8   :  { %5654 = vmatprep.subr.bf16.mxu1 %v8131_v48  ;;  %v8191_v48 = vld [vmem:[#allocation5 + $0x13ac] ss:$16 sps:$4 sm:$0xff]  }
 0x2d9   :  { %v5319_v54 = vpop.f32.mrf.mxu0  ;;  %5564 = vmatmul.mubr.bf16.vlgmr.msra.gmra.mxu0 %v8654_v7 }
 0x2da   :  { %v5360_v55 = vpop.f32.mrf.mxu1  ;;  %5605 = vmatmul.mubr.bf16.vlgmr.msra.gmra.mxu1 %v8656_v10  ;;  %v5320_v56 = vadd.f32 %v5319_v54, %v944_v52  ;;  %5614 = vmatpush1.bf16.msra.mxu0 %v8126_v45  ;;  %v8194_v52 = vld [vmem:[#allocation5 + $0x118c] ss:$16 sps:$4 sm:$0xff]   ;;  %v8198_v54 = vld [vmem:[#allocation5 + $0x1168] ss:$16 sps:$4 sm:$0xff]  }
 0x2db   :  { %5655 = vmatpush1.bf16.msra.mxu1 %v8129_v46  ;;  %v5321_v59 = vpop.f32.mrf.mxu0  ;;  %5615 = vmatprep.subr.bf16.mxu0 %v8134_v47  ;;  %v8197_v45 = vld [vmem:[#allocation5 + $0x138c] ss:$16 sps:$4 sm:$0xff]   ;;  %v8192_v46 = vld [vmem:[#allocation5 + $0x1188] ss:$16 sps:$4 sm:$0xff]  }
 0x2dc   :  { %v5362_v61 = vpop.f32.mrf.mxu1  ;;  %5656 = vmatprep.subr.bf16.mxu1 %v8137_v51  ;;  %v8736_v62 = vadd.f32 %v5360_v55, %v5320_v56  ;;  %v5322_v63 = vadd.f32 %v5321_v59, %v948_v53  ;;  %5645 = vmatprep.mubr.bf16.mxu0 %v8658_v17  ;;  %v8147_v17 = vld [vmem:[#allocation5 + $0x1288] ss:$16 sps:$4 sm:$0xff]   ;;  %v8200_v51 = vld [vmem:[#allocation5 + $0x116c] ss:$16 sps:$4 sm:$0xff]  }
 0x2dd   :  { %5686 = vmatprep.mubr.bf16.mxu1 %v8660_v18  ;;  %v5323_v7 = vpop.f32.mrf.mxu0  ;;  %v8152_v18 = vld [vmem:[#allocation5 + $0x106c] ss:$16 sps:$4 sm:$0xff]   ;;  %v8195_v47 = vld [vmem:[#allocation5 + $0x1388] ss:$16 sps:$4 sm:$0xff]  }
 0x2de   :  { %v5364_v10 = vpop.f32.mrf.mxu1  ;;  %v8740_v0 = vadd.f32 %v5362_v61, %v5322_v63  ;;  %5616 = vmatpush1.bf16.msra.mxu0 %v8132_v57  ;;  %v8203_v53 = vld [vmem:[#allocation5 + $0x136c] ss:$16 sps:$4 sm:$0xff]   ;;  %v8201_v55 = vld [vmem:[#allocation5 + $0x1368] ss:$16 sps:$4 sm:$0xff]  }
 0x2df   :  { %5657 = vmatpush1.bf16.msra.mxu1 %v8135_v58  ;;  %v5324_v11 = vpop.f32.mrf.mxu0  ;;  %5617 = vmatprep.subr.bf16.mxu0 %v8140_v20  ;;  %v8206_v56 = vld [vmem:[#allocation5 + $0x114c] ss:$16 sps:$4 sm:$0xff]   ;;  %v8204_v58 = vld [vmem:[#allocation5 + $0x1148] ss:$16 sps:$4 sm:$0xff]  }
 0x2e0   :  { %v5365_v27 = vpop.f32.mrf.mxu1  ;;  %5658 = vmatprep.subr.bf16.mxu1 %v8143_v21  ;;  %v8209_v57 = vld [vmem:[#allocation5 + $0x134c] ss:$16 sps:$4 sm:$0xff]   ;;  %v8207_v59 = vld [vmem:[#allocation5 + $0x1348] ss:$16 sps:$4 sm:$0xff]  }
 0x2e1   :  { %v8212_v61 = vld [vmem:[#allocation5 + $0x112c] ss:$16 sps:$4 sm:$0xff]   ;;  %v8210_v21 = vld [vmem:[#allocation5 + $0x1128] ss:$16 sps:$4 sm:$0xff]  }
 0x2e2   :  { %5618 = vmatpush1.bf16.msra.mxu0 %v8138_v5  ;;  %v8215_v20 = vld [vmem:[#allocation5 + $0x132c] ss:$16 sps:$4 sm:$0xff]   ;;  %v8213_v63 = vld [vmem:[#allocation5 + $0x1328] ss:$16 sps:$4 sm:$0xff]  }
 0x2e3   :  { %5659 = vmatpush1.bf16.msra.mxu1 %v8141_v6  ;;  %5619 = vmatprep.subr.bf16.mxu0 %v8146_v29  ;;  %v8218_v7 = vld [vmem:[#allocation5 + $0x110c] ss:$16 sps:$4 sm:$0xff]   ;;  %v8216_v5 = vld [vmem:[#allocation5 + $0x1108] ss:$16 sps:$4 sm:$0xff]  }
 0x2e4   :  { %5660 = vmatprep.subr.bf16.mxu1 %v8149_v32  ;;  %v8221_v10 = vld [vmem:[#allocation5 + $0x130c] ss:$16 sps:$4 sm:$0xff]   ;;  %v8219_v6 = vld [vmem:[#allocation5 + $0x1308] ss:$16 sps:$4 sm:$0xff]  }
 0x2e5   :  { %v8224_v11 = vld [vmem:[#allocation5 + $0x14ec] ss:$16 sps:$4 sm:$0xff]   ;;  %v8222_v29 = vld [vmem:[#allocation5 + $0x14e8] ss:$16 sps:$4 sm:$0xff]  }
 0x2e6   :  { %5620 = vmatpush1.bf16.msra.mxu0 %v8144_v12  ;;  %v8227_v27 = vld [vmem:[#allocation5 + $0x16ec] ss:$16 sps:$4 sm:$0xff]   ;;  %v8225_v32 = vld [vmem:[#allocation5 + $0x16e8] ss:$16 sps:$4 sm:$0xff]  }
 0x2e7   :  { %5661 = vmatpush1.bf16.msra.mxu1 %v8147_v17  ;;  %5621 = vmatprep.subr.bf16.mxu0 %v8152_v18  ;;  %v8230_v12 = vld [vmem:[#allocation5 + $0x14cc] ss:$16 sps:$4 sm:$0xff]  }
 0x2e8   :  { %5662 = vmatprep.subr.bf16.mxu1 %v8155_v15  ;;  %v8233_v17 = vld [vmem:[#allocation5 + $0x16cc] ss:$16 sps:$4 sm:$0xff]  }
 0x2ea   :  { %5622 = vmatpush1.bf16.msra.mxu0 %v8150_v16 }
 0x2eb   :  { %5663 = vmatpush1.bf16.msra.mxu1 %v8153_v19  ;;  %5623 = vmatprep.subr.bf16.mxu0 %v8158_v23  ;;  %v8228_v19 = vld [vmem:[#allocation5 + $0x14c8] ss:$16 sps:$4 sm:$0xff]  }
 0x2ec   :  { %5664 = vmatprep.subr.bf16.mxu1 %v8161_v24  ;;  %v8231_v23 = vld [vmem:[#allocation5 + $0x16c8] ss:$16 sps:$4 sm:$0xff]  }
 0x2ee   :  { %5624 = vmatpush1.bf16.msra.mxu0 %v8156_v25 }
 0x2ef   :  { %5665 = vmatpush1.bf16.msra.mxu1 %v8159_v8  ;;  %5625 = vmatprep.subr.bf16.mxu0 %v8164_v9  ;;  %v8236_v8 = vld [vmem:[#allocation5 + $0x14ac] ss:$16 sps:$4 sm:$0xff]  }
 0x2f0   :  { %5666 = vmatprep.subr.bf16.mxu1 %v8167_v28  ;;  %v8239_v9 = vld [vmem:[#allocation5 + $0x16ac] ss:$16 sps:$4 sm:$0xff]  }
 0x2f2   :  { %5626 = vmatpush1.bf16.msra.mxu0 %v8162_v30 }
 0x2f3   :  { %5667 = vmatpush1.bf16.msra.mxu1 %v8165_v33  ;;  %5627 = vmatprep.subr.bf16.mxu0 %v8170_v31  ;;  %v8234_v33 = vld [vmem:[#allocation5 + $0x14a8] ss:$16 sps:$4 sm:$0xff]  }
 0x2f4   :  { %5668 = vmatprep.subr.bf16.mxu1 %v8173_v35  ;;  %v8237_v31 = vld [vmem:[#allocation5 + $0x16a8] ss:$16 sps:$4 sm:$0xff]  }
 0x2f6   :  { %5628 = vmatpush1.bf16.msra.mxu0 %v8168_v26 }
 0x2f7   :  { %5669 = vmatpush1.bf16.msra.mxu1 %v8171_v40  ;;  %5629 = vmatprep.subr.bf16.mxu0 %v8176_v42  ;;  %v8242_v40 = vld [vmem:[#allocation5 + $0x148c] ss:$16 sps:$4 sm:$0xff]  }
 0x2f8   :  { %5670 = vmatprep.subr.bf16.mxu1 %v8179_v43  ;;  %v8245_v42 = vld [vmem:[#allocation5 + $0x168c] ss:$16 sps:$4 sm:$0xff]  }
 0x2f9   :  { %v8251_v43 = vld [vmem:[#allocation5 + $0x166c] ss:$16 sps:$4 sm:$0xff]  }
 0x2fa   :  { %5630 = vmatpush2.bf16.msra.mxu0 %v8174_v36  ;;  %v8246_v36 = vld [vmem:[#allocation5 + $0x1468] ss:$16 sps:$4 sm:$0xff]  }
 0x2fb   :  { %5671 = vmatpush2.bf16.msra.mxu1 %v8177_v39  ;;  %5631 = vmatprep.subr.bf16.mxu0 %v8182_v41  ;;  %v8249_v39 = vld [vmem:[#allocation5 + $0x1668] ss:$16 sps:$4 sm:$0xff]   ;;  %v8254_v41 = vld [vmem:[#allocation5 + $0x144c] ss:$16 sps:$4 sm:$0xff]  }
 0x2fc   :  { %5672 = vmatprep.subr.bf16.mxu1 %v8185_v38  ;;  %v8257_v38 = vld [vmem:[#allocation5 + $0x164c] ss:$16 sps:$4 sm:$0xff]  }
 0x2fe   :  { %5632 = vmatpush2.bf16.msra.mxu0 %v8180_v34  ;;  %v8252_v34 = vld [vmem:[#allocation5 + $0x1448] ss:$16 sps:$4 sm:$0xff]  }
 0x2ff   :  { %5673 = vmatpush2.bf16.msra.mxu1 %v8183_v44  ;;  %5633 = vmatprep.subr.bf16.mxu0 %v8188_v22  ;;  %v8255_v44 = vld [vmem:[#allocation5 + $0x1648] ss:$16 sps:$4 sm:$0xff]   ;;  %v8260_v22 = vld [vmem:[#allocation5 + $0x142c] ss:$16 sps:$4 sm:$0xff]  }
 0x300   :  { %5674 = vmatprep.subr.bf16.mxu1 %v8191_v48  ;;  %v8263_v48 = vld [vmem:[#allocation5 + $0x162c] ss:$16 sps:$4 sm:$0xff]  }
 0x302   :  { %5634 = vmatpush2.bf16.msra.mxu0 %v8186_v50  ;;  %v8258_v50 = vld [vmem:[#allocation5 + $0x1428] ss:$16 sps:$4 sm:$0xff]  }
 0x303   :  { %5675 = vmatpush2.bf16.msra.mxu1 %v8189_v49  ;;  %5635 = vmatprep.subr.bf16.mxu0 %v8194_v52  ;;  %v8261_v49 = vld [vmem:[#allocation5 + $0x1628] ss:$16 sps:$4 sm:$0xff]   ;;  %v8266_v52 = vld [vmem:[#allocation5 + $0x140c] ss:$16 sps:$4 sm:$0xff]  }
 0x304   :  { %5676 = vmatprep.subr.bf16.mxu1 %v8197_v45  ;;  %v8269_v45 = vld [vmem:[#allocation5 + $0x160c] ss:$16 sps:$4 sm:$0xff]  }
 0x306   :  { %5636 = vmatpush2.bf16.msra.mxu0 %v8192_v46  ;;  %v8264_v46 = vld [vmem:[#allocation5 + $0x1408] ss:$16 sps:$4 sm:$0xff]  }
 0x307   :  { %5677 = vmatpush2.bf16.msra.mxu1 %v8195_v47  ;;  %5637 = vmatprep.subr.bf16.mxu0 %v8200_v51  ;;  %v8267_v47 = vld [vmem:[#allocation5 + $0x1608] ss:$16 sps:$4 sm:$0xff]   ;;  %v8272_v51 = vld [vmem:[#allocation5 + $0x15ec] ss:$16 sps:$4 sm:$0xff]  }
 0x308   :  { %5678 = vmatprep.subr.bf16.mxu1 %v8203_v53  ;;  %v8275_v53 = vld [vmem:[#allocation5 + $0x17ec] ss:$16 sps:$4 sm:$0xff]  }
 0x30a   :  { %5638 = vmatpush2.bf16.msra.mxu0 %v8198_v54  ;;  %v8270_v54 = vld [vmem:[#allocation5 + $0x15e8] ss:$16 sps:$4 sm:$0xff]  }
 0x30b   :  { %5679 = vmatpush2.bf16.msra.mxu1 %v8201_v55  ;;  %5639 = vmatprep.subr.bf16.mxu0 %v8206_v56  ;;  %v8273_v55 = vld [vmem:[#allocation5 + $0x17e8] ss:$16 sps:$4 sm:$0xff]   ;;  %v8278_v56 = vld [vmem:[#allocation5 + $0x15cc] ss:$16 sps:$4 sm:$0xff]  }
 0x30c   :  { %5680 = vmatprep.subr.bf16.mxu1 %v8209_v57  ;;  %v8281_v57 = vld [vmem:[#allocation5 + $0x17cc] ss:$16 sps:$4 sm:$0xff]  }
 0x30e   :  { %5640 = vmatpush2.bf16.msra.mxu0 %v8204_v58  ;;  %v8276_v58 = vld [vmem:[#allocation5 + $0x15c8] ss:$16 sps:$4 sm:$0xff]  }
 0x30f   :  { %5681 = vmatpush2.bf16.msra.mxu1 %v8207_v59  ;;  %5641 = vmatprep.subr.bf16.mxu0 %v8212_v61  ;;  %v8279_v59 = vld [vmem:[#allocation5 + $0x17c8] ss:$16 sps:$4 sm:$0xff]   ;;  %v8284_v61 = vld [vmem:[#allocation5 + $0x15ac] ss:$16 sps:$4 sm:$0xff]  }
 0x310   :  { %5682 = vmatprep.subr.bf16.mxu1 %v8215_v20  ;;  %v8287_v20 = vld [vmem:[#allocation5 + $0x17ac] ss:$16 sps:$4 sm:$0xff]  }
 0x312   :  { %5642 = vmatpush2.bf16.msra.mxu0 %v8210_v21  ;;  %v8282_v21 = vld [vmem:[#allocation5 + $0x15a8] ss:$16 sps:$4 sm:$0xff]  }
 0x313   :  { %5683 = vmatpush2.bf16.msra.mxu1 %v8213_v63  ;;  %5643 = vmatprep.subr.bf16.mxu0 %v8218_v7  ;;  %v8285_v63 = vld [vmem:[#allocation5 + $0x17a8] ss:$16 sps:$4 sm:$0xff]   ;;  %v8290_v7 = vld [vmem:[#allocation5 + $0x158c] ss:$16 sps:$4 sm:$0xff]  }
 0x314   :  { %5684 = vmatprep.subr.bf16.mxu1 %v8221_v10  ;;  %v8293_v10 = vld [vmem:[#allocation5 + $0x178c] ss:$16 sps:$4 sm:$0xff]  }
 0x316   :  { %5644 = vmatpush2.bf16.msra.mxu0 %v8216_v5  ;;  %v8288_v5 = vld [vmem:[#allocation5 + $0x1588] ss:$16 sps:$4 sm:$0xff]  }
 0x317   :  { %5685 = vmatpush2.bf16.msra.mxu1 %v8219_v6  ;;  %5695 = vmatprep.subr.bf16.mxu0 %v8224_v11  ;;  %v8291_v6 = vld [vmem:[#allocation5 + $0x1788] ss:$16 sps:$4 sm:$0xff]   ;;  %v8296_v11 = vld [vmem:[#allocation5 + $0x156c] ss:$16 sps:$4 sm:$0xff]  }
 0x318   :  { %5736 = vmatprep.subr.bf16.mxu1 %v8227_v27  ;;  %v8299_v27 = vld [vmem:[#allocation5 + $0x176c] ss:$16 sps:$4 sm:$0xff]  }
 0x319   :  { %v5401_v18 = vpop.f32.mrf.mxu0  ;;  %5646 = vmatmul.mubr.bf16.vlgmr.msra.gmra.mxu0 %v8670_v3 }
 0x31a   :  { %v5442_v15 = vpop.f32.mrf.mxu1  ;;  %5687 = vmatmul.mubr.bf16.vlgmr.msra.gmra.mxu1 %v8672_v4  ;;  %v5402_v16 = vadd.f32 %v5401_v18, %v8736_v62  ;;  %5696 = vmatpush1.bf16.msra.mxu0 %v8222_v29  ;;  %v8294_v29 = vld [vmem:[#allocation5 + $0x1568] ss:$16 sps:$4 sm:$0xff]  }
 0x31b   :  { %5737 = vmatpush1.bf16.msra.mxu1 %v8225_v32  ;;  %v5403_v24 = vpop.f32.mrf.mxu0  ;;  %5697 = vmatprep.subr.bf16.mxu0 %v8230_v12  ;;  %v8297_v32 = vld [vmem:[#allocation5 + $0x1768] ss:$16 sps:$4 sm:$0xff]   ;;  %v8302_v12 = vld [vmem:[#allocation5 + $0x154c] ss:$16 sps:$4 sm:$0xff]  }
 0x31c   :  { %v5444_v25 = vpop.f32.mrf.mxu1  ;;  %5738 = vmatprep.subr.bf16.mxu1 %v8233_v17  ;;  %v8745_v28 = vadd.f32 %v5442_v15, %v5402_v16  ;;  %v5404_v30 = vadd.f32 %v5403_v24, %v8740_v0  ;;  %5727 = vmatprep.mubr.bf16.mxu0 %v8674_v13  ;;  %v8240_v0 = vld [vmem:[#allocation5 + $0x1488] ss:$16 sps:$4 sm:$0xff]   ;;  %v8305_v17 = vld [vmem:[#allocation5 + $0x174c] ss:$16 sps:$4 sm:$0xff]  }
 0x31d   :  { %5768 = vmatprep.mubr.bf16.mxu1 %v8676_v14  ;;  %v5405_v3 = vpop.f32.mrf.mxu0  ;;  %v8243_v13 = vld [vmem:[#allocation5 + $0x1688] ss:$16 sps:$4 sm:$0xff]   ;;  %v8248_v14 = vld [vmem:[#allocation5 + $0x146c] ss:$16 sps:$4 sm:$0xff]  }
 0x31e   :  { %v5446_v4 = vpop.f32.mrf.mxu1  ;;  %v8750_v62 = vadd.f32 %v5444_v25, %v5404_v30  ;;  %5698 = vmatpush1.bf16.msra.mxu0 %v8228_v19  ;;  %v8300_v18 = vld [vmem:[#allocation5 + $0x1548] ss:$16 sps:$4 sm:$0xff]   ;;  %v8308_v16 = vld [vmem:[#allocation5 + $0x152c] ss:$16 sps:$4 sm:$0xff]  }
 0x31f   :  { %5739 = vmatpush1.bf16.msra.mxu1 %v8231_v23  ;;  %v5406_v35 = vpop.f32.mrf.mxu0  ;;  %5699 = vmatprep.subr.bf16.mxu0 %v8236_v8  ;;  %v8303_v15 = vld [vmem:[#allocation5 + $0x1748] ss:$16 sps:$4 sm:$0xff]   ;;  %v8311_v19 = vld [vmem:[#allocation5 + $0x172c] ss:$16 sps:$4 sm:$0xff]   ;;  %v5778_v4 = vmax.f32 %v8730_v60, 0.0 }
 0x320   :  { %v5447_v26 = vpop.f32.mrf.mxu1  ;;  %5740 = vmatprep.subr.bf16.mxu1 %v8239_v9  ;;  %v8306_v23 = vld [vmem:[#allocation5 + $0x1528] ss:$16 sps:$4 sm:$0xff]   ;;  %v8314_v25 = vld [vmem:[#allocation5 + $0x150c] ss:$16 sps:$4 sm:$0xff]  }
 0x321   :  { %v8309_v24 = vld [vmem:[#allocation5 + $0x1728] ss:$16 sps:$4 sm:$0xff]   ;;  %v8317_v8 = vld [vmem:[#allocation5 + $0x170c] ss:$16 sps:$4 sm:$0xff]   ;;  %v5782_v35 = vpack.c.bf16 %v5778_v4, %v5778_v4 }
 0x322   :  { %5700 = vmatpush1.bf16.msra.mxu0 %v8234_v33  ;;  %v8312_v9 = vld [vmem:[#allocation5 + $0x1508] ss:$16 sps:$4 sm:$0xff]   ;;  %v8318_v3 = vld [vmem:[#allocation8 + $0x78] sm:$0xff]   ;;  %v8322_v60 = vld [vmem:[#allocation8 + $0x68] sm:$0xff]  }
 0x323   :  { %5741 = vmatpush1.bf16.msra.mxu1 %v8237_v31  ;;  %5701 = vmatprep.subr.bf16.mxu0 %v8242_v40  ;;  %v8315_v30 = vld [vmem:[#allocation5 + $0x1708] ss:$16 sps:$4 sm:$0xff]   ;;  %v8319_v33 = vld [vmem:[#allocation8 + $0x38] sm:$0xff]  }
 0x324   :  { %5742 = vmatprep.subr.bf16.mxu1 %v8245_v42  ;;  %v8320_v31 = vld [vmem:[#allocation8 + $0x70] sm:$0xff]   ;;  %v8354_v4 = vld [vmem:[#allocation11 + $0x18] sm:$0xff]  }
 0x326   :  { %5702 = vmatpush1.bf16.msra.mxu0 %v8240_v0  ;;  %v8321_v0 = vld [vmem:[#allocation8 + $0x30] sm:$0xff]  }
 0x327   :  { %5743 = vmatpush1.bf16.msra.mxu1 %v8243_v13  ;;  %5703 = vmatprep.subr.bf16.mxu0 %v8248_v14 }
 0x328   :  { %5744 = vmatprep.subr.bf16.mxu1 %v8251_v43 }
 0x32a   :  { %5704 = vmatpush1.bf16.msra.mxu0 %v8246_v36 }
 0x32b   :  { %5745 = vmatpush1.bf16.msra.mxu1 %v8249_v39  ;;  %5705 = vmatprep.subr.bf16.mxu0 %v8254_v41 }
 0x32c   :  { %5746 = vmatprep.subr.bf16.mxu1 %v8257_v38 }
 0x32e   :  { %5706 = vmatpush1.bf16.msra.mxu0 %v8252_v34  ;;  %v8323_v34 = vld [vmem:[#allocation8 + $0x28] sm:$0xff]  }
 0x32f   :  { %5747 = vmatpush1.bf16.msra.mxu1 %v8255_v44  ;;  %5707 = vmatprep.subr.bf16.mxu0 %v8260_v22  ;;  %v8335_v22 = vld [vmem:[#allocation8 + $0xb8] sm:$0xff]  }
 0x330   :  { %5748 = vmatprep.subr.bf16.mxu1 %v8263_v48  ;;  %v8336_v48 = vld [vmem:[#allocation8 + $0xf0] sm:$0xff]  }
 0x332   :  { %5708 = vmatpush1.bf16.msra.mxu0 %v8258_v50  ;;  %v8325_v50 = vld [vmem:[#allocation8 + $0x20] sm:$0xff]  }
 0x333   :  { %5749 = vmatpush1.bf16.msra.mxu1 %v8261_v49  ;;  %5709 = vmatprep.subr.bf16.mxu0 %v8266_v52  ;;  %v8337_v49 = vld [vmem:[#allocation8 + $0xb0] sm:$0xff]   ;;  %v8326_v52 = vld [vmem:[#allocation8 + $0x58] sm:$0xff]  }
 0x334   :  { %5750 = vmatprep.subr.bf16.mxu1 %v8269_v45  ;;  %v8327_v45 = vld [vmem:[#allocation8 + $0x18] sm:$0xff]  }
 0x336   :  { %5710 = vmatpush1.bf16.msra.mxu0 %v8264_v46  ;;  %v8339_v46 = vld [vmem:[#allocation8 + $0xa8] sm:$0xff]  }
 0x337   :  { %5751 = vmatpush1.bf16.msra.mxu1 %v8267_v47  ;;  %5711 = vmatprep.subr.bf16.mxu0 %v8272_v51  ;;  %v8328_v47 = vld [vmem:[#allocation8 + $0x50] sm:$0xff]   ;;  %v8340_v51 = vld [vmem:[#allocation8 + $0xe0] sm:$0xff]  }
 0x338   :  { %5752 = vmatprep.subr.bf16.mxu1 %v8275_v53  ;;  %v8329_v53 = vld [vmem:[#allocation8 + $0x10] sm:$0xff]  }
 0x33a   :  { %5712 = vmatpush2.bf16.msra.mxu0 %v8270_v54  ;;  %v8341_v54 = vld [vmem:[#allocation8 + $0xa0] sm:$0xff]  }
 0x33b   :  { %5753 = vmatpush2.bf16.msra.mxu1 %v8273_v55  ;;  %5713 = vmatprep.subr.bf16.mxu0 %v8278_v56  ;;  %v8330_v55 = vld [vmem:[#allocation8 + $0x48] sm:$0xff]   ;;  %v8342_v56 = vld [vmem:[#allocation8 + $0xd8] sm:$0xff]  }
 0x33c   :  { %5754 = vmatprep.subr.bf16.mxu1 %v8281_v57  ;;  %v8331_v57 = vld [vmem:[#allocation8 + $0x8] sm:$0xff]  }
 0x33e   :  { %5714 = vmatpush2.bf16.msra.mxu0 %v8276_v58  ;;  %v8343_v58 = vld [vmem:[#allocation8 + $0x98] sm:$0xff]  }
 0x33f   :  { %5755 = vmatpush2.bf16.msra.mxu1 %v8279_v59  ;;  %5715 = vmatprep.subr.bf16.mxu0 %v8284_v61  ;;  %v8332_v59 = vld [vmem:[#allocation8 + $0x40] sm:$0xff]  }
 0x340   :  { %5756 = vmatprep.subr.bf16.mxu1 %v8287_v20  ;;  %v8333_v61 = vld [vmem:[#allocation8] sm:$0xff]   ;;  %v5777_v20 = vmax.f32 %v8725_v37, 0.0 }
 0x342   :  { %5716 = vmatpush2.bf16.msra.mxu0 %v8282_v21  ;;  %v5781_v21 = vpack.c.bf16 %v5777_v20, %v5777_v20 }
 0x343   :  { %5757 = vmatpush2.bf16.msra.mxu1 %v8285_v63  ;;  %5717 = vmatprep.subr.bf16.mxu0 %v8290_v7  ;;  %v8344_v63 = vld [vmem:[#allocation8 + $0xd0] sm:$0xff]  }
 0x344   :  { %5758 = vmatprep.subr.bf16.mxu1 %v8293_v10  ;;  %v8345_v7 = vld [vmem:[#allocation8 + $0x90] sm:$0xff]  }
 0x346   :  { %5718 = vmatpush2.bf16.msra.mxu0 %v8288_v5 }
 0x347   :  { %5759 = vmatpush2.bf16.msra.mxu1 %v8291_v6  ;;  %5719 = vmatprep.subr.bf16.mxu0 %v8296_v11 }
 0x348   :  { %5760 = vmatprep.subr.bf16.mxu1 %v8299_v27 }
 0x34a   :  { %5720 = vmatpush2.bf16.msra.mxu0 %v8294_v29  ;;  %v8346_v29 = vld [vmem:[#allocation8 + $0xc8] sm:$0xff]  }
 0x34b   :  { %5761 = vmatpush2.bf16.msra.mxu1 %v8297_v32  ;;  %5721 = vmatprep.subr.bf16.mxu0 %v8302_v12 }
 0x34c   :  { %5762 = vmatprep.subr.bf16.mxu1 %v8305_v17  ;;  %v8347_v17 = vld [vmem:[#allocation8 + $0x88] sm:$0xff]  }
 0x34e   :  { %5722 = vmatpush2.bf16.msra.mxu0 %v8300_v18 }
 0x34f   :  { %5763 = vmatpush2.bf16.msra.mxu1 %v8303_v15  ;;  %5723 = vmatprep.subr.bf16.mxu0 %v8308_v16 }
 0x350   :  { %5764 = vmatprep.subr.bf16.mxu1 %v8311_v19 }
 0x352   :  { %5724 = vmatpush2.bf16.msra.mxu0 %v8306_v23  ;;  %v8348_v23 = vld [vmem:[#allocation8 + $0xc0] sm:$0xff]  }
 0x353   :  { %5765 = vmatpush2.bf16.msra.mxu1 %v8309_v24  ;;  %5725 = vmatprep.subr.bf16.mxu0 %v8314_v25  ;;  %v8349_v24 = vld [vmem:[#allocation8 + $0x80] sm:$0xff]  }
 0x354   :  { %5766 = vmatprep.subr.bf16.mxu1 %v8317_v8  ;;  %v8350_v25 = vld [vmem:[#allocation11 + $0x38] sm:$0xff]   ;;  %v8544_v8 = vmov 0.0  }
 0x356   :  { %5726 = vmatpush2.bf16.msra.mxu0 %v8312_v9  ;;  %v8351_v9 = vld [vmem:[#allocation11 + $0x30] sm:$0xff]  }
 0x357   :  { %5767 = vmatpush2.bf16.msra.mxu1 %v8315_v30  ;;  %7079 = vmatprep.subr.bf16.mxu0 %v8318_v3  ;;  %v8352_v30 = vld [vmem:[#allocation11 + $0x28] sm:$0xff]   ;;  %v8353_v3 = vld [vmem:[#allocation11 + $0x20] sm:$0xff]  }
 0x359   :  { %v5483_v26 = vpop.f32.mrf.mxu0  ;;  %5728 = vmatmul.mubr.bf16.vlgmr.msra.gmra.mxu0 %v8688_v1  ;;  %v8324_v1 = vld [vmem:[#allocation8 + $0x60] sm:$0xff]  }
 0x35a   :  { %v5524_v40 = vpop.f32.mrf.mxu1  ;;  %5769 = vmatmul.mubr.bf16.vlgmr.msra.gmra.mxu1 %v8690_v2  ;;  %v5484_v42 = vadd.f32 %v5483_v26, %v8745_v28  ;;  %7080 = vmatpush3.bf16.msra.mxu0 %v8319_v33  ;;  %v8334_v28 = vld [vmem:[#allocation8 + $0xf8] sm:$0xff]  }
 0x35b   :  { %6080 = vmatprep.mubr.bf16.mxu0 %v5782_v35  ;;  %v5485_v13 = vpop.f32.mrf.mxu0  ;;  %7081 = vmatprep.subr.bf16.mxu0 %v8320_v31 }
 0x35c   :  { %v5526_v14 = vpop.f32.mrf.mxu1  ;;  %v5525_v43 = vadd.f32 %v5524_v40, %v5484_v42  ;;  %v5486_v36 = vadd.f32 %v5485_v13, %v8750_v62  ;;  %7101 = vmatprep.subr.bf16.mxu1 %v8334_v28  ;;  %v8338_v62 = vld [vmem:[#allocation8 + $0xe8] sm:$0xff]  }
 0x35d   :  { %v5487_v39 = vpop.f32.mrf.mxu0  ;;  %7102 = vmatpush3.bf16.msra.mxu1 %v8335_v22 }
 0x35e   :  { %v5528_v41 = vpop.f32.mrf.mxu1  ;;  %v5527_v38 = vadd.f32 %v5526_v14, %v5486_v36  ;;  %7082 = vmatpush3.bf16.msra.mxu0 %v8321_v0  ;;  %7103 = vmatprep.subr.bf16.mxu1 %v8336_v48 }
 0x35f   :  { %v5488_v44 = vpop.f32.mrf.mxu0  ;;  %7083 = vmatprep.subr.bf16.mxu0 %v8322_v60 }
 0x360   :  { %v5529_v2 = vpop.f32.mrf.mxu1 }
 0x361   :  { %7104 = vmatpush3.bf16.msra.mxu1 %v8337_v49 }
 0x362   :  { %7084 = vmatpush3.bf16.msra.mxu0 %v8323_v34  ;;  %7105 = vmatprep.subr.bf16.mxu1 %v8338_v62 }
 0x363   :  { %7085 = vmatprep.subr.bf16.mxu0 %v8324_v1 }
 0x365   :  { %7106 = vmatpush3.bf16.msra.mxu1 %v8339_v46 }
 0x366   :  { %7086 = vmatpush3.bf16.msra.mxu0 %v8325_v50  ;;  %7107 = vmatprep.subr.bf16.mxu1 %v8340_v51 }
 0x367   :  { %7087 = vmatprep.subr.bf16.mxu0 %v8326_v52 }
 0x369   :  { %7108 = vmatpush3.bf16.msra.mxu1 %v8341_v54 }
 0x36a   :  { %7088 = vmatpush3.bf16.msra.mxu0 %v8327_v45  ;;  %7109 = vmatprep.subr.bf16.mxu1 %v8342_v56  ;;  %v8355_v56 = vld [vmem:[#allocation11 + $0x10] sm:$0xff]  }
 0x36b   :  { %7089 = vmatprep.subr.bf16.mxu0 %v8328_v47 }
 0x36d   :  { %7110 = vmatpush3.bf16.msra.mxu1 %v8343_v58  ;;  %v8357_v58 = vld [vmem:[#allocation11] sm:$0xff]  }
 0x36e   :  { %7090 = vmatpush3.bf16.msra.mxu0 %v8329_v53  ;;  %7111 = vmatprep.subr.bf16.mxu1 %v8344_v63 }
 0x36f   :  { %7091 = vmatprep.subr.bf16.mxu0 %v8330_v55 }
 0x371   :  { %7112 = vmatpush3.bf16.msra.mxu1 %v8345_v7 }
 0x372   :  { %7092 = vmatpush3.bf16.msra.mxu0 %v8331_v57  ;;  %7113 = vmatprep.subr.bf16.mxu1 %v8346_v29  ;;  %v8356_v57 = vld [vmem:[#allocation11 + $0x8] sm:$0xff]  }
 0x373   :  { %7093 = vmatprep.subr.bf16.mxu0 %v8332_v59  ;;  %v7037_v59 = vld [vmem:[#allocation10] ss:$0 sm:$0xff] }
 0x375   :  { %7114 = vmatpush3.bf16.msra.mxu1 %v8347_v17 }
 0x376   :  { %7094 = vmatpush3.bf16.msra.mxu0 %v8333_v61  ;;  %7115 = vmatprep.subr.bf16.mxu1 %v8348_v23 }
 0x377   :  { %7132 = vmatprep.subr.bf16.mxu0 %v8544_v8 }
 0x379   :  { %6081 = vmatmul.mubr.bf16.vlgmr.msra.gmra.mxu0 %v5781_v21  ;;  %7116 = vmatpush3.bf16.msra.mxu1 %v8349_v24 }
 0x37a   :  { %7133 = vmatpush3.bf16.msra.mxu0 %v8350_v25  ;;  %7148 = vmatprep.mubr.msk.bf16.mxu0 %vm8545_vm0, %v8544_v8 }
 0x37b   :  { %7134 = vmatprep.subr.bf16.mxu0 %v8544_v8 }
 0x37e   :  { %7135 = vmatpush3.bf16.msra.mxu0 %v8351_v9 }
 0x37f   :  { %7136 = vmatprep.subr.bf16.mxu0 %v8544_v8 }
 0x382   :  { %7137 = vmatpush3.bf16.msra.mxu0 %v8352_v30 }
 0x383   :  { %7138 = vmatprep.subr.bf16.mxu0 %v8544_v8 }
 0x386   :  { %7139 = vmatpush3.bf16.msra.mxu0 %v8353_v3 }
 0x387   :  { %7140 = vmatprep.subr.bf16.mxu0 %v8544_v8 }
 0x38a   :  { %7141 = vmatpush3.bf16.msra.mxu0 %v8354_v4 }
 0x38b   :  { %7142 = vmatprep.subr.bf16.mxu0 %v8544_v8 }
 0x38e   :  { %7143 = vmatpush3.bf16.msra.mxu0 %v8355_v56 }
 0x38f   :  { %7144 = vmatprep.subr.bf16.mxu0 %v8544_v8 }
 0x392   :  { %7145 = vmatpush3.bf16.msra.mxu0 %v8356_v57 }
 0x393   :  { %7146 = vmatprep.subr.bf16.mxu0 %v8544_v8 }
 0x396   :  { %7147 = vmatpush3.bf16.msra.mxu0 %v8357_v58 }
 0x399   :  { %v5565_v10 = vpop.f32.mrf.mxu0 }
 0x39a   :  { %v5606_v5 = vpop.f32.mrf.mxu1  ;;  %v5566_v6 = vadd.f32 %v5565_v10, %v5525_v43 }
 0x39b   :  { %v5567_v11 = vpop.f32.mrf.mxu0 }
 0x39c   :  { %v5608_v27 = vpop.f32.mrf.mxu1  ;;  %v5607_v32 = vadd.f32 %v5606_v5, %v5566_v6  ;;  %v5568_v12 = vadd.f32 %v5567_v11, %v5527_v38 }
 0x39d   :  { %v5569_v18 = vpop.f32.mrf.mxu0 }
 0x39e   :  { %v5610_v15 = vpop.f32.mrf.mxu1  ;;  %v5609_v37 = vadd.f32 %v5608_v27, %v5568_v12  ;;  %v7070_v27 = vld [vmem:[#allocation13] ss:$0 sm:$0xff] }
 0x39f   :  { %v5570_v16 = vpop.f32.mrf.mxu0 }
 0x3a0   :  { %v5611_v19 = vpop.f32.mrf.mxu1 }
 0x3d9   :  { %v5647_v33 = vpop.f32.mrf.mxu0 }
 0x3da   :  { %v5688_v31 = vpop.f32.mrf.mxu1  ;;  %v5648_v35 = vadd.f32 %v5647_v33, %v5607_v32 }
 0x3db   :  { %v5649_v26 = vpop.f32.mrf.mxu0 }
 0x3dc   :  { %v5690_v40 = vpop.f32.mrf.mxu1  ;;  %v5689_v42 = vadd.f32 %v5688_v31, %v5648_v35  ;;  %v5650_v43 = vadd.f32 %v5649_v26, %v5609_v37 }
 0x3dd   :  { %v5651_v0 = vpop.f32.mrf.mxu0 }
 0x3de   :  { %v5692_v13 = vpop.f32.mrf.mxu1  ;;  %v5691_v41 = vadd.f32 %v5690_v40, %v5650_v43 }
 0x3df   :  { %v5652_v14 = vpop.f32.mrf.mxu0 }
 0x3e0   :  { %v5693_v60 = vpop.f32.mrf.mxu1 }
 0x419   :  { %v5729_v36 = vpop.f32.mrf.mxu0 }
 0x41a   :  { %v5770_v39 = vpop.f32.mrf.mxu1  ;;  %v5730_v38 = vadd.f32 %v5729_v36, %v5689_v42 }
 0x41b   :  { %v5731_v34 = vpop.f32.mrf.mxu0 }
 0x41c   :  { %v5772_v1 = vpop.f32.mrf.mxu1  ;;  %v5771_v44 = vadd.f32 %v5770_v39, %v5730_v38  ;;  %v5732_v2 = vadd.f32 %v5731_v34, %v5691_v41 }
 0x41d   :  { %v5733_v28 = vpop.f32.mrf.mxu0 }
 0x41e   :  { %v5774_v22 = vpop.f32.mrf.mxu1  ;;  %v5773_v48 = vadd.f32 %v5772_v1, %v5732_v2  ;;  %v5779_v50 = vmax.f32 %v5771_v44, 0.0 }
 0x41f   :  { %v5734_v49 = vpop.f32.mrf.mxu0 }
 0x420   :  { %v5775_v52 = vpop.f32.mrf.mxu1  ;;  %v5780_v62 = vmax.f32 %v5773_v48, 0.0  ;;  %v5783_v46 = vpack.c.bf16 %v5779_v50, %v5779_v50 }
 0x422   :  { %v5784_v45 = vpack.c.bf16 %v5780_v62, %v5780_v62 }
 0x424   :  { %6120 = vmatprep.mubr.bf16.mxu1 %v5784_v45 }
 0x425   :  { %6121 = vmatmul.mubr.bf16.vlgmr.msra.gmra.mxu1 %v5783_v46 }
 0x439   :  { %v7095_v47 = vpop.f32.mrf.mxu0 }
 0x43b   :  { %v7096_v51 = vpop.f32.mrf.mxu0 }
 0x43c   :  { %v7097_v53 = vadd.f32 %v7096_v51, %v7095_v47 }
 0x43d   :  { %v7098_v54 = vpop.f32.mrf.mxu0 }
 0x43e   :  { %v6083_v21 = vadd.f32 %v7097_v53, %v7037_v59 }
 0x43f   :  { %v7099_v55 = vpop.f32.mrf.mxu0 }
 0x4e5   :  { %v7117_v61 = vpop.f32.mrf.mxu1 }
 0x4e7   :  { %v7118_v20 = vpop.f32.mrf.mxu1 }
 0x4e8   :  { %v7119_v63 = vadd.f32 %v7118_v20, %v7117_v61 }
 0x4e9   :  { %v7120_v7 = vpop.f32.mrf.mxu1 }
 0x4ea   :  { %v6123_v10 = vadd.f32 %v7119_v63, %v6083_v21 }
 0x4eb   :  { %v7121_v5 = vpop.f32.mrf.mxu1 }
 0x4ec   :  { %v6128_v6 = vmax.f32 %v6123_v10, 0.0 }
 0x4ee   :  { %v6129_v11 = vpack.c.bf16 %v6128_v6, %v6128_v6 }
 0x4f0   :  { %7149 = vmatmul.mubr.bf16.vlgmr.msra.gmra.mxu0 %v6129_v11 }
 0x5b0   :  { %v6235_v29 = vpop.f32.mrf.mxu0 }
 0x5b1   :  { %v6236_v32 = vadd.f32 %v7070_v27, %v6235_v29 }
 0x5b2   :  { %v7150_v12 = vpop.f32.mrf.mxu0 }
 0x5b3   :  { %6241 = vmax.xlane.f32.xlu0 %v6236_v32 }
 0x5b4   :  { %v6238_v17 = vpop.f32.mrf.mxu0 }
 0x5b6   :  { %v7151_v18 = vpop.f32.mrf.mxu0 }
 0x63c   :  { %v6242_v15 = vpop.xlane.xlu0 %6241 }
 0x63d   :  { %v6243_v37 = vsub.f32 %v6236_v32, %v6242_v15 }
 0x63f   :  { %v6244_v16 = vmul.f32 1.442695, %v6243_v37 }
 0x641   :  { %8358 = vpow2.f32 %v6244_v16 }
 0x64e   :  { %v8359_v19 = vpop.eup %8358 }
 0x64f   :  { %6246 = vadd.xlane.f32.xlu0 %v8359_v19 }
 0x6d8   :  { %v6247_v23 = vpop.xlane.xlu0 %6246 }
 0x6d9   :  { %8360 = vrcp.f32 %v6247_v23 }
 0x6e6   :  { %v8361_v24 = vpop.eup %8360 }
 0x6e7   :  { %v6249_v25 = vmul.f32 %v8361_v24, %v8359_v19 }
 0x6e9   :  { %6250 = vst [vmem:[#allocation14] sm:$0xff] %v6249_v25 }
 0x6ea   :  { %8514 = shalt.err (!%p8511_p11)
}
 0x6eb   :  { %6260 = dma.vmem_to_hbm [thread:$0]  %s6258_s6, 128, %s8768_s7, [#allocation4]  }
 0x6ec   :  { %8531 = dma.done.wait [#allocation4], 128  }
 0x6ed   :  { %8532 = vsyncadd [#allocation4], 4294967168 }
 0x6ee   :  { %6264 = vsyncpa [#allocation3], 1 }
 0x6ef   :  { %6265 = vsyncpa [#allocation6], 1 }
 0x6f0   :  { %6266 = vsyncpa [#allocation9], 1 }
 0x6f1   :  { %6267 = vsyncpa [#allocation12], 1 }
 0x6f2   :  { %6268 = vsyncpa [#allocation4], 1 }

// kernel: tpu_custom_call.1
= control target key start
LH: loop header
LB: loop body
LE: loop exit
PB: predicated region body
PF: predicated region fallthrough
CT: control target
= control target key end

     0   :  { %12 = vsyncpa [#allocation3], 0  ;;  %s8761_s0 = inlined_call_operand.hbm [shape: f32[8,3072], index: 0, kind: input, shape index: {}]   ;;  %s8762_s1 = inlined_call_operand.hbm [shape: bf16[3072,512], index: 1, kind: input, shape index: {}]   ;;  %s8763_s2 = inlined_call_operand.hbm [shape: f32[1,512], index: 2, kind: input, shape index: {}]   ;;  %s8764_s3 = inlined_call_operand.hbm [shape: bf16[512,128], index: 3, kind: input, shape index: {}]   ;;  %s8765_s4 = inlined_call_operand.hbm [shape: f32[1,128], index: 4, kind: input, shape index: {}]   ;;  %s8766_s5 = inlined_call_operand.hbm [shape: bf16[128,128], index: 5, kind: input, shape index: {}]   ;;  %s8767_s6 = inlined_call_operand.hbm [shape: f32[1,128], index: 6, kind: input, shape index: {}]   ;;  %s8768_s7 = inlined_call_operand.hbm [shape: f32[8,128], index: 7, kind: output, shape index: {}]  }
   0x1   :  { %13 = vsyncpa [#allocation6], 0 }
   0x2   :  { %14 = vsyncpa [#allocation9], 0 }
   0x3   :  { %15 = vsyncpa [#allocation12], 0 }
   0x4   :  { %16 = vsyncpa [#allocation4], 0  ;;  %s8533_s24 = smov [#allocation5]  }
   0x5   :  { %s32_s25 = sshll.u32 %s8533_s24, 4  ;;  %s33_s25 = int_to_ptr.vmem [resolvable:$true] %s32_s25 }
   0x6   :  { %s8371_s26 = scalar_lea.vmem %s33_s25, 98304  ;;  %p8376_p1 = scmp.lt.s32.totalorder %s33_s25, %s33_s25 }
   0x7   :  { %p8372_p0 = scmp.ne.s32.totalorder %s33_s25, %s8371_s26  ;;  %p8377_p2 = scmp.lt.s32.totalorder %s8371_s26, %s8371_s26 }
   0x9   :  { %p8378_p3 = por %p8377_p2, %p8376_p1 }
   0xb   :  { %p8379_p4 = pnand %p8378_p3, %p8372_p0 }
   0xd   :  { %8382 = shalt.err (!%p8379_p4)
}
   0xe   :  { %s8534_s27 = smov 256   ;;  %s8535_s28 = smov 16  }
   0xf   :  { %38 = dma.hbm_to_vmem [thread:$0]  %s8762_s1, 98304, %s33_s25, [#allocation6], %s8534_s27, %s8534_s27, %s8535_s28  }
  0x10   :  { %s8536_s8 = smov [#allocation8]  }
  0x11   :  { %s54_s9 = sshll.u32 %s8536_s8, 4  ;;  %s55_s9 = int_to_ptr.vmem [resolvable:$true] %s54_s9 }
  0x12   :  { %s8391_s10 = scalar_lea.vmem %s55_s9, 4096  ;;  %p8396_p6 = scmp.lt.s32.totalorder %s55_s9, %s55_s9 }
  0x13   :  { %p8392_p5 = scmp.ne.s32.totalorder %s55_s9, %s8391_s10  ;;  %p8397_p7 = scmp.lt.s32.totalorder %s8391_s10, %s8391_s10 }
  0x15   :  { %p8398_p8 = por %p8397_p7, %p8396_p6 }
  0x17   :  { %p8399_p9 = pnand %p8398_p8, %p8392_p5 }
  0x19   :  { %8402 = shalt.err (!%p8399_p9)
}
  0x1a   :  { %s8537_s11 = smov 64   ;;  %s8538_s12 = smov 4  }
  0x1b   :  { %60 = dma.hbm_to_vmem [thread:$0]  %s8764_s3, 4096, %s55_s9, [#allocation9], %s8537_s11, %s8537_s11, %s8538_s12  }
  0x1c   :  { %s8539_s15 = smov [#allocation11]   ;;  %s8540_s17 = smov [#allocation2]  }
  0x1d   :  { %s76_s16 = sshll.u32 %s8539_s15, 4  ;;  %s23_s1 = sshll.u32 %s8540_s17, 4  ;;  %s77_s16 = int_to_ptr.vmem [resolvable:$true] %s76_s16  ;;  %s24_s1 = int_to_ptr.vmem [resolvable:$true] %s23_s1 }
  0x1e   :  { %s8411_s18 = scalar_lea.vmem %s77_s16, 1024  ;;  %p8416_p11 = scmp.lt.s32.totalorder %s77_s16, %s77_s16 }
  0x1f   :  { %p8412_p10 = scmp.ne.s32.totalorder %s77_s16, %s8411_s18  ;;  %p8417_p12 = scmp.lt.s32.totalorder %s8411_s18, %s8411_s18 }
  0x21   :  { %p8418_p13 = por %p8417_p12, %p8416_p11 }
  0x23   :  { %p8419_p0 = pnand %p8418_p13, %p8412_p10 }
  0x25   :  { %8422 = shalt.err (!%p8419_p0)
}
  0x26   :  { %82 = dma.hbm_to_vmem [thread:$0]  %s8766_s5, 1024, %s77_s16, [#allocation12], %s8537_s11, %s8537_s11, %s8538_s12  }
  0x27   :  { %s8431_s21 = scalar_lea.vmem %s24_s1, 3072  ;;  %p8436_p2 = scmp.lt.s32.totalorder %s24_s1, %s24_s1 }
  0x28   :  { %p8432_p1 = scmp.ne.s32.totalorder %s24_s1, %s8431_s21  ;;  %p8437_p3 = scmp.lt.s32.totalorder %s8431_s21, %s8431_s21 }
  0x2a   :  { %p8438_p4 = por %p8437_p3, %p8436_p2 }
  0x2c   :  { %p8439_p5 = pnand %p8438_p4, %p8432_p1 }
  0x2e   :  { %8442 = shalt.err (!%p8439_p5)
}
  0x2f   :  { %26 = dma.hbm_to_vmem [thread:$0]  %s8761_s0, 3072, %s24_s1, [#allocation3]  }
  0x30   :  { %s8541_s23 = smov [#allocation7]   ;;  %s8542_s25 = smov [#allocation10]  }
  0x31   :  { %s45_s24 = sshll.u32 %s8541_s23, 4  ;;  %s67_s26 = sshll.u32 %s8542_s25, 4  ;;  %s46_s24 = int_to_ptr.vmem [resolvable:$true] %s45_s24  ;;  %s68_s26 = int_to_ptr.vmem [resolvable:$true] %s67_s26 }
  0x32   :  { %s8451_s27 = scalar_lea.vmem %s46_s24, 64  ;;  %p8456_p7 = scmp.lt.s32.totalorder %s46_s24, %s46_s24 }
  0x33   :  { %p8452_p6 = scmp.ne.s32.totalorder %s46_s24, %s8451_s27  ;;  %p8457_p8 = scmp.lt.s32.totalorder %s8451_s27, %s8451_s27 }
  0x35   :  { %p8458_p9 = por %p8457_p8, %p8456_p7 }
  0x37   :  { %p8459_p10 = pnand %p8458_p9, %p8452_p6 }
  0x39   :  { %8462 = shalt.err (!%p8459_p10)
}
  0x3a   :  { %48 = dma.hbm_to_vmem [thread:$0]  %s8763_s2, 64, %s46_s24, [#allocation6]  }
  0x3b   :  { %s8471_s29 = scalar_lea.vmem %s68_s26, 16  ;;  %s8475_s0 = scalar_lea.vmem %s68_s26, 32 }
  0x3c   :  { %p8472_p11 = scmp.ne.s32.totalorder %s68_s26, %s8471_s29  ;;  %p8476_p12 = scmp.lt.s32.totalorder %s68_s26, %s68_s26 }
  0x3d   :  { %p8477_p13 = scmp.lt.s32.totalorder %s8475_s0, %s8471_s29 }
  0x3f   :  { %p8478_p0 = por %p8477_p13, %p8476_p12 }
  0x41   :  { %p8479_p1 = pnand %p8478_p0, %p8472_p11 }
  0x43   :  { %8482 = shalt.err (!%p8479_p1)
}
  0x44   :  { %70 = dma.hbm_to_vmem [thread:$0]  %s8765_s4, 16, %s68_s26, [#allocation9]  }
  0x45   :  { %s8543_s9 = smov [#allocation13]  }
  0x46   :  { %s89_s10 = sshll.u32 %s8543_s9, 4  ;;  %s90_s10 = int_to_ptr.vmem [resolvable:$true] %s89_s10 }
  0x47   :  { %s8491_s11 = scalar_lea.vmem %s90_s10, 16  ;;  %s8495_s12 = scalar_lea.vmem %s90_s10, 32 }
  0x48   :  { %p8492_p2 = scmp.ne.s32.totalorder %s90_s10, %s8491_s11  ;;  %p8496_p3 = scmp.lt.s32.totalorder %s90_s10, %s90_s10 }
  0x49   :  { %p8497_p4 = scmp.lt.s32.totalorder %s8495_s12, %s8491_s11 }
  0x4b   :  { %p8498_p5 = por %p8497_p4, %p8496_p3 }
  0x4d   :  { %p8499_p6 = pnand %p8498_p5, %p8492_p2 }
  0x4f   :  { %8502 = shalt.err (!%p8499_p6)
}
  0x50   :  { %92 = dma.hbm_to_vmem [thread:$0]  %s8767_s6, 16, %s90_s10, [#allocation12]  }
  0x51   :  { %8523 = dma.done.wait [#allocation3], 3072  }
  0x52   :  { %8524 = vsyncadd [#allocation3], 4294964224 }
  0x53   :  { %8525 = dma.done.wait [#allocation6], 98368  }
  0x54   :  { %8526 = vsyncadd [#allocation6], 4294868928 }
  0x55   :  { %8527 = dma.done.wait [#allocation9], 4112  }
  0x56   :  { %8528 = vsyncadd [#allocation9], 4294963184 }
  0x57   :  { %8529 = dma.done.wait [#allocation12], 1040  }
  0x58   :  { %8530 = vsyncadd [#allocation12], 4294966256  ;;  %v7166_v0 = vld [vmem:[#allocation5 + $0xe4] ss:$16 sps:$4 sm:$0xff]   ;;  %v7170_v2 = vld [vmem:[#allocation5 + $0xe0] ss:$16 sps:$4 sm:$0xff]  }
  0x59   :  { %v7168_v1 = vld [vmem:[#allocation5 + $0x2e4] ss:$16 sps:$4 sm:$0xff]   ;;  %4793 = vmatprep.subr.bf16.mxu0 %v7166_v0  ;;  %v7171_v3 = vld [vmem:[#allocation5 + $0x2e0] ss:$16 sps:$4 sm:$0xff]   ;;  %v116_v46 = vld [vmem:[#allocation2 + $0x8] sm:$0xff]  ;;  %vm8545_vm0 = vmmov 0  }
  0x5a   :  { %4834 = vmatprep.subr.bf16.mxu1 %v7168_v1  ;;  %v7172_v4 = vld [vmem:[#allocation5 + $0xc4] ss:$16 sps:$4 sm:$0xff]   ;;  %4794 = vmatpush1.bf16.msra.mxu0 %v7170_v2  ;;  %v7176_v6 = vld [vmem:[#allocation5 + $0xc0] ss:$16 sps:$4 sm:$0xff]   ;;  %v8608_v49 = vpack.c.bf16 %v116_v46, %v116_v46  ;;  %v118_v50 = vld [vmem:[#allocation2 + $0x18] sm:$0xff]  ;;  %s8546_s4 = smov [#allocation14]  }
  0x5b   :  { %4835 = vmatpush1.bf16.msra.mxu1 %v7171_v3  ;;  %v7174_v5 = vld [vmem:[#allocation5 + $0x2c4] ss:$16 sps:$4 sm:$0xff]   ;;  %4795 = vmatprep.subr.bf16.mxu0 %v7172_v4  ;;  %v7177_v7 = vld [vmem:[#allocation5 + $0x2c0] ss:$16 sps:$4 sm:$0xff]   ;;  %v8610_v52 = vpack.c.bf16 %v118_v50, %v118_v50  ;;  %s6257_s6 = sshll.u32 %s8546_s4, 4  ;;  %s6258_s6 = int_to_ptr.vmem [resolvable:$true] %s6257_s6 }
  0x5c   :  { %4836 = vmatprep.subr.bf16.mxu1 %v7174_v5  ;;  %v7178_v8 = vld [vmem:[#allocation5 + $0xa4] ss:$16 sps:$4 sm:$0xff]   ;;  %v7182_v10 = vld [vmem:[#allocation5 + $0xa0] ss:$16 sps:$4 sm:$0xff]   ;;  %4825 = vmatprep.mubr.bf16.mxu0 %v8608_v49  ;;  %s8503_s14 = scalar_lea.vmem %s6258_s6, 128  ;;  %p8508_p8 = scmp.lt.s32.totalorder %s6258_s6, %s6258_s6 }
  0x5d   :  { %v7180_v9 = vld [vmem:[#allocation5 + $0x2a4] ss:$16 sps:$4 sm:$0xff]   ;;  %v7183_v11 = vld [vmem:[#allocation5 + $0x2a0] ss:$16 sps:$4 sm:$0xff]   ;;  %4866 = vmatprep.mubr.bf16.mxu1 %v8610_v52  ;;  %p8504_p7 = scmp.ne.s32.totalorder %s6258_s6, %s8503_s14  ;;  %p8509_p9 = scmp.lt.s32.totalorder %s8503_s14, %s8503_s14 }
  0x5e   :  { %4796 = vmatpush1.bf16.msra.mxu0 %v7176_v6  ;;  %v7184_v12 = vld [vmem:[#allocation5 + $0x84] ss:$16 sps:$4 sm:$0xff]   ;;  %v7188_v14 = vld [vmem:[#allocation5 + $0x80] ss:$16 sps:$4 sm:$0xff]  }
  0x5f   :  { %4837 = vmatpush1.bf16.msra.mxu1 %v7177_v7  ;;  %4797 = vmatprep.subr.bf16.mxu0 %v7178_v8  ;;  %v7186_v13 = vld [vmem:[#allocation5 + $0x284] ss:$16 sps:$4 sm:$0xff]   ;;  %v7189_v15 = vld [vmem:[#allocation5 + $0x280] ss:$16 sps:$4 sm:$0xff]   ;;  %p8510_p10 = por %p8509_p9, %p8508_p8 }
  0x60   :  { %4838 = vmatprep.subr.bf16.mxu1 %v7180_v9  ;;  %v7190_v16 = vld [vmem:[#allocation5 + $0x64] ss:$16 sps:$4 sm:$0xff]   ;;  %v7194_v18 = vld [vmem:[#allocation5 + $0x60] ss:$16 sps:$4 sm:$0xff]  }
  0x61   :  { %v7192_v17 = vld [vmem:[#allocation5 + $0x264] ss:$16 sps:$4 sm:$0xff]   ;;  %v7195_v19 = vld [vmem:[#allocation5 + $0x260] ss:$16 sps:$4 sm:$0xff]   ;;  %p8511_p11 = pnand %p8510_p10, %p8504_p7 }
  0x62   :  { %4798 = vmatpush1.bf16.msra.mxu0 %v7182_v10  ;;  %v7196_v20 = vld [vmem:[#allocation5 + $0x44] ss:$16 sps:$4 sm:$0xff]   ;;  %v7200_v22 = vld [vmem:[#allocation5 + $0x40] ss:$16 sps:$4 sm:$0xff]  }
  0x63   :  { %4839 = vmatpush1.bf16.msra.mxu1 %v7183_v11  ;;  %4799 = vmatprep.subr.bf16.mxu0 %v7184_v12  ;;  %v7198_v21 = vld [vmem:[#allocation5 + $0x244] ss:$16 sps:$4 sm:$0xff]   ;;  %v7201_v23 = vld [vmem:[#allocation5 + $0x240] ss:$16 sps:$4 sm:$0xff]  }
  0x64   :  { %4840 = vmatprep.subr.bf16.mxu1 %v7186_v13  ;;  %v7202_v24 = vld [vmem:[#allocation5 + $0x24] ss:$16 sps:$4 sm:$0xff]   ;;  %v7206_v26 = vld [vmem:[#allocation5 + $0x20] ss:$16 sps:$4 sm:$0xff]  }
  0x65   :  { %v7204_v25 = vld [vmem:[#allocation5 + $0x224] ss:$16 sps:$4 sm:$0xff]   ;;  %v7207_v27 = vld [vmem:[#allocation5 + $0x220] ss:$16 sps:$4 sm:$0xff]  }
  0x66   :  { %4800 = vmatpush1.bf16.msra.mxu0 %v7188_v14  ;;  %v7208_v28 = vld [vmem:[#allocation5 + $0x4] ss:$16 sps:$4 sm:$0xff]   ;;  %v7212_v30 = vld [vmem:[#allocation5] ss:$16 sps:$4 sm:$0xff]  }
  0x67   :  { %4841 = vmatpush1.bf16.msra.mxu1 %v7189_v15  ;;  %4801 = vmatprep.subr.bf16.mxu0 %v7190_v16  ;;  %v7210_v29 = vld [vmem:[#allocation5 + $0x204] ss:$16 sps:$4 sm:$0xff]   ;;  %v7213_v31 = vld [vmem:[#allocation5 + $0x200] ss:$16 sps:$4 sm:$0xff]  }
  0x68   :  { %4842 = vmatprep.subr.bf16.mxu1 %v7192_v17  ;;  %v7214_v32 = vld [vmem:[#allocation5 + $0x1e4] ss:$16 sps:$4 sm:$0xff]   ;;  %v7218_v34 = vld [vmem:[#allocation5 + $0x1e0] ss:$16 sps:$4 sm:$0xff]  }
  0x69   :  { %v7216_v33 = vld [vmem:[#allocation5 + $0x3e4] ss:$16 sps:$4 sm:$0xff]   ;;  %v7219_v35 = vld [vmem:[#allocation5 + $0x3e0] ss:$16 sps:$4 sm:$0xff]  }
  0x6a   :  { %4802 = vmatpush1.bf16.msra.mxu0 %v7194_v18  ;;  %v7220_v36 = vld [vmem:[#allocation5 + $0x1c4] ss:$16 sps:$4 sm:$0xff]   ;;  %v7224_v38 = vld [vmem:[#allocation5 + $0x1c0] ss:$16 sps:$4 sm:$0xff]  }
  0x6b   :  { %4843 = vmatpush1.bf16.msra.mxu1 %v7195_v19  ;;  %4803 = vmatprep.subr.bf16.mxu0 %v7196_v20  ;;  %v7222_v37 = vld [vmem:[#allocation5 + $0x3c4] ss:$16 sps:$4 sm:$0xff]   ;;  %v7225_v39 = vld [vmem:[#allocation5 + $0x3c0] ss:$16 sps:$4 sm:$0xff]  }
  0x6c   :  { %4844 = vmatprep.subr.bf16.mxu1 %v7198_v21  ;;  %v7226_v40 = vld [vmem:[#allocation5 + $0x1a4] ss:$16 sps:$4 sm:$0xff]   ;;  %v7230_v42 = vld [vmem:[#allocation5 + $0x1a0] ss:$16 sps:$4 sm:$0xff]  }
  0x6d   :  { %v7228_v41 = vld [vmem:[#allocation5 + $0x3a4] ss:$16 sps:$4 sm:$0xff]   ;;  %v7231_v43 = vld [vmem:[#allocation5 + $0x3a0] ss:$16 sps:$4 sm:$0xff]  }
  0x6e   :  { %4804 = vmatpush1.bf16.msra.mxu0 %v7200_v22  ;;  %v7232_v44 = vld [vmem:[#allocation5 + $0x184] ss:$16 sps:$4 sm:$0xff]   ;;  %v7236_v47 = vld [vmem:[#allocation5 + $0x180] ss:$16 sps:$4 sm:$0xff]  }
  0x6f   :  { %4845 = vmatpush1.bf16.msra.mxu1 %v7201_v23  ;;  %4805 = vmatprep.subr.bf16.mxu0 %v7202_v24  ;;  %v7234_v45 = vld [vmem:[#allocation5 + $0x384] ss:$16 sps:$4 sm:$0xff]   ;;  %v7237_v48 = vld [vmem:[#allocation5 + $0x380] ss:$16 sps:$4 sm:$0xff]  }
  0x70   :  { %4846 = vmatprep.subr.bf16.mxu1 %v7204_v25  ;;  %v7238_v51 = vld [vmem:[#allocation5 + $0x164] ss:$16 sps:$4 sm:$0xff]   ;;  %v7242_v54 = vld [vmem:[#allocation5 + $0x160] ss:$16 sps:$4 sm:$0xff]  }
  0x71   :  { %v7240_v53 = vld [vmem:[#allocation5 + $0x364] ss:$16 sps:$4 sm:$0xff]   ;;  %v7243_v55 = vld [vmem:[#allocation5 + $0x360] ss:$16 sps:$4 sm:$0xff]  }
  0x72   :  { %4806 = vmatpush1.bf16.msra.mxu0 %v7206_v26  ;;  %v7244_v56 = vld [vmem:[#allocation5 + $0x144] ss:$16 sps:$4 sm:$0xff]   ;;  %v7248_v58 = vld [vmem:[#allocation5 + $0x140] ss:$16 sps:$4 sm:$0xff]  }
  0x73   :  { %4847 = vmatpush1.bf16.msra.mxu1 %v7207_v27  ;;  %4807 = vmatprep.subr.bf16.mxu0 %v7208_v28  ;;  %v7246_v57 = vld [vmem:[#allocation5 + $0x344] ss:$16 sps:$4 sm:$0xff]   ;;  %v7249_v59 = vld [vmem:[#allocation5 + $0x340] ss:$16 sps:$4 sm:$0xff]  }
  0x74   :  { %4848 = vmatprep.subr.bf16.mxu1 %v7210_v29  ;;  %v7250_v60 = vld [vmem:[#allocation5 + $0x124] ss:$16 sps:$4 sm:$0xff]   ;;  %v7254_v62 = vld [vmem:[#allocation5 + $0x120] ss:$16 sps:$4 sm:$0xff]  }
  0x75   :  { %v7252_v61 = vld [vmem:[#allocation5 + $0x324] ss:$16 sps:$4 sm:$0xff]   ;;  %v7255_v63 = vld [vmem:[#allocation5 + $0x320] ss:$16 sps:$4 sm:$0xff]  }
  0x76   :  { %4808 = vmatpush1.bf16.msra.mxu0 %v7212_v30  ;;  %v7256_v0 = vld [vmem:[#allocation5 + $0x104] ss:$16 sps:$4 sm:$0xff]   ;;  %v7260_v2 = vld [vmem:[#allocation5 + $0x100] ss:$16 sps:$4 sm:$0xff]  }
  0x77   :  { %4849 = vmatpush1.bf16.msra.mxu1 %v7213_v31  ;;  %4809 = vmatprep.subr.bf16.mxu0 %v7214_v32  ;;  %v7258_v1 = vld [vmem:[#allocation5 + $0x304] ss:$16 sps:$4 sm:$0xff]   ;;  %v7261_v3 = vld [vmem:[#allocation5 + $0x300] ss:$16 sps:$4 sm:$0xff]  }
  0x78   :  { %4850 = vmatprep.subr.bf16.mxu1 %v7216_v33  ;;  %v115_v4 = vld [vmem:[#allocation2] sm:$0xff]  ;;  %v117_v5 = vld [vmem:[#allocation2 + $0x10] sm:$0xff] }
  0x79   :  { %v7264_v6 = vld [vmem:[#allocation5 + $0x4e4] ss:$16 sps:$4 sm:$0xff]   ;;  %v8614_v8 = vpack.c.bf16 %v115_v4, %v115_v4  ;;  %v8616_v9 = vpack.c.bf16 %v117_v5, %v117_v5  ;;  %v7262_v10 = vld [vmem:[#allocation5 + $0x4e0] ss:$16 sps:$4 sm:$0xff]  }
  0x7a   :  { %4810 = vmatpush2.bf16.msra.mxu0 %v7218_v34  ;;  %v7267_v7 = vld [vmem:[#allocation5 + $0x6e4] ss:$16 sps:$4 sm:$0xff]   ;;  %v7265_v11 = vld [vmem:[#allocation5 + $0x6e0] ss:$16 sps:$4 sm:$0xff]   ;;  %v120_v34 = vld [vmem:[#allocation2 + $0x28] sm:$0xff] }
  0x7b   :  { %4851 = vmatpush2.bf16.msra.mxu1 %v7219_v35  ;;  %4811 = vmatprep.subr.bf16.mxu0 %v7220_v36  ;;  %v7270_v12 = vld [vmem:[#allocation5 + $0x4c4] ss:$16 sps:$4 sm:$0xff]   ;;  %v7268_v14 = vld [vmem:[#allocation5 + $0x4c0] ss:$16 sps:$4 sm:$0xff]  }
  0x7c   :  { %4852 = vmatprep.subr.bf16.mxu1 %v7222_v37  ;;  %v7273_v13 = vld [vmem:[#allocation5 + $0x6c4] ss:$16 sps:$4 sm:$0xff]   ;;  %v7271_v15 = vld [vmem:[#allocation5 + $0x6c0] ss:$16 sps:$4 sm:$0xff]   ;;  %v8620_v37 = vpack.c.bf16 %v120_v34, %v120_v34 }
  0x7d   :  { %v7276_v16 = vld [vmem:[#allocation5 + $0x4a4] ss:$16 sps:$4 sm:$0xff]   ;;  %v7274_v18 = vld [vmem:[#allocation5 + $0x4a0] ss:$16 sps:$4 sm:$0xff]  }
  0x7e   :  { %4812 = vmatpush2.bf16.msra.mxu0 %v7224_v38  ;;  %v7279_v17 = vld [vmem:[#allocation5 + $0x6a4] ss:$16 sps:$4 sm:$0xff]   ;;  %v7277_v19 = vld [vmem:[#allocation5 + $0x6a0] ss:$16 sps:$4 sm:$0xff]   ;;  %v122_v38 = vld [vmem:[#allocation2 + $0x38] sm:$0xff] }
  0x7f   :  { %4853 = vmatpush2.bf16.msra.mxu1 %v7225_v39  ;;  %4813 = vmatprep.subr.bf16.mxu0 %v7226_v40  ;;  %v7282_v20 = vld [vmem:[#allocation5 + $0x484] ss:$16 sps:$4 sm:$0xff]   ;;  %v7280_v22 = vld [vmem:[#allocation5 + $0x480] ss:$16 sps:$4 sm:$0xff]   ;;  %v8622_v40 = vpack.c.bf16 %v122_v38, %v122_v38 }
  0x80   :  { %4854 = vmatprep.subr.bf16.mxu1 %v7228_v41  ;;  %v7285_v21 = vld [vmem:[#allocation5 + $0x684] ss:$16 sps:$4 sm:$0xff]   ;;  %v7283_v23 = vld [vmem:[#allocation5 + $0x680] ss:$16 sps:$4 sm:$0xff]  }
  0x81   :  { %v7288_v24 = vld [vmem:[#allocation5 + $0x464] ss:$16 sps:$4 sm:$0xff]   ;;  %v7286_v26 = vld [vmem:[#allocation5 + $0x460] ss:$16 sps:$4 sm:$0xff]  }
  0x82   :  { %4814 = vmatpush2.bf16.msra.mxu0 %v7230_v42  ;;  %v7291_v25 = vld [vmem:[#allocation5 + $0x664] ss:$16 sps:$4 sm:$0xff]   ;;  %v7289_v27 = vld [vmem:[#allocation5 + $0x660] ss:$16 sps:$4 sm:$0xff]  }
  0x83   :  { %4855 = vmatpush2.bf16.msra.mxu1 %v7231_v43  ;;  %4815 = vmatprep.subr.bf16.mxu0 %v7232_v44  ;;  %v7294_v28 = vld [vmem:[#allocation5 + $0x444] ss:$16 sps:$4 sm:$0xff]   ;;  %v7292_v30 = vld [vmem:[#allocation5 + $0x440] ss:$16 sps:$4 sm:$0xff]  }
  0x84   :  { %4856 = vmatprep.subr.bf16.mxu1 %v7234_v45  ;;  %v7297_v29 = vld [vmem:[#allocation5 + $0x644] ss:$16 sps:$4 sm:$0xff]   ;;  %v7295_v31 = vld [vmem:[#allocation5 + $0x640] ss:$16 sps:$4 sm:$0xff]  }
  0x85   :  { %v7300_v32 = vld [vmem:[#allocation5 + $0x424] ss:$16 sps:$4 sm:$0xff]   ;;  %v7298_v35 = vld [vmem:[#allocation5 + $0x420] ss:$16 sps:$4 sm:$0xff]  }
  0x86   :  { %4816 = vmatpush2.bf16.msra.mxu0 %v7236_v47  ;;  %v7303_v33 = vld [vmem:[#allocation5 + $0x624] ss:$16 sps:$4 sm:$0xff]   ;;  %v7301_v36 = vld [vmem:[#allocation5 + $0x620] ss:$16 sps:$4 sm:$0xff]  }
  0x87   :  { %4857 = vmatpush2.bf16.msra.mxu1 %v7237_v48  ;;  %4817 = vmatprep.subr.bf16.mxu0 %v7238_v51  ;;  %v7306_v39 = vld [vmem:[#allocation5 + $0x404] ss:$16 sps:$4 sm:$0xff]   ;;  %v7304_v42 = vld [vmem:[#allocation5 + $0x400] ss:$16 sps:$4 sm:$0xff]  }
  0x88   :  { %4858 = vmatprep.subr.bf16.mxu1 %v7240_v53  ;;  %v7309_v41 = vld [vmem:[#allocation5 + $0x604] ss:$16 sps:$4 sm:$0xff]   ;;  %v7307_v43 = vld [vmem:[#allocation5 + $0x600] ss:$16 sps:$4 sm:$0xff]  }
  0x89   :  { %v7312_v44 = vld [vmem:[#allocation5 + $0x5e4] ss:$16 sps:$4 sm:$0xff]   ;;  %v7310_v46 = vld [vmem:[#allocation5 + $0x5e0] ss:$16 sps:$4 sm:$0xff]  }
  0x8a   :  { %4818 = vmatpush2.bf16.msra.mxu0 %v7242_v54  ;;  %v7315_v45 = vld [vmem:[#allocation5 + $0x7e4] ss:$16 sps:$4 sm:$0xff]   ;;  %v7313_v47 = vld [vmem:[#allocation5 + $0x7e0] ss:$16 sps:$4 sm:$0xff]  }
  0x8b   :  { %4859 = vmatpush2.bf16.msra.mxu1 %v7243_v55  ;;  %4819 = vmatprep.subr.bf16.mxu0 %v7244_v56  ;;  %v7318_v48 = vld [vmem:[#allocation5 + $0x5c4] ss:$16 sps:$4 sm:$0xff]   ;;  %v7316_v51 = vld [vmem:[#allocation5 + $0x5c0] ss:$16 sps:$4 sm:$0xff]  }
  0x8c   :  { %4860 = vmatprep.subr.bf16.mxu1 %v7246_v57  ;;  %v7321_v50 = vld [vmem:[#allocation5 + $0x7c4] ss:$16 sps:$4 sm:$0xff]   ;;  %v7319_v53 = vld [vmem:[#allocation5 + $0x7c0] ss:$16 sps:$4 sm:$0xff]  }
  0x8d   :  { %v7324_v54 = vld [vmem:[#allocation5 + $0x5a4] ss:$16 sps:$4 sm:$0xff]   ;;  %v7322_v56 = vld [vmem:[#allocation5 + $0x5a0] ss:$16 sps:$4 sm:$0xff]  }
  0x8e   :  { %4820 = vmatpush2.bf16.msra.mxu0 %v7248_v58  ;;  %v7327_v55 = vld [vmem:[#allocation5 + $0x7a4] ss:$16 sps:$4 sm:$0xff]   ;;  %v7325_v57 = vld [vmem:[#allocation5 + $0x7a0] ss:$16 sps:$4 sm:$0xff]  }
  0x8f   :  { %4861 = vmatpush2.bf16.msra.mxu1 %v7249_v59  ;;  %4821 = vmatprep.subr.bf16.mxu0 %v7250_v60  ;;  %v7330_v58 = vld [vmem:[#allocation5 + $0x584] ss:$16 sps:$4 sm:$0xff]   ;;  %v7328_v60 = vld [vmem:[#allocation5 + $0x580] ss:$16 sps:$4 sm:$0xff]  }
  0x90   :  { %4862 = vmatprep.subr.bf16.mxu1 %v7252_v61  ;;  %v7333_v59 = vld [vmem:[#allocation5 + $0x784] ss:$16 sps:$4 sm:$0xff]   ;;  %v7331_v61 = vld [vmem:[#allocation5 + $0x780] ss:$16 sps:$4 sm:$0xff]  }
  0x91   :  { %v7340_v4 = vld [vmem:[#allocation5 + $0x540] ss:$16 sps:$4 sm:$0xff]   ;;  %v7381_v38 = vld [vmem:[#allocation5 + $0xa84] ss:$16 sps:$4 sm:$0xff]  }
  0x92   :  { %4822 = vmatpush2.bf16.msra.mxu0 %v7254_v62  ;;  %v7336_v62 = vld [vmem:[#allocation5 + $0x564] ss:$16 sps:$4 sm:$0xff]   ;;  %v7343_v5 = vld [vmem:[#allocation5 + $0x740] ss:$16 sps:$4 sm:$0xff]  }
  0x93   :  { %4863 = vmatpush2.bf16.msra.mxu1 %v7255_v63  ;;  %4823 = vmatprep.subr.bf16.mxu0 %v7256_v0  ;;  %v7339_v63 = vld [vmem:[#allocation5 + $0x764] ss:$16 sps:$4 sm:$0xff]   ;;  %v7334_v0 = vld [vmem:[#allocation5 + $0x560] ss:$16 sps:$4 sm:$0xff]  }
  0x94   :  { %4864 = vmatprep.subr.bf16.mxu1 %v7258_v1  ;;  %v7337_v1 = vld [vmem:[#allocation5 + $0x760] ss:$16 sps:$4 sm:$0xff]  }
  0x95   :  { %v7370_v34 = vld [vmem:[#allocation5 + $0x8a0] ss:$16 sps:$4 sm:$0xff]  }
  0x96   :  { %4824 = vmatpush2.bf16.msra.mxu0 %v7260_v2  ;;  %v7342_v2 = vld [vmem:[#allocation5 + $0x544] ss:$16 sps:$4 sm:$0xff]  }
  0x97   :  { %4865 = vmatpush2.bf16.msra.mxu1 %v7261_v3  ;;  %4875 = vmatprep.subr.bf16.mxu0 %v7264_v6  ;;  %v7345_v3 = vld [vmem:[#allocation5 + $0x744] ss:$16 sps:$4 sm:$0xff]  }
  0x98   :  { %4916 = vmatprep.subr.bf16.mxu1 %v7267_v7  ;;  %v7348_v6 = vld [vmem:[#allocation5 + $0x524] ss:$16 sps:$4 sm:$0xff]  }
  0x99   :  { %4826 = vmatmul.mubr.bf16.vlgmr.msra.gmra.mxu0 %v8614_v8  ;;  %v7351_v7 = vld [vmem:[#allocation5 + $0x724] ss:$16 sps:$4 sm:$0xff]  }
  0x9a   :  { %4867 = vmatmul.mubr.bf16.vlgmr.msra.gmra.mxu1 %v8616_v9  ;;  %4876 = vmatpush1.bf16.msra.mxu0 %v7262_v10  ;;  %v7346_v10 = vld [vmem:[#allocation5 + $0x520] ss:$16 sps:$4 sm:$0xff]  }
  0x9b   :  { %4917 = vmatpush1.bf16.msra.mxu1 %v7265_v11  ;;  %4877 = vmatprep.subr.bf16.mxu0 %v7270_v12  ;;  %v7349_v11 = vld [vmem:[#allocation5 + $0x720] ss:$16 sps:$4 sm:$0xff]   ;;  %v7354_v12 = vld [vmem:[#allocation5 + $0x504] ss:$16 sps:$4 sm:$0xff]  }
  0x9c   :  { %4918 = vmatprep.subr.bf16.mxu1 %v7273_v13  ;;  %4907 = vmatprep.mubr.bf16.mxu0 %v8620_v37  ;;  %v7357_v13 = vld [vmem:[#allocation5 + $0x704] ss:$16 sps:$4 sm:$0xff]  }
  0x9d   :  { %4948 = vmatprep.mubr.bf16.mxu1 %v8622_v40 }
  0x9e   :  { %4878 = vmatpush1.bf16.msra.mxu0 %v7268_v14  ;;  %v7352_v14 = vld [vmem:[#allocation5 + $0x500] ss:$16 sps:$4 sm:$0xff]  }
  0x9f   :  { %4919 = vmatpush1.bf16.msra.mxu1 %v7271_v15  ;;  %4879 = vmatprep.subr.bf16.mxu0 %v7276_v16  ;;  %v7355_v15 = vld [vmem:[#allocation5 + $0x700] ss:$16 sps:$4 sm:$0xff]  }
  0xa0   :  { %4920 = vmatprep.subr.bf16.mxu1 %v7279_v17  ;;  %v119_v16 = vld [vmem:[#allocation2 + $0x20] sm:$0xff]  ;;  %v121_v17 = vld [vmem:[#allocation2 + $0x30] sm:$0xff] }
  0xa2   :  { %4880 = vmatpush1.bf16.msra.mxu0 %v7274_v18  ;;  %v7360_v18 = vld [vmem:[#allocation5 + $0x8e4] ss:$16 sps:$4 sm:$0xff]  }
  0xa3   :  { %4921 = vmatpush1.bf16.msra.mxu1 %v7277_v19  ;;  %4881 = vmatprep.subr.bf16.mxu0 %v7282_v20  ;;  %v7363_v19 = vld [vmem:[#allocation5 + $0xae4] ss:$16 sps:$4 sm:$0xff]   ;;  %v8626_v20 = vpack.c.bf16 %v119_v16, %v119_v16  ;;  %v7430_v16 = vld [vmem:[#allocation5 + $0x960] ss:$16 sps:$4 sm:$0xff]  }
  0xa4   :  { %4922 = vmatprep.subr.bf16.mxu1 %v7285_v21  ;;  %v8628_v21 = vpack.c.bf16 %v121_v17, %v121_v17  ;;  %v7433_v17 = vld [vmem:[#allocation5 + $0xb60] ss:$16 sps:$4 sm:$0xff]  }
  0xa6   :  { %4882 = vmatpush1.bf16.msra.mxu0 %v7280_v22  ;;  %v7358_v22 = vld [vmem:[#allocation5 + $0x8e0] ss:$16 sps:$4 sm:$0xff]  }
  0xa7   :  { %4923 = vmatpush1.bf16.msra.mxu1 %v7283_v23  ;;  %4883 = vmatprep.subr.bf16.mxu0 %v7288_v24  ;;  %v7361_v23 = vld [vmem:[#allocation5 + $0xae0] ss:$16 sps:$4 sm:$0xff]   ;;  %v7366_v24 = vld [vmem:[#allocation5 + $0x8c4] ss:$16 sps:$4 sm:$0xff]  }
  0xa8   :  { %4924 = vmatprep.subr.bf16.mxu1 %v7291_v25  ;;  %v7369_v25 = vld [vmem:[#allocation5 + $0xac4] ss:$16 sps:$4 sm:$0xff]  }
  0xaa   :  { %4884 = vmatpush1.bf16.msra.mxu0 %v7286_v26  ;;  %v124_v26 = vld [vmem:[#allocation2 + $0x48] sm:$0xff] }
  0xab   :  { %4925 = vmatpush1.bf16.msra.mxu1 %v7289_v27  ;;  %4885 = vmatprep.subr.bf16.mxu0 %v7294_v28  ;;  %v7364_v27 = vld [vmem:[#allocation5 + $0x8c0] ss:$16 sps:$4 sm:$0xff]  }
  0xac   :  { %4926 = vmatprep.subr.bf16.mxu1 %v7297_v29  ;;  %v7367_v28 = vld [vmem:[#allocation5 + $0xac0] ss:$16 sps:$4 sm:$0xff]   ;;  %v8632_v29 = vpack.c.bf16 %v124_v26, %v124_v26 }
  0xad   :  { %v7442_v26 = vld [vmem:[#allocation5 + $0x920] ss:$16 sps:$4 sm:$0xff]  }
  0xae   :  { %4886 = vmatpush1.bf16.msra.mxu0 %v7292_v30  ;;  %v126_v30 = vld [vmem:[#allocation2 + $0x58] sm:$0xff] }
  0xaf   :  { %4927 = vmatpush1.bf16.msra.mxu1 %v7295_v31  ;;  %4887 = vmatprep.subr.bf16.mxu0 %v7300_v32  ;;  %v7372_v31 = vld [vmem:[#allocation5 + $0x8a4] ss:$16 sps:$4 sm:$0xff]   ;;  %v8634_v32 = vpack.c.bf16 %v126_v30, %v126_v30 }
  0xb0   :  { %4928 = vmatprep.subr.bf16.mxu1 %v7303_v33  ;;  %v7375_v33 = vld [vmem:[#allocation5 + $0xaa4] ss:$16 sps:$4 sm:$0xff]  }
  0xb1   :  { %v7453_v30 = vld [vmem:[#allocation5 + $0xb04] ss:$16 sps:$4 sm:$0xff]  }
  0xb2   :  { %4888 = vmatpush1.bf16.msra.mxu0 %v7298_v35  ;;  %v7373_v35 = vld [vmem:[#allocation5 + $0xaa0] ss:$16 sps:$4 sm:$0xff]  }
  0xb3   :  { %4929 = vmatpush1.bf16.msra.mxu1 %v7301_v36  ;;  %4889 = vmatprep.subr.bf16.mxu0 %v7306_v39  ;;  %v7378_v36 = vld [vmem:[#allocation5 + $0x884] ss:$16 sps:$4 sm:$0xff]   ;;  %v7376_v39 = vld [vmem:[#allocation5 + $0x880] ss:$16 sps:$4 sm:$0xff]  }
  0xb4   :  { %4930 = vmatprep.subr.bf16.mxu1 %v7309_v41  ;;  %v7379_v41 = vld [vmem:[#allocation5 + $0xa80] ss:$16 sps:$4 sm:$0xff]  }
  0xb6   :  { %4890 = vmatpush1.bf16.msra.mxu0 %v7304_v42  ;;  %v7384_v42 = vld [vmem:[#allocation5 + $0x864] ss:$16 sps:$4 sm:$0xff]  }
  0xb7   :  { %4931 = vmatpush1.bf16.msra.mxu1 %v7307_v43  ;;  %4891 = vmatprep.subr.bf16.mxu0 %v7312_v44  ;;  %v7387_v43 = vld [vmem:[#allocation5 + $0xa64] ss:$16 sps:$4 sm:$0xff]   ;;  %v7382_v44 = vld [vmem:[#allocation5 + $0x860] ss:$16 sps:$4 sm:$0xff]  }
  0xb8   :  { %4932 = vmatprep.subr.bf16.mxu1 %v7315_v45  ;;  %v7385_v45 = vld [vmem:[#allocation5 + $0xa60] ss:$16 sps:$4 sm:$0xff]  }
  0xba   :  { %4892 = vmatpush2.bf16.msra.mxu0 %v7310_v46  ;;  %v7390_v46 = vld [vmem:[#allocation5 + $0x844] ss:$16 sps:$4 sm:$0xff]  }
  0xbb   :  { %4933 = vmatpush2.bf16.msra.mxu1 %v7313_v47  ;;  %4893 = vmatprep.subr.bf16.mxu0 %v7318_v48  ;;  %v7393_v47 = vld [vmem:[#allocation5 + $0xa44] ss:$16 sps:$4 sm:$0xff]   ;;  %v7388_v48 = vld [vmem:[#allocation5 + $0x840] ss:$16 sps:$4 sm:$0xff]  }
  0xbc   :  { %4934 = vmatprep.subr.bf16.mxu1 %v7321_v50  ;;  %v7391_v50 = vld [vmem:[#allocation5 + $0xa40] ss:$16 sps:$4 sm:$0xff]  }
  0xbe   :  { %4894 = vmatpush2.bf16.msra.mxu0 %v7316_v51  ;;  %v7396_v51 = vld [vmem:[#allocation5 + $0x824] ss:$16 sps:$4 sm:$0xff]  }
  0xbf   :  { %4935 = vmatpush2.bf16.msra.mxu1 %v7319_v53  ;;  %4895 = vmatprep.subr.bf16.mxu0 %v7324_v54  ;;  %v7399_v53 = vld [vmem:[#allocation5 + $0xa24] ss:$16 sps:$4 sm:$0xff]   ;;  %v7394_v54 = vld [vmem:[#allocation5 + $0x820] ss:$16 sps:$4 sm:$0xff]  }
  0xc0   :  { %4936 = vmatprep.subr.bf16.mxu1 %v7327_v55  ;;  %v7397_v55 = vld [vmem:[#allocation5 + $0xa20] ss:$16 sps:$4 sm:$0xff]  }
  0xc2   :  { %4896 = vmatpush2.bf16.msra.mxu0 %v7322_v56  ;;  %v7402_v56 = vld [vmem:[#allocation5 + $0x804] ss:$16 sps:$4 sm:$0xff]  }
  0xc3   :  { %4937 = vmatpush2.bf16.msra.mxu1 %v7325_v57  ;;  %4897 = vmatprep.subr.bf16.mxu0 %v7330_v58  ;;  %v7405_v57 = vld [vmem:[#allocation5 + $0xa04] ss:$16 sps:$4 sm:$0xff]   ;;  %v7400_v58 = vld [vmem:[#allocation5 + $0x800] ss:$16 sps:$4 sm:$0xff]  }
  0xc4   :  { %4938 = vmatprep.subr.bf16.mxu1 %v7333_v59  ;;  %v7403_v59 = vld [vmem:[#allocation5 + $0xa00] ss:$16 sps:$4 sm:$0xff]  }
  0xc6   :  { %4898 = vmatpush2.bf16.msra.mxu0 %v7328_v60  ;;  %v7408_v60 = vld [vmem:[#allocation5 + $0x9e4] ss:$16 sps:$4 sm:$0xff]  }
  0xc7   :  { %4939 = vmatpush2.bf16.msra.mxu1 %v7331_v61  ;;  %4899 = vmatprep.subr.bf16.mxu0 %v7336_v62  ;;  %v7411_v61 = vld [vmem:[#allocation5 + $0xbe4] ss:$16 sps:$4 sm:$0xff]   ;;  %v7406_v62 = vld [vmem:[#allocation5 + $0x9e0] ss:$16 sps:$4 sm:$0xff]  }
  0xc8   :  { %4940 = vmatprep.subr.bf16.mxu1 %v7339_v63  ;;  %v7409_v63 = vld [vmem:[#allocation5 + $0xbe0] ss:$16 sps:$4 sm:$0xff]  }
  0xca   :  { %4900 = vmatpush2.bf16.msra.mxu0 %v7334_v0  ;;  %v7414_v0 = vld [vmem:[#allocation5 + $0x9c4] ss:$16 sps:$4 sm:$0xff]  }
  0xcb   :  { %4941 = vmatpush2.bf16.msra.mxu1 %v7337_v1  ;;  %4901 = vmatprep.subr.bf16.mxu0 %v7342_v2  ;;  %v7417_v1 = vld [vmem:[#allocation5 + $0xbc4] ss:$16 sps:$4 sm:$0xff]   ;;  %v7412_v2 = vld [vmem:[#allocation5 + $0x9c0] ss:$16 sps:$4 sm:$0xff]  }
  0xcc   :  { %4942 = vmatprep.subr.bf16.mxu1 %v7345_v3  ;;  %v7415_v3 = vld [vmem:[#allocation5 + $0xbc0] ss:$16 sps:$4 sm:$0xff]  }
  0xce   :  { %4902 = vmatpush2.bf16.msra.mxu0 %v7340_v4  ;;  %v7420_v4 = vld [vmem:[#allocation5 + $0x9a4] ss:$16 sps:$4 sm:$0xff]  }
  0xcf   :  { %4943 = vmatpush2.bf16.msra.mxu1 %v7343_v5  ;;  %4903 = vmatprep.subr.bf16.mxu0 %v7348_v6  ;;  %v7423_v5 = vld [vmem:[#allocation5 + $0xba4] ss:$16 sps:$4 sm:$0xff]   ;;  %v7418_v6 = vld [vmem:[#allocation5 + $0x9a0] ss:$16 sps:$4 sm:$0xff]  }
  0xd0   :  { %4944 = vmatprep.subr.bf16.mxu1 %v7351_v7  ;;  %v7421_v7 = vld [vmem:[#allocation5 + $0xba0] ss:$16 sps:$4 sm:$0xff]  }
  0xd2   :  { %4904 = vmatpush2.bf16.msra.mxu0 %v7346_v10  ;;  %v7426_v10 = vld [vmem:[#allocation5 + $0x984] ss:$16 sps:$4 sm:$0xff]  }
  0xd3   :  { %4945 = vmatpush2.bf16.msra.mxu1 %v7349_v11  ;;  %4905 = vmatprep.subr.bf16.mxu0 %v7354_v12  ;;  %v7429_v11 = vld [vmem:[#allocation5 + $0xb84] ss:$16 sps:$4 sm:$0xff]   ;;  %v7424_v12 = vld [vmem:[#allocation5 + $0x980] ss:$16 sps:$4 sm:$0xff]  }
  0xd4   :  { %4946 = vmatprep.subr.bf16.mxu1 %v7357_v13  ;;  %v7427_v13 = vld [vmem:[#allocation5 + $0xb80] ss:$16 sps:$4 sm:$0xff]  }
  0xd6   :  { %4906 = vmatpush2.bf16.msra.mxu0 %v7352_v14  ;;  %v7432_v14 = vld [vmem:[#allocation5 + $0x964] ss:$16 sps:$4 sm:$0xff]  }
  0xd7   :  { %4947 = vmatpush2.bf16.msra.mxu1 %v7355_v15  ;;  %4957 = vmatprep.subr.bf16.mxu0 %v7360_v18  ;;  %v7435_v15 = vld [vmem:[#allocation5 + $0xb64] ss:$16 sps:$4 sm:$0xff]  }
  0xd8   :  { %4998 = vmatprep.subr.bf16.mxu1 %v7363_v19  ;;  %v7438_v18 = vld [vmem:[#allocation5 + $0x944] ss:$16 sps:$4 sm:$0xff]  }
  0xd9   :  { %4908 = vmatmul.mubr.bf16.vlgmr.msra.gmra.mxu0 %v8626_v20  ;;  %v7441_v19 = vld [vmem:[#allocation5 + $0xb44] ss:$16 sps:$4 sm:$0xff]  }
  0xda   :  { %4949 = vmatmul.mubr.bf16.vlgmr.msra.gmra.mxu1 %v8628_v21  ;;  %4958 = vmatpush1.bf16.msra.mxu0 %v7358_v22  ;;  %v7436_v22 = vld [vmem:[#allocation5 + $0x940] ss:$16 sps:$4 sm:$0xff]  }
  0xdb   :  { %4999 = vmatpush1.bf16.msra.mxu1 %v7361_v23  ;;  %4959 = vmatprep.subr.bf16.mxu0 %v7366_v24  ;;  %v7439_v23 = vld [vmem:[#allocation5 + $0xb40] ss:$16 sps:$4 sm:$0xff]   ;;  %v7444_v24 = vld [vmem:[#allocation5 + $0x924] ss:$16 sps:$4 sm:$0xff]  }
  0xdc   :  { %5000 = vmatprep.subr.bf16.mxu1 %v7369_v25  ;;  %4989 = vmatprep.mubr.bf16.mxu0 %v8632_v29  ;;  %v7447_v25 = vld [vmem:[#allocation5 + $0xb24] ss:$16 sps:$4 sm:$0xff]  }
  0xdd   :  { %5030 = vmatprep.mubr.bf16.mxu1 %v8634_v32 }
  0xde   :  { %4960 = vmatpush1.bf16.msra.mxu0 %v7364_v27  ;;  %v7445_v27 = vld [vmem:[#allocation5 + $0xb20] ss:$16 sps:$4 sm:$0xff]  }
  0xdf   :  { %5001 = vmatpush1.bf16.msra.mxu1 %v7367_v28  ;;  %4961 = vmatprep.subr.bf16.mxu0 %v7372_v31  ;;  %v7450_v28 = vld [vmem:[#allocation5 + $0x904] ss:$16 sps:$4 sm:$0xff]   ;;  %v7448_v31 = vld [vmem:[#allocation5 + $0x900] ss:$16 sps:$4 sm:$0xff]  }
  0xe0   :  { %5002 = vmatprep.subr.bf16.mxu1 %v7375_v33  ;;  %v7451_v33 = vld [vmem:[#allocation5 + $0xb00] ss:$16 sps:$4 sm:$0xff]  }
  0xe2   :  { %4962 = vmatpush1.bf16.msra.mxu0 %v7370_v34  ;;  %v123_v34 = vld [vmem:[#allocation2 + $0x40] sm:$0xff] }
  0xe3   :  { %5003 = vmatpush1.bf16.msra.mxu1 %v7373_v35  ;;  %4963 = vmatprep.subr.bf16.mxu0 %v7378_v36  ;;  %v125_v35 = vld [vmem:[#allocation2 + $0x50] sm:$0xff] }
  0xe4   :  { %5004 = vmatprep.subr.bf16.mxu1 %v7381_v38  ;;  %v7456_v36 = vld [vmem:[#allocation5 + $0xce4] ss:$16 sps:$4 sm:$0xff]  }
  0xe5   :  { %v7459_v38 = vld [vmem:[#allocation5 + $0xee4] ss:$16 sps:$4 sm:$0xff]  }
  0xe6   :  { %4964 = vmatpush1.bf16.msra.mxu0 %v7376_v39  ;;  %v7454_v39 = vld [vmem:[#allocation5 + $0xce0] ss:$16 sps:$4 sm:$0xff]  }
  0xe7   :  { %5005 = vmatpush1.bf16.msra.mxu1 %v7379_v41  ;;  %4965 = vmatprep.subr.bf16.mxu0 %v7384_v42  ;;  %v128_v41 = vld [vmem:[#allocation2 + $0x68] sm:$0xff]  ;;  %v8638_v42 = vpack.c.bf16 %v123_v34, %v123_v34  ;;  %v7520_v34 = vld [vmem:[#allocation5 + $0xd80] ss:$16 sps:$4 sm:$0xff]  }
  0xe8   :  { %5006 = vmatprep.subr.bf16.mxu1 %v7387_v43  ;;  %v8640_v43 = vpack.c.bf16 %v125_v35, %v125_v35  ;;  %v7523_v35 = vld [vmem:[#allocation5 + $0xf80] ss:$16 sps:$4 sm:$0xff]  }
  0xea   :  { %4966 = vmatpush1.bf16.msra.mxu0 %v7382_v44  ;;  %v130_v44 = vld [vmem:[#allocation2 + $0x78] sm:$0xff] }
  0xeb   :  { %5007 = vmatpush1.bf16.msra.mxu1 %v7385_v45  ;;  %4967 = vmatprep.subr.bf16.mxu0 %v7390_v46  ;;  %v7457_v45 = vld [vmem:[#allocation5 + $0xee0] ss:$16 sps:$4 sm:$0xff]   ;;  %v7462_v46 = vld [vmem:[#allocation5 + $0xcc4] ss:$16 sps:$4 sm:$0xff]  }
  0xec   :  { %5008 = vmatprep.subr.bf16.mxu1 %v7393_v47  ;;  %v7465_v47 = vld [vmem:[#allocation5 + $0xec4] ss:$16 sps:$4 sm:$0xff]  }
  0xee   :  { %4968 = vmatpush1.bf16.msra.mxu0 %v7388_v48  ;;  %v8642_v48 = vpack.c.bf16 %v128_v41, %v128_v41  ;;  %v7529_v41 = vld [vmem:[#allocation5 + $0xf60] ss:$16 sps:$4 sm:$0xff]  }
  0xef   :  { %5009 = vmatpush1.bf16.msra.mxu1 %v7391_v50  ;;  %4969 = vmatprep.subr.bf16.mxu0 %v7396_v51  ;;  %v8644_v50 = vpack.c.bf16 %v130_v44, %v130_v44  ;;  %v7460_v51 = vld [vmem:[#allocation5 + $0xcc0] ss:$16 sps:$4 sm:$0xff]   ;;  %v7534_v44 = vld [vmem:[#allocation5 + $0xd44] ss:$16 sps:$4 sm:$0xff]  }
  0xf0   :  { %5010 = vmatprep.subr.bf16.mxu1 %v7399_v53  ;;  %v7463_v53 = vld [vmem:[#allocation5 + $0xec0] ss:$16 sps:$4 sm:$0xff]  }
  0xf2   :  { %4970 = vmatpush1.bf16.msra.mxu0 %v7394_v54  ;;  %v7468_v54 = vld [vmem:[#allocation5 + $0xca4] ss:$16 sps:$4 sm:$0xff]  }
  0xf3   :  { %5011 = vmatpush1.bf16.msra.mxu1 %v7397_v55  ;;  %4971 = vmatprep.subr.bf16.mxu0 %v7402_v56  ;;  %v7471_v55 = vld [vmem:[#allocation5 + $0xea4] ss:$16 sps:$4 sm:$0xff]   ;;  %v7466_v56 = vld [vmem:[#allocation5 + $0xca0] ss:$16 sps:$4 sm:$0xff]  }
  0xf4   :  { %5012 = vmatprep.subr.bf16.mxu1 %v7405_v57  ;;  %v7469_v57 = vld [vmem:[#allocation5 + $0xea0] ss:$16 sps:$4 sm:$0xff]  }
  0xf6   :  { %4972 = vmatpush1.bf16.msra.mxu0 %v7400_v58  ;;  %v7474_v58 = vld [vmem:[#allocation5 + $0xc84] ss:$16 sps:$4 sm:$0xff]  }
  0xf7   :  { %5013 = vmatpush1.bf16.msra.mxu1 %v7403_v59  ;;  %4973 = vmatprep.subr.bf16.mxu0 %v7408_v60  ;;  %v7477_v59 = vld [vmem:[#allocation5 + $0xe84] ss:$16 sps:$4 sm:$0xff]   ;;  %v7472_v60 = vld [vmem:[#allocation5 + $0xc80] ss:$16 sps:$4 sm:$0xff]  }
  0xf8   :  { %5014 = vmatprep.subr.bf16.mxu1 %v7411_v61  ;;  %v7475_v61 = vld [vmem:[#allocation5 + $0xe80] ss:$16 sps:$4 sm:$0xff]  }
  0xfa   :  { %4974 = vmatpush2.bf16.msra.mxu0 %v7406_v62  ;;  %v7480_v62 = vld [vmem:[#allocation5 + $0xc64] ss:$16 sps:$4 sm:$0xff]  }
  0xfb   :  { %5015 = vmatpush2.bf16.msra.mxu1 %v7409_v63  ;;  %4975 = vmatprep.subr.bf16.mxu0 %v7414_v0  ;;  %v7483_v63 = vld [vmem:[#allocation5 + $0xe64] ss:$16 sps:$4 sm:$0xff]   ;;  %v7478_v0 = vld [vmem:[#allocation5 + $0xc60] ss:$16 sps:$4 sm:$0xff]  }
  0xfc   :  { %5016 = vmatprep.subr.bf16.mxu1 %v7417_v1  ;;  %v7481_v1 = vld [vmem:[#allocation5 + $0xe60] ss:$16 sps:$4 sm:$0xff]  }
  0xfe   :  { %4976 = vmatpush2.bf16.msra.mxu0 %v7412_v2  ;;  %v7486_v2 = vld [vmem:[#allocation5 + $0xc44] ss:$16 sps:$4 sm:$0xff]  }
  0xff   :  { %5017 = vmatpush2.bf16.msra.mxu1 %v7415_v3  ;;  %4977 = vmatprep.subr.bf16.mxu0 %v7420_v4  ;;  %v7489_v3 = vld [vmem:[#allocation5 + $0xe44] ss:$16 sps:$4 sm:$0xff]   ;;  %v7484_v4 = vld [vmem:[#allocation5 + $0xc40] ss:$16 sps:$4 sm:$0xff]  }
 0x100   :  { %5018 = vmatprep.subr.bf16.mxu1 %v7423_v5  ;;  %v7487_v5 = vld [vmem:[#allocation5 + $0xe40] ss:$16 sps:$4 sm:$0xff]  }
 0x102   :  { %4978 = vmatpush2.bf16.msra.mxu0 %v7418_v6  ;;  %v7492_v6 = vld [vmem:[#allocation5 + $0xc24] ss:$16 sps:$4 sm:$0xff]  }
 0x103   :  { %5019 = vmatpush2.bf16.msra.mxu1 %v7421_v7  ;;  %4979 = vmatprep.subr.bf16.mxu0 %v7426_v10  ;;  %v7495_v7 = vld [vmem:[#allocation5 + $0xe24] ss:$16 sps:$4 sm:$0xff]   ;;  %v7490_v10 = vld [vmem:[#allocation5 + $0xc20] ss:$16 sps:$4 sm:$0xff]  }
 0x104   :  { %5020 = vmatprep.subr.bf16.mxu1 %v7429_v11  ;;  %v7493_v11 = vld [vmem:[#allocation5 + $0xe20] ss:$16 sps:$4 sm:$0xff]  }
 0x106   :  { %4980 = vmatpush2.bf16.msra.mxu0 %v7424_v12  ;;  %v7498_v12 = vld [vmem:[#allocation5 + $0xc04] ss:$16 sps:$4 sm:$0xff]  }
 0x107   :  { %5021 = vmatpush2.bf16.msra.mxu1 %v7427_v13  ;;  %4981 = vmatprep.subr.bf16.mxu0 %v7432_v14  ;;  %v7501_v13 = vld [vmem:[#allocation5 + $0xe04] ss:$16 sps:$4 sm:$0xff]   ;;  %v7496_v14 = vld [vmem:[#allocation5 + $0xc00] ss:$16 sps:$4 sm:$0xff]  }
 0x108   :  { %5022 = vmatprep.subr.bf16.mxu1 %v7435_v15  ;;  %v7499_v15 = vld [vmem:[#allocation5 + $0xe00] ss:$16 sps:$4 sm:$0xff]  }
 0x10a   :  { %4982 = vmatpush2.bf16.msra.mxu0 %v7430_v16  ;;  %v7504_v16 = vld [vmem:[#allocation5 + $0xde4] ss:$16 sps:$4 sm:$0xff]  }
 0x10b   :  { %5023 = vmatpush2.bf16.msra.mxu1 %v7433_v17  ;;  %4983 = vmatprep.subr.bf16.mxu0 %v7438_v18  ;;  %v7507_v17 = vld [vmem:[#allocation5 + $0xfe4] ss:$16 sps:$4 sm:$0xff]   ;;  %v7502_v18 = vld [vmem:[#allocation5 + $0xde0] ss:$16 sps:$4 sm:$0xff]  }
 0x10c   :  { %5024 = vmatprep.subr.bf16.mxu1 %v7441_v19  ;;  %v7505_v19 = vld [vmem:[#allocation5 + $0xfe0] ss:$16 sps:$4 sm:$0xff]  }
 0x10e   :  { %4984 = vmatpush2.bf16.msra.mxu0 %v7436_v22  ;;  %v7510_v22 = vld [vmem:[#allocation5 + $0xdc4] ss:$16 sps:$4 sm:$0xff]  }
 0x10f   :  { %5025 = vmatpush2.bf16.msra.mxu1 %v7439_v23  ;;  %4985 = vmatprep.subr.bf16.mxu0 %v7444_v24  ;;  %v7513_v23 = vld [vmem:[#allocation5 + $0xfc4] ss:$16 sps:$4 sm:$0xff]   ;;  %v7508_v24 = vld [vmem:[#allocation5 + $0xdc0] ss:$16 sps:$4 sm:$0xff]  }
 0x110   :  { %5026 = vmatprep.subr.bf16.mxu1 %v7447_v25  ;;  %v7511_v25 = vld [vmem:[#allocation5 + $0xfc0] ss:$16 sps:$4 sm:$0xff]  }
 0x112   :  { %4986 = vmatpush2.bf16.msra.mxu0 %v7442_v26  ;;  %v7516_v26 = vld [vmem:[#allocation5 + $0xda4] ss:$16 sps:$4 sm:$0xff]  }
 0x113   :  { %5027 = vmatpush2.bf16.msra.mxu1 %v7445_v27  ;;  %4987 = vmatprep.subr.bf16.mxu0 %v7450_v28  ;;  %v7519_v27 = vld [vmem:[#allocation5 + $0xfa4] ss:$16 sps:$4 sm:$0xff]   ;;  %v7514_v28 = vld [vmem:[#allocation5 + $0xda0] ss:$16 sps:$4 sm:$0xff]  }
 0x114   :  { %5028 = vmatprep.subr.bf16.mxu1 %v7453_v30  ;;  %v7517_v30 = vld [vmem:[#allocation5 + $0xfa0] ss:$16 sps:$4 sm:$0xff]  }
 0x116   :  { %4988 = vmatpush2.bf16.msra.mxu0 %v7448_v31  ;;  %v7522_v31 = vld [vmem:[#allocation5 + $0xd84] ss:$16 sps:$4 sm:$0xff]  }
 0x117   :  { %5029 = vmatpush2.bf16.msra.mxu1 %v7451_v33  ;;  %5039 = vmatprep.subr.bf16.mxu0 %v7456_v36  ;;  %v7525_v33 = vld [vmem:[#allocation5 + $0xf84] ss:$16 sps:$4 sm:$0xff]  }
 0x118   :  { %5080 = vmatprep.subr.bf16.mxu1 %v7459_v38  ;;  %v7528_v36 = vld [vmem:[#allocation5 + $0xd64] ss:$16 sps:$4 sm:$0xff]  }
 0x119   :  { %4990 = vmatmul.mubr.bf16.vlgmr.msra.gmra.mxu0 %v8638_v42  ;;  %v7531_v38 = vld [vmem:[#allocation5 + $0xf64] ss:$16 sps:$4 sm:$0xff]  }
 0x11a   :  { %5031 = vmatmul.mubr.bf16.vlgmr.msra.gmra.mxu1 %v8640_v43  ;;  %5040 = vmatpush1.bf16.msra.mxu0 %v7454_v39  ;;  %v7526_v39 = vld [vmem:[#allocation5 + $0xd60] ss:$16 sps:$4 sm:$0xff]  }
 0x11b   :  { %5081 = vmatpush1.bf16.msra.mxu1 %v7457_v45  ;;  %5041 = vmatprep.subr.bf16.mxu0 %v7462_v46  ;;  %v7537_v45 = vld [vmem:[#allocation5 + $0xf44] ss:$16 sps:$4 sm:$0xff]   ;;  %v7532_v46 = vld [vmem:[#allocation5 + $0xd40] ss:$16 sps:$4 sm:$0xff]  }
 0x11c   :  { %5082 = vmatprep.subr.bf16.mxu1 %v7465_v47  ;;  %5071 = vmatprep.mubr.bf16.mxu0 %v8642_v48  ;;  %v7535_v47 = vld [vmem:[#allocation5 + $0xf40] ss:$16 sps:$4 sm:$0xff]  }
 0x11d   :  { %5112 = vmatprep.mubr.bf16.mxu1 %v8644_v50 }
 0x11e   :  { %5042 = vmatpush1.bf16.msra.mxu0 %v7460_v51  ;;  %v933_v51 = vlaneseq }
 0x11f   :  { %5083 = vmatpush1.bf16.msra.mxu1 %v7463_v53  ;;  %5043 = vmatprep.subr.bf16.mxu0 %v7468_v54  ;;  %v7540_v53 = vld [vmem:[#allocation5 + $0xd24] ss:$16 sps:$4 sm:$0xff]  }
 0x120   :  { %5084 = vmatprep.subr.bf16.mxu1 %v7471_v55  ;;  %v7543_v54 = vld [vmem:[#allocation5 + $0xf24] ss:$16 sps:$4 sm:$0xff]   ;;  %v7538_v55 = vld [vmem:[#allocation5 + $0xd20] ss:$16 sps:$4 sm:$0xff]  }
 0x122   :  { %5044 = vmatpush1.bf16.msra.mxu0 %v7466_v56  ;;  %v7541_v56 = vld [vmem:[#allocation5 + $0xf20] ss:$16 sps:$4 sm:$0xff]  }
 0x123   :  { %5085 = vmatpush1.bf16.msra.mxu1 %v7469_v57  ;;  %5045 = vmatprep.subr.bf16.mxu0 %v7474_v58  ;;  %v8650_v57 = vshrl.u32 %v933_v51, 7  ;;  %v7546_v58 = vld [vmem:[#allocation5 + $0xd04] ss:$16 sps:$4 sm:$0xff]   ;;  %v7571_v51 = vld [vmem:[#allocation5 + $0x1280] ss:$16 sps:$4 sm:$0xff]  }
 0x124   :  { %5086 = vmatprep.subr.bf16.mxu1 %v7477_v59  ;;  %v7549_v59 = vld [vmem:[#allocation5 + $0xf04] ss:$16 sps:$4 sm:$0xff]  }
 0x126   :  { %5046 = vmatpush1.bf16.msra.mxu0 %v7472_v60  ;;  %v7544_v60 = vld [vmem:[#allocation5 + $0xd00] ss:$16 sps:$4 sm:$0xff]  }
 0x127   :  { %5087 = vmatpush1.bf16.msra.mxu1 %v7475_v61  ;;  %5047 = vmatprep.subr.bf16.mxu0 %v7480_v62  ;;  %v7547_v61 = vld [vmem:[#allocation5 + $0xf00] ss:$16 sps:$4 sm:$0xff]  }
 0x128   :  { %5088 = vmatprep.subr.bf16.mxu1 %v7483_v63  ;;  %v931_v62 = vld [vmem:[#allocation7] sm:$0xf] }
 0x129   :  { %v127_v63 = vld [vmem:[#allocation2 + $0x60] sm:$0xff] }
 0x12a   :  { %5048 = vmatpush1.bf16.msra.mxu0 %v7478_v0  ;;  %v935_v0 = vsub.s32 0, %v8650_v57 }
 0x12b   :  { %5089 = vmatpush1.bf16.msra.mxu1 %v7481_v1  ;;  %5049 = vmatprep.subr.bf16.mxu0 %v7486_v2  ;;  %v129_v1 = vld [vmem:[#allocation2 + $0x70] sm:$0xff] }
 0x12c   :  { %5090 = vmatprep.subr.bf16.mxu1 %v7489_v3  ;;  %v7552_v2 = vld [vmem:[#allocation5 + $0x10e4] ss:$16 sps:$4 sm:$0xff]  }
 0x12d   :  { %v7555_v3 = vld [vmem:[#allocation5 + $0x12e4] ss:$16 sps:$4 sm:$0xff]  }
 0x12e   :  { %5050 = vmatpush1.bf16.msra.mxu0 %v7484_v4  ;;  %v7550_v4 = vld [vmem:[#allocation5 + $0x10e0] ss:$16 sps:$4 sm:$0xff]  }
 0x12f   :  { %5091 = vmatpush1.bf16.msra.mxu1 %v7487_v5  ;;  %5051 = vmatprep.subr.bf16.mxu0 %v7492_v6  ;;  %v939_v5 = vsub.s32 1, %v8650_v57  ;;  %v132_v6 = vld [vmem:[#allocation2 + $0x88] sm:$0xff] }
 0x130   :  { %5092 = vmatprep.subr.bf16.mxu1 %v7495_v7  ;;  %v8654_v7 = vpack.c.bf16 %v127_v63, %v127_v63  ;;  %v7591_v63 = vld [vmem:[#allocation5 + $0x1224] ss:$16 sps:$4 sm:$0xff]  }
 0x132   :  { %5052 = vmatpush1.bf16.msra.mxu0 %v7490_v10  ;;  %v8656_v10 = vpack.c.bf16 %v129_v1, %v129_v1  ;;  %v7589_v1 = vld [vmem:[#allocation5 + $0x1220] ss:$16 sps:$4 sm:$0xff]  }
 0x133   :  { %5093 = vmatpush1.bf16.msra.mxu1 %v7493_v11  ;;  %5053 = vmatprep.subr.bf16.mxu0 %v7498_v12  ;;  %v134_v11 = vld [vmem:[#allocation2 + $0x98] sm:$0xff]  ;;  %v936_v12 = vrot.slane %v931_v62, %v935_v0  ;;  %v7586_v0 = vld [vmem:[#allocation5 + $0x1020] ss:$16 sps:$4 sm:$0xff]  }
 0x134   :  { %5094 = vmatprep.subr.bf16.mxu1 %v7501_v13  ;;  %v7553_v13 = vld [vmem:[#allocation5 + $0x12e0] ss:$16 sps:$4 sm:$0xff]  }
 0x136   :  { %5054 = vmatpush1.bf16.msra.mxu0 %v7496_v14  ;;  %v7558_v14 = vld [vmem:[#allocation5 + $0x10c4] ss:$16 sps:$4 sm:$0xff]  }
 0x137   :  { %5095 = vmatpush1.bf16.msra.mxu1 %v7499_v15  ;;  %5055 = vmatprep.subr.bf16.mxu0 %v7504_v16  ;;  %v7561_v15 = vld [vmem:[#allocation5 + $0x12c4] ss:$16 sps:$4 sm:$0xff]   ;;  %v940_v16 = vrot.slane %v931_v62, %v939_v5  ;;  %v7595_v5 = vld [vmem:[#allocation5 + $0x1200] ss:$16 sps:$4 sm:$0xff]  }
 0x138   :  { %5096 = vmatprep.subr.bf16.mxu1 %v7507_v17  ;;  %v8658_v17 = vpack.c.bf16 %v132_v6, %v132_v6  ;;  %v7588_v62 = vld [vmem:[#allocation5 + $0x1024] ss:$16 sps:$4 sm:$0xff]  }
 0x139   :  { %v7600_v6 = vld [vmem:[#allocation5 + $0x11e4] ss:$16 sps:$4 sm:$0xff]  }
 0x13a   :  { %5056 = vmatpush2.bf16.msra.mxu0 %v7502_v18  ;;  %v8660_v18 = vpack.c.bf16 %v134_v11, %v134_v11  ;;  %v7603_v11 = vld [vmem:[#allocation5 + $0x13e4] ss:$16 sps:$4 sm:$0xff]  }
 0x13b   :  { %5097 = vmatpush2.bf16.msra.mxu1 %v7505_v19  ;;  %5057 = vmatprep.subr.bf16.mxu0 %v7510_v22 }
 0x13c   :  { %5098 = vmatprep.subr.bf16.mxu1 %v7513_v23  ;;  %v7556_v23 = vld [vmem:[#allocation5 + $0x10c0] ss:$16 sps:$4 sm:$0xff]  }
 0x13e   :  { %5058 = vmatpush2.bf16.msra.mxu0 %v7508_v24 }
 0x13f   :  { %5099 = vmatpush2.bf16.msra.mxu1 %v7511_v25  ;;  %5059 = vmatprep.subr.bf16.mxu0 %v7516_v26  ;;  %v7559_v25 = vld [vmem:[#allocation5 + $0x12c0] ss:$16 sps:$4 sm:$0xff]  }
 0x140   :  { %5100 = vmatprep.subr.bf16.mxu1 %v7519_v27 }
 0x142   :  { %5060 = vmatpush2.bf16.msra.mxu0 %v7514_v28  ;;  %v7564_v28 = vld [vmem:[#allocation5 + $0x10a4] ss:$16 sps:$4 sm:$0xff]  }
 0x143   :  { %5101 = vmatpush2.bf16.msra.mxu1 %v7517_v30  ;;  %5061 = vmatprep.subr.bf16.mxu0 %v7522_v31  ;;  %v7567_v30 = vld [vmem:[#allocation5 + $0x12a4] ss:$16 sps:$4 sm:$0xff]  }
 0x144   :  { %5102 = vmatprep.subr.bf16.mxu1 %v7525_v33 }
 0x146   :  { %5062 = vmatpush2.bf16.msra.mxu0 %v7520_v34 }
 0x147   :  { %5103 = vmatpush2.bf16.msra.mxu1 %v7523_v35  ;;  %5063 = vmatprep.subr.bf16.mxu0 %v7528_v36  ;;  %v7562_v36 = vld [vmem:[#allocation5 + $0x10a0] ss:$16 sps:$4 sm:$0xff]  }
 0x148   :  { %5104 = vmatprep.subr.bf16.mxu1 %v7531_v38 }
 0x14a   :  { %5064 = vmatpush2.bf16.msra.mxu0 %v7526_v39  ;;  %v7565_v39 = vld [vmem:[#allocation5 + $0x12a0] ss:$16 sps:$4 sm:$0xff]  }
 0x14b   :  { %5105 = vmatpush2.bf16.msra.mxu1 %v7529_v41  ;;  %5065 = vmatprep.subr.bf16.mxu0 %v7534_v44 }
 0x14c   :  { %5106 = vmatprep.subr.bf16.mxu1 %v7537_v45  ;;  %v7570_v45 = vld [vmem:[#allocation5 + $0x1084] ss:$16 sps:$4 sm:$0xff]  }
 0x14e   :  { %5066 = vmatpush2.bf16.msra.mxu0 %v7532_v46  ;;  %v7573_v46 = vld [vmem:[#allocation5 + $0x1284] ss:$16 sps:$4 sm:$0xff]  }
 0x14f   :  { %5107 = vmatpush2.bf16.msra.mxu1 %v7535_v47  ;;  %5067 = vmatprep.subr.bf16.mxu0 %v7540_v53  ;;  %v7568_v47 = vld [vmem:[#allocation5 + $0x1080] ss:$16 sps:$4 sm:$0xff]   ;;  %v7576_v53 = vld [vmem:[#allocation5 + $0x1064] ss:$16 sps:$4 sm:$0xff]  }
 0x150   :  { %5108 = vmatprep.subr.bf16.mxu1 %v7543_v54  ;;  %v7579_v54 = vld [vmem:[#allocation5 + $0x1264] ss:$16 sps:$4 sm:$0xff]  }
 0x152   :  { %5068 = vmatpush2.bf16.msra.mxu0 %v7538_v55  ;;  %v7574_v55 = vld [vmem:[#allocation5 + $0x1060] ss:$16 sps:$4 sm:$0xff]  }
 0x153   :  { %5109 = vmatpush2.bf16.msra.mxu1 %v7541_v56  ;;  %5069 = vmatprep.subr.bf16.mxu0 %v7546_v58  ;;  %v7577_v56 = vld [vmem:[#allocation5 + $0x1260] ss:$16 sps:$4 sm:$0xff]   ;;  %v7582_v58 = vld [vmem:[#allocation5 + $0x1044] ss:$16 sps:$4 sm:$0xff]  }
 0x154   :  { %5110 = vmatprep.subr.bf16.mxu1 %v7549_v59  ;;  %v7585_v59 = vld [vmem:[#allocation5 + $0x1244] ss:$16 sps:$4 sm:$0xff]  }
 0x156   :  { %5070 = vmatpush2.bf16.msra.mxu0 %v7544_v60  ;;  %v7580_v60 = vld [vmem:[#allocation5 + $0x1040] ss:$16 sps:$4 sm:$0xff]  }
 0x157   :  { %5111 = vmatpush2.bf16.msra.mxu1 %v7547_v61  ;;  %5121 = vmatprep.subr.bf16.mxu0 %v7552_v2  ;;  %v7583_v61 = vld [vmem:[#allocation5 + $0x1240] ss:$16 sps:$4 sm:$0xff]   ;;  %v7594_v2 = vld [vmem:[#allocation5 + $0x1004] ss:$16 sps:$4 sm:$0xff]  }
 0x158   :  { %5162 = vmatprep.subr.bf16.mxu1 %v7555_v3  ;;  %v7597_v3 = vld [vmem:[#allocation5 + $0x1204] ss:$16 sps:$4 sm:$0xff]  }
 0x159   :  { %v4827_v19 = vpop.f32.mrf.mxu0  ;;  %5072 = vmatmul.mubr.bf16.vlgmr.msra.gmra.mxu0 %v8654_v7 }
 0x15a   :  { %v4868_v22 = vpop.f32.mrf.mxu1  ;;  %5113 = vmatmul.mubr.bf16.vlgmr.msra.gmra.mxu1 %v8656_v10  ;;  %v4828_v24 = vadd.f32 %v4827_v19, %v936_v12  ;;  %5122 = vmatpush1.bf16.msra.mxu0 %v7550_v4  ;;  %v7592_v4 = vld [vmem:[#allocation5 + $0x1000] ss:$16 sps:$4 sm:$0xff]  }
 0x15b   :  { %5163 = vmatpush1.bf16.msra.mxu1 %v7553_v13  ;;  %v4829_v26 = vpop.f32.mrf.mxu0  ;;  %5123 = vmatprep.subr.bf16.mxu0 %v7558_v14  ;;  %v7598_v12 = vld [vmem:[#allocation5 + $0x11e0] ss:$16 sps:$4 sm:$0xff]   ;;  %v7606_v14 = vld [vmem:[#allocation5 + $0x11c4] ss:$16 sps:$4 sm:$0xff]  }
 0x15c   :  { %v4870_v27 = vpop.f32.mrf.mxu1  ;;  %5164 = vmatprep.subr.bf16.mxu1 %v7561_v15  ;;  %v8664_v31 = vadd.f32 %v4868_v22, %v4828_v24  ;;  %v4830_v33 = vadd.f32 %v4829_v26, %v940_v16  ;;  %5153 = vmatprep.mubr.bf16.mxu0 %v8658_v17  ;;  %v7601_v13 = vld [vmem:[#allocation5 + $0x13e0] ss:$16 sps:$4 sm:$0xff]   ;;  %v7609_v15 = vld [vmem:[#allocation5 + $0x13c4] ss:$16 sps:$4 sm:$0xff]  }
 0x15d   :  { %5194 = vmatprep.mubr.bf16.mxu1 %v8660_v18  ;;  %v4831_v34 = vpop.f32.mrf.mxu0  ;;  %v7604_v16 = vld [vmem:[#allocation5 + $0x11c0] ss:$16 sps:$4 sm:$0xff]   ;;  %v7612_v22 = vld [vmem:[#allocation5 + $0x11a4] ss:$16 sps:$4 sm:$0xff]  }
 0x15e   :  { %v4872_v35 = vpop.f32.mrf.mxu1  ;;  %v8668_v38 = vadd.f32 %v4870_v27, %v4830_v33  ;;  %5124 = vmatpush1.bf16.msra.mxu0 %v7556_v23  ;;  %v7607_v19 = vld [vmem:[#allocation5 + $0x13c0] ss:$16 sps:$4 sm:$0xff]   ;;  %v7615_v23 = vld [vmem:[#allocation5 + $0x13a4] ss:$16 sps:$4 sm:$0xff]  }
 0x15f   :  { %5165 = vmatpush1.bf16.msra.mxu1 %v7559_v25  ;;  %v4832_v41 = vpop.f32.mrf.mxu0  ;;  %5125 = vmatprep.subr.bf16.mxu0 %v7564_v28  ;;  %v7610_v24 = vld [vmem:[#allocation5 + $0x11a0] ss:$16 sps:$4 sm:$0xff]   ;;  %v7618_v26 = vld [vmem:[#allocation5 + $0x1184] ss:$16 sps:$4 sm:$0xff]  }
 0x160   :  { %v4873_v44 = vpop.f32.mrf.mxu1  ;;  %5166 = vmatprep.subr.bf16.mxu1 %v7567_v30  ;;  %v7613_v25 = vld [vmem:[#allocation5 + $0x13a0] ss:$16 sps:$4 sm:$0xff]   ;;  %v7621_v27 = vld [vmem:[#allocation5 + $0x1384] ss:$16 sps:$4 sm:$0xff]  }
 0x161   :  { %v7616_v28 = vld [vmem:[#allocation5 + $0x1180] ss:$16 sps:$4 sm:$0xff]   ;;  %v7624_v33 = vld [vmem:[#allocation5 + $0x1164] ss:$16 sps:$4 sm:$0xff]  }
 0x162   :  { %5126 = vmatpush1.bf16.msra.mxu0 %v7562_v36  ;;  %v7619_v30 = vld [vmem:[#allocation5 + $0x1380] ss:$16 sps:$4 sm:$0xff]   ;;  %v7627_v34 = vld [vmem:[#allocation5 + $0x1364] ss:$16 sps:$4 sm:$0xff]  }
 0x163   :  { %5167 = vmatpush1.bf16.msra.mxu1 %v7565_v39  ;;  %5127 = vmatprep.subr.bf16.mxu0 %v7570_v45  ;;  %v7622_v35 = vld [vmem:[#allocation5 + $0x1160] ss:$16 sps:$4 sm:$0xff]   ;;  %v7630_v39 = vld [vmem:[#allocation5 + $0x1144] ss:$16 sps:$4 sm:$0xff]  }
 0x164   :  { %5168 = vmatprep.subr.bf16.mxu1 %v7573_v46  ;;  %v7625_v36 = vld [vmem:[#allocation5 + $0x1360] ss:$16 sps:$4 sm:$0xff]   ;;  %v7633_v41 = vld [vmem:[#allocation5 + $0x1344] ss:$16 sps:$4 sm:$0xff]  }
 0x165   :  { %v7628_v44 = vld [vmem:[#allocation5 + $0x1140] ss:$16 sps:$4 sm:$0xff]   ;;  %v7636_v46 = vld [vmem:[#allocation5 + $0x1124] ss:$16 sps:$4 sm:$0xff]  }
 0x166   :  { %5128 = vmatpush1.bf16.msra.mxu0 %v7568_v47  ;;  %v7631_v45 = vld [vmem:[#allocation5 + $0x1340] ss:$16 sps:$4 sm:$0xff]   ;;  %v7639_v47 = vld [vmem:[#allocation5 + $0x1324] ss:$16 sps:$4 sm:$0xff]  }
 0x167   :  { %5169 = vmatpush1.bf16.msra.mxu1 %v7571_v51  ;;  %5129 = vmatprep.subr.bf16.mxu0 %v7576_v53  ;;  %v7634_v51 = vld [vmem:[#allocation5 + $0x1120] ss:$16 sps:$4 sm:$0xff]  }
 0x168   :  { %5170 = vmatprep.subr.bf16.mxu1 %v7579_v54  ;;  %v7637_v53 = vld [vmem:[#allocation5 + $0x1320] ss:$16 sps:$4 sm:$0xff]   ;;  %v7642_v54 = vld [vmem:[#allocation5 + $0x1104] ss:$16 sps:$4 sm:$0xff]  }
 0x16a   :  { %5130 = vmatpush1.bf16.msra.mxu0 %v7574_v55  ;;  %v7645_v55 = vld [vmem:[#allocation5 + $0x1304] ss:$16 sps:$4 sm:$0xff]  }
 0x16b   :  { %5171 = vmatpush1.bf16.msra.mxu1 %v7577_v56  ;;  %5131 = vmatprep.subr.bf16.mxu0 %v7582_v58  ;;  %v7640_v56 = vld [vmem:[#allocation5 + $0x1100] ss:$16 sps:$4 sm:$0xff]  }
 0x16c   :  { %5172 = vmatprep.subr.bf16.mxu1 %v7585_v59  ;;  %v7643_v58 = vld [vmem:[#allocation5 + $0x1300] ss:$16 sps:$4 sm:$0xff]  }
 0x16d   :  { %v131_v59 = vld [vmem:[#allocation2 + $0x80] sm:$0xff] }
 0x16e   :  { %5132 = vmatpush1.bf16.msra.mxu0 %v7580_v60  ;;  %v133_v60 = vld [vmem:[#allocation2 + $0x90] sm:$0xff] }
 0x16f   :  { %5173 = vmatpush1.bf16.msra.mxu1 %v7583_v61  ;;  %5133 = vmatprep.subr.bf16.mxu0 %v7588_v62  ;;  %v7648_v61 = vld [vmem:[#allocation5 + $0x14e4] ss:$16 sps:$4 sm:$0xff]  }
 0x170   :  { %5174 = vmatprep.subr.bf16.mxu1 %v7591_v63  ;;  %v7651_v62 = vld [vmem:[#allocation5 + $0x16e4] ss:$16 sps:$4 sm:$0xff]   ;;  %v136_v63 = vld [vmem:[#allocation2 + $0xa8] sm:$0xff] }
 0x172   :  { %5134 = vmatpush1.bf16.msra.mxu0 %v7586_v0  ;;  %v138_v0 = vld [vmem:[#allocation2 + $0xb8] sm:$0xff] }
 0x173   :  { %5175 = vmatpush1.bf16.msra.mxu1 %v7589_v1  ;;  %5135 = vmatprep.subr.bf16.mxu0 %v7594_v2  ;;  %v7646_v1 = vld [vmem:[#allocation5 + $0x14e0] ss:$16 sps:$4 sm:$0xff]  }
 0x174   :  { %5176 = vmatprep.subr.bf16.mxu1 %v7597_v3  ;;  %v7649_v2 = vld [vmem:[#allocation5 + $0x16e0] ss:$16 sps:$4 sm:$0xff]   ;;  %v8670_v3 = vpack.c.bf16 %v131_v59, %v131_v59  ;;  %v7687_v59 = vld [vmem:[#allocation5 + $0x1624] ss:$16 sps:$4 sm:$0xff]  }
 0x176   :  { %5136 = vmatpush1.bf16.msra.mxu0 %v7592_v4  ;;  %v8672_v4 = vpack.c.bf16 %v133_v60, %v133_v60  ;;  %v7682_v60 = vld [vmem:[#allocation5 + $0x1420] ss:$16 sps:$4 sm:$0xff]  }
 0x177   :  { %5177 = vmatpush1.bf16.msra.mxu1 %v7595_v5  ;;  %5137 = vmatprep.subr.bf16.mxu0 %v7600_v6  ;;  %v7654_v5 = vld [vmem:[#allocation5 + $0x14c4] ss:$16 sps:$4 sm:$0xff]  }
 0x178   :  { %5178 = vmatprep.subr.bf16.mxu1 %v7603_v11  ;;  %v7657_v6 = vld [vmem:[#allocation5 + $0x16c4] ss:$16 sps:$4 sm:$0xff]   ;;  %v7652_v11 = vld [vmem:[#allocation5 + $0x14c0] ss:$16 sps:$4 sm:$0xff]  }
 0x17a   :  { %5138 = vmatpush2.bf16.msra.mxu0 %v7598_v12  ;;  %v7655_v12 = vld [vmem:[#allocation5 + $0x16c0] ss:$16 sps:$4 sm:$0xff]  }
 0x17b   :  { %5179 = vmatpush2.bf16.msra.mxu1 %v7601_v13  ;;  %5139 = vmatprep.subr.bf16.mxu0 %v7606_v14  ;;  %v8674_v13 = vpack.c.bf16 %v136_v63, %v136_v63  ;;  %v8676_v14 = vpack.c.bf16 %v138_v0, %v138_v0  ;;  %v7693_v63 = vld [vmem:[#allocation5 + $0x1604] ss:$16 sps:$4 sm:$0xff]   ;;  %v7688_v0 = vld [vmem:[#allocation5 + $0x1400] ss:$16 sps:$4 sm:$0xff]  }
 0x17c   :  { %5180 = vmatprep.subr.bf16.mxu1 %v7609_v15 }
 0x17e   :  { %5140 = vmatpush2.bf16.msra.mxu0 %v7604_v16 }
 0x17f   :  { %5181 = vmatpush2.bf16.msra.mxu1 %v7607_v19  ;;  %5141 = vmatprep.subr.bf16.mxu0 %v7612_v22 }
 0x180   :  { %5182 = vmatprep.subr.bf16.mxu1 %v7615_v23 }
 0x182   :  { %5142 = vmatpush2.bf16.msra.mxu0 %v7610_v24  ;;  %v7660_v24 = vld [vmem:[#allocation5 + $0x14a4] ss:$16 sps:$4 sm:$0xff]  }
 0x183   :  { %5183 = vmatpush2.bf16.msra.mxu1 %v7613_v25  ;;  %5143 = vmatprep.subr.bf16.mxu0 %v7618_v26  ;;  %v7663_v25 = vld [vmem:[#allocation5 + $0x16a4] ss:$16 sps:$4 sm:$0xff]  }
 0x184   :  { %5184 = vmatprep.subr.bf16.mxu1 %v7621_v27 }
 0x186   :  { %5144 = vmatpush2.bf16.msra.mxu0 %v7616_v28  ;;  %v7658_v28 = vld [vmem:[#allocation5 + $0x14a0] ss:$16 sps:$4 sm:$0xff]  }
 0x187   :  { %5185 = vmatpush2.bf16.msra.mxu1 %v7619_v30  ;;  %5145 = vmatprep.subr.bf16.mxu0 %v7624_v33  ;;  %v7661_v30 = vld [vmem:[#allocation5 + $0x16a0] ss:$16 sps:$4 sm:$0xff]  }
 0x188   :  { %5186 = vmatprep.subr.bf16.mxu1 %v7627_v34 }
 0x18a   :  { %5146 = vmatpush2.bf16.msra.mxu0 %v7622_v35 }
 0x18b   :  { %5187 = vmatpush2.bf16.msra.mxu1 %v7625_v36  ;;  %5147 = vmatprep.subr.bf16.mxu0 %v7630_v39  ;;  %v7666_v39 = vld [vmem:[#allocation5 + $0x1484] ss:$16 sps:$4 sm:$0xff]  }
 0x18c   :  { %5188 = vmatprep.subr.bf16.mxu1 %v7633_v41  ;;  %v7669_v41 = vld [vmem:[#allocation5 + $0x1684] ss:$16 sps:$4 sm:$0xff]  }
 0x18e   :  { %5148 = vmatpush2.bf16.msra.mxu0 %v7628_v44  ;;  %v7667_v44 = vld [vmem:[#allocation5 + $0x1680] ss:$16 sps:$4 sm:$0xff]  }
 0x18f   :  { %5189 = vmatpush2.bf16.msra.mxu1 %v7631_v45  ;;  %5149 = vmatprep.subr.bf16.mxu0 %v7636_v46  ;;  %v7672_v45 = vld [vmem:[#allocation5 + $0x1464] ss:$16 sps:$4 sm:$0xff]  }
 0x190   :  { %5190 = vmatprep.subr.bf16.mxu1 %v7639_v47  ;;  %v7675_v46 = vld [vmem:[#allocation5 + $0x1664] ss:$16 sps:$4 sm:$0xff]   ;;  %v7670_v47 = vld [vmem:[#allocation5 + $0x1460] ss:$16 sps:$4 sm:$0xff]  }
 0x192   :  { %5150 = vmatpush2.bf16.msra.mxu0 %v7634_v51  ;;  %v7673_v51 = vld [vmem:[#allocation5 + $0x1660] ss:$16 sps:$4 sm:$0xff]  }
 0x193   :  { %5191 = vmatpush2.bf16.msra.mxu1 %v7637_v53  ;;  %5151 = vmatprep.subr.bf16.mxu0 %v7642_v54  ;;  %v7678_v53 = vld [vmem:[#allocation5 + $0x1444] ss:$16 sps:$4 sm:$0xff]  }
 0x194   :  { %5192 = vmatprep.subr.bf16.mxu1 %v7645_v55  ;;  %v7681_v54 = vld [vmem:[#allocation5 + $0x1644] ss:$16 sps:$4 sm:$0xff]   ;;  %v7676_v55 = vld [vmem:[#allocation5 + $0x1440] ss:$16 sps:$4 sm:$0xff]  }
 0x196   :  { %5152 = vmatpush2.bf16.msra.mxu0 %v7640_v56  ;;  %v7679_v56 = vld [vmem:[#allocation5 + $0x1640] ss:$16 sps:$4 sm:$0xff]  }
 0x197   :  { %5193 = vmatpush2.bf16.msra.mxu1 %v7643_v58  ;;  %5203 = vmatprep.subr.bf16.mxu0 %v7648_v61  ;;  %v7684_v58 = vld [vmem:[#allocation5 + $0x1424] ss:$16 sps:$4 sm:$0xff]   ;;  %v7685_v61 = vld [vmem:[#allocation5 + $0x1620] ss:$16 sps:$4 sm:$0xff]  }
 0x198   :  { %5244 = vmatprep.subr.bf16.mxu1 %v7651_v62  ;;  %v7690_v62 = vld [vmem:[#allocation5 + $0x1404] ss:$16 sps:$4 sm:$0xff]  }
 0x199   :  { %v4909_v15 = vpop.f32.mrf.mxu0  ;;  %5154 = vmatmul.mubr.bf16.vlgmr.msra.gmra.mxu0 %v8670_v3 }
 0x19a   :  { %v4950_v16 = vpop.f32.mrf.mxu1  ;;  %5195 = vmatmul.mubr.bf16.vlgmr.msra.gmra.mxu1 %v8672_v4  ;;  %v4910_v19 = vadd.f32 %v4909_v15, %v8664_v31  ;;  %5204 = vmatpush1.bf16.msra.mxu0 %v7646_v1  ;;  %v7691_v1 = vld [vmem:[#allocation5 + $0x1600] ss:$16 sps:$4 sm:$0xff]   ;;  %v7705_v15 = vld [vmem:[#allocation5 + $0x17c4] ss:$16 sps:$4 sm:$0xff]  }
 0x19b   :  { %5245 = vmatpush1.bf16.msra.mxu1 %v7649_v2  ;;  %v4911_v22 = vpop.f32.mrf.mxu0  ;;  %5205 = vmatprep.subr.bf16.mxu0 %v7654_v5  ;;  %v7696_v2 = vld [vmem:[#allocation5 + $0x15e4] ss:$16 sps:$4 sm:$0xff]  }
 0x19c   :  { %v4952_v23 = vpop.f32.mrf.mxu1  ;;  %5246 = vmatprep.subr.bf16.mxu1 %v7657_v6  ;;  %v8681_v26 = vadd.f32 %v4950_v16, %v4910_v19  ;;  %v4912_v27 = vadd.f32 %v4911_v22, %v8668_v38  ;;  %5235 = vmatprep.mubr.bf16.mxu0 %v8674_v13  ;;  %v7664_v38 = vld [vmem:[#allocation5 + $0x1480] ss:$16 sps:$4 sm:$0xff]   ;;  %v7699_v5 = vld [vmem:[#allocation5 + $0x17e4] ss:$16 sps:$4 sm:$0xff]  }
 0x19d   :  { %5276 = vmatprep.mubr.bf16.mxu1 %v8676_v14  ;;  %v4913_v33 = vpop.f32.mrf.mxu0  ;;  %v7694_v6 = vld [vmem:[#allocation5 + $0x15e0] ss:$16 sps:$4 sm:$0xff]   ;;  %v7708_v22 = vld [vmem:[#allocation5 + $0x15a4] ss:$16 sps:$4 sm:$0xff]  }
 0x19e   :  { %v4954_v31 = vpop.f32.mrf.mxu1  ;;  %v8686_v34 = vadd.f32 %v4952_v23, %v4912_v27  ;;  %5206 = vmatpush1.bf16.msra.mxu0 %v7652_v11  ;;  %v7697_v11 = vld [vmem:[#allocation5 + $0x17e0] ss:$16 sps:$4 sm:$0xff]   ;;  %v7711_v23 = vld [vmem:[#allocation5 + $0x17a4] ss:$16 sps:$4 sm:$0xff]  }
 0x19f   :  { %5247 = vmatpush1.bf16.msra.mxu1 %v7655_v12  ;;  %v4914_v35 = vpop.f32.mrf.mxu0  ;;  %5207 = vmatprep.subr.bf16.mxu0 %v7660_v24  ;;  %v7702_v12 = vld [vmem:[#allocation5 + $0x15c4] ss:$16 sps:$4 sm:$0xff]   ;;  %v7700_v16 = vld [vmem:[#allocation5 + $0x15c0] ss:$16 sps:$4 sm:$0xff]  }
 0x1a0   :  { %v4955_v36 = vpop.f32.mrf.mxu1  ;;  %5248 = vmatprep.subr.bf16.mxu1 %v7663_v25  ;;  %v7703_v19 = vld [vmem:[#allocation5 + $0x17c0] ss:$16 sps:$4 sm:$0xff]   ;;  %v7714_v27 = vld [vmem:[#allocation5 + $0x1584] ss:$16 sps:$4 sm:$0xff]  }
 0x1a1   :  { %v7706_v24 = vld [vmem:[#allocation5 + $0x15a0] ss:$16 sps:$4 sm:$0xff]   ;;  %v7720_v31 = vld [vmem:[#allocation5 + $0x1564] ss:$16 sps:$4 sm:$0xff]  }
 0x1a2   :  { %5208 = vmatpush1.bf16.msra.mxu0 %v7658_v28  ;;  %v7709_v25 = vld [vmem:[#allocation5 + $0x17a0] ss:$16 sps:$4 sm:$0xff]   ;;  %v7717_v28 = vld [vmem:[#allocation5 + $0x1784] ss:$16 sps:$4 sm:$0xff]  }
 0x1a3   :  { %5249 = vmatpush1.bf16.msra.mxu1 %v7661_v30  ;;  %5209 = vmatprep.subr.bf16.mxu0 %v7666_v39  ;;  %v7712_v30 = vld [vmem:[#allocation5 + $0x1580] ss:$16 sps:$4 sm:$0xff]   ;;  %v7723_v35 = vld [vmem:[#allocation5 + $0x1764] ss:$16 sps:$4 sm:$0xff]  }
 0x1a4   :  { %5250 = vmatprep.subr.bf16.mxu1 %v7669_v41  ;;  %v7715_v33 = vld [vmem:[#allocation5 + $0x1780] ss:$16 sps:$4 sm:$0xff]   ;;  %v7726_v41 = vld [vmem:[#allocation5 + $0x1544] ss:$16 sps:$4 sm:$0xff]  }
 0x1a5   :  { %v7718_v36 = vld [vmem:[#allocation5 + $0x1560] ss:$16 sps:$4 sm:$0xff]  }
 0x1a6   :  { %5210 = vmatpush1.bf16.msra.mxu0 %v7664_v38  ;;  %v7721_v39 = vld [vmem:[#allocation5 + $0x1760] ss:$16 sps:$4 sm:$0xff]   ;;  %v7729_v38 = vld [vmem:[#allocation5 + $0x1744] ss:$16 sps:$4 sm:$0xff]  }
 0x1a7   :  { %5251 = vmatpush1.bf16.msra.mxu1 %v7667_v44  ;;  %5211 = vmatprep.subr.bf16.mxu0 %v7672_v45  ;;  %v7724_v44 = vld [vmem:[#allocation5 + $0x1540] ss:$16 sps:$4 sm:$0xff]  }
 0x1a8   :  { %5252 = vmatprep.subr.bf16.mxu1 %v7675_v46  ;;  %v7727_v45 = vld [vmem:[#allocation5 + $0x1740] ss:$16 sps:$4 sm:$0xff]   ;;  %v7732_v46 = vld [vmem:[#allocation5 + $0x1524] ss:$16 sps:$4 sm:$0xff]  }
 0x1aa   :  { %5212 = vmatpush1.bf16.msra.mxu0 %v7670_v47  ;;  %v7735_v47 = vld [vmem:[#allocation5 + $0x1724] ss:$16 sps:$4 sm:$0xff]  }
 0x1ab   :  { %5253 = vmatpush1.bf16.msra.mxu1 %v7673_v51  ;;  %5213 = vmatprep.subr.bf16.mxu0 %v7678_v53  ;;  %v7730_v51 = vld [vmem:[#allocation5 + $0x1520] ss:$16 sps:$4 sm:$0xff]  }
 0x1ac   :  { %5254 = vmatprep.subr.bf16.mxu1 %v7681_v54  ;;  %v7733_v53 = vld [vmem:[#allocation5 + $0x1720] ss:$16 sps:$4 sm:$0xff]   ;;  %v7738_v54 = vld [vmem:[#allocation5 + $0x1504] ss:$16 sps:$4 sm:$0xff]  }
 0x1ae   :  { %5214 = vmatpush1.bf16.msra.mxu0 %v7676_v55  ;;  %v7741_v55 = vld [vmem:[#allocation5 + $0x1704] ss:$16 sps:$4 sm:$0xff]  }
 0x1af   :  { %5255 = vmatpush1.bf16.msra.mxu1 %v7679_v56  ;;  %5215 = vmatprep.subr.bf16.mxu0 %v7684_v58  ;;  %v7736_v56 = vld [vmem:[#allocation5 + $0x1500] ss:$16 sps:$4 sm:$0xff]  }
 0x1b0   :  { %5256 = vmatprep.subr.bf16.mxu1 %v7687_v59  ;;  %v7739_v58 = vld [vmem:[#allocation5 + $0x1700] ss:$16 sps:$4 sm:$0xff]  }
 0x1b1   :  { %v135_v59 = vld [vmem:[#allocation2 + $0xa0] sm:$0xff] }
 0x1b2   :  { %5216 = vmatpush1.bf16.msra.mxu0 %v7682_v60  ;;  %v137_v60 = vld [vmem:[#allocation2 + $0xb0] sm:$0xff] }
 0x1b3   :  { %5257 = vmatpush1.bf16.msra.mxu1 %v7685_v61  ;;  %5217 = vmatprep.subr.bf16.mxu0 %v7690_v62  ;;  %v7744_v61 = vld [vmem:[#allocation5 + $0xec] ss:$16 sps:$4 sm:$0xff]  }
 0x1b4   :  { %5258 = vmatprep.subr.bf16.mxu1 %v7693_v63  ;;  %v7747_v62 = vld [vmem:[#allocation5 + $0x2ec] ss:$16 sps:$4 sm:$0xff]   ;;  %v7742_v63 = vld [vmem:[#allocation5 + $0xe8] ss:$16 sps:$4 sm:$0xff]  }
 0x1b6   :  { %5218 = vmatpush1.bf16.msra.mxu0 %v7688_v0  ;;  %v7745_v0 = vld [vmem:[#allocation5 + $0x2e8] ss:$16 sps:$4 sm:$0xff]  }
 0x1b7   :  { %5259 = vmatpush1.bf16.msra.mxu1 %v7691_v1  ;;  %5219 = vmatprep.subr.bf16.mxu0 %v7696_v2  ;;  %v8688_v1 = vpack.c.bf16 %v135_v59, %v135_v59  ;;  %v8690_v2 = vpack.c.bf16 %v137_v60, %v137_v60  ;;  %v7781_v59 = vld [vmem:[#allocation5 + $0x228] ss:$16 sps:$4 sm:$0xff]   ;;  %v7786_v60 = vld [vmem:[#allocation5 + $0xc] ss:$16 sps:$4 sm:$0xff]  }
 0x1b8   :  { %5260 = vmatprep.subr.bf16.mxu1 %v7699_v5  ;;  %v7750_v5 = vld [vmem:[#allocation5 + $0xcc] ss:$16 sps:$4 sm:$0xff]  }
 0x1ba   :  { %5220 = vmatpush2.bf16.msra.mxu0 %v7694_v6  ;;  %v7753_v6 = vld [vmem:[#allocation5 + $0x2cc] ss:$16 sps:$4 sm:$0xff]  }
 0x1bb   :  { %5261 = vmatpush2.bf16.msra.mxu1 %v7697_v11  ;;  %5221 = vmatprep.subr.bf16.mxu0 %v7702_v12  ;;  %v7748_v11 = vld [vmem:[#allocation5 + $0xc8] ss:$16 sps:$4 sm:$0xff]  }
 0x1bc   :  { %5262 = vmatprep.subr.bf16.mxu1 %v7705_v15  ;;  %v7751_v12 = vld [vmem:[#allocation5 + $0x2c8] ss:$16 sps:$4 sm:$0xff]  }
 0x1be   :  { %5222 = vmatpush2.bf16.msra.mxu0 %v7700_v16 }
 0x1bf   :  { %5263 = vmatpush2.bf16.msra.mxu1 %v7703_v19  ;;  %5223 = vmatprep.subr.bf16.mxu0 %v7708_v22 }
 0x1c0   :  { %5264 = vmatprep.subr.bf16.mxu1 %v7711_v23 }
 0x1c2   :  { %5224 = vmatpush2.bf16.msra.mxu0 %v7706_v24  ;;  %v7756_v24 = vld [vmem:[#allocation5 + $0xac] ss:$16 sps:$4 sm:$0xff]  }
 0x1c3   :  { %5265 = vmatpush2.bf16.msra.mxu1 %v7709_v25  ;;  %5225 = vmatprep.subr.bf16.mxu0 %v7714_v27  ;;  %v7759_v25 = vld [vmem:[#allocation5 + $0x2ac] ss:$16 sps:$4 sm:$0xff]  }
 0x1c4   :  { %5266 = vmatprep.subr.bf16.mxu1 %v7717_v28 }
 0x1c6   :  { %5226 = vmatpush2.bf16.msra.mxu0 %v7712_v30  ;;  %v7754_v30 = vld [vmem:[#allocation5 + $0xa8] ss:$16 sps:$4 sm:$0xff]  }
 0x1c7   :  { %5267 = vmatpush2.bf16.msra.mxu1 %v7715_v33  ;;  %5227 = vmatprep.subr.bf16.mxu0 %v7720_v31  ;;  %v7757_v33 = vld [vmem:[#allocation5 + $0x2a8] ss:$16 sps:$4 sm:$0xff]  }
 0x1c8   :  { %5268 = vmatprep.subr.bf16.mxu1 %v7723_v35 }
 0x1ca   :  { %5228 = vmatpush2.bf16.msra.mxu0 %v7718_v36 }
 0x1cb   :  { %5269 = vmatpush2.bf16.msra.mxu1 %v7721_v39  ;;  %5229 = vmatprep.subr.bf16.mxu0 %v7726_v41  ;;  %v7762_v41 = vld [vmem:[#allocation5 + $0x8c] ss:$16 sps:$4 sm:$0xff]  }
 0x1cc   :  { %5270 = vmatprep.subr.bf16.mxu1 %v7729_v38  ;;  %v7765_v38 = vld [vmem:[#allocation5 + $0x28c] ss:$16 sps:$4 sm:$0xff]  }
 0x1ce   :  { %5230 = vmatpush2.bf16.msra.mxu0 %v7724_v44  ;;  %v7763_v44 = vld [vmem:[#allocation5 + $0x288] ss:$16 sps:$4 sm:$0xff]  }
 0x1cf   :  { %5271 = vmatpush2.bf16.msra.mxu1 %v7727_v45  ;;  %5231 = vmatprep.subr.bf16.mxu0 %v7732_v46  ;;  %v7766_v45 = vld [vmem:[#allocation5 + $0x68] ss:$16 sps:$4 sm:$0xff]  }
 0x1d0   :  { %5272 = vmatprep.subr.bf16.mxu1 %v7735_v47  ;;  %v7769_v46 = vld [vmem:[#allocation5 + $0x268] ss:$16 sps:$4 sm:$0xff]   ;;  %v7774_v47 = vld [vmem:[#allocation5 + $0x4c] ss:$16 sps:$4 sm:$0xff]  }
 0x1d2   :  { %5232 = vmatpush2.bf16.msra.mxu0 %v7730_v51  ;;  %v7777_v51 = vld [vmem:[#allocation5 + $0x24c] ss:$16 sps:$4 sm:$0xff]  }
 0x1d3   :  { %5273 = vmatpush2.bf16.msra.mxu1 %v7733_v53  ;;  %5233 = vmatprep.subr.bf16.mxu0 %v7738_v54  ;;  %v7772_v53 = vld [vmem:[#allocation5 + $0x48] ss:$16 sps:$4 sm:$0xff]  }
 0x1d4   :  { %5274 = vmatprep.subr.bf16.mxu1 %v7741_v55  ;;  %v7775_v54 = vld [vmem:[#allocation5 + $0x248] ss:$16 sps:$4 sm:$0xff]   ;;  %v7780_v55 = vld [vmem:[#allocation5 + $0x2c] ss:$16 sps:$4 sm:$0xff]  }
 0x1d6   :  { %5234 = vmatpush2.bf16.msra.mxu0 %v7736_v56  ;;  %v7783_v56 = vld [vmem:[#allocation5 + $0x22c] ss:$16 sps:$4 sm:$0xff]  }
 0x1d7   :  { %5275 = vmatpush2.bf16.msra.mxu1 %v7739_v58  ;;  %5285 = vmatprep.subr.bf16.mxu0 %v7744_v61  ;;  %v7778_v58 = vld [vmem:[#allocation5 + $0x28] ss:$16 sps:$4 sm:$0xff]   ;;  %v7789_v61 = vld [vmem:[#allocation5 + $0x20c] ss:$16 sps:$4 sm:$0xff]  }
 0x1d8   :  { %5326 = vmatprep.subr.bf16.mxu1 %v7747_v62  ;;  %v7784_v62 = vld [vmem:[#allocation5 + $0x8] ss:$16 sps:$4 sm:$0xff]  }
 0x1d9   :  { %v4991_v15 = vpop.f32.mrf.mxu0  ;;  %5236 = vmatmul.mubr.bf16.vlgmr.msra.gmra.mxu0 %v8688_v1 }
 0x1da   :  { %v5032_v16 = vpop.f32.mrf.mxu1  ;;  %5277 = vmatmul.mubr.bf16.vlgmr.msra.gmra.mxu1 %v8690_v2  ;;  %v4992_v19 = vadd.f32 %v4991_v15, %v8681_v26  ;;  %5286 = vmatpush1.bf16.msra.mxu0 %v7742_v63  ;;  %v7787_v63 = vld [vmem:[#allocation5 + $0x208] ss:$16 sps:$4 sm:$0xff]   ;;  %v7801_v15 = vld [vmem:[#allocation5 + $0x3cc] ss:$16 sps:$4 sm:$0xff]  }
 0x1db   :  { %5327 = vmatpush1.bf16.msra.mxu1 %v7745_v0  ;;  %v4993_v22 = vpop.f32.mrf.mxu0  ;;  %5287 = vmatprep.subr.bf16.mxu0 %v7750_v5  ;;  %v7792_v0 = vld [vmem:[#allocation5 + $0x1ec] ss:$16 sps:$4 sm:$0xff]  }
 0x1dc   :  { %v5034_v23 = vpop.f32.mrf.mxu1  ;;  %5328 = vmatprep.subr.bf16.mxu1 %v7753_v6  ;;  %v8695_v27 = vadd.f32 %v5032_v16, %v4992_v19  ;;  %v4994_v28 = vadd.f32 %v4993_v22, %v8686_v34  ;;  %5317 = vmatprep.mubr.bf16.mxu0 %v8608_v49  ;;  %v7760_v34 = vld [vmem:[#allocation5 + $0x88] ss:$16 sps:$4 sm:$0xff]   ;;  %v7768_v49 = vld [vmem:[#allocation5 + $0x6c] ss:$16 sps:$4 sm:$0xff]  }
 0x1dd   :  { %5358 = vmatprep.mubr.bf16.mxu1 %v8610_v52  ;;  %v4995_v31 = vpop.f32.mrf.mxu0  ;;  %v7771_v52 = vld [vmem:[#allocation5 + $0x26c] ss:$16 sps:$4 sm:$0xff]   ;;  %v7790_v6 = vld [vmem:[#allocation5 + $0x1e8] ss:$16 sps:$4 sm:$0xff]  }
 0x1de   :  { %v5036_v26 = vpop.f32.mrf.mxu1  ;;  %v8700_v35 = vadd.f32 %v5034_v23, %v4994_v28  ;;  %5288 = vmatpush1.bf16.msra.mxu0 %v7748_v11  ;;  %v7795_v5 = vld [vmem:[#allocation5 + $0x3ec] ss:$16 sps:$4 sm:$0xff]   ;;  %v7793_v11 = vld [vmem:[#allocation5 + $0x3e8] ss:$16 sps:$4 sm:$0xff]  }
 0x1df   :  { %5329 = vmatpush1.bf16.msra.mxu1 %v7751_v12  ;;  %v4996_v36 = vpop.f32.mrf.mxu0  ;;  %5289 = vmatprep.subr.bf16.mxu0 %v7756_v24  ;;  %v7798_v12 = vld [vmem:[#allocation5 + $0x1cc] ss:$16 sps:$4 sm:$0xff]   ;;  %v7796_v16 = vld [vmem:[#allocation5 + $0x1c8] ss:$16 sps:$4 sm:$0xff]  }
 0x1e0   :  { %v5037_v39 = vpop.f32.mrf.mxu1  ;;  %5330 = vmatprep.subr.bf16.mxu1 %v7759_v25  ;;  %v7799_v19 = vld [vmem:[#allocation5 + $0x3c8] ss:$16 sps:$4 sm:$0xff]   ;;  %v7804_v22 = vld [vmem:[#allocation5 + $0x1ac] ss:$16 sps:$4 sm:$0xff]  }
 0x1e1   :  { %v7807_v23 = vld [vmem:[#allocation5 + $0x3ac] ss:$16 sps:$4 sm:$0xff]   ;;  %v7802_v24 = vld [vmem:[#allocation5 + $0x1a8] ss:$16 sps:$4 sm:$0xff]  }
 0x1e2   :  { %5290 = vmatpush1.bf16.msra.mxu0 %v7754_v30  ;;  %v7805_v25 = vld [vmem:[#allocation5 + $0x3a8] ss:$16 sps:$4 sm:$0xff]   ;;  %v7810_v28 = vld [vmem:[#allocation5 + $0x18c] ss:$16 sps:$4 sm:$0xff]  }
 0x1e3   :  { %5331 = vmatpush1.bf16.msra.mxu1 %v7757_v33  ;;  %5291 = vmatprep.subr.bf16.mxu0 %v7762_v41  ;;  %v7813_v30 = vld [vmem:[#allocation5 + $0x38c] ss:$16 sps:$4 sm:$0xff]   ;;  %v7808_v33 = vld [vmem:[#allocation5 + $0x188] ss:$16 sps:$4 sm:$0xff]  }
 0x1e4   :  { %5332 = vmatprep.subr.bf16.mxu1 %v7765_v38  ;;  %v7811_v31 = vld [vmem:[#allocation5 + $0x388] ss:$16 sps:$4 sm:$0xff]   ;;  %v7816_v26 = vld [vmem:[#allocation5 + $0x16c] ss:$16 sps:$4 sm:$0xff]  }
 0x1e5   :  { %v7819_v36 = vld [vmem:[#allocation5 + $0x36c] ss:$16 sps:$4 sm:$0xff]   ;;  %v7814_v39 = vld [vmem:[#allocation5 + $0x168] ss:$16 sps:$4 sm:$0xff]  }
 0x1e6   :  { %5292 = vmatpush1.bf16.msra.mxu0 %v7760_v34  ;;  %v7817_v41 = vld [vmem:[#allocation5 + $0x368] ss:$16 sps:$4 sm:$0xff]   ;;  %v7822_v38 = vld [vmem:[#allocation5 + $0x14c] ss:$16 sps:$4 sm:$0xff]  }
 0x1e7   :  { %5333 = vmatpush1.bf16.msra.mxu1 %v7763_v44  ;;  %5293 = vmatprep.subr.bf16.mxu0 %v7768_v49  ;;  %v7825_v34 = vld [vmem:[#allocation5 + $0x34c] ss:$16 sps:$4 sm:$0xff]   ;;  %v7820_v44 = vld [vmem:[#allocation5 + $0x148] ss:$16 sps:$4 sm:$0xff]  }
 0x1e8   :  { %5334 = vmatprep.subr.bf16.mxu1 %v7771_v52  ;;  %v7823_v49 = vld [vmem:[#allocation5 + $0x348] ss:$16 sps:$4 sm:$0xff]   ;;  %v7828_v52 = vld [vmem:[#allocation5 + $0x12c] ss:$16 sps:$4 sm:$0xff]  }
 0x1ea   :  { %5294 = vmatpush1.bf16.msra.mxu0 %v7766_v45  ;;  %v7831_v45 = vld [vmem:[#allocation5 + $0x32c] ss:$16 sps:$4 sm:$0xff]  }
 0x1eb   :  { %5335 = vmatpush1.bf16.msra.mxu1 %v7769_v46  ;;  %5295 = vmatprep.subr.bf16.mxu0 %v7774_v47  ;;  %v7826_v46 = vld [vmem:[#allocation5 + $0x128] ss:$16 sps:$4 sm:$0xff]  }
 0x1ec   :  { %5336 = vmatprep.subr.bf16.mxu1 %v7777_v51  ;;  %v7829_v47 = vld [vmem:[#allocation5 + $0x328] ss:$16 sps:$4 sm:$0xff]   ;;  %v7834_v51 = vld [vmem:[#allocation5 + $0x10c] ss:$16 sps:$4 sm:$0xff]  }
 0x1ee   :  { %5296 = vmatpush1.bf16.msra.mxu0 %v7772_v53  ;;  %v7837_v53 = vld [vmem:[#allocation5 + $0x30c] ss:$16 sps:$4 sm:$0xff]  }
 0x1ef   :  { %5337 = vmatpush1.bf16.msra.mxu1 %v7775_v54  ;;  %5297 = vmatprep.subr.bf16.mxu0 %v7780_v55  ;;  %v7832_v54 = vld [vmem:[#allocation5 + $0x108] ss:$16 sps:$4 sm:$0xff]  }
 0x1f0   :  { %5338 = vmatprep.subr.bf16.mxu1 %v7783_v56  ;;  %v7835_v55 = vld [vmem:[#allocation5 + $0x308] ss:$16 sps:$4 sm:$0xff]   ;;  %v7840_v56 = vld [vmem:[#allocation5 + $0x4ec] ss:$16 sps:$4 sm:$0xff]  }
 0x1f2   :  { %5298 = vmatpush1.bf16.msra.mxu0 %v7778_v58  ;;  %v7843_v58 = vld [vmem:[#allocation5 + $0x6ec] ss:$16 sps:$4 sm:$0xff]  }
 0x1f3   :  { %5339 = vmatpush1.bf16.msra.mxu1 %v7781_v59  ;;  %5299 = vmatprep.subr.bf16.mxu0 %v7786_v60  ;;  %v7838_v59 = vld [vmem:[#allocation5 + $0x4e8] ss:$16 sps:$4 sm:$0xff]  }
 0x1f4   :  { %5340 = vmatprep.subr.bf16.mxu1 %v7789_v61  ;;  %v7841_v60 = vld [vmem:[#allocation5 + $0x6e8] ss:$16 sps:$4 sm:$0xff]   ;;  %v7846_v61 = vld [vmem:[#allocation5 + $0x4cc] ss:$16 sps:$4 sm:$0xff]  }
 0x1f6   :  { %5300 = vmatpush1.bf16.msra.mxu0 %v7784_v62  ;;  %v7849_v62 = vld [vmem:[#allocation5 + $0x6cc] ss:$16 sps:$4 sm:$0xff]  }
 0x1f7   :  { %5341 = vmatpush1.bf16.msra.mxu1 %v7787_v63  ;;  %5301 = vmatprep.subr.bf16.mxu0 %v7792_v0  ;;  %v7844_v63 = vld [vmem:[#allocation5 + $0x4c8] ss:$16 sps:$4 sm:$0xff]  }
 0x1f8   :  { %5342 = vmatprep.subr.bf16.mxu1 %v7795_v5  ;;  %v7847_v0 = vld [vmem:[#allocation5 + $0x6c8] ss:$16 sps:$4 sm:$0xff]  }
 0x1fa   :  { %5302 = vmatpush2.bf16.msra.mxu0 %v7790_v6 }
 0x1fb   :  { %5343 = vmatpush2.bf16.msra.mxu1 %v7793_v11  ;;  %5303 = vmatprep.subr.bf16.mxu0 %v7798_v12 }
 0x1fc   :  { %5344 = vmatprep.subr.bf16.mxu1 %v7801_v15 }
 0x1fe   :  { %5304 = vmatpush2.bf16.msra.mxu0 %v7796_v16  ;;  %v7852_v16 = vld [vmem:[#allocation5 + $0x4ac] ss:$16 sps:$4 sm:$0xff]  }
 0x1ff   :  { %5345 = vmatpush2.bf16.msra.mxu1 %v7799_v19  ;;  %5305 = vmatprep.subr.bf16.mxu0 %v7804_v22  ;;  %v7855_v19 = vld [vmem:[#allocation5 + $0x6ac] ss:$16 sps:$4 sm:$0xff]  }
 0x200   :  { %5346 = vmatprep.subr.bf16.mxu1 %v7807_v23 }
 0x202   :  { %5306 = vmatpush2.bf16.msra.mxu0 %v7802_v24  ;;  %v7850_v24 = vld [vmem:[#allocation5 + $0x4a8] ss:$16 sps:$4 sm:$0xff]  }
 0x203   :  { %5347 = vmatpush2.bf16.msra.mxu1 %v7805_v25  ;;  %5307 = vmatprep.subr.bf16.mxu0 %v7810_v28  ;;  %v7853_v25 = vld [vmem:[#allocation5 + $0x6a8] ss:$16 sps:$4 sm:$0xff]  }
 0x204   :  { %5348 = vmatprep.subr.bf16.mxu1 %v7813_v30 }
 0x206   :  { %5308 = vmatpush2.bf16.msra.mxu0 %v7808_v33  ;;  %v7858_v33 = vld [vmem:[#allocation5 + $0x48c] ss:$16 sps:$4 sm:$0xff]  }
 0x207   :  { %5349 = vmatpush2.bf16.msra.mxu1 %v7811_v31  ;;  %5309 = vmatprep.subr.bf16.mxu0 %v7816_v26  ;;  %v7861_v31 = vld [vmem:[#allocation5 + $0x68c] ss:$16 sps:$4 sm:$0xff]   ;;  %v7859_v26 = vld [vmem:[#allocation5 + $0x688] ss:$16 sps:$4 sm:$0xff]  }
 0x208   :  { %5350 = vmatprep.subr.bf16.mxu1 %v7819_v36  ;;  %v7862_v36 = vld [vmem:[#allocation5 + $0x468] ss:$16 sps:$4 sm:$0xff]  }
 0x20a   :  { %5310 = vmatpush2.bf16.msra.mxu0 %v7814_v39  ;;  %v7865_v39 = vld [vmem:[#allocation5 + $0x668] ss:$16 sps:$4 sm:$0xff]  }
 0x20b   :  { %5351 = vmatpush2.bf16.msra.mxu1 %v7817_v41  ;;  %5311 = vmatprep.subr.bf16.mxu0 %v7822_v38  ;;  %v7870_v41 = vld [vmem:[#allocation5 + $0x44c] ss:$16 sps:$4 sm:$0xff]  }
 0x20c   :  { %5352 = vmatprep.subr.bf16.mxu1 %v7825_v34  ;;  %v7873_v38 = vld [vmem:[#allocation5 + $0x64c] ss:$16 sps:$4 sm:$0xff]   ;;  %v7868_v34 = vld [vmem:[#allocation5 + $0x448] ss:$16 sps:$4 sm:$0xff]  }
 0x20e   :  { %5312 = vmatpush2.bf16.msra.mxu0 %v7820_v44  ;;  %v7871_v44 = vld [vmem:[#allocation5 + $0x648] ss:$16 sps:$4 sm:$0xff]  }
 0x20f   :  { %5353 = vmatpush2.bf16.msra.mxu1 %v7823_v49  ;;  %5313 = vmatprep.subr.bf16.mxu0 %v7828_v52  ;;  %v7876_v49 = vld [vmem:[#allocation5 + $0x42c] ss:$16 sps:$4 sm:$0xff]  }
 0x210   :  { %5354 = vmatprep.subr.bf16.mxu1 %v7831_v45  ;;  %v7879_v52 = vld [vmem:[#allocation5 + $0x62c] ss:$16 sps:$4 sm:$0xff]   ;;  %v7874_v45 = vld [vmem:[#allocation5 + $0x428] ss:$16 sps:$4 sm:$0xff]  }
 0x212   :  { %5314 = vmatpush2.bf16.msra.mxu0 %v7826_v46  ;;  %v7877_v46 = vld [vmem:[#allocation5 + $0x628] ss:$16 sps:$4 sm:$0xff]  }
 0x213   :  { %5355 = vmatpush2.bf16.msra.mxu1 %v7829_v47  ;;  %5315 = vmatprep.subr.bf16.mxu0 %v7834_v51  ;;  %v7882_v47 = vld [vmem:[#allocation5 + $0x40c] ss:$16 sps:$4 sm:$0xff]  }
 0x214   :  { %5356 = vmatprep.subr.bf16.mxu1 %v7837_v53  ;;  %v7885_v51 = vld [vmem:[#allocation5 + $0x60c] ss:$16 sps:$4 sm:$0xff]   ;;  %v7880_v53 = vld [vmem:[#allocation5 + $0x408] ss:$16 sps:$4 sm:$0xff]  }
 0x216   :  { %5316 = vmatpush2.bf16.msra.mxu0 %v7832_v54  ;;  %v7883_v54 = vld [vmem:[#allocation5 + $0x608] ss:$16 sps:$4 sm:$0xff]  }
 0x217   :  { %5357 = vmatpush2.bf16.msra.mxu1 %v7835_v55  ;;  %5367 = vmatprep.subr.bf16.mxu0 %v7840_v56  ;;  %v7888_v55 = vld [vmem:[#allocation5 + $0x5ec] ss:$16 sps:$4 sm:$0xff]  }
 0x218   :  { %5408 = vmatprep.subr.bf16.mxu1 %v7843_v58  ;;  %v7891_v56 = vld [vmem:[#allocation5 + $0x7ec] ss:$16 sps:$4 sm:$0xff]   ;;  %v7886_v58 = vld [vmem:[#allocation5 + $0x5e8] ss:$16 sps:$4 sm:$0xff]  }
 0x219   :  { %v5073_v5 = vpop.f32.mrf.mxu0  ;;  %5318 = vmatmul.mubr.bf16.vlgmr.msra.gmra.mxu0 %v8614_v8 }
 0x21a   :  { %v5114_v6 = vpop.f32.mrf.mxu1  ;;  %5359 = vmatmul.mubr.bf16.vlgmr.msra.gmra.mxu1 %v8616_v9  ;;  %v5074_v11 = vadd.f32 %v5073_v5, %v8695_v27  ;;  %5368 = vmatpush1.bf16.msra.mxu0 %v7838_v59  ;;  %v7889_v59 = vld [vmem:[#allocation5 + $0x7e8] ss:$16 sps:$4 sm:$0xff]   ;;  %v7903_v5 = vld [vmem:[#allocation5 + $0x7ac] ss:$16 sps:$4 sm:$0xff]  }
 0x21b   :  { %5409 = vmatpush1.bf16.msra.mxu1 %v7841_v60  ;;  %v5075_v12 = vpop.f32.mrf.mxu0  ;;  %5369 = vmatprep.subr.bf16.mxu0 %v7846_v61  ;;  %v7894_v60 = vld [vmem:[#allocation5 + $0x5cc] ss:$16 sps:$4 sm:$0xff]  }
 0x21c   :  { %v5116_v15 = vpop.f32.mrf.mxu1  ;;  %5410 = vmatprep.subr.bf16.mxu1 %v7849_v62  ;;  %v8705_v22 = vadd.f32 %v5114_v6, %v5074_v11  ;;  %v5076_v23 = vadd.f32 %v5075_v12, %v8700_v35  ;;  %5399 = vmatprep.mubr.bf16.mxu0 %v8620_v37  ;;  %v7856_v35 = vld [vmem:[#allocation5 + $0x488] ss:$16 sps:$4 sm:$0xff]   ;;  %v7864_v37 = vld [vmem:[#allocation5 + $0x46c] ss:$16 sps:$4 sm:$0xff]  }
 0x21d   :  { %5440 = vmatprep.mubr.bf16.mxu1 %v8622_v40  ;;  %v5077_v8 = vpop.f32.mrf.mxu0  ;;  %v7867_v40 = vld [vmem:[#allocation5 + $0x66c] ss:$16 sps:$4 sm:$0xff]   ;;  %v7892_v62 = vld [vmem:[#allocation5 + $0x5c8] ss:$16 sps:$4 sm:$0xff]  }
 0x21e   :  { %v5118_v9 = vpop.f32.mrf.mxu1  ;;  %v8710_v27 = vadd.f32 %v5116_v15, %v5076_v23  ;;  %5370 = vmatpush1.bf16.msra.mxu0 %v7844_v63  ;;  %v7897_v61 = vld [vmem:[#allocation5 + $0x7cc] ss:$16 sps:$4 sm:$0xff]   ;;  %v7895_v63 = vld [vmem:[#allocation5 + $0x7c8] ss:$16 sps:$4 sm:$0xff]  }
 0x21f   :  { %5411 = vmatpush1.bf16.msra.mxu1 %v7847_v0  ;;  %v5078_v28 = vpop.f32.mrf.mxu0  ;;  %5371 = vmatprep.subr.bf16.mxu0 %v7852_v16  ;;  %v7900_v0 = vld [vmem:[#allocation5 + $0x5ac] ss:$16 sps:$4 sm:$0xff]   ;;  %v7898_v6 = vld [vmem:[#allocation5 + $0x5a8] ss:$16 sps:$4 sm:$0xff]  }
 0x220   :  { %v5119_v30 = vpop.f32.mrf.mxu1  ;;  %5412 = vmatprep.subr.bf16.mxu1 %v7855_v19  ;;  %v7901_v11 = vld [vmem:[#allocation5 + $0x7a8] ss:$16 sps:$4 sm:$0xff]   ;;  %v7906_v12 = vld [vmem:[#allocation5 + $0x58c] ss:$16 sps:$4 sm:$0xff]  }
 0x221   :  { %v7909_v15 = vld [vmem:[#allocation5 + $0x78c] ss:$16 sps:$4 sm:$0xff]   ;;  %v7904_v16 = vld [vmem:[#allocation5 + $0x588] ss:$16 sps:$4 sm:$0xff]  }
 0x222   :  { %5372 = vmatpush1.bf16.msra.mxu0 %v7850_v24  ;;  %v7907_v19 = vld [vmem:[#allocation5 + $0x788] ss:$16 sps:$4 sm:$0xff]   ;;  %v7912_v23 = vld [vmem:[#allocation5 + $0x56c] ss:$16 sps:$4 sm:$0xff]  }
 0x223   :  { %5413 = vmatpush1.bf16.msra.mxu1 %v7853_v25  ;;  %5373 = vmatprep.subr.bf16.mxu0 %v7858_v33  ;;  %v7915_v24 = vld [vmem:[#allocation5 + $0x76c] ss:$16 sps:$4 sm:$0xff]   ;;  %v7910_v25 = vld [vmem:[#allocation5 + $0x568] ss:$16 sps:$4 sm:$0xff]  }
 0x224   :  { %5414 = vmatprep.subr.bf16.mxu1 %v7861_v31  ;;  %v7913_v8 = vld [vmem:[#allocation5 + $0x768] ss:$16 sps:$4 sm:$0xff]   ;;  %v7918_v9 = vld [vmem:[#allocation5 + $0x54c] ss:$16 sps:$4 sm:$0xff]  }
 0x225   :  { %v7921_v28 = vld [vmem:[#allocation5 + $0x74c] ss:$16 sps:$4 sm:$0xff]   ;;  %v7916_v30 = vld [vmem:[#allocation5 + $0x548] ss:$16 sps:$4 sm:$0xff]  }
 0x226   :  { %5374 = vmatpush1.bf16.msra.mxu0 %v7856_v35  ;;  %v7919_v33 = vld [vmem:[#allocation5 + $0x748] ss:$16 sps:$4 sm:$0xff]   ;;  %v7924_v31 = vld [vmem:[#allocation5 + $0x52c] ss:$16 sps:$4 sm:$0xff]  }
 0x227   :  { %5415 = vmatpush1.bf16.msra.mxu1 %v7859_v26  ;;  %5375 = vmatprep.subr.bf16.mxu0 %v7864_v37  ;;  %v7927_v35 = vld [vmem:[#allocation5 + $0x72c] ss:$16 sps:$4 sm:$0xff]   ;;  %v7922_v26 = vld [vmem:[#allocation5 + $0x528] ss:$16 sps:$4 sm:$0xff]  }
 0x228   :  { %5416 = vmatprep.subr.bf16.mxu1 %v7867_v40  ;;  %v7925_v37 = vld [vmem:[#allocation5 + $0x728] ss:$16 sps:$4 sm:$0xff]   ;;  %v7930_v40 = vld [vmem:[#allocation5 + $0x50c] ss:$16 sps:$4 sm:$0xff]  }
 0x22a   :  { %5376 = vmatpush1.bf16.msra.mxu0 %v7862_v36  ;;  %v7933_v36 = vld [vmem:[#allocation5 + $0x70c] ss:$16 sps:$4 sm:$0xff]  }
 0x22b   :  { %5417 = vmatpush1.bf16.msra.mxu1 %v7865_v39  ;;  %5377 = vmatprep.subr.bf16.mxu0 %v7870_v41  ;;  %v7928_v39 = vld [vmem:[#allocation5 + $0x508] ss:$16 sps:$4 sm:$0xff]  }
 0x22c   :  { %5418 = vmatprep.subr.bf16.mxu1 %v7873_v38  ;;  %v7931_v41 = vld [vmem:[#allocation5 + $0x708] ss:$16 sps:$4 sm:$0xff]   ;;  %v7936_v38 = vld [vmem:[#allocation5 + $0x8ec] ss:$16 sps:$4 sm:$0xff]  }
 0x22e   :  { %5378 = vmatpush1.bf16.msra.mxu0 %v7868_v34  ;;  %v7939_v34 = vld [vmem:[#allocation5 + $0xaec] ss:$16 sps:$4 sm:$0xff]  }
 0x22f   :  { %5419 = vmatpush1.bf16.msra.mxu1 %v7871_v44  ;;  %5379 = vmatprep.subr.bf16.mxu0 %v7876_v49  ;;  %v7934_v44 = vld [vmem:[#allocation5 + $0x8e8] ss:$16 sps:$4 sm:$0xff]  }
 0x230   :  { %5420 = vmatprep.subr.bf16.mxu1 %v7879_v52  ;;  %v7937_v49 = vld [vmem:[#allocation5 + $0xae8] ss:$16 sps:$4 sm:$0xff]   ;;  %v7942_v52 = vld [vmem:[#allocation5 + $0x8cc] ss:$16 sps:$4 sm:$0xff]  }
 0x232   :  { %5380 = vmatpush1.bf16.msra.mxu0 %v7874_v45  ;;  %v7945_v45 = vld [vmem:[#allocation5 + $0xacc] ss:$16 sps:$4 sm:$0xff]  }
 0x233   :  { %5421 = vmatpush1.bf16.msra.mxu1 %v7877_v46  ;;  %5381 = vmatprep.subr.bf16.mxu0 %v7882_v47 }
 0x234   :  { %5422 = vmatprep.subr.bf16.mxu1 %v7885_v51 }
 0x236   :  { %5382 = vmatpush1.bf16.msra.mxu0 %v7880_v53  ;;  %v7940_v53 = vld [vmem:[#allocation5 + $0x8c8] ss:$16 sps:$4 sm:$0xff]  }
 0x237   :  { %5423 = vmatpush1.bf16.msra.mxu1 %v7883_v54  ;;  %5383 = vmatprep.subr.bf16.mxu0 %v7888_v55  ;;  %v7943_v54 = vld [vmem:[#allocation5 + $0xac8] ss:$16 sps:$4 sm:$0xff]  }
 0x238   :  { %5424 = vmatprep.subr.bf16.mxu1 %v7891_v56 }
 0x23a   :  { %5384 = vmatpush2.bf16.msra.mxu0 %v7886_v58  ;;  %v7948_v58 = vld [vmem:[#allocation5 + $0x8ac] ss:$16 sps:$4 sm:$0xff]  }
 0x23b   :  { %5425 = vmatpush2.bf16.msra.mxu1 %v7889_v59  ;;  %5385 = vmatprep.subr.bf16.mxu0 %v7894_v60  ;;  %v7951_v59 = vld [vmem:[#allocation5 + $0xaac] ss:$16 sps:$4 sm:$0xff]  }
 0x23c   :  { %5426 = vmatprep.subr.bf16.mxu1 %v7897_v61 }
 0x23e   :  { %5386 = vmatpush2.bf16.msra.mxu0 %v7892_v62  ;;  %v7946_v62 = vld [vmem:[#allocation5 + $0x8a8] ss:$16 sps:$4 sm:$0xff]  }
 0x23f   :  { %5427 = vmatpush2.bf16.msra.mxu1 %v7895_v63  ;;  %5387 = vmatprep.subr.bf16.mxu0 %v7900_v0  ;;  %v7949_v63 = vld [vmem:[#allocation5 + $0xaa8] ss:$16 sps:$4 sm:$0xff]  }
 0x240   :  { %5428 = vmatprep.subr.bf16.mxu1 %v7903_v5 }
 0x242   :  { %5388 = vmatpush2.bf16.msra.mxu0 %v7898_v6  ;;  %v7954_v6 = vld [vmem:[#allocation5 + $0x88c] ss:$16 sps:$4 sm:$0xff]  }
 0x243   :  { %5429 = vmatpush2.bf16.msra.mxu1 %v7901_v11  ;;  %5389 = vmatprep.subr.bf16.mxu0 %v7906_v12  ;;  %v7957_v11 = vld [vmem:[#allocation5 + $0xa8c] ss:$16 sps:$4 sm:$0xff]  }
 0x244   :  { %5430 = vmatprep.subr.bf16.mxu1 %v7909_v15  ;;  %v7963_v12 = vld [vmem:[#allocation5 + $0xa6c] ss:$16 sps:$4 sm:$0xff]   ;;  %v7958_v15 = vld [vmem:[#allocation5 + $0x868] ss:$16 sps:$4 sm:$0xff]  }
 0x246   :  { %5390 = vmatpush2.bf16.msra.mxu0 %v7904_v16  ;;  %v7961_v16 = vld [vmem:[#allocation5 + $0xa68] ss:$16 sps:$4 sm:$0xff]  }
 0x247   :  { %5431 = vmatpush2.bf16.msra.mxu1 %v7907_v19  ;;  %5391 = vmatprep.subr.bf16.mxu0 %v7912_v23  ;;  %v7966_v19 = vld [vmem:[#allocation5 + $0x84c] ss:$16 sps:$4 sm:$0xff]  }
 0x248   :  { %5432 = vmatprep.subr.bf16.mxu1 %v7915_v24  ;;  %v7969_v23 = vld [vmem:[#allocation5 + $0xa4c] ss:$16 sps:$4 sm:$0xff]   ;;  %v7964_v24 = vld [vmem:[#allocation5 + $0x848] ss:$16 sps:$4 sm:$0xff]  }
 0x24a   :  { %5392 = vmatpush2.bf16.msra.mxu0 %v7910_v25  ;;  %v7967_v25 = vld [vmem:[#allocation5 + $0xa48] ss:$16 sps:$4 sm:$0xff]  }
 0x24b   :  { %5433 = vmatpush2.bf16.msra.mxu1 %v7913_v8  ;;  %5393 = vmatprep.subr.bf16.mxu0 %v7918_v9  ;;  %v7972_v8 = vld [vmem:[#allocation5 + $0x82c] ss:$16 sps:$4 sm:$0xff]  }
 0x24c   :  { %5434 = vmatprep.subr.bf16.mxu1 %v7921_v28  ;;  %v7975_v9 = vld [vmem:[#allocation5 + $0xa2c] ss:$16 sps:$4 sm:$0xff]   ;;  %v7970_v28 = vld [vmem:[#allocation5 + $0x828] ss:$16 sps:$4 sm:$0xff]  }
 0x24e   :  { %5394 = vmatpush2.bf16.msra.mxu0 %v7916_v30  ;;  %v7973_v30 = vld [vmem:[#allocation5 + $0xa28] ss:$16 sps:$4 sm:$0xff]  }
 0x24f   :  { %5435 = vmatpush2.bf16.msra.mxu1 %v7919_v33  ;;  %5395 = vmatprep.subr.bf16.mxu0 %v7924_v31  ;;  %v7978_v33 = vld [vmem:[#allocation5 + $0x80c] ss:$16 sps:$4 sm:$0xff]  }
 0x250   :  { %5436 = vmatprep.subr.bf16.mxu1 %v7927_v35  ;;  %v7981_v31 = vld [vmem:[#allocation5 + $0xa0c] ss:$16 sps:$4 sm:$0xff]   ;;  %v7976_v35 = vld [vmem:[#allocation5 + $0x808] ss:$16 sps:$4 sm:$0xff]  }
 0x252   :  { %5396 = vmatpush2.bf16.msra.mxu0 %v7922_v26  ;;  %v7979_v26 = vld [vmem:[#allocation5 + $0xa08] ss:$16 sps:$4 sm:$0xff]  }
 0x253   :  { %5437 = vmatpush2.bf16.msra.mxu1 %v7925_v37  ;;  %5397 = vmatprep.subr.bf16.mxu0 %v7930_v40  ;;  %v7984_v37 = vld [vmem:[#allocation5 + $0x9ec] ss:$16 sps:$4 sm:$0xff]  }
 0x254   :  { %5438 = vmatprep.subr.bf16.mxu1 %v7933_v36  ;;  %v7987_v40 = vld [vmem:[#allocation5 + $0xbec] ss:$16 sps:$4 sm:$0xff]   ;;  %v7982_v36 = vld [vmem:[#allocation5 + $0x9e8] ss:$16 sps:$4 sm:$0xff]  }
 0x256   :  { %5398 = vmatpush2.bf16.msra.mxu0 %v7928_v39  ;;  %v7985_v39 = vld [vmem:[#allocation5 + $0xbe8] ss:$16 sps:$4 sm:$0xff]  }
 0x257   :  { %5439 = vmatpush2.bf16.msra.mxu1 %v7931_v41  ;;  %5449 = vmatprep.subr.bf16.mxu0 %v7936_v38  ;;  %v7990_v41 = vld [vmem:[#allocation5 + $0x9cc] ss:$16 sps:$4 sm:$0xff]  }
 0x258   :  { %5490 = vmatprep.subr.bf16.mxu1 %v7939_v34  ;;  %v7993_v38 = vld [vmem:[#allocation5 + $0xbcc] ss:$16 sps:$4 sm:$0xff]   ;;  %v7988_v34 = vld [vmem:[#allocation5 + $0x9c8] ss:$16 sps:$4 sm:$0xff]  }
 0x259   :  { %v5155_v46 = vpop.f32.mrf.mxu0  ;;  %5400 = vmatmul.mubr.bf16.vlgmr.msra.gmra.mxu0 %v8626_v20 }
 0x25a   :  { %v5196_v47 = vpop.f32.mrf.mxu1  ;;  %5441 = vmatmul.mubr.bf16.vlgmr.msra.gmra.mxu1 %v8628_v21  ;;  %v5156_v51 = vadd.f32 %v5155_v46, %v8705_v22  ;;  %5450 = vmatpush1.bf16.msra.mxu0 %v7934_v44  ;;  %v7991_v44 = vld [vmem:[#allocation5 + $0xbc8] ss:$16 sps:$4 sm:$0xff]  }
 0x25b   :  { %5491 = vmatpush1.bf16.msra.mxu1 %v7937_v49  ;;  %v5157_v55 = vpop.f32.mrf.mxu0  ;;  %5451 = vmatprep.subr.bf16.mxu0 %v7942_v52  ;;  %v7996_v49 = vld [vmem:[#allocation5 + $0x9ac] ss:$16 sps:$4 sm:$0xff]   ;;  %v7997_v46 = vld [vmem:[#allocation5 + $0xba8] ss:$16 sps:$4 sm:$0xff]  }
 0x25c   :  { %v5198_v56 = vpop.f32.mrf.mxu1  ;;  %5492 = vmatprep.subr.bf16.mxu1 %v7945_v45  ;;  %v8715_v60 = vadd.f32 %v5196_v47, %v5156_v51  ;;  %v5158_v61 = vadd.f32 %v5157_v55, %v8710_v27  ;;  %5481 = vmatprep.mubr.bf16.mxu0 %v8632_v29  ;;  %v7952_v27 = vld [vmem:[#allocation5 + $0x888] ss:$16 sps:$4 sm:$0xff]   ;;  %v7999_v52 = vld [vmem:[#allocation5 + $0xbac] ss:$16 sps:$4 sm:$0xff]  }
 0x25d   :  { %5522 = vmatprep.mubr.bf16.mxu1 %v8634_v32  ;;  %v5159_v20 = vpop.f32.mrf.mxu0  ;;  %v7955_v29 = vld [vmem:[#allocation5 + $0xa88] ss:$16 sps:$4 sm:$0xff]   ;;  %v7960_v32 = vld [vmem:[#allocation5 + $0x86c] ss:$16 sps:$4 sm:$0xff]  }
 0x25e   :  { %v5200_v21 = vpop.f32.mrf.mxu1  ;;  %v8720_v22 = vadd.f32 %v5198_v56, %v5158_v61  ;;  %5452 = vmatpush1.bf16.msra.mxu0 %v7940_v53  ;;  %v7994_v45 = vld [vmem:[#allocation5 + $0x9a8] ss:$16 sps:$4 sm:$0xff]   ;;  %v8002_v47 = vld [vmem:[#allocation5 + $0x98c] ss:$16 sps:$4 sm:$0xff]  }
 0x25f   :  { %5493 = vmatpush1.bf16.msra.mxu1 %v7943_v54  ;;  %v5160_v0 = vpop.f32.mrf.mxu0  ;;  %5453 = vmatprep.subr.bf16.mxu0 %v7948_v58  ;;  %v8005_v51 = vld [vmem:[#allocation5 + $0xb8c] ss:$16 sps:$4 sm:$0xff]   ;;  %v8000_v53 = vld [vmem:[#allocation5 + $0x988] ss:$16 sps:$4 sm:$0xff]  }
 0x260   :  { %v5201_v5 = vpop.f32.mrf.mxu1  ;;  %5494 = vmatprep.subr.bf16.mxu1 %v7951_v59  ;;  %v8003_v54 = vld [vmem:[#allocation5 + $0xb88] ss:$16 sps:$4 sm:$0xff]   ;;  %v8008_v55 = vld [vmem:[#allocation5 + $0x96c] ss:$16 sps:$4 sm:$0xff]  }
 0x261   :  { %v8011_v56 = vld [vmem:[#allocation5 + $0xb6c] ss:$16 sps:$4 sm:$0xff]   ;;  %v8006_v58 = vld [vmem:[#allocation5 + $0x968] ss:$16 sps:$4 sm:$0xff]  }
 0x262   :  { %5454 = vmatpush1.bf16.msra.mxu0 %v7946_v62  ;;  %v8009_v59 = vld [vmem:[#allocation5 + $0xb68] ss:$16 sps:$4 sm:$0xff]   ;;  %v8014_v61 = vld [vmem:[#allocation5 + $0x94c] ss:$16 sps:$4 sm:$0xff]  }
 0x263   :  { %5495 = vmatpush1.bf16.msra.mxu1 %v7949_v63  ;;  %5455 = vmatprep.subr.bf16.mxu0 %v7954_v6  ;;  %v8017_v20 = vld [vmem:[#allocation5 + $0xb4c] ss:$16 sps:$4 sm:$0xff]   ;;  %v8012_v21 = vld [vmem:[#allocation5 + $0x948] ss:$16 sps:$4 sm:$0xff]  }
 0x264   :  { %5496 = vmatprep.subr.bf16.mxu1 %v7957_v11  ;;  %v8015_v62 = vld [vmem:[#allocation5 + $0xb48] ss:$16 sps:$4 sm:$0xff]   ;;  %v8020_v63 = vld [vmem:[#allocation5 + $0x92c] ss:$16 sps:$4 sm:$0xff]  }
 0x265   :  { %v8023_v0 = vld [vmem:[#allocation5 + $0xb2c] ss:$16 sps:$4 sm:$0xff]   ;;  %v8018_v5 = vld [vmem:[#allocation5 + $0x928] ss:$16 sps:$4 sm:$0xff]  }
 0x266   :  { %5456 = vmatpush1.bf16.msra.mxu0 %v7952_v27  ;;  %v8021_v6 = vld [vmem:[#allocation5 + $0xb28] ss:$16 sps:$4 sm:$0xff]   ;;  %v8026_v11 = vld [vmem:[#allocation5 + $0x90c] ss:$16 sps:$4 sm:$0xff]  }
 0x267   :  { %5497 = vmatpush1.bf16.msra.mxu1 %v7955_v29  ;;  %5457 = vmatprep.subr.bf16.mxu0 %v7960_v32  ;;  %v8029_v27 = vld [vmem:[#allocation5 + $0xb0c] ss:$16 sps:$4 sm:$0xff]   ;;  %v8024_v29 = vld [vmem:[#allocation5 + $0x908] ss:$16 sps:$4 sm:$0xff]  }
 0x268   :  { %5498 = vmatprep.subr.bf16.mxu1 %v7963_v12  ;;  %v8027_v32 = vld [vmem:[#allocation5 + $0xb08] ss:$16 sps:$4 sm:$0xff]   ;;  %v8032_v12 = vld [vmem:[#allocation5 + $0xcec] ss:$16 sps:$4 sm:$0xff]  }
 0x26a   :  { %5458 = vmatpush1.bf16.msra.mxu0 %v7958_v15  ;;  %v8035_v15 = vld [vmem:[#allocation5 + $0xeec] ss:$16 sps:$4 sm:$0xff]  }
 0x26b   :  { %5499 = vmatpush1.bf16.msra.mxu1 %v7961_v16  ;;  %5459 = vmatprep.subr.bf16.mxu0 %v7966_v19  ;;  %v8030_v16 = vld [vmem:[#allocation5 + $0xce8] ss:$16 sps:$4 sm:$0xff]  }
 0x26c   :  { %5500 = vmatprep.subr.bf16.mxu1 %v7969_v23  ;;  %v8033_v19 = vld [vmem:[#allocation5 + $0xee8] ss:$16 sps:$4 sm:$0xff]   ;;  %v8038_v23 = vld [vmem:[#allocation5 + $0xccc] ss:$16 sps:$4 sm:$0xff]  }
 0x26e   :  { %5460 = vmatpush1.bf16.msra.mxu0 %v7964_v24  ;;  %v8041_v24 = vld [vmem:[#allocation5 + $0xecc] ss:$16 sps:$4 sm:$0xff]  }
 0x26f   :  { %5501 = vmatpush1.bf16.msra.mxu1 %v7967_v25  ;;  %5461 = vmatprep.subr.bf16.mxu0 %v7972_v8 }
 0x270   :  { %5502 = vmatprep.subr.bf16.mxu1 %v7975_v9 }
 0x272   :  { %5462 = vmatpush1.bf16.msra.mxu0 %v7970_v28  ;;  %v8036_v28 = vld [vmem:[#allocation5 + $0xcc8] ss:$16 sps:$4 sm:$0xff]  }
 0x273   :  { %5503 = vmatpush1.bf16.msra.mxu1 %v7973_v30  ;;  %5463 = vmatprep.subr.bf16.mxu0 %v7978_v33  ;;  %v8039_v30 = vld [vmem:[#allocation5 + $0xec8] ss:$16 sps:$4 sm:$0xff]  }
 0x274   :  { %5504 = vmatprep.subr.bf16.mxu1 %v7981_v31 }
 0x276   :  { %5464 = vmatpush1.bf16.msra.mxu0 %v7976_v35  ;;  %v8044_v35 = vld [vmem:[#allocation5 + $0xcac] ss:$16 sps:$4 sm:$0xff]  }
 0x277   :  { %5505 = vmatpush1.bf16.msra.mxu1 %v7979_v26  ;;  %5465 = vmatprep.subr.bf16.mxu0 %v7984_v37  ;;  %v8047_v26 = vld [vmem:[#allocation5 + $0xeac] ss:$16 sps:$4 sm:$0xff]  }
 0x278   :  { %5506 = vmatprep.subr.bf16.mxu1 %v7987_v40 }
 0x27a   :  { %5466 = vmatpush2.bf16.msra.mxu0 %v7982_v36  ;;  %v8042_v36 = vld [vmem:[#allocation5 + $0xca8] ss:$16 sps:$4 sm:$0xff]  }
 0x27b   :  { %5507 = vmatpush2.bf16.msra.mxu1 %v7985_v39  ;;  %5467 = vmatprep.subr.bf16.mxu0 %v7990_v41  ;;  %v8045_v39 = vld [vmem:[#allocation5 + $0xea8] ss:$16 sps:$4 sm:$0xff]  }
 0x27c   :  { %5508 = vmatprep.subr.bf16.mxu1 %v7993_v38 }
 0x27e   :  { %5468 = vmatpush2.bf16.msra.mxu0 %v7988_v34  ;;  %v8050_v34 = vld [vmem:[#allocation5 + $0xc8c] ss:$16 sps:$4 sm:$0xff]  }
 0x27f   :  { %5509 = vmatpush2.bf16.msra.mxu1 %v7991_v44  ;;  %5469 = vmatprep.subr.bf16.mxu0 %v7996_v49  ;;  %v8053_v44 = vld [vmem:[#allocation5 + $0xe8c] ss:$16 sps:$4 sm:$0xff]  }
 0x280   :  { %5510 = vmatprep.subr.bf16.mxu1 %v7999_v52  ;;  %v8059_v49 = vld [vmem:[#allocation5 + $0xe6c] ss:$16 sps:$4 sm:$0xff]   ;;  %v8054_v52 = vld [vmem:[#allocation5 + $0xc68] ss:$16 sps:$4 sm:$0xff]  }
 0x282   :  { %5470 = vmatpush2.bf16.msra.mxu0 %v7994_v45  ;;  %v8057_v45 = vld [vmem:[#allocation5 + $0xe68] ss:$16 sps:$4 sm:$0xff]  }
 0x283   :  { %5511 = vmatpush2.bf16.msra.mxu1 %v7997_v46  ;;  %5471 = vmatprep.subr.bf16.mxu0 %v8002_v47  ;;  %v8062_v46 = vld [vmem:[#allocation5 + $0xc4c] ss:$16 sps:$4 sm:$0xff]  }
 0x284   :  { %5512 = vmatprep.subr.bf16.mxu1 %v8005_v51  ;;  %v8065_v47 = vld [vmem:[#allocation5 + $0xe4c] ss:$16 sps:$4 sm:$0xff]   ;;  %v8060_v51 = vld [vmem:[#allocation5 + $0xc48] ss:$16 sps:$4 sm:$0xff]  }
 0x286   :  { %5472 = vmatpush2.bf16.msra.mxu0 %v8000_v53  ;;  %v8063_v53 = vld [vmem:[#allocation5 + $0xe48] ss:$16 sps:$4 sm:$0xff]  }
 0x287   :  { %5513 = vmatpush2.bf16.msra.mxu1 %v8003_v54  ;;  %5473 = vmatprep.subr.bf16.mxu0 %v8008_v55  ;;  %v8068_v54 = vld [vmem:[#allocation5 + $0xc2c] ss:$16 sps:$4 sm:$0xff]  }
 0x288   :  { %5514 = vmatprep.subr.bf16.mxu1 %v8011_v56  ;;  %v8071_v55 = vld [vmem:[#allocation5 + $0xe2c] ss:$16 sps:$4 sm:$0xff]   ;;  %v8066_v56 = vld [vmem:[#allocation5 + $0xc28] ss:$16 sps:$4 sm:$0xff]  }
 0x28a   :  { %5474 = vmatpush2.bf16.msra.mxu0 %v8006_v58  ;;  %v8069_v58 = vld [vmem:[#allocation5 + $0xe28] ss:$16 sps:$4 sm:$0xff]  }
 0x28b   :  { %5515 = vmatpush2.bf16.msra.mxu1 %v8009_v59  ;;  %5475 = vmatprep.subr.bf16.mxu0 %v8014_v61  ;;  %v8074_v59 = vld [vmem:[#allocation5 + $0xc0c] ss:$16 sps:$4 sm:$0xff]  }
 0x28c   :  { %5516 = vmatprep.subr.bf16.mxu1 %v8017_v20  ;;  %v8077_v61 = vld [vmem:[#allocation5 + $0xe0c] ss:$16 sps:$4 sm:$0xff]   ;;  %v8072_v20 = vld [vmem:[#allocation5 + $0xc08] ss:$16 sps:$4 sm:$0xff]  }
 0x28e   :  { %5476 = vmatpush2.bf16.msra.mxu0 %v8012_v21  ;;  %v8075_v21 = vld [vmem:[#allocation5 + $0xe08] ss:$16 sps:$4 sm:$0xff]  }
 0x28f   :  { %5517 = vmatpush2.bf16.msra.mxu1 %v8015_v62  ;;  %5477 = vmatprep.subr.bf16.mxu0 %v8020_v63  ;;  %v8080_v62 = vld [vmem:[#allocation5 + $0xdec] ss:$16 sps:$4 sm:$0xff]  }
 0x290   :  { %5518 = vmatprep.subr.bf16.mxu1 %v8023_v0  ;;  %v8083_v63 = vld [vmem:[#allocation5 + $0xfec] ss:$16 sps:$4 sm:$0xff]   ;;  %v8078_v0 = vld [vmem:[#allocation5 + $0xde8] ss:$16 sps:$4 sm:$0xff]  }
 0x292   :  { %5478 = vmatpush2.bf16.msra.mxu0 %v8018_v5  ;;  %v8081_v5 = vld [vmem:[#allocation5 + $0xfe8] ss:$16 sps:$4 sm:$0xff]  }
 0x293   :  { %5519 = vmatpush2.bf16.msra.mxu1 %v8021_v6  ;;  %5479 = vmatprep.subr.bf16.mxu0 %v8026_v11  ;;  %v8086_v6 = vld [vmem:[#allocation5 + $0xdcc] ss:$16 sps:$4 sm:$0xff]  }
 0x294   :  { %5520 = vmatprep.subr.bf16.mxu1 %v8029_v27  ;;  %v8089_v11 = vld [vmem:[#allocation5 + $0xfcc] ss:$16 sps:$4 sm:$0xff]   ;;  %v8084_v27 = vld [vmem:[#allocation5 + $0xdc8] ss:$16 sps:$4 sm:$0xff]  }
 0x296   :  { %5480 = vmatpush2.bf16.msra.mxu0 %v8024_v29  ;;  %v8087_v29 = vld [vmem:[#allocation5 + $0xfc8] ss:$16 sps:$4 sm:$0xff]  }
 0x297   :  { %5521 = vmatpush2.bf16.msra.mxu1 %v8027_v32  ;;  %5531 = vmatprep.subr.bf16.mxu0 %v8032_v12  ;;  %v8092_v32 = vld [vmem:[#allocation5 + $0xdac] ss:$16 sps:$4 sm:$0xff]  }
 0x298   :  { %5572 = vmatprep.subr.bf16.mxu1 %v8035_v15  ;;  %v8095_v12 = vld [vmem:[#allocation5 + $0xfac] ss:$16 sps:$4 sm:$0xff]   ;;  %v8090_v15 = vld [vmem:[#allocation5 + $0xda8] ss:$16 sps:$4 sm:$0xff]  }
 0x299   :  { %v5237_v25 = vpop.f32.mrf.mxu0  ;;  %5482 = vmatmul.mubr.bf16.vlgmr.msra.gmra.mxu0 %v8638_v42 }
 0x29a   :  { %v5278_v8 = vpop.f32.mrf.mxu1  ;;  %5523 = vmatmul.mubr.bf16.vlgmr.msra.gmra.mxu1 %v8640_v43  ;;  %v5238_v9 = vadd.f32 %v5237_v25, %v8715_v60  ;;  %5532 = vmatpush1.bf16.msra.mxu0 %v8030_v16  ;;  %v8093_v16 = vld [vmem:[#allocation5 + $0xfa8] ss:$16 sps:$4 sm:$0xff]  }
 0x29b   :  { %5573 = vmatpush1.bf16.msra.mxu1 %v8033_v19  ;;  %v5239_v33 = vpop.f32.mrf.mxu0  ;;  %5533 = vmatprep.subr.bf16.mxu0 %v8038_v23  ;;  %v8098_v19 = vld [vmem:[#allocation5 + $0xd8c] ss:$16 sps:$4 sm:$0xff]   ;;  %v8099_v25 = vld [vmem:[#allocation5 + $0xf88] ss:$16 sps:$4 sm:$0xff]  }
 0x29c   :  { %v5280_v31 = vpop.f32.mrf.mxu1  ;;  %5574 = vmatprep.subr.bf16.mxu1 %v8041_v24  ;;  %v8725_v37 = vadd.f32 %v5278_v8, %v5238_v9  ;;  %v5240_v40 = vadd.f32 %v5239_v33, %v8720_v22  ;;  %5563 = vmatprep.mubr.bf16.mxu0 %v8642_v48  ;;  %v8048_v22 = vld [vmem:[#allocation5 + $0xc88] ss:$16 sps:$4 sm:$0xff]   ;;  %v8101_v23 = vld [vmem:[#allocation5 + $0xf8c] ss:$16 sps:$4 sm:$0xff]  }
 0x29d   :  { %5604 = vmatprep.mubr.bf16.mxu1 %v8644_v50  ;;  %v5241_v42 = vpop.f32.mrf.mxu0  ;;  %v8051_v48 = vld [vmem:[#allocation5 + $0xe88] ss:$16 sps:$4 sm:$0xff]   ;;  %v8056_v50 = vld [vmem:[#allocation5 + $0xc6c] ss:$16 sps:$4 sm:$0xff]  }
 0x29e   :  { %v5282_v43 = vpop.f32.mrf.mxu1  ;;  %v8730_v60 = vadd.f32 %v5280_v31, %v5240_v40  ;;  %5534 = vmatpush1.bf16.msra.mxu0 %v8036_v28  ;;  %v8096_v24 = vld [vmem:[#allocation5 + $0xd88] ss:$16 sps:$4 sm:$0xff]   ;;  %v8104_v8 = vld [vmem:[#allocation5 + $0xd6c] ss:$16 sps:$4 sm:$0xff]  }
 0x29f   :  { %5575 = vmatpush1.bf16.msra.mxu1 %v8039_v30  ;;  %v5242_v41 = vpop.f32.mrf.mxu0  ;;  %5535 = vmatprep.subr.bf16.mxu0 %v8044_v35  ;;  %v8107_v9 = vld [vmem:[#allocation5 + $0xf6c] ss:$16 sps:$4 sm:$0xff]   ;;  %v8102_v28 = vld [vmem:[#allocation5 + $0xd68] ss:$16 sps:$4 sm:$0xff]  }
 0x2a0   :  { %v5283_v38 = vpop.f32.mrf.mxu1  ;;  %5576 = vmatprep.subr.bf16.mxu1 %v8047_v26  ;;  %v8105_v30 = vld [vmem:[#allocation5 + $0xf68] ss:$16 sps:$4 sm:$0xff]   ;;  %v8110_v33 = vld [vmem:[#allocation5 + $0xd4c] ss:$16 sps:$4 sm:$0xff]  }
 0x2a1   :  { %v8113_v31 = vld [vmem:[#allocation5 + $0xf4c] ss:$16 sps:$4 sm:$0xff]   ;;  %v8108_v35 = vld [vmem:[#allocation5 + $0xd48] ss:$16 sps:$4 sm:$0xff]  }
 0x2a2   :  { %5536 = vmatpush1.bf16.msra.mxu0 %v8042_v36  ;;  %v8111_v26 = vld [vmem:[#allocation5 + $0xf48] ss:$16 sps:$4 sm:$0xff]   ;;  %v8116_v40 = vld [vmem:[#allocation5 + $0xd2c] ss:$16 sps:$4 sm:$0xff]  }
 0x2a3   :  { %5577 = vmatpush1.bf16.msra.mxu1 %v8045_v39  ;;  %5537 = vmatprep.subr.bf16.mxu0 %v8050_v34  ;;  %v8119_v42 = vld [vmem:[#allocation5 + $0xf2c] ss:$16 sps:$4 sm:$0xff]   ;;  %v8114_v43 = vld [vmem:[#allocation5 + $0xd28] ss:$16 sps:$4 sm:$0xff]  }
 0x2a4   :  { %5578 = vmatprep.subr.bf16.mxu1 %v8053_v44  ;;  %v8117_v36 = vld [vmem:[#allocation5 + $0xf28] ss:$16 sps:$4 sm:$0xff]   ;;  %v8122_v39 = vld [vmem:[#allocation5 + $0xd0c] ss:$16 sps:$4 sm:$0xff]   ;;  %v943_v44 = vsub.s32 2, %v8650_v57 }
 0x2a5   :  { %v8125_v41 = vld [vmem:[#allocation5 + $0xf0c] ss:$16 sps:$4 sm:$0xff]   ;;  %v8120_v38 = vld [vmem:[#allocation5 + $0xd08] ss:$16 sps:$4 sm:$0xff]  }
 0x2a6   :  { %5538 = vmatpush1.bf16.msra.mxu0 %v8048_v22  ;;  %v8123_v34 = vld [vmem:[#allocation5 + $0xf08] ss:$16 sps:$4 sm:$0xff]   ;;  %v8128_v22 = vld [vmem:[#allocation5 + $0x10ec] ss:$16 sps:$4 sm:$0xff]  }
 0x2a7   :  { %5579 = vmatpush1.bf16.msra.mxu1 %v8051_v48  ;;  %5539 = vmatprep.subr.bf16.mxu0 %v8056_v50  ;;  %v8131_v48 = vld [vmem:[#allocation5 + $0x12ec] ss:$16 sps:$4 sm:$0xff]   ;;  %v947_v50 = vsub.s32 3, %v8650_v57  ;;  %v8132_v57 = vld [vmem:[#allocation5 + $0x10c8] ss:$16 sps:$4 sm:$0xff]  }
 0x2a8   :  { %5580 = vmatprep.subr.bf16.mxu1 %v8059_v49  ;;  %v8362_v49 = vld [vmem:[#allocation7] sm:$0xf] }
 0x2aa   :  { %5540 = vmatpush1.bf16.msra.mxu0 %v8054_v52  ;;  %v944_v52 = vrot.slane %v8362_v49, %v943_v44  ;;  %v8183_v44 = vld [vmem:[#allocation5 + $0x13c8] ss:$16 sps:$4 sm:$0xff]  }
 0x2ab   :  { %5581 = vmatpush1.bf16.msra.mxu1 %v8057_v45  ;;  %5541 = vmatprep.subr.bf16.mxu0 %v8062_v46  ;;  %v8126_v45 = vld [vmem:[#allocation5 + $0x10e8] ss:$16 sps:$4 sm:$0xff]  }
 0x2ac   :  { %5582 = vmatprep.subr.bf16.mxu1 %v8065_v47  ;;  %v8129_v46 = vld [vmem:[#allocation5 + $0x12e8] ss:$16 sps:$4 sm:$0xff]   ;;  %v8134_v47 = vld [vmem:[#allocation5 + $0x10cc] ss:$16 sps:$4 sm:$0xff]  }
 0x2ae   :  { %5542 = vmatpush1.bf16.msra.mxu0 %v8060_v51  ;;  %v8137_v51 = vld [vmem:[#allocation5 + $0x12cc] ss:$16 sps:$4 sm:$0xff]  }
 0x2af   :  { %5583 = vmatpush1.bf16.msra.mxu1 %v8063_v53  ;;  %5543 = vmatprep.subr.bf16.mxu0 %v8068_v54  ;;  %v948_v53 = vrot.slane %v8362_v49, %v947_v50  ;;  %v8186_v50 = vld [vmem:[#allocation5 + $0x11a8] ss:$16 sps:$4 sm:$0xff]  }
 0x2b0   :  { %5584 = vmatprep.subr.bf16.mxu1 %v8071_v55  ;;  %v8189_v49 = vld [vmem:[#allocation5 + $0x13a8] ss:$16 sps:$4 sm:$0xff]  }
 0x2b2   :  { %5544 = vmatpush1.bf16.msra.mxu0 %v8066_v56 }
 0x2b3   :  { %5585 = vmatpush1.bf16.msra.mxu1 %v8069_v58  ;;  %5545 = vmatprep.subr.bf16.mxu0 %v8074_v59  ;;  %v8135_v58 = vld [vmem:[#allocation5 + $0x12c8] ss:$16 sps:$4 sm:$0xff]  }
 0x2b4   :  { %5586 = vmatprep.subr.bf16.mxu1 %v8077_v61 }
 0x2b6   :  { %5546 = vmatpush1.bf16.msra.mxu0 %v8072_v20  ;;  %v8140_v20 = vld [vmem:[#allocation5 + $0x10ac] ss:$16 sps:$4 sm:$0xff]  }
 0x2b7   :  { %5587 = vmatpush1.bf16.msra.mxu1 %v8075_v21  ;;  %5547 = vmatprep.subr.bf16.mxu0 %v8080_v62  ;;  %v8143_v21 = vld [vmem:[#allocation5 + $0x12ac] ss:$16 sps:$4 sm:$0xff]  }
 0x2b8   :  { %5588 = vmatprep.subr.bf16.mxu1 %v8083_v63 }
 0x2ba   :  { %5548 = vmatpush2.bf16.msra.mxu0 %v8078_v0 }
 0x2bb   :  { %5589 = vmatpush2.bf16.msra.mxu1 %v8081_v5  ;;  %5549 = vmatprep.subr.bf16.mxu0 %v8086_v6  ;;  %v8138_v5 = vld [vmem:[#allocation5 + $0x10a8] ss:$16 sps:$4 sm:$0xff]  }
 0x2bc   :  { %5590 = vmatprep.subr.bf16.mxu1 %v8089_v11  ;;  %v8141_v6 = vld [vmem:[#allocation5 + $0x12a8] ss:$16 sps:$4 sm:$0xff]  }
 0x2be   :  { %5550 = vmatpush2.bf16.msra.mxu0 %v8084_v27 }
 0x2bf   :  { %5591 = vmatpush2.bf16.msra.mxu1 %v8087_v29  ;;  %5551 = vmatprep.subr.bf16.mxu0 %v8092_v32  ;;  %v8146_v29 = vld [vmem:[#allocation5 + $0x108c] ss:$16 sps:$4 sm:$0xff]  }
 0x2c0   :  { %5592 = vmatprep.subr.bf16.mxu1 %v8095_v12  ;;  %v8149_v32 = vld [vmem:[#allocation5 + $0x128c] ss:$16 sps:$4 sm:$0xff]   ;;  %v8144_v12 = vld [vmem:[#allocation5 + $0x1088] ss:$16 sps:$4 sm:$0xff]  }
 0x2c2   :  { %5552 = vmatpush2.bf16.msra.mxu0 %v8090_v15  ;;  %v8155_v15 = vld [vmem:[#allocation5 + $0x126c] ss:$16 sps:$4 sm:$0xff]  }
 0x2c3   :  { %5593 = vmatpush2.bf16.msra.mxu1 %v8093_v16  ;;  %5553 = vmatprep.subr.bf16.mxu0 %v8098_v19  ;;  %v8150_v16 = vld [vmem:[#allocation5 + $0x1068] ss:$16 sps:$4 sm:$0xff]  }
 0x2c4   :  { %5594 = vmatprep.subr.bf16.mxu1 %v8101_v23  ;;  %v8153_v19 = vld [vmem:[#allocation5 + $0x1268] ss:$16 sps:$4 sm:$0xff]   ;;  %v8158_v23 = vld [vmem:[#allocation5 + $0x104c] ss:$16 sps:$4 sm:$0xff]  }
 0x2c6   :  { %5554 = vmatpush2.bf16.msra.mxu0 %v8096_v24  ;;  %v8161_v24 = vld [vmem:[#allocation5 + $0x124c] ss:$16 sps:$4 sm:$0xff]  }
 0x2c7   :  { %5595 = vmatpush2.bf16.msra.mxu1 %v8099_v25  ;;  %5555 = vmatprep.subr.bf16.mxu0 %v8104_v8  ;;  %v8156_v25 = vld [vmem:[#allocation5 + $0x1048] ss:$16 sps:$4 sm:$0xff]  }
 0x2c8   :  { %5596 = vmatprep.subr.bf16.mxu1 %v8107_v9  ;;  %v8159_v8 = vld [vmem:[#allocation5 + $0x1248] ss:$16 sps:$4 sm:$0xff]   ;;  %v8164_v9 = vld [vmem:[#allocation5 + $0x102c] ss:$16 sps:$4 sm:$0xff]  }
 0x2ca   :  { %5556 = vmatpush2.bf16.msra.mxu0 %v8102_v28  ;;  %v8167_v28 = vld [vmem:[#allocation5 + $0x122c] ss:$16 sps:$4 sm:$0xff]  }
 0x2cb   :  { %5597 = vmatpush2.bf16.msra.mxu1 %v8105_v30  ;;  %5557 = vmatprep.subr.bf16.mxu0 %v8110_v33  ;;  %v8162_v30 = vld [vmem:[#allocation5 + $0x1028] ss:$16 sps:$4 sm:$0xff]  }
 0x2cc   :  { %5598 = vmatprep.subr.bf16.mxu1 %v8113_v31  ;;  %v8165_v33 = vld [vmem:[#allocation5 + $0x1228] ss:$16 sps:$4 sm:$0xff]   ;;  %v8170_v31 = vld [vmem:[#allocation5 + $0x100c] ss:$16 sps:$4 sm:$0xff]  }
 0x2ce   :  { %5558 = vmatpush2.bf16.msra.mxu0 %v8108_v35  ;;  %v8173_v35 = vld [vmem:[#allocation5 + $0x120c] ss:$16 sps:$4 sm:$0xff]  }
 0x2cf   :  { %5599 = vmatpush2.bf16.msra.mxu1 %v8111_v26  ;;  %5559 = vmatprep.subr.bf16.mxu0 %v8116_v40  ;;  %v8168_v26 = vld [vmem:[#allocation5 + $0x1008] ss:$16 sps:$4 sm:$0xff]  }
 0x2d0   :  { %5600 = vmatprep.subr.bf16.mxu1 %v8119_v42  ;;  %v8171_v40 = vld [vmem:[#allocation5 + $0x1208] ss:$16 sps:$4 sm:$0xff]   ;;  %v8176_v42 = vld [vmem:[#allocation5 + $0x11ec] ss:$16 sps:$4 sm:$0xff]  }
 0x2d2   :  { %5560 = vmatpush2.bf16.msra.mxu0 %v8114_v43  ;;  %v8179_v43 = vld [vmem:[#allocation5 + $0x13ec] ss:$16 sps:$4 sm:$0xff]  }
 0x2d3   :  { %5601 = vmatpush2.bf16.msra.mxu1 %v8117_v36  ;;  %5561 = vmatprep.subr.bf16.mxu0 %v8122_v39  ;;  %v8174_v36 = vld [vmem:[#allocation5 + $0x11e8] ss:$16 sps:$4 sm:$0xff]  }
 0x2d4   :  { %5602 = vmatprep.subr.bf16.mxu1 %v8125_v41  ;;  %v8177_v39 = vld [vmem:[#allocation5 + $0x13e8] ss:$16 sps:$4 sm:$0xff]   ;;  %v8182_v41 = vld [vmem:[#allocation5 + $0x11cc] ss:$16 sps:$4 sm:$0xff]  }
 0x2d6   :  { %5562 = vmatpush2.bf16.msra.mxu0 %v8120_v38  ;;  %v8185_v38 = vld [vmem:[#allocation5 + $0x13cc] ss:$16 sps:$4 sm:$0xff]  }
 0x2d7   :  { %5603 = vmatpush2.bf16.msra.mxu1 %v8123_v34  ;;  %5613 = vmatprep.subr.bf16.mxu0 %v8128_v22  ;;  %v8180_v34 = vld [vmem:[#allocation5 + $0x11c8] ss:$16 sps:$4 sm:$0xff]   ;;  %v8188_v22 = vld [vmem:[#allocation5 + $0x11ac] ss:$16 sps:$4 sm:$0xff]  }
 0x2d8   :  { %5654 = vmatprep.subr.bf16.mxu1 %v8131_v48  ;;  %v8191_v48 = vld [vmem:[#allocation5 + $0x13ac] ss:$16 sps:$4 sm:$0xff]  }
 0x2d9   :  { %v5319_v54 = vpop.f32.mrf.mxu0  ;;  %5564 = vmatmul.mubr.bf16.vlgmr.msra.gmra.mxu0 %v8654_v7 }
 0x2da   :  { %v5360_v55 = vpop.f32.mrf.mxu1  ;;  %5605 = vmatmul.mubr.bf16.vlgmr.msra.gmra.mxu1 %v8656_v10  ;;  %v5320_v56 = vadd.f32 %v5319_v54, %v944_v52  ;;  %5614 = vmatpush1.bf16.msra.mxu0 %v8126_v45  ;;  %v8194_v52 = vld [vmem:[#allocation5 + $0x118c] ss:$16 sps:$4 sm:$0xff]   ;;  %v8198_v54 = vld [vmem:[#allocation5 + $0x1168] ss:$16 sps:$4 sm:$0xff]  }
 0x2db   :  { %5655 = vmatpush1.bf16.msra.mxu1 %v8129_v46  ;;  %v5321_v59 = vpop.f32.mrf.mxu0  ;;  %5615 = vmatprep.subr.bf16.mxu0 %v8134_v47  ;;  %v8197_v45 = vld [vmem:[#allocation5 + $0x138c] ss:$16 sps:$4 sm:$0xff]   ;;  %v8192_v46 = vld [vmem:[#allocation5 + $0x1188] ss:$16 sps:$4 sm:$0xff]  }
 0x2dc   :  { %v5362_v61 = vpop.f32.mrf.mxu1  ;;  %5656 = vmatprep.subr.bf16.mxu1 %v8137_v51  ;;  %v8736_v62 = vadd.f32 %v5360_v55, %v5320_v56  ;;  %v5322_v63 = vadd.f32 %v5321_v59, %v948_v53  ;;  %5645 = vmatprep.mubr.bf16.mxu0 %v8658_v17  ;;  %v8147_v17 = vld [vmem:[#allocation5 + $0x1288] ss:$16 sps:$4 sm:$0xff]   ;;  %v8200_v51 = vld [vmem:[#allocation5 + $0x116c] ss:$16 sps:$4 sm:$0xff]  }
 0x2dd   :  { %5686 = vmatprep.mubr.bf16.mxu1 %v8660_v18  ;;  %v5323_v7 = vpop.f32.mrf.mxu0  ;;  %v8152_v18 = vld [vmem:[#allocation5 + $0x106c] ss:$16 sps:$4 sm:$0xff]   ;;  %v8195_v47 = vld [vmem:[#allocation5 + $0x1388] ss:$16 sps:$4 sm:$0xff]  }
 0x2de   :  { %v5364_v10 = vpop.f32.mrf.mxu1  ;;  %v8740_v0 = vadd.f32 %v5362_v61, %v5322_v63  ;;  %5616 = vmatpush1.bf16.msra.mxu0 %v8132_v57  ;;  %v8203_v53 = vld [vmem:[#allocation5 + $0x136c] ss:$16 sps:$4 sm:$0xff]   ;;  %v8201_v55 = vld [vmem:[#allocation5 + $0x1368] ss:$16 sps:$4 sm:$0xff]  }
 0x2df   :  { %5657 = vmatpush1.bf16.msra.mxu1 %v8135_v58  ;;  %v5324_v11 = vpop.f32.mrf.mxu0  ;;  %5617 = vmatprep.subr.bf16.mxu0 %v8140_v20  ;;  %v8206_v56 = vld [vmem:[#allocation5 + $0x114c] ss:$16 sps:$4 sm:$0xff]   ;;  %v8204_v58 = vld [vmem:[#allocation5 + $0x1148] ss:$16 sps:$4 sm:$0xff]  }
 0x2e0   :  { %v5365_v27 = vpop.f32.mrf.mxu1  ;;  %5658 = vmatprep.subr.bf16.mxu1 %v8143_v21  ;;  %v8209_v57 = vld [vmem:[#allocation5 + $0x134c] ss:$16 sps:$4 sm:$0xff]   ;;  %v8207_v59 = vld [vmem:[#allocation5 + $0x1348] ss:$16 sps:$4 sm:$0xff]  }
 0x2e1   :  { %v8212_v61 = vld [vmem:[#allocation5 + $0x112c] ss:$16 sps:$4 sm:$0xff]   ;;  %v8210_v21 = vld [vmem:[#allocation5 + $0x1128] ss:$16 sps:$4 sm:$0xff]  }
 0x2e2   :  { %5618 = vmatpush1.bf16.msra.mxu0 %v8138_v5  ;;  %v8215_v20 = vld [vmem:[#allocation5 + $0x132c] ss:$16 sps:$4 sm:$0xff]   ;;  %v8213_v63 = vld [vmem:[#allocation5 + $0x1328] ss:$16 sps:$4 sm:$0xff]  }
 0x2e3   :  { %5659 = vmatpush1.bf16.msra.mxu1 %v8141_v6  ;;  %5619 = vmatprep.subr.bf16.mxu0 %v8146_v29  ;;  %v8218_v7 = vld [vmem:[#allocation5 + $0x110c] ss:$16 sps:$4 sm:$0xff]   ;;  %v8216_v5 = vld [vmem:[#allocation5 + $0x1108] ss:$16 sps:$4 sm:$0xff]  }
 0x2e4   :  { %5660 = vmatprep.subr.bf16.mxu1 %v8149_v32  ;;  %v8221_v10 = vld [vmem:[#allocation5 + $0x130c] ss:$16 sps:$4 sm:$0xff]   ;;  %v8219_v6 = vld [vmem:[#allocation5 + $0x1308] ss:$16 sps:$4 sm:$0xff]  }
 0x2e5   :  { %v8224_v11 = vld [vmem:[#allocation5 + $0x14ec] ss:$16 sps:$4 sm:$0xff]   ;;  %v8222_v29 = vld [vmem:[#allocation5 + $0x14e8] ss:$16 sps:$4 sm:$0xff]  }
 0x2e6   :  { %5620 = vmatpush1.bf16.msra.mxu0 %v8144_v12  ;;  %v8227_v27 = vld [vmem:[#allocation5 + $0x16ec] ss:$16 sps:$4 sm:$0xff]   ;;  %v8225_v32 = vld [vmem:[#allocation5 + $0x16e8] ss:$16 sps:$4 sm:$0xff]  }
 0x2e7   :  { %5661 = vmatpush1.bf16.msra.mxu1 %v8147_v17  ;;  %5621 = vmatprep.subr.bf16.mxu0 %v8152_v18  ;;  %v8230_v12 = vld [vmem:[#allocation5 + $0x14cc] ss:$16 sps:$4 sm:$0xff]  }
 0x2e8   :  { %5662 = vmatprep.subr.bf16.mxu1 %v8155_v15  ;;  %v8233_v17 = vld [vmem:[#allocation5 + $0x16cc] ss:$16 sps:$4 sm:$0xff]  }
 0x2ea   :  { %5622 = vmatpush1.bf16.msra.mxu0 %v8150_v16 }
 0x2eb   :  { %5663 = vmatpush1.bf16.msra.mxu1 %v8153_v19  ;;  %5623 = vmatprep.subr.bf16.mxu0 %v8158_v23  ;;  %v8228_v19 = vld [vmem:[#allocation5 + $0x14c8] ss:$16 sps:$4 sm:$0xff]  }
 0x2ec   :  { %5664 = vmatprep.subr.bf16.mxu1 %v8161_v24  ;;  %v8231_v23 = vld [vmem:[#allocation5 + $0x16c8] ss:$16 sps:$4 sm:$0xff]  }
 0x2ee   :  { %5624 = vmatpush1.bf16.msra.mxu0 %v8156_v25 }
 0x2ef   :  { %5665 = vmatpush1.bf16.msra.mxu1 %v8159_v8  ;;  %5625 = vmatprep.subr.bf16.mxu0 %v8164_v9  ;;  %v8236_v8 = vld [vmem:[#allocation5 + $0x14ac] ss:$16 sps:$4 sm:$0xff]  }
 0x2f0   :  { %5666 = vmatprep.subr.bf16.mxu1 %v8167_v28  ;;  %v8239_v9 = vld [vmem:[#allocation5 + $0x16ac] ss:$16 sps:$4 sm:$0xff]  }
 0x2f2   :  { %5626 = vmatpush1.bf16.msra.mxu0 %v8162_v30 }
 0x2f3   :  { %5667 = vmatpush1.bf16.msra.mxu1 %v8165_v33  ;;  %5627 = vmatprep.subr.bf16.mxu0 %v8170_v31  ;;  %v8234_v33 = vld [vmem:[#allocation5 + $0x14a8] ss:$16 sps:$4 sm:$0xff]  }
 0x2f4   :  { %5668 = vmatprep.subr.bf16.mxu1 %v8173_v35  ;;  %v8237_v31 = vld [vmem:[#allocation5 + $0x16a8] ss:$16 sps:$4 sm:$0xff]  }
 0x2f6   :  { %5628 = vmatpush1.bf16.msra.mxu0 %v8168_v26 }
 0x2f7   :  { %5669 = vmatpush1.bf16.msra.mxu1 %v8171_v40  ;;  %5629 = vmatprep.subr.bf16.mxu0 %v8176_v42  ;;  %v8242_v40 = vld [vmem:[#allocation5 + $0x148c] ss:$16 sps:$4 sm:$0xff]  }
 0x2f8   :  { %5670 = vmatprep.subr.bf16.mxu1 %v8179_v43  ;;  %v8245_v42 = vld [vmem:[#allocation5 + $0x168c] ss:$16 sps:$4 sm:$0xff]  }
 0x2f9   :  { %v8251_v43 = vld [vmem:[#allocation5 + $0x166c] ss:$16 sps:$4 sm:$0xff]  }
 0x2fa   :  { %5630 = vmatpush2.bf16.msra.mxu0 %v8174_v36  ;;  %v8246_v36 = vld [vmem:[#allocation5 + $0x1468] ss:$16 sps:$4 sm:$0xff]  }
 0x2fb   :  { %5671 = vmatpush2.bf16.msra.mxu1 %v8177_v39  ;;  %5631 = vmatprep.subr.bf16.mxu0 %v8182_v41  ;;  %v8249_v39 = vld [vmem:[#allocation5 + $0x1668] ss:$16 sps:$4 sm:$0xff]   ;;  %v8254_v41 = vld [vmem:[#allocation5 + $0x144c] ss:$16 sps:$4 sm:$0xff]  }
 0x2fc   :  { %5672 = vmatprep.subr.bf16.mxu1 %v8185_v38  ;;  %v8257_v38 = vld [vmem:[#allocation5 + $0x164c] ss:$16 sps:$4 sm:$0xff]  }
 0x2fe   :  { %5632 = vmatpush2.bf16.msra.mxu0 %v8180_v34  ;;  %v8252_v34 = vld [vmem:[#allocation5 + $0x1448] ss:$16 sps:$4 sm:$0xff]  }
 0x2ff   :  { %5673 = vmatpush2.bf16.msra.mxu1 %v8183_v44  ;;  %5633 = vmatprep.subr.bf16.mxu0 %v8188_v22  ;;  %v8255_v44 = vld [vmem:[#allocation5 + $0x1648] ss:$16 sps:$4 sm:$0xff]   ;;  %v8260_v22 = vld [vmem:[#allocation5 + $0x142c] ss:$16 sps:$4 sm:$0xff]  }
 0x300   :  { %5674 = vmatprep.subr.bf16.mxu1 %v8191_v48  ;;  %v8263_v48 = vld [vmem:[#allocation5 + $0x162c] ss:$16 sps:$4 sm:$0xff]  }
 0x302   :  { %5634 = vmatpush2.bf16.msra.mxu0 %v8186_v50  ;;  %v8258_v50 = vld [vmem:[#allocation5 + $0x1428] ss:$16 sps:$4 sm:$0xff]  }
 0x303   :  { %5675 = vmatpush2.bf16.msra.mxu1 %v8189_v49  ;;  %5635 = vmatprep.subr.bf16.mxu0 %v8194_v52  ;;  %v8261_v49 = vld [vmem:[#allocation5 + $0x1628] ss:$16 sps:$4 sm:$0xff]   ;;  %v8266_v52 = vld [vmem:[#allocation5 + $0x140c] ss:$16 sps:$4 sm:$0xff]  }
 0x304   :  { %5676 = vmatprep.subr.bf16.mxu1 %v8197_v45  ;;  %v8269_v45 = vld [vmem:[#allocation5 + $0x160c] ss:$16 sps:$4 sm:$0xff]  }
 0x306   :  { %5636 = vmatpush2.bf16.msra.mxu0 %v8192_v46  ;;  %v8264_v46 = vld [vmem:[#allocation5 + $0x1408] ss:$16 sps:$4 sm:$0xff]  }
 0x307   :  { %5677 = vmatpush2.bf16.msra.mxu1 %v8195_v47  ;;  %5637 = vmatprep.subr.bf16.mxu0 %v8200_v51  ;;  %v8267_v47 = vld [vmem:[#allocation5 + $0x1608] ss:$16 sps:$4 sm:$0xff]   ;;  %v8272_v51 = vld [vmem:[#allocation5 + $0x15ec] ss:$16 sps:$4 sm:$0xff]  }
 0x308   :  { %5678 = vmatprep.subr.bf16.mxu1 %v8203_v53  ;;  %v8275_v53 = vld [vmem:[#allocation5 + $0x17ec] ss:$16 sps:$4 sm:$0xff]  }
 0x30a   :  { %5638 = vmatpush2.bf16.msra.mxu0 %v8198_v54  ;;  %v8270_v54 = vld [vmem:[#allocation5 + $0x15e8] ss:$16 sps:$4 sm:$0xff]  }
 0x30b   :  { %5679 = vmatpush2.bf16.msra.mxu1 %v8201_v55  ;;  %5639 = vmatprep.subr.bf16.mxu0 %v8206_v56  ;;  %v8273_v55 = vld [vmem:[#allocation5 + $0x17e8] ss:$16 sps:$4 sm:$0xff]   ;;  %v8278_v56 = vld [vmem:[#allocation5 + $0x15cc] ss:$16 sps:$4 sm:$0xff]  }
 0x30c   :  { %5680 = vmatprep.subr.bf16.mxu1 %v8209_v57  ;;  %v8281_v57 = vld [vmem:[#allocation5 + $0x17cc] ss:$16 sps:$4 sm:$0xff]  }
 0x30e   :  { %5640 = vmatpush2.bf16.msra.mxu0 %v8204_v58  ;;  %v8276_v58 = vld [vmem:[#allocation5 + $0x15c8] ss:$16 sps:$4 sm:$0xff]  }
 0x30f   :  { %5681 = vmatpush2.bf16.msra.mxu1 %v8207_v59  ;;  %5641 = vmatprep.subr.bf16.mxu0 %v8212_v61  ;;  %v8279_v59 = vld [vmem:[#allocation5 + $0x17c8] ss:$16 sps:$4 sm:$0xff]   ;;  %v8284_v61 = vld [vmem:[#allocation5 + $0x15ac] ss:$16 sps:$4 sm:$0xff]  }
 0x310   :  { %5682 = vmatprep.subr.bf16.mxu1 %v8215_v20  ;;  %v8287_v20 = vld [vmem:[#allocation5 + $0x17ac] ss:$16 sps:$4 sm:$0xff]  }
 0x312   :  { %5642 = vmatpush2.bf16.msra.mxu0 %v8210_v21  ;;  %v8282_v21 = vld [vmem:[#allocation5 + $0x15a8] ss:$16 sps:$4 sm:$0xff]  }
 0x313   :  { %5683 = vmatpush2.bf16.msra.mxu1 %v8213_v63  ;;  %5643 = vmatprep.subr.bf16.mxu0 %v8218_v7  ;;  %v8285_v63 = vld [vmem:[#allocation5 + $0x17a8] ss:$16 sps:$4 sm:$0xff]   ;;  %v8290_v7 = vld [vmem:[#allocation5 + $0x158c] ss:$16 sps:$4 sm:$0xff]  }
 0x314   :  { %5684 = vmatprep.subr.bf16.mxu1 %v8221_v10  ;;  %v8293_v10 = vld [vmem:[#allocation5 + $0x178c] ss:$16 sps:$4 sm:$0xff]  }
 0x316   :  { %5644 = vmatpush2.bf16.msra.mxu0 %v8216_v5  ;;  %v8288_v5 = vld [vmem:[#allocation5 + $0x1588] ss:$16 sps:$4 sm:$0xff]  }
 0x317   :  { %5685 = vmatpush2.bf16.msra.mxu1 %v8219_v6  ;;  %5695 = vmatprep.subr.bf16.mxu0 %v8224_v11  ;;  %v8291_v6 = vld [vmem:[#allocation5 + $0x1788] ss:$16 sps:$4 sm:$0xff]   ;;  %v8296_v11 = vld [vmem:[#allocation5 + $0x156c] ss:$16 sps:$4 sm:$0xff]  }
 0x318   :  { %5736 = vmatprep.subr.bf16.mxu1 %v8227_v27  ;;  %v8299_v27 = vld [vmem:[#allocation5 + $0x176c] ss:$16 sps:$4 sm:$0xff]  }
 0x319   :  { %v5401_v18 = vpop.f32.mrf.mxu0  ;;  %5646 = vmatmul.mubr.bf16.vlgmr.msra.gmra.mxu0 %v8670_v3 }
 0x31a   :  { %v5442_v15 = vpop.f32.mrf.mxu1  ;;  %5687 = vmatmul.mubr.bf16.vlgmr.msra.gmra.mxu1 %v8672_v4  ;;  %v5402_v16 = vadd.f32 %v5401_v18, %v8736_v62  ;;  %5696 = vmatpush1.bf16.msra.mxu0 %v8222_v29  ;;  %v8294_v29 = vld [vmem:[#allocation5 + $0x1568] ss:$16 sps:$4 sm:$0xff]  }
 0x31b   :  { %5737 = vmatpush1.bf16.msra.mxu1 %v8225_v32  ;;  %v5403_v24 = vpop.f32.mrf.mxu0  ;;  %5697 = vmatprep.subr.bf16.mxu0 %v8230_v12  ;;  %v8297_v32 = vld [vmem:[#allocation5 + $0x1768] ss:$16 sps:$4 sm:$0xff]   ;;  %v8302_v12 = vld [vmem:[#allocation5 + $0x154c] ss:$16 sps:$4 sm:$0xff]  }
 0x31c   :  { %v5444_v25 = vpop.f32.mrf.mxu1  ;;  %5738 = vmatprep.subr.bf16.mxu1 %v8233_v17  ;;  %v8745_v28 = vadd.f32 %v5442_v15, %v5402_v16  ;;  %v5404_v30 = vadd.f32 %v5403_v24, %v8740_v0  ;;  %5727 = vmatprep.mubr.bf16.mxu0 %v8674_v13  ;;  %v8240_v0 = vld [vmem:[#allocation5 + $0x1488] ss:$16 sps:$4 sm:$0xff]   ;;  %v8305_v17 = vld [vmem:[#allocation5 + $0x174c] ss:$16 sps:$4 sm:$0xff]  }
 0x31d   :  { %5768 = vmatprep.mubr.bf16.mxu1 %v8676_v14  ;;  %v5405_v3 = vpop.f32.mrf.mxu0  ;;  %v8243_v13 = vld [vmem:[#allocation5 + $0x1688] ss:$16 sps:$4 sm:$0xff]   ;;  %v8248_v14 = vld [vmem:[#allocation5 + $0x146c] ss:$16 sps:$4 sm:$0xff]  }
 0x31e   :  { %v5446_v4 = vpop.f32.mrf.mxu1  ;;  %v8750_v62 = vadd.f32 %v5444_v25, %v5404_v30  ;;  %5698 = vmatpush1.bf16.msra.mxu0 %v8228_v19  ;;  %v8300_v18 = vld [vmem:[#allocation5 + $0x1548] ss:$16 sps:$4 sm:$0xff]   ;;  %v8308_v16 = vld [vmem:[#allocation5 + $0x152c] ss:$16 sps:$4 sm:$0xff]  }
 0x31f   :  { %5739 = vmatpush1.bf16.msra.mxu1 %v8231_v23  ;;  %v5406_v35 = vpop.f32.mrf.mxu0  ;;  %5699 = vmatprep.subr.bf16.mxu0 %v8236_v8  ;;  %v8303_v15 = vld [vmem:[#allocation5 + $0x1748] ss:$16 sps:$4 sm:$0xff]   ;;  %v8311_v19 = vld [vmem:[#allocation5 + $0x172c] ss:$16 sps:$4 sm:$0xff]   ;;  %v5778_v4 = vmax.f32 %v8730_v60, 0.0 }
 0x320   :  { %v5447_v26 = vpop.f32.mrf.mxu1  ;;  %5740 = vmatprep.subr.bf16.mxu1 %v8239_v9  ;;  %v8306_v23 = vld [vmem:[#allocation5 + $0x1528] ss:$16 sps:$4 sm:$0xff]   ;;  %v8314_v25 = vld [vmem:[#allocation5 + $0x150c] ss:$16 sps:$4 sm:$0xff]  }
 0x321   :  { %v8309_v24 = vld [vmem:[#allocation5 + $0x1728] ss:$16 sps:$4 sm:$0xff]   ;;  %v8317_v8 = vld [vmem:[#allocation5 + $0x170c] ss:$16 sps:$4 sm:$0xff]   ;;  %v5782_v35 = vpack.c.bf16 %v5778_v4, %v5778_v4 }
 0x322   :  { %5700 = vmatpush1.bf16.msra.mxu0 %v8234_v33  ;;  %v8312_v9 = vld [vmem:[#allocation5 + $0x1508] ss:$16 sps:$4 sm:$0xff]   ;;  %v8318_v3 = vld [vmem:[#allocation8 + $0x78] sm:$0xff]   ;;  %v8322_v60 = vld [vmem:[#allocation8 + $0x68] sm:$0xff]  }
 0x323   :  { %5741 = vmatpush1.bf16.msra.mxu1 %v8237_v31  ;;  %5701 = vmatprep.subr.bf16.mxu0 %v8242_v40  ;;  %v8315_v30 = vld [vmem:[#allocation5 + $0x1708] ss:$16 sps:$4 sm:$0xff]   ;;  %v8319_v33 = vld [vmem:[#allocation8 + $0x38] sm:$0xff]  }
 0x324   :  { %5742 = vmatprep.subr.bf16.mxu1 %v8245_v42  ;;  %v8320_v31 = vld [vmem:[#allocation8 + $0x70] sm:$0xff]   ;;  %v8354_v4 = vld [vmem:[#allocation11 + $0x18] sm:$0xff]  }
 0x326   :  { %5702 = vmatpush1.bf16.msra.mxu0 %v8240_v0  ;;  %v8321_v0 = vld [vmem:[#allocation8 + $0x30] sm:$0xff]  }
 0x327   :  { %5743 = vmatpush1.bf16.msra.mxu1 %v8243_v13  ;;  %5703 = vmatprep.subr.bf16.mxu0 %v8248_v14 }
 0x328   :  { %5744 = vmatprep.subr.bf16.mxu1 %v8251_v43 }
 0x32a   :  { %5704 = vmatpush1.bf16.msra.mxu0 %v8246_v36 }
 0x32b   :  { %5745 = vmatpush1.bf16.msra.mxu1 %v8249_v39  ;;  %5705 = vmatprep.subr.bf16.mxu0 %v8254_v41 }
 0x32c   :  { %5746 = vmatprep.subr.bf16.mxu1 %v8257_v38 }
 0x32e   :  { %5706 = vmatpush1.bf16.msra.mxu0 %v8252_v34  ;;  %v8323_v34 = vld [vmem:[#allocation8 + $0x28] sm:$0xff]  }
 0x32f   :  { %5747 = vmatpush1.bf16.msra.mxu1 %v8255_v44  ;;  %5707 = vmatprep.subr.bf16.mxu0 %v8260_v22  ;;  %v8335_v22 = vld [vmem:[#allocation8 + $0xb8] sm:$0xff]  }
 0x330   :  { %5748 = vmatprep.subr.bf16.mxu1 %v8263_v48  ;;  %v8336_v48 = vld [vmem:[#allocation8 + $0xf0] sm:$0xff]  }
 0x332   :  { %5708 = vmatpush1.bf16.msra.mxu0 %v8258_v50  ;;  %v8325_v50 = vld [vmem:[#allocation8 + $0x20] sm:$0xff]  }
 0x333   :  { %5749 = vmatpush1.bf16.msra.mxu1 %v8261_v49  ;;  %5709 = vmatprep.subr.bf16.mxu0 %v8266_v52  ;;  %v8337_v49 = vld [vmem:[#allocation8 + $0xb0] sm:$0xff]   ;;  %v8326_v52 = vld [vmem:[#allocation8 + $0x58] sm:$0xff]  }
 0x334   :  { %5750 = vmatprep.subr.bf16.mxu1 %v8269_v45  ;;  %v8327_v45 = vld [vmem:[#allocation8 + $0x18] sm:$0xff]  }
 0x336   :  { %5710 = vmatpush1.bf16.msra.mxu0 %v8264_v46  ;;  %v8339_v46 = vld [vmem:[#allocation8 + $0xa8] sm:$0xff]  }
 0x337   :  { %5751 = vmatpush1.bf16.msra.mxu1 %v8267_v47  ;;  %5711 = vmatprep.subr.bf16.mxu0 %v8272_v51  ;;  %v8328_v47 = vld [vmem:[#allocation8 + $0x50] sm:$0xff]   ;;  %v8340_v51 = vld [vmem:[#allocation8 + $0xe0] sm:$0xff]  }
 0x338   :  { %5752 = vmatprep.subr.bf16.mxu1 %v8275_v53  ;;  %v8329_v53 = vld [vmem:[#allocation8 + $0x10] sm:$0xff]  }
 0x33a   :  { %5712 = vmatpush2.bf16.msra.mxu0 %v8270_v54  ;;  %v8341_v54 = vld [vmem:[#allocation8 + $0xa0] sm:$0xff]  }
 0x33b   :  { %5753 = vmatpush2.bf16.msra.mxu1 %v8273_v55  ;;  %5713 = vmatprep.subr.bf16.mxu0 %v8278_v56  ;;  %v8330_v55 = vld [vmem:[#allocation8 + $0x48] sm:$0xff]   ;;  %v8342_v56 = vld [vmem:[#allocation8 + $0xd8] sm:$0xff]  }
 0x33c   :  { %5754 = vmatprep.subr.bf16.mxu1 %v8281_v57  ;;  %v8331_v57 = vld [vmem:[#allocation8 + $0x8] sm:$0xff]  }
 0x33e   :  { %5714 = vmatpush2.bf16.msra.mxu0 %v8276_v58  ;;  %v8343_v58 = vld [vmem:[#allocation8 + $0x98] sm:$0xff]  }
 0x33f   :  { %5755 = vmatpush2.bf16.msra.mxu1 %v8279_v59  ;;  %5715 = vmatprep.subr.bf16.mxu0 %v8284_v61  ;;  %v8332_v59 = vld [vmem:[#allocation8 + $0x40] sm:$0xff]  }
 0x340   :  { %5756 = vmatprep.subr.bf16.mxu1 %v8287_v20  ;;  %v8333_v61 = vld [vmem:[#allocation8] sm:$0xff]   ;;  %v5777_v20 = vmax.f32 %v8725_v37, 0.0 }
 0x342   :  { %5716 = vmatpush2.bf16.msra.mxu0 %v8282_v21  ;;  %v5781_v21 = vpack.c.bf16 %v5777_v20, %v5777_v20 }
 0x343   :  { %5757 = vmatpush2.bf16.msra.mxu1 %v8285_v63  ;;  %5717 = vmatprep.subr.bf16.mxu0 %v8290_v7  ;;  %v8344_v63 = vld [vmem:[#allocation8 + $0xd0] sm:$0xff]  }
 0x344   :  { %5758 = vmatprep.subr.bf16.mxu1 %v8293_v10  ;;  %v8345_v7 = vld [vmem:[#allocation8 + $0x90] sm:$0xff]  }
 0x346   :  { %5718 = vmatpush2.bf16.msra.mxu0 %v8288_v5 }
 0x347   :  { %5759 = vmatpush2.bf16.msra.mxu1 %v8291_v6  ;;  %5719 = vmatprep.subr.bf16.mxu0 %v8296_v11 }
 0x348   :  { %5760 = vmatprep.subr.bf16.mxu1 %v8299_v27 }
 0x34a   :  { %5720 = vmatpush2.bf16.msra.mxu0 %v8294_v29  ;;  %v8346_v29 = vld [vmem:[#allocation8 + $0xc8] sm:$0xff]  }
 0x34b   :  { %5761 = vmatpush2.bf16.msra.mxu1 %v8297_v32  ;;  %5721 = vmatprep.subr.bf16.mxu0 %v8302_v12 }
 0x34c   :  { %5762 = vmatprep.subr.bf16.mxu1 %v8305_v17  ;;  %v8347_v17 = vld [vmem:[#allocation8 + $0x88] sm:$0xff]  }
 0x34e   :  { %5722 = vmatpush2.bf16.msra.mxu0 %v8300_v18 }
 0x34f   :  { %5763 = vmatpush2.bf16.msra.mxu1 %v8303_v15  ;;  %5723 = vmatprep.subr.bf16.mxu0 %v8308_v16 }
 0x350   :  { %5764 = vmatprep.subr.bf16.mxu1 %v8311_v19 }
 0x352   :  { %5724 = vmatpush2.bf16.msra.mxu0 %v8306_v23  ;;  %v8348_v23 = vld [vmem:[#allocation8 + $0xc0] sm:$0xff]  }
 0x353   :  { %5765 = vmatpush2.bf16.msra.mxu1 %v8309_v24  ;;  %5725 = vmatprep.subr.bf16.mxu0 %v8314_v25  ;;  %v8349_v24 = vld [vmem:[#allocation8 + $0x80] sm:$0xff]  }
 0x354   :  { %5766 = vmatprep.subr.bf16.mxu1 %v8317_v8  ;;  %v8350_v25 = vld [vmem:[#allocation11 + $0x38] sm:$0xff]   ;;  %v8544_v8 = vmov 0.0  }
 0x356   :  { %5726 = vmatpush2.bf16.msra.mxu0 %v8312_v9  ;;  %v8351_v9 = vld [vmem:[#allocation11 + $0x30] sm:$0xff]  }
 0x357   :  { %5767 = vmatpush2.bf16.msra.mxu1 %v8315_v30  ;;  %7079 = vmatprep.subr.bf16.mxu0 %v8318_v3  ;;  %v8352_v30 = vld [vmem:[#allocation11 + $0x28] sm:$0xff]   ;;  %v8353_v3 = vld [vmem:[#allocation11 + $0x20] sm:$0xff]  }
 0x359   :  { %v5483_v26 = vpop.f32.mrf.mxu0  ;;  %5728 = vmatmul.mubr.bf16.vlgmr.msra.gmra.mxu0 %v8688_v1  ;;  %v8324_v1 = vld [vmem:[#allocation8 + $0x60] sm:$0xff]  }
 0x35a   :  { %v5524_v40 = vpop.f32.mrf.mxu1  ;;  %5769 = vmatmul.mubr.bf16.vlgmr.msra.gmra.mxu1 %v8690_v2  ;;  %v5484_v42 = vadd.f32 %v5483_v26, %v8745_v28  ;;  %7080 = vmatpush3.bf16.msra.mxu0 %v8319_v33  ;;  %v8334_v28 = vld [vmem:[#allocation8 + $0xf8] sm:$0xff]  }
 0x35b   :  { %6080 = vmatprep.mubr.bf16.mxu0 %v5782_v35  ;;  %v5485_v13 = vpop.f32.mrf.mxu0  ;;  %7081 = vmatprep.subr.bf16.mxu0 %v8320_v31 }
 0x35c   :  { %v5526_v14 = vpop.f32.mrf.mxu1  ;;  %v5525_v43 = vadd.f32 %v5524_v40, %v5484_v42  ;;  %v5486_v36 = vadd.f32 %v5485_v13, %v8750_v62  ;;  %7101 = vmatprep.subr.bf16.mxu1 %v8334_v28  ;;  %v8338_v62 = vld [vmem:[#allocation8 + $0xe8] sm:$0xff]  }
 0x35d   :  { %v5487_v39 = vpop.f32.mrf.mxu0  ;;  %7102 = vmatpush3.bf16.msra.mxu1 %v8335_v22 }
 0x35e   :  { %v5528_v41 = vpop.f32.mrf.mxu1  ;;  %v5527_v38 = vadd.f32 %v5526_v14, %v5486_v36  ;;  %7082 = vmatpush3.bf16.msra.mxu0 %v8321_v0  ;;  %7103 = vmatprep.subr.bf16.mxu1 %v8336_v48 }
 0x35f   :  { %v5488_v44 = vpop.f32.mrf.mxu0  ;;  %7083 = vmatprep.subr.bf16.mxu0 %v8322_v60 }
 0x360   :  { %v5529_v2 = vpop.f32.mrf.mxu1 }
 0x361   :  { %7104 = vmatpush3.bf16.msra.mxu1 %v8337_v49 }
 0x362   :  { %7084 = vmatpush3.bf16.msra.mxu0 %v8323_v34  ;;  %7105 = vmatprep.subr.bf16.mxu1 %v8338_v62 }
 0x363   :  { %7085 = vmatprep.subr.bf16.mxu0 %v8324_v1 }
 0x365   :  { %7106 = vmatpush3.bf16.msra.mxu1 %v8339_v46 }
 0x366   :  { %7086 = vmatpush3.bf16.msra.mxu0 %v8325_v50  ;;  %7107 = vmatprep.subr.bf16.mxu1 %v8340_v51 }
 0x367   :  { %7087 = vmatprep.subr.bf16.mxu0 %v8326_v52 }
 0x369   :  { %7108 = vmatpush3.bf16.msra.mxu1 %v8341_v54 }
 0x36a   :  { %7088 = vmatpush3.bf16.msra.mxu0 %v8327_v45  ;;  %7109 = vmatprep.subr.bf16.mxu1 %v8342_v56  ;;  %v8355_v56 = vld [vmem:[#allocation11 + $0x10] sm:$0xff]  }
 0x36b   :  { %7089 = vmatprep.subr.bf16.mxu0 %v8328_v47 }
 0x36d   :  { %7110 = vmatpush3.bf16.msra.mxu1 %v8343_v58  ;;  %v8357_v58 = vld [vmem:[#allocation11] sm:$0xff]  }
 0x36e   :  { %7090 = vmatpush3.bf16.msra.mxu0 %v8329_v53  ;;  %7111 = vmatprep.subr.bf16.mxu1 %v8344_v63 }
 0x36f   :  { %7091 = vmatprep.subr.bf16.mxu0 %v8330_v55 }
 0x371   :  { %7112 = vmatpush3.bf16.msra.mxu1 %v8345_v7 }
 0x372   :  { %7092 = vmatpush3.bf16.msra.mxu0 %v8331_v57  ;;  %7113 = vmatprep.subr.bf16.mxu1 %v8346_v29  ;;  %v8356_v57 = vld [vmem:[#allocation11 + $0x8] sm:$0xff]  }
 0x373   :  { %7093 = vmatprep.subr.bf16.mxu0 %v8332_v59  ;;  %v7037_v59 = vld [vmem:[#allocation10] ss:$0 sm:$0xff] }
 0x375   :  { %7114 = vmatpush3.bf16.msra.mxu1 %v8347_v17 }
 0x376   :  { %7094 = vmatpush3.bf16.msra.mxu0 %v8333_v61  ;;  %7115 = vmatprep.subr.bf16.mxu1 %v8348_v23 }
 0x377   :  { %7132 = vmatprep.subr.bf16.mxu0 %v8544_v8 }
 0x379   :  { %6081 = vmatmul.mubr.bf16.vlgmr.msra.gmra.mxu0 %v5781_v21  ;;  %7116 = vmatpush3.bf16.msra.mxu1 %v8349_v24 }
 0x37a   :  { %7133 = vmatpush3.bf16.msra.mxu0 %v8350_v25  ;;  %7148 = vmatprep.mubr.msk.bf16.mxu0 %vm8545_vm0, %v8544_v8 }
 0x37b   :  { %7134 = vmatprep.subr.bf16.mxu0 %v8544_v8 }
 0x37e   :  { %7135 = vmatpush3.bf16.msra.mxu0 %v8351_v9 }
 0x37f   :  { %7136 = vmatprep.subr.bf16.mxu0 %v8544_v8 }
 0x382   :  { %7137 = vmatpush3.bf16.msra.mxu0 %v8352_v30 }
 0x383   :  { %7138 = vmatprep.subr.bf16.mxu0 %v8544_v8 }
 0x386   :  { %7139 = vmatpush3.bf16.msra.mxu0 %v8353_v3 }
 0x387   :  { %7140 = vmatprep.subr.bf16.mxu0 %v8544_v8 }
 0x38a   :  { %7141 = vmatpush3.bf16.msra.mxu0 %v8354_v4 }
 0x38b   :  { %7142 = vmatprep.subr.bf16.mxu0 %v8544_v8 }
 0x38e   :  { %7143 = vmatpush3.bf16.msra.mxu0 %v8355_v56 }
 0x38f   :  { %7144 = vmatprep.subr.bf16.mxu0 %v8544_v8 }
 0x392   :  { %7145 = vmatpush3.bf16.msra.mxu0 %v8356_v57 }
 0x393   :  { %7146 = vmatprep.subr.bf16.mxu0 %v8544_v8 }
 0x396   :  { %7147 = vmatpush3.bf16.msra.mxu0 %v8357_v58 }
 0x399   :  { %v5565_v10 = vpop.f32.mrf.mxu0 }
 0x39a   :  { %v5606_v5 = vpop.f32.mrf.mxu1  ;;  %v5566_v6 = vadd.f32 %v5565_v10, %v5525_v43 }
 0x39b   :  { %v5567_v11 = vpop.f32.mrf.mxu0 }
 0x39c   :  { %v5608_v27 = vpop.f32.mrf.mxu1  ;;  %v5607_v32 = vadd.f32 %v5606_v5, %v5566_v6  ;;  %v5568_v12 = vadd.f32 %v5567_v11, %v5527_v38 }
 0x39d   :  { %v5569_v18 = vpop.f32.mrf.mxu0 }
 0x39e   :  { %v5610_v15 = vpop.f32.mrf.mxu1  ;;  %v5609_v37 = vadd.f32 %v5608_v27, %v5568_v12  ;;  %v7070_v27 = vld [vmem:[#allocation13] ss:$0 sm:$0xff] }
 0x39f   :  { %v5570_v16 = vpop.f32.mrf.mxu0 }
 0x3a0   :  { %v5611_v19 = vpop.f32.mrf.mxu1 }
 0x3d9   :  { %v5647_v33 = vpop.f32.mrf.mxu0 }
 0x3da   :  { %v5688_v31 = vpop.f32.mrf.mxu1  ;;  %v5648_v35 = vadd.f32 %v5647_v33, %v5607_v32 }
 0x3db   :  { %v5649_v26 = vpop.f32.mrf.mxu0 }
 0x3dc   :  { %v5690_v40 = vpop.f32.mrf.mxu1  ;;  %v5689_v42 = vadd.f32 %v5688_v31, %v5648_v35  ;;  %v5650_v43 = vadd.f32 %v5649_v26, %v5609_v37 }
 0x3dd   :  { %v5651_v0 = vpop.f32.mrf.mxu0 }
 0x3de   :  { %v5692_v13 = vpop.f32.mrf.mxu1  ;;  %v5691_v41 = vadd.f32 %v5690_v40, %v5650_v43 }
 0x3df   :  { %v5652_v14 = vpop.f32.mrf.mxu0 }
 0x3e0   :  { %v5693_v60 = vpop.f32.mrf.mxu1 }
 0x419   :  { %v5729_v36 = vpop.f32.mrf.mxu0 }
 0x41a   :  { %v5770_v39 = vpop.f32.mrf.mxu1  ;;  %v5730_v38 = vadd.f32 %v5729_v36, %v5689_v42 }
 0x41b   :  { %v5731_v34 = vpop.f32.mrf.mxu0 }
 0x41c   :  { %v5772_v1 = vpop.f32.mrf.mxu1  ;;  %v5771_v44 = vadd.f32 %v5770_v39, %v5730_v38  ;;  %v5732_v2 = vadd.f32 %v5731_v34, %v5691_v41 }
 0x41d   :  { %v5733_v28 = vpop.f32.mrf.mxu0 }
 0x41e   :  { %v5774_v22 = vpop.f32.mrf.mxu1  ;;  %v5773_v48 = vadd.f32 %v5772_v1, %v5732_v2  ;;  %v5779_v50 = vmax.f32 %v5771_v44, 0.0 }
 0x41f   :  { %v5734_v49 = vpop.f32.mrf.mxu0 }
 0x420   :  { %v5775_v52 = vpop.f32.mrf.mxu1  ;;  %v5780_v62 = vmax.f32 %v5773_v48, 0.0  ;;  %v5783_v46 = vpack.c.bf16 %v5779_v50, %v5779_v50 }
 0x422   :  { %v5784_v45 = vpack.c.bf16 %v5780_v62, %v5780_v62 }
 0x424   :  { %6120 = vmatprep.mubr.bf16.mxu1 %v5784_v45 }
 0x425   :  { %6121 = vmatmul.mubr.bf16.vlgmr.msra.gmra.mxu1 %v5783_v46 }
 0x439   :  { %v7095_v47 = vpop.f32.mrf.mxu0 }
 0x43b   :  { %v7096_v51 = vpop.f32.mrf.mxu0 }
 0x43c   :  { %v7097_v53 = vadd.f32 %v7096_v51, %v7095_v47 }
 0x43d   :  { %v7098_v54 = vpop.f32.mrf.mxu0 }
 0x43e   :  { %v6083_v21 = vadd.f32 %v7097_v53, %v7037_v59 }
 0x43f   :  { %v7099_v55 = vpop.f32.mrf.mxu0 }
 0x4e5   :  { %v7117_v61 = vpop.f32.mrf.mxu1 }
 0x4e7   :  { %v7118_v20 = vpop.f32.mrf.mxu1 }
 0x4e8   :  { %v7119_v63 = vadd.f32 %v7118_v20, %v7117_v61 }
 0x4e9   :  { %v7120_v7 = vpop.f32.mrf.mxu1 }
 0x4ea   :  { %v6123_v10 = vadd.f32 %v7119_v63, %v6083_v21 }
 0x4eb   :  { %v7121_v5 = vpop.f32.mrf.mxu1 }
 0x4ec   :  { %v6128_v6 = vmax.f32 %v6123_v10, 0.0 }
 0x4ee   :  { %v6129_v11 = vpack.c.bf16 %v6128_v6, %v6128_v6 }
 0x4f0   :  { %7149 = vmatmul.mubr.bf16.vlgmr.msra.gmra.mxu0 %v6129_v11 }
 0x5b0   :  { %v6235_v29 = vpop.f32.mrf.mxu0 }
 0x5b1   :  { %v6236_v32 = vadd.f32 %v7070_v27, %v6235_v29 }
 0x5b2   :  { %v7150_v12 = vpop.f32.mrf.mxu0 }
 0x5b3   :  { %6241 = vmax.xlane.f32.xlu0 %v6236_v32 }
 0x5b4   :  { %v6238_v17 = vpop.f32.mrf.mxu0 }
 0x5b6   :  { %v7151_v18 = vpop.f32.mrf.mxu0 }
 0x63c   :  { %v6242_v15 = vpop.xlane.xlu0 %6241 }
 0x63d   :  { %v6243_v37 = vsub.f32 %v6236_v32, %v6242_v15 }
 0x63f   :  { %v6244_v16 = vmul.f32 1.442695, %v6243_v37 }
 0x641   :  { %8358 = vpow2.f32 %v6244_v16 }
 0x64e   :  { %v8359_v19 = vpop.eup %8358 }
 0x64f   :  { %6246 = vadd.xlane.f32.xlu0 %v8359_v19 }
 0x6d8   :  { %v6247_v23 = vpop.xlane.xlu0 %6246 }
 0x6d9   :  { %8360 = vrcp.f32 %v6247_v23 }
 0x6e6   :  { %v8361_v24 = vpop.eup %8360 }
 0x6e7   :  { %v6249_v25 = vmul.f32 %v8361_v24, %v8359_v19 }
 0x6e9   :  { %6250 = vst [vmem:[#allocation14] sm:$0xff] %v6249_v25 }
 0x6ea   :  { %8514 = shalt.err (!%p8511_p11)
}
 0x6eb   :  { %6260 = dma.vmem_to_hbm [thread:$0]  %s6258_s6, 128, %s8768_s7, [#allocation4]  }
 0x6ec   :  { %8531 = dma.done.wait [#allocation4], 128  }
 0x6ed   :  { %8532 = vsyncadd [#allocation4], 4294967168 }
 0x6ee   :  { %6264 = vsyncpa [#allocation3], 1 }
 0x6ef   :  { %6265 = vsyncpa [#allocation6], 1 }
 0x6f0   :  { %6266 = vsyncpa [#allocation9], 1 }
 0x6f1   :  { %6267 = vsyncpa [#allocation12], 1 }
 0x6f2   :  { %6268 = vsyncpa [#allocation4], 1 }

</bundles_post_ra>
